<compile_context>
chip_gen: v5e
topology: v5e:2x2
jax: 0.10.0
libtpu: 0.0.40
codegen_flags: <defaults>
</compile_context>

<pallas_src>
import functools

import jax
import jax.numpy as jnp
from jax import lax
from jax.experimental import pallas as pl
from jax.experimental.pallas import tpu as pltpu


def _mlp_kernel(x_ref, w1_ref, b1_ref, w2_ref, b2_ref, o_ref, *, precision):
    # x_ref:  [C_in, TN]        activations (channels on sublanes, spatial on lanes)
    # w1_ref: [C_hidden, C_in]  fc1 weight (PyTorch [Co, Ci] orientation)
    # b1_ref: [C_hidden, 1]     fc1 bias (f32)
    # w2_ref: [C_out, C_hidden] fc2 weight
    # b2_ref: [C_out, 1]        fc2 bias (f32)
    # o_ref:  [C_out, TN]
    # fc1: [C_hidden, C_in] @ [C_in, TN] -> f32 accumulator
    h = jnp.dot(w1_ref[...], x_ref[...].astype(w1_ref.dtype),
                preferred_element_type=jnp.float32, precision=precision)
    h = jnp.maximum(h + b1_ref[...], 0.0)          # bias + ReLU in f32
    # dropout(p=0.15): identity in eval/inference mode.

    # fc2: [C_out, C_hidden] @ [C_hidden, TN] -> f32 accumulator
    y = jnp.dot(w2_ref[...], h.astype(w2_ref.dtype),
                preferred_element_type=jnp.float32, precision=precision)
    # Residual: re-read x here (keeps the x tile's live range short at large TN).
    y = y + b2_ref[...] + x_ref[...].astype(jnp.float32)
    o_ref[...] = y.astype(o_ref.dtype)


def _default_tile_n():
    """Generation-aware default spatial tile (multiple of 128)."""
    try:
        info = pltpu.get_tpu_info()
        ver = str(getattr(info, "chip_version", ""))
        if "7" in ver:          # v7x: 3.2 TB/s HBM -> need bigger steps to amortize overhead
            return 8192
    except Exception:
        pass
    return 4096                 # v5e / v6e (and safe fallback)


def mlp_forward(x, w1, b1, w2, b2, *, tile_n=None, compute_dtype=None):
    """Forward pass of MultiLayerPerceptron.

    Args:
      x:  [B, C_in, H, W] or [B, C_in, N]   (C_in = input_dim + 64).  Pass bf16
          activations for the HBM-bandwidth win (output dtype matches x dtype).
      w1: [C_hidden, C_in]   (Conv2d weight squeezed from [Co, Ci, 1, 1])
      b1: [C_hidden]
      w2: [C_out, C_hidden]  (C_out = hidden_dim + 64 == C_in for the residual)
      b2: [C_out]
      tile_n: spatial tile width (multiple of 128); default is generation-aware.
      compute_dtype: MXU operand dtype.  Default: bf16 activations -> bf16
        operands; f32 activations -> f32 operands at Precision.HIGHEST.
        Accumulation/bias/ReLU/residual always f32.

    Returns:
      Tensor with the same shape and dtype as x.
    """
    orig_shape = x.shape
    if x.ndim == 4:
        B, C_in, H, W = x.shape
        x3 = x.reshape(B, C_in, H * W)            # free reshape (contiguous)
    elif x.ndim == 3:
        B, C_in, _ = x.shape
        x3 = x
    else:
        raise ValueError(f"expected 3D or 4D input, got {x.shape}")
    N = x3.shape[-1]

    C_hidden, C_in_w = w1.shape
    C_out = w2.shape[0]
    assert C_in_w == C_in, (C_in_w, C_in)
    assert w2.shape == (C_out, C_hidden)
    assert C_out == C_in, "residual requires fc2 out_channels == in_channels"

    if tile_n is None:
        tile_n = _default_tile_n()
    assert tile_n % 128 == 0, "tile_n must be a multiple of 128"

    # MXU operand dtype policy.
    if compute_dtype is None:
        compute_dtype = jnp.bfloat16 if x3.dtype == jnp.bfloat16 else jnp.float32
    precision = (lax.Precision.HIGHEST if compute_dtype == jnp.float32
                 else lax.Precision.DEFAULT)
    w1c = w1.astype(compute_dtype)
    w2c = w2.astype(compute_dtype)
    b1c = b1.reshape(C_hidden, 1).astype(jnp.float32)
    b2c = b2.reshape(C_out, 1).astype(jnp.float32)

    # Spatial tile: full extent when N is small; otherwise a 128-multiple tile
    # with a cdiv grid.  A tile that does not divide N is legal — the partial
    # last block is write-masked (and its padded input columns only affect
    # masked output columns, since the contraction is over channels).
    tn = N if N <= tile_n else tile_n
    grid = (B, pl.cdiv(N, tn))

    out_dtype = x3.dtype
    x_item = jnp.dtype(x3.dtype).itemsize
    o_item = jnp.dtype(out_dtype).itemsize
    w_item = jnp.dtype(compute_dtype).itemsize

    # Scoped-VMEM budget: double-buffered streaming x/out tiles + resident
    # weights/biases + f32 intermediates (h, y).  Set explicitly because v5e's
    # scoped default is only 16 MiB; cap at 64 MiB (v7x physical VMEM per TC).
    pipeline_bytes = 2 * tn * (C_in * x_item + C_out * o_item)
    weight_bytes = 2 * (w_item * (C_hidden * C_in + C_out * C_hidden)
                        + 4 * (C_hidden + C_out))
    interm_bytes = 4 * tn * (C_hidden + C_out)
    vmem_limit = int(min(64 * 2**20,
                         max(32 * 2**20,
                             2 * (pipeline_bytes + weight_bytes + interm_bytes))))

    # Advisory cost estimate for XLA's scheduler around the custom call.
    flops = 2 * B * N * (C_hidden * C_in + C_out * C_hidden)
    bytes_accessed = (B * N * (C_in * x_item + C_out * o_item)
                      + w_item * (C_hidden * C_in + C_out * C_hidden)
                      + 4 * (C_hidden + C_out))

    kernel = functools.partial(_mlp_kernel, precision=precision)

    out3 = pl.pallas_call(
        kernel,
        out_shape=jax.ShapeDtypeStruct((B, C_out, N), out_dtype),
        grid=grid,
        in_specs=[
            # Activations: stream spatial tiles per batch (batch dim squeezed).
            pl.BlockSpec((None, C_in, tn), lambda b, n: (b, 0, n)),
            # Weights/biases: constant block index -> fetched once, VMEM-resident.
            pl.BlockSpec((C_hidden, C_in), lambda b, n: (0, 0)),
            pl.BlockSpec((C_hidden, 1), lambda b, n: (0, 0)),
            pl.BlockSpec((C_out, C_hidden), lambda b, n: (0, 0)),
            pl.BlockSpec((C_out, 1), lambda b, n: (0, 0)),
        ],
        out_specs=pl.BlockSpec((None, C_out, tn), lambda b, n: (b, 0, n)),
        compiler_params=pltpu.CompilerParams(
            dimension_semantics=("parallel", "parallel"),
            vmem_limit_bytes=vmem_limit),
        cost_estimate=pl.CostEstimate(flops=flops, transcendentals=0,
                                      bytes_accessed=bytes_accessed),
    )(x3, w1c, b1c, w2c, b2c)

    return out3.reshape(orig_shape)


def reference_forward(x, w1, b1, w2, b2):
    """Pure-JAX reference (1x1 conv == channel matmul), same layout/orientation."""
    B, C_in = x.shape[0], x.shape[1]
    x3 = x.reshape(B, C_in, -1).astype(jnp.float32)
    hp = lax.Precision.HIGHEST
    h = jnp.maximum(jnp.einsum("oc,bcn->bon", w1, x3, precision=hp)
                    + b1[None, :, None], 0.0)
    y = jnp.einsum("oc,bcn->bon", w2, h, precision=hp) + b2[None, :, None] + x3
    return y.reshape(x.shape)


if __name__ == "__main__":
    # Module hyperparameters (residual requires fc2 out == fc1 in channels).
    input_dim = 32
    hidden_dim = 32
    C_in = input_dim + 64       # 96
    C_hidden = hidden_dim       # 32
    C_out = hidden_dim + 64     # 96

    B, H, W = 2, 32, 32         # N = 1024

    key = jax.random.PRNGKey(0)
    kx, kw1, kb1, kw2, kb2 = jax.random.split(key, 5)

    x = jax.random.normal(kx, (B, C_in, H, W), dtype=jnp.float32)

    # Deterministic init mimicking PyTorch Conv2d default: U(+/- 1/sqrt(fan_in));
    # kernel_size = (1, 1) so weights squeeze to [out_channels, in_channels].
    bound1 = 1.0 / (C_in ** 0.5)
    w1 = jax.random.uniform(kw1, (C_hidden, C_in), jnp.float32, -bound1, bound1)
    b1 = jax.random.uniform(kb1, (C_hidden,), jnp.float32, -bound1, bound1)
    bound2 = 1.0 / (C_hidden ** 0.5)
    w2 = jax.random.uniform(kw2, (C_out, C_hidden), jnp.float32, -bound2, bound2)
    b2 = jax.random.uniform(kb2, (C_out,), jnp.float32, -bound2, bound2)

    # 1) Default f32 path (single full-extent spatial block here since N <= tile).
    out = jax.block_until_ready(mlp_forward(x, w1, b1, w2, b2))
    ref = reference_forward(x, w1, b1, w2, b2)
    assert out.shape == x.shape and out.dtype == x.dtype
    assert jnp.allclose(out, ref, atol=1e-4, rtol=1e-4), "f32 mismatch vs reference"

    # 2) Tiled path with an unaligned N (exercises the masked partial last block).
    N2 = 1000
    x2 = jax.random.normal(kx, (B, C_in, N2), dtype=jnp.float32)
    out2 = jax.block_until_ready(mlp_forward(x2, w1, b1, w2, b2, tile_n=256))
    ref2 = reference_forward(x2, w1, b1, w2, b2)
    assert out2.shape == x2.shape
    assert jnp.allclose(out2, ref2, atol=1e-4, rtol=1e-4), "tiled mismatch vs reference"

    # 3) bf16 activation-I/O path (the real HBM-bandwidth win): bf16 in/out,
    #    f32 accumulation/bias/ReLU/residual inside the kernel.
    xb = x.astype(jnp.bfloat16)
    outb = jax.block_until_ready(mlp_forward(xb, w1, b1, w2, b2))
    assert outb.shape == x.shape and outb.dtype == jnp.bfloat16
    assert jnp.allclose(outb.astype(jnp.float32), ref, atol=1e-1, rtol=1e-1), \
        "bf16-I/O mismatch vs reference"

    print("KERNEL_OK")
</pallas_src>

<mosaic_0001>
module attributes {stable_mosaic.version = 11 : i64} {
  func.func @_mlp_kernel(%arg0: i32, %arg1: i32, %arg2: memref<1x96x1024xf32, #tpu.memory_space<vmem>>, %arg3: memref<32x96xf32, #tpu.memory_space<vmem>>, %arg4: memref<32x1xf32, #tpu.memory_space<vmem>>, %arg5: memref<96x32xf32, #tpu.memory_space<vmem>>, %arg6: memref<96x1xf32, #tpu.memory_space<vmem>>, %arg7: memref<1x96x1024xf32, #tpu.memory_space<vmem>>) attributes {dimension_semantics = [#tpu.dimension_semantics<parallel>, #tpu.dimension_semantics<parallel>], iteration_bounds = array<i64: 2, 1>, scalar_prefetch = 0 : i64, scratch_operands = 0 : i64, tpu.core_type = #tpu.core_type<tc>, window_params = [{transform_indices = @transform_0, window_bounds = array<i64: 1, 96, 1024>}, {pipeline_mode = #tpu.pipeline_mode<synchronous>, transform_indices = @transform_1, window_bounds = array<i64: 32, 96>}, {pipeline_mode = #tpu.pipeline_mode<synchronous>, transform_indices = @transform_2, window_bounds = array<i64: 32, 1>}, {pipeline_mode = #tpu.pipeline_mode<synchronous>, transform_indices = @transform_3, window_bounds = array<i64: 96, 32>}, {pipeline_mode = #tpu.pipeline_mode<synchronous>, transform_indices = @transform_4, window_bounds = array<i64: 96, 1>}, {transform_indices = @transform_5, window_bounds = array<i64: 1, 96, 1024>}]} {
    %c0 = arith.constant 0 : index
    %c0_0 = arith.constant 0 : index
    %0 = vector.load %arg3[%c0, %c0_0] : memref<32x96xf32, #tpu.memory_space<vmem>>, vector<32x96xf32>
    %c0_1 = arith.constant 0 : index
    %c0_2 = arith.constant 0 : index
    %c0_3 = arith.constant 0 : index
    %1 = vector.load %arg2[%c0_1, %c0_2, %c0_3] : memref<1x96x1024xf32, #tpu.memory_space<vmem>>, vector<1x96x1024xf32>
    %2 = vector.shape_cast %1 : vector<1x96x1024xf32> to vector<96x1024xf32>
    %cst = arith.constant dense<0.000000e+00> : vector<32x1024xf32>
    %3 = tpu.matmul %0, %2, %cst {dimension_numbers = #tpu.dot_dimension_numbers<[1], [0], [0], [1], [0, 0, 1, 1], [], []>, precision = #tpu.contract_precision<fp32>} : vector<32x96xf32>, vector<96x1024xf32>, vector<32x1024xf32> -> vector<32x1024xf32>
    %c0_4 = arith.constant 0 : index
    %c0_5 = arith.constant 0 : index
    %4 = vector.load %arg4[%c0_4, %c0_5] : memref<32x1xf32, #tpu.memory_space<vmem>>, vector<32x1xf32>
    %5 = vector.broadcast %4 : vector<32x1xf32> to vector<32x1024xf32>
    %6 = arith.addf %3, %5 : vector<32x1024xf32>
    %cst_6 = arith.constant 0.000000e+00 : f32
    %7 = vector.broadcast %cst_6 : f32 to vector<32x1024xf32>
    %8 = arith.maximumf %6, %7 : vector<32x1024xf32>
    %c0_7 = arith.constant 0 : index
    %c0_8 = arith.constant 0 : index
    %9 = vector.load %arg5[%c0_7, %c0_8] : memref<96x32xf32, #tpu.memory_space<vmem>>, vector<96x32xf32>
    %cst_9 = arith.constant dense<0.000000e+00> : vector<96x1024xf32>
    %10 = tpu.matmul %9, %8, %cst_9 {dimension_numbers = #tpu.dot_dimension_numbers<[1], [0], [0], [1], [0, 0, 1, 1], [], []>, precision = #tpu.contract_precision<fp32>} : vector<96x32xf32>, vector<32x1024xf32>, vector<96x1024xf32> -> vector<96x1024xf32>
    %c0_10 = arith.constant 0 : index
    %c0_11 = arith.constant 0 : index
    %11 = vector.load %arg6[%c0_10, %c0_11] : memref<96x1xf32, #tpu.memory_space<vmem>>, vector<96x1xf32>
    %12 = vector.broadcast %11 : vector<96x1xf32> to vector<96x1024xf32>
    %13 = arith.addf %10, %12 : vector<96x1024xf32>
    %c0_12 = arith.constant 0 : index
    %c0_13 = arith.constant 0 : index
    %c0_14 = arith.constant 0 : index
    %14 = vector.load %arg2[%c0_12, %c0_13, %c0_14] : memref<1x96x1024xf32, #tpu.memory_space<vmem>>, vector<1x96x1024xf32>
    %15 = vector.shape_cast %14 : vector<1x96x1024xf32> to vector<96x1024xf32>
    %16 = arith.addf %13, %15 : vector<96x1024xf32>
    %c0_15 = arith.constant 0 : index
    %c0_16 = arith.constant 0 : index
    %c0_17 = arith.constant 0 : index
    %17 = vector.load %arg7[%c0_15, %c0_16, %c0_17] : memref<1x96x1024xf32, #tpu.memory_space<vmem>>, vector<1x96x1024xf32>
    %18 = vector.shape_cast %17 : vector<1x96x1024xf32> to vector<96x1024xf32>
    %19 = vector.shape_cast %16 : vector<96x1024xf32> to vector<1x96x1024xf32>
    tpu.vector_store %arg7[%c0_15, %c0_16, %c0_17], %19 {strides = array<i32>} : memref<1x96x1024xf32, #tpu.memory_space<vmem>>, vector<1x96x1024xf32>,
    return
  }
  func.func @transform_0(%arg0: i32, %arg1: i32) -> (i32, i32, i32) {
    %c0_i32 = arith.constant 0 : i32
    %c0_i32_0 = arith.constant 0 : i32
    return %arg0, %c0_i32, %arg1 : i32, i32, i32
  }
  func.func @transform_1(%arg0: i32, %arg1: i32) -> (i32, i32) {
    %c0_i32 = arith.constant 0 : i32
    %c0_i32_0 = arith.constant 0 : i32
    %c0_i32_1 = arith.constant 0 : i32
    return %c0_i32, %c0_i32_0 : i32, i32
  }
  func.func @transform_2(%arg0: i32, %arg1: i32) -> (i32, i32) {
    %c0_i32 = arith.constant 0 : i32
    %c0_i32_0 = arith.constant 0 : i32
    %c0_i32_1 = arith.constant 0 : i32
    return %c0_i32, %c0_i32_0 : i32, i32
  }
  func.func @transform_3(%arg0: i32, %arg1: i32) -> (i32, i32) {
    %c0_i32 = arith.constant 0 : i32
    %c0_i32_0 = arith.constant 0 : i32
    %c0_i32_1 = arith.constant 0 : i32
    return %c0_i32, %c0_i32_0 : i32, i32
  }
  func.func @transform_4(%arg0: i32, %arg1: i32) -> (i32, i32) {
    %c0_i32 = arith.constant 0 : i32
    %c0_i32_0 = arith.constant 0 : i32
    %c0_i32_1 = arith.constant 0 : i32
    return %c0_i32, %c0_i32_0 : i32, i32
  }
  func.func @transform_5(%arg0: i32, %arg1: i32) -> (i32, i32, i32) {
    %c0_i32 = arith.constant 0 : i32
    %c0_i32_0 = arith.constant 0 : i32
    return %arg0, %c0_i32, %arg1 : i32, i32, i32
  }
}

</mosaic_0001>

<bundles_post_ra>
// kernel: tpu_custom_call.1
= control target key start
LH: loop header
LB: loop body
LE: loop exit
PB: predicated region body
PF: predicated region fallthrough
CT: control target
= control target key end

     0   :  { %10 = vsyncpa [#allocation3], 0  ;;  %s12778_s0 = inlined_call_operand.hbm [shape: f32[2,96,1024], index: 0, kind: input, shape index: {}]   ;;  %s12779_s1 = inlined_call_operand.vmem [shape: f32[32,96], index: 1, kind: input, shape index: {}]   ;;  %s12780_s2 = inlined_call_operand.vmem [shape: f32[32,1], index: 2, kind: input, shape index: {}]   ;;  %s12781_s3 = inlined_call_operand.vmem [shape: f32[96,32], index: 3, kind: input, shape index: {}]   ;;  %s12782_s4 = inlined_call_operand.vmem [shape: f32[96,1], index: 4, kind: input, shape index: {}]   ;;  %s12783_s5 = inlined_call_operand.hbm [shape: f32[2,96,1024], index: 5, kind: output, shape index: {}]  }
   0x1   :  { %12 = vsyncpa [#allocation3 + $0x1], 0 }
   0x2   :  { %13 = vsyncpa [#allocation4], 0 }
   0x3   :  { %15 = vsyncpa [#allocation4 + $0x1], 0  ;;  %s8444_s18 = smov 0   ;;  %s8446_s19 = smov 0  }
   0x4   :  { %s8448_s20 = smov 0   ;;  %s8450_s21 = smov 0  }
   0x5   :  { %s8452_s22 = smov 0   ;;  %s8454_s23 = smov 0  }
   0x6 LB: > { %s8116_s24 = sadd.s32 4294967295, %s8407_s23   ;;  %s8117_s25 = sadd.s32 4294967294, %s8407_s23   ;;  %s8407_s23 = sphi %s8454_s23, %s21_s23   ;;  %s8403_s22 = sphi %s8452_s22, %s13799_s22   ;;  %s8399_s21 = sphi %s8450_s21, %s13798_s21   ;;  %s8395_s20 = sphi %s8448_s20, %s13797_s20   ;;  %s8391_s19 = sphi %s8446_s19, %s13796_s19   ;;  %s8387_s18 = sphi %s8444_s18, %s13795_s18  }
   0x7   : > { %s33_s26 = sadd.s32 1, %s8403_s22  ;;  %s42_s27 = sadd.s32 1, %s8395_s20 }
   0x8   : > { %p35_p0 = scmp.ge.s32.totalorder %s33_s26, 2  ;;  %p49_p1 = scmp.ne.s32.totalorder %s8395_s20, %s8391_s19 }
   0x9   : > { %p50_p2 = scmp.eq.s32.totalorder %s8407_s23, 0  ;;  %p55_p3 = scmp.ne.s32.totalorder %s8391_s19, %s8387_s18 }
   0xa   : > { %s13801_s26 = smov (%p35_p0, %s33_s26), 0  ;;  %p56_p5 = scmp.eq.s32.totalorder %s8116_s24, 0 }
   0xb   : > { %p8485_p4 = por %p50_p2, %p49_p1  ;;  %s37_s29 = ssub.s32 %s8403_s22, %s13801_s26 }
   0xc   : > { %p165_p6 = scmp.eq.s32.totalorder %s8116_s24, 1  ;;  %p40_p7 = scmp.eq.s32.totalorder %s37_s29, 0 }
   0xd   : > { %p8491_p8 = por %p56_p5, %p55_p3  ;;  %p171_p10 = scmp.eq.s32.totalorder %s8117_s25, 1 }
   0xe   : > { %p8495_p9 = por %p165_p6, %p49_p1  ;;  %p8119_p12 = scmp.ge.s32.totalorder %s8407_s23, 2 }
   0xf   : > { %s8500_s7 = scalar_select %p40_p7, %s8395_s20, %s42_s27  }
  0x10   : > { %p8502_p11 = por %p171_p10, %p55_p3  ;;  %p8141_p13 = scmp.lt.s32.totalorder %s8407_s23, 2 }
  0x11   : > { %s203_s9 = sand.u32 1, %s8395_s20   ;;  %s8126_s11 = smul.u32 768, %s8403_s22 }
  0x12   : > { %s8125_s10 = smul.u32 768, %s203_s9  ;;  %p8134_p0 = pnand %p8141_p13, %p8485_p4 }
  0x13   : > { %s214_s14 = scalar_lea.hbm %s12778_s0, %s8126_s11  ;;  %p8121_p1 = scmp.ge.s32.totalorder %s8407_s23, 1 }
  0x14   : > { %s207_s15 = scalar_lea.vmem [#allocation2], %s8125_s10  ;;  %s215_s17 = sshll.u32 %s214_s14, 4  ;;  %s216_s17 = int_to_ptr.hbm [resolvable:$true] %s215_s17 }
  0x15   : > { %s217_s16 = sshll.u32 %s207_s15, 4  ;;  %s204_s24 = scalar_lea.sflag [#allocation3], %s203_s9  ;;  %s218_s16 = int_to_ptr.vmem [resolvable:$true] %s217_s16 }
  0x16   : > { %s8409_s25 = smov 1024   ;;  %s8410_s27 = smov 64  }
  0x17   : > { %8136 = dma.hbm_to_vmem [thread:$0]  (!%p8134_p0), %s216_s17, 12288, %s218_s16, %s204_s24, %s8409_s25, %s8409_s25, %s8410_s27  }
  0x18   : > { %p225_p2 = scmp.lt.s32.totalorder %s8407_s23, 3 }
  0x1a   : > { %p226_p3 = pnand %p8121_p1, %p225_p2 }
  0x1c   : > { %229 = sbr.rel (%p226_p3) target bundleno = 1783 (0x6f7), region = 40 }
  0x21   : > { %s8518_s28 = sand.u32 1, %s8391_s19  }
  0x22   : > { %s8127_s29 = smul.u32 768, %s8518_s28  ;;  %s232_s10 = scalar_lea.sflag [#allocation3], %s8518_s28 }
  0x24   : > { %s8524_s11 = scalar_lea.vmem [#allocation2], %s8127_s29 }
  0x25   : > { %8378 = dma.done.wait (%p8491_p8), %s232_s10, 12288  }
  0x26   : > { %8380 = vsyncadd (%p8491_p8), %s232_s10, 4294955008  ;;  %v357_v0 = vld [vmem:[%s8524_s11 + $0x2c0] sm:$0xff]  ;;  %vm389_vm0 = vcmask 785408   ;;  %v358_v46 = vld [vmem:[%s8524_s11 + $0x2c8] sm:$0xff]  ;;  %vm3574_vm1 = vcmask 261120   ;;  %s11399_s14 = scalar_lea.vmem [#allocation5], %s8127_s29 }
  0x27   : > { %v349_v1 = vld [vmem:[%s8524_s11 + $0x280] sm:$0xff]  ;;  %v8533_v3 = vand.u32 4294901760, %v357_v0  ;;  %v350_v55 = vld [vmem:[%s8524_s11 + $0x288] sm:$0xff]  ;;  %v8647_v57 = vand.u32 4294901760, %v358_v46  ;;  %s8128_s29 = smul.u32 768, %s8399_s21  ;;  %s8026_s21 = sshll.u32 %s11399_s14, 4  ;;  %s8027_s21 = int_to_ptr.vmem [resolvable:$true] %s8026_s21 }
  0x28   : > { %v341_v2 = vld [vmem:[%s8524_s11 + $0x240] sm:$0xff]  ;;  %v8535_v4 = vand.u32 4294901760, %v349_v1  ;;  %v266_v61 = vld [vmem:[%s12779_s1 + $0x8] sm:$0xff]  ;;  %s8012_s25 = scalar_lea.sflag [#allocation4], %s8518_s28  ;;  %s8345_s12 = scalar_lea.hbm %s12783_s5, 1536 }
  0x29   : > { %v8537_v5 = vand.u32 4294901760, %v341_v2  ;;  %v333_v6 = vld [vmem:[%s8524_s11 + $0x200] sm:$0xff]  ;;  %407 = vmatpush.msra.mxu0 %v8533_v3  ;;  %622 = vmatpush.msra.mxu3 %v8533_v3  ;;  %v8553_v14 = vsub.f32 %v357_v0, %v8533_v3  ;;  %v8666_v0 = vsub.f32 %v358_v46, %v8647_v57  ;;  %s8025_s17 = scalar_lea.hbm %s12783_s5, %s8128_s29 }
  0x2a   : > { %v325_v7 = vld [vmem:[%s8524_s11 + $0x1c0] sm:$0xff]  ;;  %v8542_v9 = vand.u32 4294901760, %v333_v6  ;;  %v8556_v15 = vsub.f32 %v349_v1, %v8535_v4  ;;  %v8668_v1 = vand.u32 4294901760, %v350_v55  ;;  %s8028_s24 = sshll.u32 %s8025_s17, 4  ;;  %s8029_s24 = int_to_ptr.hbm [resolvable:$true] %s8028_s24 }
  0x2b   : > { %v317_v8 = vld [vmem:[%s8524_s11 + $0x180] sm:$0xff]  ;;  %v8544_v10 = vand.u32 4294901760, %v325_v7  ;;  %v8559_v16 = vsub.f32 %v341_v2, %v8537_v5  ;;  %409 = vmatpush.msra.mxu0 %v8535_v4  ;;  %562 = vmatpush.msra.mxu2 %v8553_v14  ;;  %v469_v21 = vand.u32 4294901760, %v8553_v14  ;;  %v342_v2 = vld [vmem:[%s8524_s11 + $0x248] sm:$0xff]  ;;  %s8339_s27 = sshra.s32 %s8029_s24, 4  ;;  %s8340_s27 = int_to_ptr.hbm [resolvable:$true] %s8339_s27 }
  0x2c   : > { %v8546_v11 = vand.u32 4294901760, %v317_v8  ;;  %v309_v12 = vld [vmem:[%s8524_s11 + $0x140] sm:$0xff]  ;;  %v8564_v18 = vsub.f32 %v333_v6, %v8542_v9  ;;  %v475_v22 = vand.u32 4294901760, %v8556_v15  ;;  %624 = vmatpush.msra.mxu3 %v8535_v4  ;;  %s8341_s10 = scalar_lea.hbm %s8340_s27, 768  ;;  %p8346_p7 = scmp.lt.s32.totalorder %s8340_s27, %s12783_s5 }
  0x2d   : > { %v301_v13 = vld [vmem:[%s8524_s11 + $0x100] sm:$0xff]  ;;  %v8561_v17 = vand.u32 4294901760, %v309_v12  ;;  %v8567_v19 = vsub.f32 %v325_v7, %v8544_v10  ;;  %v12795_v23 = vand.u32 4294901760, %v8559_v16  ;;  %411 = vmatpush.msra.mxu0 %v8537_v5  ;;  %565 = vmatpush.msra.mxu2 %v8556_v15  ;;  %v470_v28 = vsub.f32 %v8553_v14, %v469_v21  ;;  %p8342_p4 = scmp.ne.s32.totalorder %s8340_s27, %s8341_s10  ;;  %p8347_p8 = scmp.lt.s32.totalorder %s8345_s12, %s8341_s10 }
  0x2e   : > { %v8570_v20 = vsub.f32 %v317_v8, %v8546_v11  ;;  %v8577_v24 = vand.u32 4294901760, %v301_v13  ;;  %v293_v25 = vld [vmem:[%s8524_s11 + $0xc0] sm:$0xff]  ;;  %v12794_v26 = vand.u32 4294901760, %v8564_v18  ;;  %v476_v29 = vsub.f32 %v8556_v15, %v475_v22  ;;  %626 = vmatpush.msra.mxu3 %v8537_v5 }
  0x2f   : > { %v8583_v27 = vsub.f32 %v309_v12, %v8561_v17  ;;  %v482_v30 = vsub.f32 %v8559_v16, %v12795_v23  ;;  %v12793_v31 = vand.u32 4294901760, %v8567_v19  ;;  %v285_v32 = vld [vmem:[%s8524_s11 + $0x80] sm:$0xff]  ;;  %v8602_v34 = vand.u32 4294901760, %v293_v25  ;;  %413 = vmatpush.msra.mxu0 %v8542_v9  ;;  %568 = vmatpush.msra.mxu2 %v8559_v16  ;;  %p8343_p5 = pnand %p8342_p4, %p8495_p9  ;;  %p8348_p10 = por %p8347_p8, %p8346_p7 }
  0x30   : > { %v488_v33 = vsub.f32 %v8564_v18, %v12794_v26  ;;  %v471_v35 = vand.u32 4294901760, %v470_v28  ;;  %v477_v36 = vand.u32 4294901760, %v476_v29  ;;  %v8607_v37 = vsub.f32 %v301_v13, %v8577_v24  ;;  %v277_v39 = vld [vmem:[%s8524_s11 + $0x40] sm:$0xff]  ;;  %628 = vmatpush.msra.mxu3 %v8542_v9 }
  0x31   : > { %v12792_v38 = vand.u32 4294901760, %v8570_v20  ;;  %v265_v40 = vld [vmem:[%s12779_s1] sm:$0xff]  ;;  %v8615_v41 = vand.u32 4294901760, %v285_v32  ;;  %415 = vmatpush.msra.mxu0 %v8544_v10  ;;  %v483_v43 = vand.u32 4294901760, %v482_v30  ;;  %v494_v44 = vsub.f32 %v8567_v19, %v12793_v31  ;;  %571 = vmatpush.msra.mxu2 %v8564_v18  ;;  %v334_v30 = vld [vmem:[%s8524_s11 + $0x208] sm:$0xff]  ;;  %p8344_p6 = pneg %p8343_p5 }
  0x32   : > { %v269_v42 = vld [vmem:[%s8524_s11] sm:$0xff]  ;;  %472 = vmatpush.msra.mxu1 %v471_v35  ;;  %v12790_v45 = vand.u32 4294901760, %v8583_v27  ;;  %630 = vmatpush.msra.mxu3 %v8544_v10  ;;  %v489_v47 = vand.u32 4294901760, %v488_v33  ;;  %v8627_v48 = vsub.f32 %v293_v25, %v8602_v34  ;;  %v8629_v49 = vand.u32 4294901760, %v277_v39 }
  0x33   : > { %v391_v50 = vsel %vm389_vm0, %v265_v40, 0  ;;  %417 = vmatpush.msra.mxu0 %v8546_v11  ;;  %v500_v51 = vsub.f32 %v8570_v20, %v12792_v38  ;;  %v8636_v52 = vand.u32 4294901760, %v269_v42  ;;  %v12788_v53 = vand.u32 4294901760, %v8607_v37  ;;  %574 = vmatpush.msra.mxu2 %v8567_v19  ;;  %v302_v38 = vld [vmem:[%s8524_s11 + $0x108] sm:$0xff]  ;;  %p8349_p13 = pnand %p8348_p10, %p8344_p6 }
  0x34   : > { %478 = vmatpush.msra.mxu1 %v477_v36  ;;  %v8639_v54 = vand.u32 4294901760, %v391_v50  ;;  %632 = vmatpush.msra.mxu3 %v8546_v11  ;;  %v8645_v56 = vsub.f32 %v285_v32, %v8615_v41  ;;  %v495_v58 = vand.u32 4294901760, %v494_v44  ;;  %v506_v59 = vsub.f32 %v8583_v27, %v12790_v45  ;;  %v267_v32 = vld [vmem:[%s12779_s1 + $0x10] sm:$0xff] }
  0x35   : > { %419 = vmatpush.msra.mxu0 %v8561_v17  ;;  %577 = vmatpush.msra.mxu2 %v8570_v20  ;;  %v8662_v62 = vsub.f32 %v277_v39, %v8629_v49  ;;  %v12787_v63 = vand.u32 4294901760, %v8627_v48  ;;  %v501_v6 = vand.u32 4294901760, %v500_v51  ;;  %v512_v7 = vsub.f32 %v8607_v37, %v12788_v53 }
  0x36   : > { %484 = vmatpush.msra.mxu1 %v483_v43  ;;  %v8654_v60 = vsub.f32 %v391_v50, %v8639_v54  ;;  %634 = vmatpush.msra.mxu3 %v8561_v17  ;;  %v8679_v12 = vsub.f32 %v269_v42, %v8636_v52  ;;  %v12785_v13 = vand.u32 4294901760, %v8645_v56  ;;  %v12784_v25 = vand.u32 4294901760, %v8666_v0 }
  0x37   : > { %421 = vmatpush.msra.mxu0 %v8577_v24  ;;  %580 = vmatpush.msra.mxu2 %v8583_v27  ;;  %v394_v28 = vsel %vm389_vm0, %v266_v61, 0  ;;  %v8687_v29 = vsub.f32 %v350_v55, %v8668_v1  ;;  %v507_v33 = vand.u32 4294901760, %v506_v59  ;;  %v8698_v39 = vand.u32 4294901760, %v342_v2  ;;  %v326_v59 = vld [vmem:[%s8524_s11 + $0x1c8] sm:$0xff] }
  0x38   : > { %13089 = vst [vmem:[#allocation8_spill] sm:$0xff] %v8654_v60  ;;  %490 = vmatpush.msra.mxu1 %v489_v47  ;;  %v8676_v8 = vand.u32 4294901760, %v8654_v60  ;;  %636 = vmatpush.msra.mxu3 %v8577_v24  ;;  %v8696_v36 = vand.u32 4294901760, %v394_v28  ;;  %v518_v40 = vsub.f32 %v8627_v48, %v12787_v63  ;;  %v12786_v42 = vand.u32 4294901760, %v8662_v62  ;;  %v268_v63 = vld [vmem:[%s12779_s1 + $0x18] sm:$0xff] }
  0x39   : > { %423 = vmatpush.msra.mxu0 %v8602_v34  ;;  %583 = vmatpush.msra.mxu2 %v8607_v37  ;;  %v513_v43 = vand.u32 4294901760, %v512_v7  ;;  %v8710_v46 = vand.u32 4294901760, %v334_v30  ;;  %v397_v47 = vsel %vm389_vm0, %v267_v32, 0  ;;  %v524_v50 = vsub.f32 %v8645_v56, %v12785_v13  ;;  %v318_v32 = vld [vmem:[%s8524_s11 + $0x188] sm:$0xff] }
  0x3a   : > { %13090 = vst [vmem:[#allocation9_spill] sm:$0xff] %v8676_v8  ;;  %496 = vmatpush.msra.mxu1 %v495_v58  ;;  %v433_v35 = vsub.f32 %v8654_v60, %v8676_v8  ;;  %638 = vmatpush.msra.mxu3 %v8602_v34  ;;  %v8708_v44 = vsub.f32 %v394_v28, %v8696_v36  ;;  %v12789_v55 = vand.u32 4294901760, %v8679_v12  ;;  %v12791_v58 = vand.u32 4294901760, %v8687_v29 }
  0x3b   : > { %13091 = vst [vmem:[#allocation10_spill] sm:$0xff] %v8696_v36  ;;  %425 = vmatpush.msra.mxu0 %v8615_v41  ;;  %586 = vmatpush.msra.mxu2 %v8627_v48  ;;  %v852_v51 = vsub.f32 %v8666_v0, %v12784_v25  ;;  %v8731_v7 = vsub.f32 %v342_v2, %v8698_v39  ;;  %v8733_v28 = vand.u32 4294901760, %v397_v47  ;;  %v519_v25 = vand.u32 4294901760, %v518_v40 }
  0x3c   : > { %502 = vmatpush.msra.mxu1 %v501_v6  ;;  %640 = vmatpush.msra.mxu3 %v8615_v41  ;;  %v8725_v61 = vand.u32 4294901760, %v433_v35  ;;  %v8728_v6 = vand.u32 4294901760, %v8708_v44  ;;  %v8743_v35 = vsub.f32 %v334_v30, %v8710_v46  ;;  %v8745_v2 = vand.u32 4294901760, %v326_v59  ;;  %v310_v30 = vld [vmem:[%s8524_s11 + $0x148] sm:$0xff] }
  0x3d   : > { %427 = vmatpush.msra.mxu0 %v8629_v49  ;;  %13093 = vst [vmem:[#allocation12_spill] sm:$0xff] %v8733_v28  ;;  %589 = vmatpush.msra.mxu2 %v8645_v56  ;;  %v525_v13 = vand.u32 4294901760, %v524_v50  ;;  %v536_v40 = vsub.f32 %v8679_v12, %v12789_v55  ;;  %v853_v50 = vand.u32 4294901760, %v852_v51  ;;  %v12796_v55 = vand.u32 4294901760, %v8731_v7 }
  0x3e   : > { %508 = vmatpush.msra.mxu1 %v507_v33  ;;  %13092 = vst [vmem:[#allocation11_spill] sm:$0xff] %v8728_v6  ;;  %642 = vmatpush.msra.mxu3 %v8629_v49  ;;  %v530_v33 = vsub.f32 %v8662_v62, %v12786_v42  ;;  %v858_v42 = vsub.f32 %v8687_v29, %v12791_v58  ;;  %v12799_v51 = vand.u32 4294901760, %v8743_v35  ;;  %v8778_v26 = vand.u32 4294901760, %v310_v30 }
  0x3f   : > { %429 = vmatpush.msra.mxu0 %v8636_v52  ;;  %592 = vmatpush.msra.mxu2 %v8662_v62  ;;  %v441_v53 = vsub.f32 %v8708_v44, %v8728_v6  ;;  %v8767_v45 = vsub.f32 %v397_v47, %v8733_v28  ;;  %v8776_v31 = vsub.f32 %v326_v59, %v8745_v2  ;;  %v400_v47 = vsel %vm389_vm0, %v268_v63, 0 }
  0x40   : > { %514 = vmatpush.msra.mxu1 %v513_v43  ;;  %644 = vmatpush.msra.mxu3 %v8636_v52  ;;  %v8755_v43 = vand.u32 4294901760, %v318_v32  ;;  %v531_v58 = vand.u32 4294901760, %v530_v33  ;;  %v366_v33 = vld [vmem:[%s12780_s2 + $0x8] sm:$0xff]  ;;  %v859_v14 = vand.u32 4294901760, %v858_v42  ;;  %v12797_v59 = vmov 0  }
  0x41   : > { %435 = vmatmul.f32.vlgmr.msra.gmra.mxu0 %v8725_v61  ;;  %648 = vmatmul.f32.vlgmr.msra.gmra.mxu3 %v8676_v8  ;;  %13094 = vst [vmem:[#allocation13_spill] sm:$0xff] %v8767_v45  ;;  %v8789_v23 = vand.u32 4294901760, %v441_v53  ;;  %v864_v63 = vsub.f32 %v8731_v7, %v12796_v55  ;;  %v8800_v42 = vand.u32 4294901760, %v400_v47  ;;  %v870_v53 = vsub.f32 %v8743_v35, %v12799_v51 }
  0x42   : > { %520 = vmatpush.msra.mxu1 %v519_v25  ;;  %595 = vmatpush.msra.mxu2 %v8679_v12  ;;  %v537_v25 = vand.u32 4294901760, %v536_v40  ;;  %v8797_v40 = vand.u32 4294901760, %v302_v38  ;;  %v8810_v55 = vsub.f32 %v310_v30, %v8778_v26 }
  0x43   : > { %598 = vmatmul.f32.vlgmr.msra.gmra.mxu2 %v8654_v60  ;;  %677 = vmatpush.msrb.mxu0 %v469_v21  ;;  %v8786_v21 = vsub.f32 %v318_v32, %v8755_v43  ;;  %v294_v32 = vld [vmem:[%s8524_s11 + $0xc8] sm:$0xff]  ;;  %v865_v15 = vand.u32 4294901760, %v864_v63  ;;  %v8826_v30 = vsub.f32 %v400_v47, %v8800_v42  ;;  %v871_v63 = vand.u32 4294901760, %v870_v53 }
  0x44   : > { %526 = vmatpush.msra.mxu1 %v525_v13  ;;  %789 = vmatpush.msrb.mxu2 %v8647_v57  ;;  %v8795_v13 = vand.u32 4294901760, %v8767_v45  ;;  %v8821_v51 = vand.u32 4294901760, %v294_v32  ;;  %v270_v53 = vld [vmem:[%s8524_s11 + $0x8] sm:$0xff] }
  0x45   : > { %854 = vmatpush.msrb.mxu3 %v853_v50  ;;  %8197 = vset.pattern.permute.xlu1 %v12797_v59  ;;  %v12802_v50 = vand.u32 4294901760, %v8776_v31  ;;  %v286_v59 = vld [vmem:[%s8524_s11 + $0x88] sm:$0xff] }
  0x46   : > { %532 = vmatpush.msra.mxu1 %v531_v58  ;;  %791 = vmatpush.msrb.mxu2 %v8668_v1  ;;  %v8836_v8 = vand.u32 4294901760, %v286_v59 }
  0x47   : > { %376 = vperm.xlu1 %8197, %v366_v33   ;;  %681 = vmatpush.msrb.mxu0 %v475_v22  ;;  %v449_v22 = vsub.f32 %v8767_v45, %v8795_v13  ;;  %v8819_v33 = vsub.f32 %v302_v38, %v8797_v40  ;;  %v876_v38 = vsub.f32 %v8776_v31, %v12802_v50 }
  0x48   : > { %538 = vmatpush.msra.mxu1 %v537_v25  ;;  %860 = vmatpush.msrb.mxu3 %v859_v14  ;;  %v278_v25 = vld [vmem:[%s8524_s11 + $0x48] sm:$0xff]  ;;  %v13095_v14 = vand.u32 4294901760, %v8559_v16  ;;  %v13096_v16 = vand.u32 4294901760, %v8786_v21 }
  0x49   : > { %443 = vmatmul.f32.gmra.mxu0 %v8789_v23  ;;  %540 = vmatmul.f32.vlgmr.msra.gmra.mxu1 %v8639_v54  ;;  %v8849_v50 = vand.u32 4294901760, %v449_v22  ;;  %v12805_v58 = vand.u32 4294901760, %v8819_v33 }
  0x4a   : > { %654 = vmatmul.f32.gmra.mxu3 %v8728_v6  ;;  %744 = vmatpush.msrb.mxu1 %v8533_v3  ;;  %v365_v3 = vld [vmem:[%s12780_s2] sm:$0xff]  ;;  %v882_v47 = vsub.f32 %v8786_v21, %v13096_v16  ;;  %v8853_v6 = vsub.f32 %v294_v32, %v8821_v51  ;;  %v8860_v16 = vand.u32 4294901760, %v8826_v30  ;;  %v8868_v32 = vand.u32 4294901760, %v270_v53 }
  0x4b   : > { %603 = vmatmul.f32.gmra.mxu2 %v8708_v44  ;;  %685 = vmatpush.msrb.mxu0 %v13095_v14  ;;  %v13097_v14 = vand.u32 4294901760, %v8564_v18  ;;  %13098 = vst [vmem:[#allocation14_spill] sm:$0xff] %v8849_v50  ;;  %v877_v18 = vand.u32 4294901760, %v876_v38 }
  0x4c   : > { %793 = vmatpush.msrb.mxu2 %v8698_v39  ;;  %746 = vmatpush.msrb.mxu1 %v8535_v4  ;;  %v8855_v4 = vand.u32 4294901760, %v278_v25  ;;  %v899_v38 = vand.u32 4294901760, %v8853_v6 }
  0x4d   : > { %866 = vmatpush.msrb.mxu3 %v865_v15  ;;  %689 = vmatpush.msrb.mxu0 %v13097_v14  ;;  %v13099_v15 = vand.u32 4294901760, %v8810_v55  ;;  %v8866_v14 = vsub.f32 %v286_v59, %v8836_v8 }
  0x4e   : > { %795 = vmatpush.msrb.mxu2 %v8710_v46  ;;  %748 = vmatpush.msrb.mxu1 %v8537_v5  ;;  %v883_v5 = vand.u32 4294901760, %v882_v47  ;;  %v8879_v59 = vsub.f32 %v278_v25, %v8855_v4  ;;  %v13101_v25 = vand.u32 4294901760, %v8570_v20 }
  0x4f   : > { %872 = vmatpush.msrb.mxu3 %v871_v63  ;;  %371 = vperm.xlu1 %8197, %v365_v3   ;;  %v888_v22 = vsub.f32 %v8810_v55, %v13099_v15  ;;  %v894_v63 = vsub.f32 %v8819_v33, %v12805_v58  ;;  %v13100_v3 = vand.u32 4294901760, %v8567_v19  ;;  %v905_v15 = vand.u32 4294901760, %v8866_v14 }
  0x50   : > { %797 = vmatpush.msrb.mxu2 %v8745_v2  ;;  %750 = vmatpush.msrb.mxu1 %v8542_v9  ;;  %v457_v9 = vsub.f32 %v8826_v30, %v8860_v16  ;;  %v8889_v58 = vsub.f32 %v270_v53, %v8868_v32  ;;  %v13102_v53 = vand.u32 4294901760, %v8583_v27  ;;  %v368_v27 = vld [vmem:[%s12780_s2 + $0x18] sm:$0xff] }
  0x51   : > { %451 = vmatmul.f32.gmra.mxu0 %v8849_v50  ;;  %544 = vmatmul.f32.gmra.mxu1 %v8696_v36  ;;  %v889_v47 = vand.u32 4294901760, %v888_v22  ;;  %v895_v19 = vand.u32 4294901760, %v894_v63  ;;  %v911_v22 = vand.u32 4294901760, %v8879_v59  ;;  %v13105_v63 = vmov 0  }
  0x52   : > { %660 = vmatmul.f32.gmra.mxu3 %v8795_v13  ;;  %693 = vmatpush.msrb.mxu0 %v13100_v3  ;;  %v8902_v3 = vand.u32 4294901760, %v457_v9  ;;  %v917_v20 = vand.u32 4294901760, %v8889_v58 }
  0x53   : > { %878 = vmatpush.msrb.mxu3 %v877_v18  ;;  %608 = vmatmul.f32.gmra.mxu2 %v8767_v45  ;;  %v900_v18 = vsub.f32 %v8853_v6, %v899_v38 }
  0x54   : > { %799 = vmatpush.msrb.mxu2 %v8755_v43  ;;  %697 = vmatpush.msrb.mxu0 %v13101_v25  ;;  %13103 = vst [vmem:[#allocation15_spill] sm:$0xff] %v8902_v3  ;;  %v13106_v25 = vand.u32 4294901760, %v8627_v48  ;;  %v13109_v48 = vand.u32 4294901760, %v8679_v12 }
  0x55   : > { %752 = vmatpush.msrb.mxu1 %v8544_v10  ;;  %884 = vmatpush.msrb.mxu3 %v883_v5  ;;  %v906_v10 = vsub.f32 %v8866_v14, %v905_v15  ;;  %v13104_v5 = vand.u32 4294901760, %v8607_v37  ;;  %v901_v9 = vand.u32 4294901760, %v900_v18  ;;  %v13107_v18 = vand.u32 4294901760, %v8645_v56  ;;  %v367_v56 = vld [vmem:[%s12780_s2 + $0x10] sm:$0xff] }
  0x56   : > { %801 = vmatpush.msrb.mxu2 %v8778_v26  ;;  %701 = vmatpush.msrb.mxu0 %v13102_v53  ;;  %v13108_v53 = vand.u32 4294901760, %v8662_v62  ;;  %v13115_v62 = vand.u32 4294901760, %v8786_v21 }
  0x57   : > { %890 = vmatpush.msrb.mxu3 %v889_v47  ;;  %754 = vmatpush.msrb.mxu1 %v8546_v11  ;;  %v912_v11 = vsub.f32 %v8879_v59, %v911_v22  ;;  %v907_v37 = vand.u32 4294901760, %v906_v10  ;;  %v918_v47 = vsub.f32 %v8889_v58, %v917_v20 }
  0x58   : > { %705 = vmatpush.msrb.mxu0 %v13104_v5  ;;  %803 = vmatpush.msrb.mxu2 %v8797_v40 }
  0x59   : > { %896 = vmatpush.msrb.mxu3 %v895_v19  ;;  %8196 = vset.pattern.permute.xlu0 %v13105_v63  ;;  %v913_v19 = vand.u32 4294901760, %v912_v11 }
  0x5a   : > { %459 = vmatmul.f32.gmra.mxu0 %v8902_v3  ;;  %548 = vmatmul.f32.gmra.mxu1 %v8733_v28 }
  0x5b   : > { %666 = vmatmul.f32.gmra.mxu3 %v8860_v16  ;;  %756 = vmatpush.msrb.mxu1 %v8561_v17  ;;  %v919_v17 = vand.u32 4294901760, %v918_v47  ;;  %v295_v47 = vld [vmem:[%s8524_s11 + $0xd0] sm:$0xff] }
  0x5c   : > { %386 = vperm.xlu0 %8196, %v368_v27   ;;  %709 = vmatpush.msrb.mxu0 %v13106_v25  ;;  %v303_v27 = vld [vmem:[%s8524_s11 + $0x110] sm:$0xff]  ;;  %v13118_v25 = vld [vmem:[#allocation9_spill] sm:$0xff] }
  0x5d   : > { %902 = vmatpush.msrb.mxu3 %v901_v9  ;;  %613 = vmatmul.f32.gmra.mxu2 %v8826_v30 }
  0x5e   : > { %805 = vmatpush.msrb.mxu2 %v8821_v51  ;;  %713 = vmatpush.msrb.mxu0 %v13107_v18 }
  0x5f   : > { %758 = vmatpush.msrb.mxu1 %v8577_v24  ;;  %908 = vmatpush.msrb.mxu3 %v907_v37  ;;  %v13110_v24 = vand.u32 4294901760, %v8666_v0 }
  0x60   : > { %807 = vmatpush.msrb.mxu2 %v8836_v8  ;;  %717 = vmatpush.msrb.mxu0 %v13108_v53  ;;  %v9101_v53 = vand.u32 4294901760, %v295_v47 }
  0x61   : > { %914 = vmatpush.msrb.mxu3 %v913_v19  ;;  %760 = vmatpush.msrb.mxu1 %v8602_v34  ;;  %v13111_v34 = vand.u32 4294901760, %v8687_v29 }
  0x62   : > { %721 = vmatpush.msrb.mxu0 %v13109_v48  ;;  %809 = vmatpush.msrb.mxu2 %v8855_v4 }
  0x63   : > { %920 = vmatpush.msrb.mxu3 %v919_v17  ;;  %552 = vmatmul.f32.gmra.mxu1 %v8800_v42 }
  0x64   : > { %723 = vmatmul.f32.vlgmr.msrb.gmra.mxu0 %v8639_v54  ;;  %762 = vmatpush.msrb.mxu1 %v8615_v41  ;;  %v13112_v41 = vand.u32 4294901760, %v8731_v7 }
  0x65   : > { %922 = vmatmul.f32.vlgmr.msrb.gmra.mxu3 %v8639_v54  ;;  %381 = vperm.xlu0 %8196, %v367_v56  }
  0x66   : > { %811 = vmatpush.msrb.mxu2 %v8868_v32  ;;  %764 = vmatpush.msrb.mxu1 %v8629_v49  ;;  %v13113_v49 = vand.u32 4294901760, %v8743_v35 }
  0x67   : > { %817 = vmatmul.f32.vlgmr.msrb.gmra.mxu2 %v8725_v61  ;;  %944 = vmatpush.msra.mxu0 %v8666_v0  ;;  %v351_v0 = vld [vmem:[%s8524_s11 + $0x290] sm:$0xff] }
  0x68   : > { %1059 = vmatpush.msra.mxu2 %v13110_v24  ;;  %766 = vmatpush.msrb.mxu1 %v8636_v52  ;;  %v13114_v52 = vand.u32 4294901760, %v8776_v31  ;;  %v8998_v12 = vand.u32 4294901760, %v351_v0  ;;  %v287_v24 = vld [vmem:[%s8524_s11 + $0x90] sm:$0xff] }
  0x69   : > { %1126 = vmatpush.msra.mxu3 %v8647_v57  ;;  %947 = vmatpush.msra.mxu0 %v8687_v29  ;;  %v343_v29 = vld [vmem:[%s8524_s11 + $0x250] sm:$0xff] }
  0x6a   : > { %1004 = vmatpush.msra.mxu1 %v8647_v57  ;;  %1063 = vmatpush.msra.mxu2 %v13111_v34  ;;  %v359_v57 = vld [vmem:[%s8524_s11 + $0x2d0] sm:$0xff] }
  0x6b   : > { %768 = vmatmul.f32.vlgmr.msrb.gmra.mxu1 %v8639_v54  ;;  %1128 = vmatpush.msra.mxu3 %v8668_v1 }
  0x6c   : > { %727 = vmatmul.f32.gmra.mxu0 %v8696_v36  ;;  %1067 = vmatpush.msra.mxu2 %v13112_v41 }
  0x6d   : > { %926 = vmatmul.f32.gmra.mxu3 %v8696_v36  ;;  %1006 = vmatpush.msra.mxu1 %v8668_v1  ;;  %v13116_v1 = vand.u32 4294901760, %v8810_v55 }
  0x6e   : > { %950 = vmatpush.msra.mxu0 %v8731_v7  ;;  %1071 = vmatpush.msra.mxu2 %v13113_v49  ;;  %v9012_v7 = vand.u32 4294901760, %v343_v29  ;;  %v279_v49 = vld [vmem:[%s8524_s11 + $0x50] sm:$0xff] }
  0x6f   : > { %825 = vmatmul.f32.gmra.mxu2 %v8789_v23  ;;  %1130 = vmatpush.msra.mxu3 %v8698_v39 }
  0x70   : > { %953 = vmatpush.msra.mxu0 %v8743_v35  ;;  %1008 = vmatpush.msra.mxu1 %v8698_v39  ;;  %v13117_v39 = vand.u32 4294901760, %v8819_v33  ;;  %v9018_v35 = vsub.f32 %v351_v0, %v8998_v12  ;;  %v360_v0 = vld [vmem:[%s8524_s11 + $0x2d8] sm:$0xff] }
  0x71   : > { %1132 = vmatpush.msra.mxu3 %v8710_v46  ;;  %1075 = vmatpush.msra.mxu2 %v13114_v52 }
  0x72   : > { %1010 = vmatpush.msra.mxu1 %v8710_v46  ;;  %956 = vmatpush.msra.mxu0 %v8776_v31  ;;  %v8988_v31 = vand.u32 4294901760, %v359_v57 }
  0x73   : > { %772 = vmatmul.f32.gmra.mxu1 %v8696_v36  ;;  %1134 = vmatpush.msra.mxu3 %v8745_v2 }
  0x74   : > { %731 = vmatmul.f32.gmra.mxu0 %v8733_v28  ;;  %1079 = vmatpush.msra.mxu2 %v13115_v62  ;;  %v9005_v46 = vsub.f32 %v359_v57, %v8988_v31  ;;  %v9123_v57 = vsub.f32 %v295_v47, %v9101_v53  ;;  %v9125_v62 = vand.u32 4294901760, %v287_v24 }
  0x75   : > { %930 = vmatmul.f32.gmra.mxu3 %v8733_v28  ;;  %959 = vmatpush.msra.mxu0 %v8786_v21  ;;  %v12815_v21 = vand.u32 4294901760, %v9018_v35 }
  0x76   : > { %1012 = vmatpush.msra.mxu1 %v8745_v2  ;;  %1136 = vmatpush.msra.mxu3 %v8755_v43  ;;  %v12816_v2 = vand.u32 4294901760, %v9005_v46 }
  0x77   : > { %833 = vmatmul.f32.gmra.mxu2 %v8849_v50  ;;  %962 = vmatpush.msra.mxu0 %v8810_v55  ;;  %v335_v55 = vld [vmem:[%s8524_s11 + $0x210] sm:$0xff] }
  0x78   : > { %1083 = vmatpush.msra.mxu2 %v13116_v1  ;;  %1138 = vmatpush.msra.mxu3 %v8778_v26 }
  0x79   : > { %1014 = vmatpush.msra.mxu1 %v8755_v43  ;;  %965 = vmatpush.msra.mxu0 %v8819_v33  ;;  %v9023_v43 = vand.u32 4294901760, %v335_v55 }
  0x7a   : > { %1087 = vmatpush.msra.mxu2 %v13117_v39  ;;  %1140 = vmatpush.msra.mxu3 %v8797_v40  ;;  %v13119_v39 = vld [vmem:[#allocation11_spill] sm:$0xff] }
  0x7b   : > { %776 = vmatmul.f32.gmra.mxu1 %v8733_v28  ;;  %968 = vmatpush.msra.mxu0 %v8853_v6  ;;  %v9032_v6 = vsub.f32 %v343_v29, %v9012_v7  ;;  %v9044_v33 = vsub.f32 %v335_v55, %v9023_v43  ;;  %v271_v29 = vld [vmem:[%s8524_s11 + $0x10] sm:$0xff] }
  0x7c   : > { %735 = vmatmul.f32.gmra.mxu0 %v8800_v42  ;;  %1016 = vmatpush.msra.mxu1 %v8778_v26  ;;  %v327_v26 = vld [vmem:[%s8524_s11 + $0x1d0] sm:$0xff] }
  0x7d   : > { %934 = vmatmul.f32.gmra.mxu3 %v8800_v42  ;;  %1091 = vmatpush.msra.mxu2 %v899_v38  ;;  %v319_v38 = vld [vmem:[%s8524_s11 + $0x190] sm:$0xff] }
  0x7e   : > { %1142 = vmatpush.msra.mxu3 %v8821_v51  ;;  %971 = vmatpush.msra.mxu0 %v8866_v14  ;;  %v9046_v14 = vand.u32 4294901760, %v327_v26 }
  0x7f   : > { %841 = vmatmul.f32.gmra.mxu2 %v8902_v3  ;;  %1018 = vmatpush.msra.mxu1 %v8797_v40  ;;  %v1234_v40 = vsub.f32 %v9005_v46, %v12816_v2 }
  0x80   : > { %1144 = vmatpush.msra.mxu3 %v8836_v8  ;;  %1095 = vmatpush.msra.mxu2 %v905_v15  ;;  %v9059_v15 = vand.u32 4294901760, %v319_v38  ;;  %v9066_v5 = vsub.f32 %v327_v26, %v9046_v14  ;;  %v9133_v26 = vand.u32 4294901760, %v279_v49 }
  0x81   : > { %974 = vmatpush.msra.mxu0 %v8879_v59  ;;  %1020 = vmatpush.msra.mxu1 %v8821_v51  ;;  %v12814_v51 = vand.u32 4294901760, %v9032_v6  ;;  %v1240_v59 = vsub.f32 %v9018_v35, %v12815_v21  ;;  %v1235_v10 = vand.u32 4294901760, %v1234_v40  ;;  %v312_v21 = vld [vmem:[%s8524_s11 + $0x158] sm:$0xff] }
  0x82   : > { %1146 = vmatpush.msra.mxu3 %v8855_v4  ;;  %1099 = vmatpush.msra.mxu2 %v911_v22  ;;  %v311_v22 = vld [vmem:[%s8524_s11 + $0x150] sm:$0xff]  ;;  %v9082_v11 = vsub.f32 %v319_v38, %v9059_v15  ;;  %v12811_v37 = vand.u32 4294901760, %v9066_v5  ;;  %13120 = vst [vmem:[#allocation16_spill] sm:$0xff] %v9133_v26  ;;  %v9140_v38 = vand.u32 4294901760, %v360_v0 }
  0x83   : > { %977 = vmatpush.msra.mxu0 %v8889_v58  ;;  %780 = vmatmul.f32.gmra.mxu1 %v8800_v42  ;;  %v1246_v58 = vsub.f32 %v9032_v6, %v12814_v51  ;;  %v1241_v9 = vand.u32 4294901760, %v1240_v59  ;;  %v352_v59 = vld [vmem:[%s8524_s11 + $0x298] sm:$0xff] }
  0x84   : > { %1148 = vmatpush.msra.mxu3 %v8868_v32  ;;  %980 = vmatmul.f32.vlgmr.msra.gmra.mxu0 %v8654_v60  ;;  %v12809_v17 = vand.u32 4294901760, %v9082_v11  ;;  %v1258_v56 = vsub.f32 %v9066_v5, %v12811_v37  ;;  %v9160_v47 = vand.u32 4294901760, %v352_v59 }
  0x85   : > { %1022 = vmatpush.msra.mxu1 %v8836_v8  ;;  %1150 = vmatmul.f32.vlgmr.msra.gmra.mxu3 %v8639_v54  ;;  %v12812_v8 = vand.u32 4294901760, %v9044_v33  ;;  %v1247_v19 = vand.u32 4294901760, %v1246_v58  ;;  %v12806_v58 = vand.u32 4294901760, %v9123_v57 }
  0x86   : > { %1103 = vmatpush.msra.mxu2 %v917_v20  ;;  %1171 = vmatpush.msrb.mxu0 %v8988_v31  ;;  %v9076_v20 = vand.u32 4294901760, %v311_v22  ;;  %v1264_v52 = vsub.f32 %v9082_v11, %v12809_v17  ;;  %v1259_v1 = vand.u32 4294901760, %v1258_v56  ;;  %v344_v56 = vld [vmem:[%s8524_s11 + $0x258] sm:$0xff] }
  0x87   : > { %1105 = vmatmul.f32.vlgmr.msra.gmra.mxu2 %v8639_v54  ;;  %1024 = vmatpush.msra.mxu1 %v8855_v4  ;;  %v1252_v4 = vsub.f32 %v9044_v33, %v12812_v8  ;;  %v320_v8 = vld [vmem:[%s8524_s11 + $0x198] sm:$0xff] }
  0x88   : > { %1326 = vmatpush.msrb.mxu2 %v9005_v46  ;;  %1386 = vmatpush.msrb.mxu3 %v8988_v31  ;;  %v9097_v18 = vsub.f32 %v311_v22, %v9076_v20  ;;  %v1265_v22 = vand.u32 4294901760, %v1264_v52  ;;  %v9226_v2 = vand.u32 4294901760, %v320_v8 }
  0x89   : > { %1026 = vmatpush.msra.mxu1 %v8868_v32  ;;  %1173 = vmatpush.msrb.mxu0 %v8998_v12  ;;  %v9092_v32 = vand.u32 4294901760, %v303_v27  ;;  %v1253_v48 = vand.u32 4294901760, %v1252_v4  ;;  %v9158_v4 = vsub.f32 %v279_v49, %v9133_v26 }
  0x8a   : > { %1329 = vmatpush.msrb.mxu2 %v9018_v35  ;;  %1388 = vmatpush.msrb.mxu3 %v8998_v12  ;;  %v12808_v41 = vand.u32 4294901760, %v9097_v18 }
  0x8b   : > { %1236 = vmatpush.msrb.mxu1 %v1235_v10  ;;  %1175 = vmatpush.msrb.mxu0 %v9012_v7  ;;  %v9112_v34 = vsub.f32 %v303_v27, %v9092_v32  ;;  %v9146_v10 = vsub.f32 %v287_v24, %v9125_v62  ;;  %v9149_v27 = vand.u32 4294901760, %v271_v29  ;;  %v1282_v24 = vsub.f32 %v9123_v57, %v12806_v58 }
  0x8c   : > { %1030 = vmatmul.f32.vlgmr.msra.gmra.mxu1 %v13118_v25  ;;  %985 = vmatmul.f32.gmra.mxu0 %v8708_v44  ;;  %v1270_v40 = vsub.f32 %v9097_v18, %v12808_v41  ;;  %v9185_v58 = vand.u32 4294901760, %v344_v56 }
  0x8d   : > { %1332 = vmatpush.msrb.mxu2 %v9032_v6  ;;  %1154 = vmatmul.f32.gmra.mxu3 %v8696_v36  ;;  %v12807_v55 = vand.u32 4294901760, %v9112_v34  ;;  %v12810_v49 = vand.u32 4294901760, %v9146_v10  ;;  %v9174_v52 = vsub.f32 %v271_v29, %v9149_v27  ;;  %v1283_v41 = vand.u32 4294901760, %v1282_v24 }
  0x8e   : > { %1242 = vmatpush.msrb.mxu1 %v1241_v9  ;;  %1390 = vmatpush.msrb.mxu3 %v9012_v7 }
  0x8f   : > { %1335 = vmatpush.msrb.mxu2 %v9044_v33  ;;  %1177 = vmatpush.msrb.mxu0 %v9023_v43  ;;  %v1276_v9 = vsub.f32 %v9112_v34, %v12807_v55  ;;  %v328_v55 = vld [vmem:[%s8524_s11 + $0x1d8] sm:$0xff] }
  0x90   : > { %1109 = vmatmul.f32.gmra.mxu2 %v8696_v36  ;;  %1248 = vmatpush.msrb.mxu1 %v1247_v19  ;;  %v1271_v19 = vand.u32 4294901760, %v1270_v40  ;;  %v12813_v40 = vand.u32 4294901760, %v9158_v4  ;;  %v9208_v37 = vand.u32 4294901760, %v328_v55 }
  0x91   : > { %1392 = vmatpush.msrb.mxu3 %v9023_v43  ;;  %1338 = vmatpush.msrb.mxu2 %v9066_v5 }
  0x92   : > { %1254 = vmatpush.msrb.mxu1 %v1253_v48  ;;  %1179 = vmatpush.msrb.mxu0 %v9046_v14  ;;  %v9165_v48 = vsub.f32 %v360_v0, %v9140_v38  ;;  %v336_v0 = vld [vmem:[%s8524_s11 + $0x218] sm:$0xff] }
  0x93   : > { %1394 = vmatpush.msrb.mxu3 %v9046_v14  ;;  %1341 = vmatpush.msrb.mxu2 %v9082_v11  ;;  %v9196_v17 = vand.u32 4294901760, %v336_v0 }
  0x94   : > { %1036 = vmatmul.f32.gmra.mxu1 %v13119_v39  ;;  %990 = vmatmul.f32.gmra.mxu0 %v8767_v45  ;;  %v12817_v29 = vand.u32 4294901760, %v9165_v48 }
  0x95   : > { %1158 = vmatmul.f32.gmra.mxu3 %v8733_v28  ;;  %1181 = vmatpush.msrb.mxu0 %v9059_v15  ;;  %v9221_v51 = vsub.f32 %v336_v0, %v9196_v17  ;;  %v9235_v0 = vsub.f32 %v328_v55, %v9208_v37  ;;  %v13123_v55 = vand.u32 4294901760, %v9005_v46 }
  0x96   : > { %1260 = vmatpush.msrb.mxu1 %v1259_v1  ;;  %1396 = vmatpush.msrb.mxu3 %v9059_v15  ;;  %v1277_v1 = vand.u32 4294901760, %v1276_v9  ;;  %v1288_v9 = vsub.f32 %v9146_v10, %v12810_v49  ;;  %v9206_v49 = vsub.f32 %v344_v56, %v9185_v58 }
  0x97   : > { %1183 = vmatpush.msrb.mxu0 %v9076_v20  ;;  %1344 = vmatpush.msrb.mxu2 %v9097_v18  ;;  %13122 = vst [vmem:[#allocation18_spill] sm:$0xff] %v9235_v0 }
  0x98   : > { %1113 = vmatmul.f32.gmra.mxu2 %v8733_v28  ;;  %1398 = vmatpush.msrb.mxu3 %v9076_v20 }
  0x99   : > { %1266 = vmatpush.msrb.mxu1 %v1265_v22  ;;  %1185 = vmatpush.msrb.mxu0 %v9092_v32  ;;  %v9183_v22 = vsub.f32 %v352_v59, %v9160_v47  ;;  %v12818_v59 = vand.u32 4294901760, %v9174_v52 }
  0x9a   : > { %1347 = vmatpush.msrb.mxu2 %v9112_v34  ;;  %1400 = vmatpush.msrb.mxu3 %v9092_v32 }
  0x9b   : > { %1187 = vmatpush.msrb.mxu0 %v9101_v53  ;;  %13121 = vst [vmem:[#allocation17_spill] sm:$0xff] %v9183_v22  ;;  %1272 = vmatpush.msrb.mxu1 %v1271_v19  ;;  %v1294_v19 = vsub.f32 %v9158_v4, %v12813_v40  ;;  %v12820_v24 = vand.u32 4294901760, %v9183_v22  ;;  %v1289_v40 = vand.u32 4294901760, %v1288_v9  ;;  %v1300_v56 = vsub.f32 %v9174_v52, %v12818_v59  ;;  %v304_v59 = vld [vmem:[%s8524_s11 + $0x118] sm:$0xff] }
  0x9c   : > { %1042 = vmatmul.f32.gmra.mxu1 %v8795_v13  ;;  %995 = vmatmul.f32.gmra.mxu0 %v8826_v30 }
  0x9d   : > { %1162 = vmatmul.f32.gmra.mxu3 %v8800_v42  ;;  %1350 = vmatpush.msrb.mxu2 %v9123_v57  ;;  %v1622_v9 = vsub.f32 %v9183_v22, %v12820_v24  ;;  %v9250_v22 = vand.u32 4294901760, %v304_v59  ;;  %v12824_v24 = vand.u32 4294901760, %v9235_v0 }
  0x9e   : > { %1402 = vmatpush.msrb.mxu3 %v9101_v53  ;;  %1189 = vmatpush.msrb.mxu0 %v9125_v62 }
  0x9f   : > { %1278 = vmatpush.msrb.mxu1 %v1277_v1  ;;  %1353 = vmatpush.msrb.mxu2 %v9146_v10  ;;  %v1616_v1 = vsub.f32 %v9165_v48, %v12817_v29  ;;  %v9248_v29 = vsub.f32 %v320_v8, %v9226_v2  ;;  %v13125_v8 = vand.u32 4294901760, %v9018_v35 }
  0xa0   : > { %1117 = vmatmul.f32.gmra.mxu2 %v8800_v42  ;;  %1404 = vmatpush.msrb.mxu3 %v9125_v62 }
  0xa1   : > { %1191 = vmatpush.msrb.mxu0 %v9133_v26  ;;  %1284 = vmatpush.msrb.mxu1 %v1283_v41  ;;  %v1295_v41 = vand.u32 4294901760, %v1294_v19  ;;  %v1617_v63 = vand.u32 4294901760, %v1616_v1  ;;  %v1301_v19 = vand.u32 4294901760, %v1300_v56  ;;  %v13124_v1 = vand.u32 4294901760, %v9206_v49 }
  0xa2   : > { %1406 = vmatpush.msrb.mxu3 %v9133_v26  ;;  %1356 = vmatpush.msrb.mxu2 %v9158_v4  ;;  %v9240_v26 = vand.u32 4294901760, %v312_v21 }
  0xa3   : > { %1193 = vmatpush.msrb.mxu0 %v9149_v27  ;;  %1290 = vmatpush.msrb.mxu1 %v1289_v40  ;;  %v1623_v40 = vand.u32 4294901760, %v1622_v9  ;;  %v1628_v56 = vsub.f32 %v9206_v49, %v13124_v1  ;;  %v12829_v1 = vand.u32 4294901760, %v9248_v29 }
  0xa4   : > { %1048 = vmatmul.f32.gmra.mxu1 %v8860_v16  ;;  %1408 = vmatpush.msrb.mxu3 %v9149_v27  ;;  %v9260_v46 = vsub.f32 %v312_v21, %v9240_v26 }
  0xa5   : > { %1199 = vmatmul.f32.vlgmr.msrb.gmra.mxu0 %v8725_v61  ;;  %1412 = vmatmul.f32.vlgmr.msrb.gmra.mxu3 %v13118_v25  ;;  %v296_v25 = vld [vmem:[%s8524_s11 + $0xd8] sm:$0xff]  ;;  %v1629_v35 = vand.u32 4294901760, %v1628_v56  ;;  %v13127_v56 = vand.u32 4294901760, %v9032_v6  ;;  %v13128_v6 = vand.u32 4294901760, %v9044_v33 }
  0xa6   : > { %1359 = vmatpush.msrb.mxu2 %v9174_v52  ;;  %1441 = vmatpush.msra.mxu0 %v13123_v55  ;;  %v288_v55 = vld [vmem:[%s8524_s11 + $0x98] sm:$0xff]  ;;  %v9274_v21 = vand.u32 4294901760, %v296_v25 }
  0xa7   : > { %1296 = vmatpush.msrb.mxu1 %v1295_v41  ;;  %1618 = vmatpush.msra.mxu3 %v1617_v63  ;;  %v13126_v41 = vand.u32 4294901760, %v9221_v51  ;;  %v9272_v63 = vsub.f32 %v304_v59, %v9250_v22 }
  0xa8   : > { %1362 = vmatmul.f32.vlgmr.msrb.gmra.mxu2 %v8654_v60  ;;  %1445 = vmatpush.msra.mxu0 %v13125_v8  ;;  %v280_v8 = vld [vmem:[%s8524_s11 + $0x58] sm:$0xff] }
  0xa9   : > { %1553 = vmatpush.msra.mxu2 %v9140_v38  ;;  %1302 = vmatpush.msrb.mxu1 %v1301_v19  ;;  %v1634_v9 = vsub.f32 %v9221_v51, %v13126_v41  ;;  %v1640_v19 = vsub.f32 %v9235_v0, %v12824_v24  ;;  %v9284_v41 = vand.u32 4294901760, %v288_v55  ;;  %v1646_v24 = vsub.f32 %v9248_v29, %v12829_v1 }
  0xaa   : > { %1624 = vmatpush.msra.mxu3 %v1623_v40  ;;  %v272_v40 = vld [vmem:[%s8524_s11 + $0x18] sm:$0xff]  ;;  %1449 = vmatpush.msra.mxu0 %v13127_v56  ;;  %v1657_v60 = vand.u32 4294901760, %v9272_v63  ;;  %v9299_v0 = vand.u32 4294901760, %v280_v8 }
  0xab   : > { %1555 = vmatpush.msra.mxu2 %v9160_v47  ;;  %1508 = vmatpush.msra.mxu1 %v8988_v31  ;;  %v1635_v59 = vand.u32 4294901760, %v1634_v9  ;;  %v9297_v31 = vsub.f32 %v296_v25, %v9274_v21  ;;  %v13129_v9 = vand.u32 4294901760, %v9260_v46  ;;  %v9309_v1 = vsub.f32 %v288_v55, %v9284_v41 }
  0xac   : > { %1304 = vmatmul.f32.vlgmr.msrb.gmra.mxu1 %v8639_v54  ;;  %1630 = vmatpush.msra.mxu3 %v1629_v35  ;;  %v9311_v25 = vand.u32 4294901760, %v272_v40  ;;  %v13130_v35 = vand.u32 4294901760, %v9066_v5  ;;  %v1647_v33 = vand.u32 4294901760, %v1646_v24  ;;  %v9322_v55 = vsub.f32 %v280_v8, %v9299_v0 }
  0xad   : > { %1207 = vmatmul.f32.gmra.mxu0 %v8789_v23  ;;  %1557 = vmatpush.msra.mxu2 %v9185_v58  ;;  %v1652_v56 = vsub.f32 %v9260_v46, %v13129_v9  ;;  %v1669_v5 = vand.u32 4294901760, %v9309_v1  ;;  %v13133_v9 = vand.u32 4294901760, %v9112_v34 }
  0xae   : > { %1418 = vmatmul.f32.gmra.mxu3 %v13119_v39  ;;  %1510 = vmatpush.msra.mxu1 %v8998_v12  ;;  %v1641_v12 = vand.u32 4294901760, %v1640_v19  ;;  %v1663_v19 = vand.u32 4294901760, %v9297_v31  ;;  %v9329_v24 = vsub.f32 %v272_v40, %v9311_v25  ;;  %v13132_v40 = vand.u32 4294901760, %v9097_v18 }
  0xaf   : > { %1559 = vmatpush.msra.mxu2 %v9196_v17  ;;  %1453 = vmatpush.msra.mxu0 %v13128_v6  ;;  %v1675_v6 = vand.u32 4294901760, %v9322_v55 }
  0xb0   : > { %1367 = vmatmul.f32.gmra.mxu2 %v8708_v44  ;;  %1512 = vmatpush.msra.mxu1 %v9012_v7  ;;  %v1658_v7 = vsub.f32 %v9272_v63, %v1657_v60 }
  0xb1   : > { %1636 = vmatpush.msra.mxu3 %v1635_v59  ;;  %1561 = vmatpush.msra.mxu2 %v9208_v37  ;;  %v13131_v59 = vand.u32 4294901760, %v9082_v11  ;;  %v1681_v11 = vand.u32 4294901760, %v9329_v24 }
  0xb2   : > { %1514 = vmatpush.msra.mxu1 %v9023_v43  ;;  %1457 = vmatpush.msra.mxu0 %v13130_v35  ;;  %v1653_v43 = vand.u32 4294901760, %v1652_v56  ;;  %v1659_v8 = vand.u32 4294901760, %v1658_v7  ;;  %v1676_v35 = vsub.f32 %v9322_v55, %v1675_v6  ;;  %v13136_v7 = vand.u32 4294901760, %v9146_v10 }
  0xb3   : > { %1642 = vmatpush.msra.mxu3 %v1641_v12  ;;  %1563 = vmatpush.msra.mxu2 %v9226_v2  ;;  %v1664_v12 = vsub.f32 %v9297_v31, %v1663_v19  ;;  %v1682_v34 = vsub.f32 %v9329_v24, %v1681_v11  ;;  %v13139_v10 = vand.u32 4294901760, %v9174_v52  ;;  %v13140_v52 = vld [vmem:[#allocation16_spill] sm:$0xff] }
  0xb4   : > { %1308 = vmatmul.f32.gmra.mxu1 %v8696_v36  ;;  %1461 = vmatpush.msra.mxu0 %v13131_v59  ;;  %v13137_v59 = vand.u32 4294901760, %v9158_v4 }
  0xb5   : > { %1215 = vmatmul.f32.gmra.mxu0 %v8849_v50  ;;  %1516 = vmatpush.msra.mxu1 %v9046_v14  ;;  %v1670_v14 = vsub.f32 %v9309_v1, %v1669_v5  ;;  %v1665_v18 = vand.u32 4294901760, %v1664_v12 }
  0xb6   : > { %1424 = vmatmul.f32.gmra.mxu3 %v8795_v13  ;;  %1465 = vmatpush.msra.mxu0 %v13132_v40 }
  0xb7   : > { %1648 = vmatpush.msra.mxu3 %v1647_v33  ;;  %1565 = vmatpush.msra.mxu2 %v9240_v26  ;;  %v13135_v33 = vand.u32 4294901760, %v9123_v57  ;;  %v1677_v57 = vand.u32 4294901760, %v1676_v35 }
  0xb8   : > { %1372 = vmatmul.f32.gmra.mxu2 %v8767_v45  ;;  %1518 = vmatpush.msra.mxu1 %v9059_v15  ;;  %v1671_v15 = vand.u32 4294901760, %v1670_v14 }
  0xb9   : > { %1654 = vmatpush.msra.mxu3 %v1653_v43  ;;  %1469 = vmatpush.msra.mxu0 %v13133_v9  ;;  %v9350_v56 = vpop.permute.xlu1 %376  ;;  %v13141_v9 = vand.u32 4294901760, %v9165_v48 }
  0xba   : > { %13134 = vst [vmem:[#allocation19_spill] sm:$0xff] %v9350_v56  ;;  %1567 = vmatpush.msra.mxu2 %v9250_v22  ;;  %1520 = vmatpush.msra.mxu1 %v9076_v20  ;;  %v1683_v20 = vand.u32 4294901760, %v1682_v34 }
  0xbb   : > { %1660 = vmatpush.msra.mxu3 %v1659_v8  ;;  %1473 = vmatpush.msra.mxu0 %v13135_v33 }
  0xbc   : > { %1312 = vmatmul.f32.gmra.mxu1 %v8733_v28  ;;  %1569 = vmatpush.msra.mxu2 %v9274_v21 }
  0xbd   : > { %1223 = vmatmul.f32.gmra.mxu0 %v8902_v3  ;;  %1666 = vmatpush.msra.mxu3 %v1665_v18  ;;  %v13142_v18 = vld [vmem:[#allocation17_spill] sm:$0xff] }
  0xbe   : > { %1430 = vmatmul.f32.gmra.mxu3 %v8860_v16  ;;  %1477 = vmatpush.msra.mxu0 %v13136_v7  ;;  %v436_v43 = vpop.f32.mrf.mxu0  ;;  %v13143_v35 = vand.u32 4294901760, %v13142_v18 }
  0xbf   : > { %1522 = vmatpush.msra.mxu1 %v9092_v32  ;;  %1672 = vmatpush.msra.mxu3 %v1671_v15  ;;  %v13145_v15 = vand.u32 4294901760, %v9206_v49 }
  0xc0   : > { %1377 = vmatmul.f32.gmra.mxu2 %v8826_v30  ;;  %1481 = vmatpush.msra.mxu0 %v13137_v59 }
  0xc1   : > { %1571 = vmatpush.msra.mxu2 %v9284_v41  ;;  %1524 = vmatpush.msra.mxu1 %v9101_v53  ;;  %v9374_v8 = vpop.permute.xlu1 %371 }
  0xc2   : > { %13138 = vst [vmem:[#allocation20_spill] sm:$0xff] %v9374_v8  ;;  %1678 = vmatpush.msra.mxu3 %v1677_v57  ;;  %1485 = vmatpush.msra.mxu0 %v13139_v10  ;;  %v437_v32 = vadd.f32 %v436_v43, %v9374_v8  ;;  %v361_v10 = vld [vmem:[%s8524_s11 + $0x2e0] sm:$0xff] }
  0xc3   : > { %1573 = vmatpush.msra.mxu2 %v9299_v0  ;;  %1526 = vmatpush.msra.mxu1 %v9125_v62 }
  0xc4   : > { %1316 = vmatmul.f32.gmra.mxu1 %v8800_v42  ;;  %1684 = vmatpush.msra.mxu3 %v1683_v20  ;;  %v649_v12 = vpop.f32.mrf.mxu3 }
  0xc5   : > { %1487 = vmatmul.f32.vlgmr.msra.gmra.mxu0 %v8639_v54  ;;  %1575 = vmatpush.msra.mxu2 %v9311_v25 }
  0xc6   : > { %1686 = vmatmul.f32.vlgmr.msra.gmra.mxu3 %v8639_v54  ;;  %v444_v53 = vpop.f32.mrf.mxu0  ;;  %v541_v4 = vpop.f32.mrf.mxu1  ;;  %1708 = vmatpush.msrb.mxu0 %v9165_v48 }
  0xc7   : > { %1528 = vmatpush.msra.mxu1 %v13140_v52  ;;  %v542_v40 = vadd.f32 %v541_v4, %v437_v32  ;;  %v599_v14 = vpop.f32.mrf.mxu2  ;;  %1823 = vmatpush.msrb.mxu2 %v13141_v9  ;;  %v445_v48 = vadd.f32 %v444_v53, %v9350_v56  ;;  %v13153_v52 = vand.u32 4294901760, %v9260_v46  ;;  %v345_v9 = vld [vmem:[%s8524_s11 + $0x260] sm:$0xff] }
  0xc8   : > { %1581 = vmatmul.f32.vlgmr.msra.gmra.mxu2 %v8725_v61  ;;  %1890 = vmatpush.msrb.mxu3 %v9140_v38 }
  0xc9   : > { %v600_v62 = vadd.f32 %v599_v14, %v542_v40  ;;  %1530 = vmatpush.msra.mxu1 %v9149_v27  ;;  %1711 = vmatpush.msrb.mxu0 %v13142_v18  ;;  %v337_v18 = vld [vmem:[%s8524_s11 + $0x220] sm:$0xff] }
  0xca   : > { %1827 = vmatpush.msrb.mxu2 %v13143_v35  ;;  %1892 = vmatpush.msrb.mxu3 %v9160_v47  ;;  %v9459_v35 = vand.u32 4294901760, %v345_v9 }
  0xcb   : > { %1768 = vmatpush.msrb.mxu1 %v9140_v38  ;;  %v9396_v33 = vadd.f32 %v649_v12, %v600_v62  ;;  %1714 = vmatpush.msrb.mxu0 %v9206_v49  ;;  %v13147_v38 = vand.u32 4294901760, %v9221_v51  ;;  %v353_v12 = vld [vmem:[%s8524_s11 + $0x2a0] sm:$0xff] }
  0xcc   : > { %1532 = vmatmul.f32.vlgmr.msra.gmra.mxu1 %v8639_v54  ;;  %1831 = vmatpush.msrb.mxu2 %v13145_v15  ;;  %v9445_v14 = vand.u32 4294901760, %v353_v12 }
  0xcd   : > { %13144 = vst [vmem:[#allocation16_spill] sm:$0xff] %v9396_v33  ;;  %1491 = vmatmul.f32.gmra.mxu0 %v8696_v36  ;;  %1770 = vmatpush.msrb.mxu1 %v9160_v47  ;;  %v655_v27 = vpop.f32.mrf.mxu3  ;;  %v13148_v47 = vld [vmem:[#allocation18_spill] sm:$0xff] }
  0xce   : > { %1690 = vmatmul.f32.gmra.mxu3 %v8696_v36  ;;  %v9406_v34 = vpop.permute.xlu0 %386  ;;  %1835 = vmatpush.msrb.mxu2 %v13147_v38  ;;  %v452_v7 = vpop.f32.mrf.mxu0  ;;  %v13149_v49 = vand.u32 4294901760, %v13148_v47 }
  0xcf   : > { %13146 = vst [vmem:[#allocation17_spill] sm:$0xff] %v9406_v34  ;;  %1894 = vmatpush.msrb.mxu3 %v9185_v58  ;;  %v545_v43 = vpop.f32.mrf.mxu1  ;;  %v604_v57 = vpop.f32.mrf.mxu2  ;;  %1717 = vmatpush.msrb.mxu0 %v9221_v51  ;;  %v13151_v51 = vand.u32 4294901760, %v9248_v29 }
  0xd0   : > { %1589 = vmatmul.f32.gmra.mxu2 %v8789_v23  ;;  %v546_v20 = vadd.f32 %v545_v43, %v445_v48  ;;  %1772 = vmatpush.msrb.mxu1 %v9185_v58 }
  0xd1   : > { %1896 = vmatpush.msrb.mxu3 %v9196_v17  ;;  %1839 = vmatpush.msrb.mxu2 %v13149_v49 }
  0xd2   : > { %v605_v59 = vadd.f32 %v604_v57, %v546_v20  ;;  %1774 = vmatpush.msrb.mxu1 %v9196_v17  ;;  %1720 = vmatpush.msrb.mxu0 %v13148_v47  ;;  %v9432_v17 = vand.u32 4294901760, %v361_v10  ;;  %v321_v20 = vld [vmem:[%s8524_s11 + $0x1a0] sm:$0xff] }
  0xd3   : > { %1898 = vmatpush.msrb.mxu3 %v9208_v37  ;;  %1843 = vmatpush.msrb.mxu2 %v13151_v51  ;;  %v313_v51 = vld [vmem:[%s8524_s11 + $0x160] sm:$0xff] }
  0xd4   : > { %1536 = vmatmul.f32.gmra.mxu1 %v8696_v36  ;;  %v9423_v32 = vadd.f32 %v655_v27, %v605_v59  ;;  %1723 = vmatpush.msrb.mxu0 %v9248_v29  ;;  %v9473_v27 = vand.u32 4294901760, %v337_v18 }
  0xd5   : > { %1495 = vmatmul.f32.gmra.mxu0 %v8733_v28  ;;  %v661_v58 = vpop.f32.mrf.mxu3  ;;  %1776 = vmatpush.msrb.mxu1 %v9208_v37 }
  0xd6   : > { %13150 = vst [vmem:[#allocation18_spill] sm:$0xff] %v9423_v32  ;;  %1694 = vmatmul.f32.gmra.mxu3 %v8733_v28  ;;  %1726 = vmatpush.msrb.mxu0 %v9260_v46  ;;  %v9452_v46 = vsub.f32 %v361_v10, %v9432_v17 }
  0xd7   : > { %1900 = vmatpush.msrb.mxu3 %v9226_v2  ;;  %v9436_v53 = vpop.permute.xlu0 %381  ;;  %v460_v4 = vpop.f32.mrf.mxu0  ;;  %1847 = vmatpush.msrb.mxu2 %v13153_v52 }
  0xd8   : > { %1597 = vmatmul.f32.gmra.mxu2 %v8849_v50  ;;  %13152 = vst [vmem:[#allocation21_spill] sm:$0xff] %v9436_v53  ;;  %v453_v29 = vadd.f32 %v452_v7, %v9436_v53  ;;  %v549_v37 = vpop.f32.mrf.mxu1  ;;  %v609_v40 = vpop.f32.mrf.mxu2  ;;  %1778 = vmatpush.msrb.mxu1 %v9226_v2  ;;  %v9482_v7 = vsub.f32 %v345_v9, %v9459_v35  ;;  %v297_v9 = vld [vmem:[%s8524_s11 + $0xe0] sm:$0xff] }
  0xd9   : > { %1902 = vmatpush.msrb.mxu3 %v9240_v26  ;;  %1729 = vmatpush.msrb.mxu0 %v9272_v63  ;;  %v9466_v63 = vsub.f32 %v353_v12, %v9445_v14 }
  0xda   : > { %v550_v62 = vadd.f32 %v549_v37, %v453_v29  ;;  %1851 = vmatpush.msrb.mxu2 %v1657_v60  ;;  %1780 = vmatpush.msrb.mxu1 %v9240_v26  ;;  %v461_v60 = vadd.f32 %v460_v4, %v9406_v34  ;;  %v12835_v26 = vand.u32 4294901760, %v9452_v46  ;;  %v9535_v29 = vand.u32 4294901760, %v313_v51  ;;  %v305_v37 = vld [vmem:[%s8524_s11 + $0x120] sm:$0xff] }
  0xdb   : > { %1904 = vmatpush.msrb.mxu3 %v9250_v22  ;;  %1732 = vmatpush.msrb.mxu0 %v9297_v31  ;;  %v329_v31 = vld [vmem:[%s8524_s11 + $0x1e0] sm:$0xff] }
  0xdc   : > { %1540 = vmatmul.f32.gmra.mxu1 %v8733_v28  ;;  %v610_v2 = vadd.f32 %v609_v40, %v550_v62  ;;  %1855 = vmatpush.msrb.mxu2 %v1663_v19  ;;  %v9499_v47 = vand.u32 4294901760, %v329_v31 }
  0xdd   : > { %1499 = vmatmul.f32.gmra.mxu0 %v8800_v42  ;;  %1906 = vmatpush.msrb.mxu3 %v9274_v21 }
  0xde   : > { %1698 = vmatmul.f32.gmra.mxu3 %v8800_v42  ;;  %v9468_v48 = vadd.f32 %v661_v58, %v610_v2  ;;  %1735 = vmatpush.msrb.mxu0 %v9309_v1  ;;  %v667_v15 = vpop.f32.mrf.mxu3  ;;  %v1998_v1 = vsub.f32 %v9452_v46, %v12835_v26  ;;  %v9520_v12 = vsub.f32 %v329_v31, %v9499_v47 }
  0xdf   : > { %1782 = vmatpush.msrb.mxu1 %v9250_v22  ;;  %1908 = vmatpush.msrb.mxu3 %v9284_v41  ;;  %v12834_v22 = vand.u32 4294901760, %v9466_v63 }
  0xe0   : > { %13154 = vst [vmem:[#allocation22_spill] sm:$0xff] %v9468_v48  ;;  %1605 = vmatmul.f32.gmra.mxu2 %v8902_v3  ;;  %v553_v19 = vpop.f32.mrf.mxu1  ;;  %v614_v38 = vpop.f32.mrf.mxu2  ;;  %1738 = vmatpush.msrb.mxu0 %v9322_v55  ;;  %v12833_v55 = vand.u32 4294901760, %v9482_v7  ;;  %v1999_v58 = vand.u32 4294901760, %v1998_v1  ;;  %v12830_v2 = vand.u32 4294901760, %v9520_v12 }
  0xe1   : > { %1859 = vmatpush.msrb.mxu2 %v1669_v5  ;;  %v554_v43 = vadd.f32 %v553_v19, %v461_v60  ;;  %v9484_v57 = vpop.f32.mrf.mxu0  ;;  %1784 = vmatpush.msrb.mxu1 %v9274_v21  ;;  %v9497_v5 = vsub.f32 %v337_v18, %v9473_v27  ;;  %v13156_v21 = vld [vmem:[#allocation8_spill] sm:$0xff]  ;;  %v2004_v10 = vsub.f32 %v9466_v63, %v12834_v22 }
  0xe2   : > { %13155 = vst [vmem:[#allocation23_spill] sm:$0xff] %v9484_v57  ;;  %1910 = vmatpush.msrb.mxu3 %v9299_v0  ;;  %1741 = vmatpush.msrb.mxu0 %v9329_v24  ;;  %v9556_v19 = vsub.f32 %v313_v51, %v9535_v29 }
  0xe3   : > { %1863 = vmatpush.msrb.mxu2 %v1675_v6  ;;  %v615_v49 = vadd.f32 %v614_v38, %v554_v43  ;;  %v9506_v6 = vand.u32 4294901760, %v321_v20  ;;  %1786 = vmatpush.msrb.mxu1 %v9284_v41  ;;  %v12832_v41 = vand.u32 4294901760, %v9497_v5  ;;  %v9559_v43 = vand.u32 4294901760, %v297_v9 }
  0xe4   : > { %1544 = vmatmul.f32.gmra.mxu1 %v8800_v42  ;;  %1912 = vmatpush.msrb.mxu3 %v9311_v25 }
  0xe5   : > { %1744 = vmatmul.f32.vlgmr.msrb.gmra.mxu0 %v13156_v21  ;;  %v9508_v59 = vadd.f32 %v667_v15, %v615_v49  ;;  %1867 = vmatpush.msrb.mxu2 %v1681_v11  ;;  %v2010_v11 = vsub.f32 %v9482_v7, %v12833_v55  ;;  %v9533_v52 = vsub.f32 %v321_v20, %v9506_v6  ;;  %v13160_v15 = vld [vmem:[#allocation9_spill] sm:$0xff] }
  0xe6   : > { %1914 = vmatmul.f32.vlgmr.msrb.gmra.mxu3 %v8639_v54  ;;  %1935 = vmatpush.msra.mxu0 %v9432_v17  ;;  %v2016_v18 = vsub.f32 %v9497_v5, %v12832_v41  ;;  %v2022_v49 = vsub.f32 %v9520_v12, %v12830_v2  ;;  %v362_v41 = vld [vmem:[%s8524_s11 + $0x2e8] sm:$0xff] }
  0xe7   : > { %13157 = vst [vmem:[#allocation24_spill] sm:$0xff] %v9508_v59  ;;  %1788 = vmatpush.msrb.mxu1 %v9299_v0  ;;  %2090 = vmatpush.msra.mxu2 %v9452_v46  ;;  %v2005_v0 = vand.u32 4294901760, %v2004_v10  ;;  %v2011_v31 = vand.u32 4294901760, %v2010_v11  ;;  %v12831_v38 = vand.u32 4294901760, %v9533_v52  ;;  %v289_v10 = vld [vmem:[%s8524_s11 + $0xa0] sm:$0xff]  ;;  %v306_v59 = vld [vmem:[%s8524_s11 + $0x128] sm:$0xff] }
  0xe8   : > { %1869 = vmatmul.f32.vlgmr.msrb.gmra.mxu2 %v8639_v54  ;;  %v9526_v4 = vpop.f32.mrf.mxu1  ;;  %2150 = vmatpush.msra.mxu3 %v9432_v17  ;;  %v923_v24 = vpop.f32.mrf.mxu3  ;;  %v2017_v1 = vand.u32 4294901760, %v2016_v18  ;;  %v281_v18 = vld [vmem:[%s8524_s11 + $0x60] sm:$0xff]  ;;  %v2023_v2 = vand.u32 4294901760, %v2022_v49 }
  0xe9   : > { %13158 = vst [vmem:[#allocation25_spill] sm:$0xff] %v9526_v4  ;;  %v9538_v40 = vpop.f32.mrf.mxu0  ;;  %1790 = vmatpush.msrb.mxu1 %v9311_v25  ;;  %1937 = vmatpush.msra.mxu0 %v9445_v14  ;;  %v9551_v25 = vand.u32 4294901760, %v305_v37  ;;  %v2028_v11 = vsub.f32 %v9533_v52, %v12831_v38  ;;  %v273_v38 = vld [vmem:[%s8524_s11 + $0x20] sm:$0xff]  ;;  %v9599_v22 = vand.u32 4294901760, %v281_v18  ;;  %v346_v4 = vld [vmem:[%s8524_s11 + $0x268] sm:$0xff] }
  0xea   : > { %13159 = vst [vmem:[#allocation26_spill] sm:$0xff] %v9538_v40  ;;  %v818_v62 = vpop.f32.mrf.mxu2  ;;  %2093 = vmatpush.msra.mxu2 %v9466_v63  ;;  %2152 = vmatpush.msra.mxu3 %v9445_v14  ;;  %v9654_v33 = vand.u32 4294901760, %v346_v4 }
  0xeb   : > { %2000 = vmatpush.msra.mxu1 %v1999_v58  ;;  %v819_v60 = vadd.f32 %v818_v62, %v9374_v8  ;;  %1939 = vmatpush.msra.mxu0 %v9459_v35  ;;  %v9573_v51 = vsub.f32 %v305_v37, %v9551_v25  ;;  %v9583_v62 = vsub.f32 %v297_v9, %v9559_v43  ;;  %v9614_v8 = vand.u32 4294901760, %v273_v38 }
  0xec   : > { %1794 = vmatmul.f32.vlgmr.msrb.gmra.mxu1 %v13160_v15  ;;  %2096 = vmatpush.msra.mxu2 %v9482_v7 }
  0xed   : > { %1749 = vmatmul.f32.gmra.mxu0 %v8708_v44  ;;  %v9561_v20 = vadd.f32 %v923_v24, %v819_v60  ;;  %2006 = vmatpush.msra.mxu1 %v2005_v0  ;;  %v12840_v0 = vand.u32 4294901760, %v9556_v19  ;;  %v9590_v60 = vand.u32 4294901760, %v289_v10  ;;  %13165 = vst [vmem:[#allocation31_spill] sm:$0xff] %v9614_v8 }
  0xee   : > { %1918 = vmatmul.f32.gmra.mxu3 %v8696_v36  ;;  %2099 = vmatpush.msra.mxu2 %v9497_v5 }
  0xef   : > { %13161 = vst [vmem:[#allocation27_spill] sm:$0xff] %v9561_v20  ;;  %2154 = vmatpush.msra.mxu3 %v9459_v35  ;;  %1941 = vmatpush.msra.mxu0 %v9473_v27  ;;  %v2034_v49 = vsub.f32 %v9556_v19, %v12840_v0  ;;  %v9612_v9 = vsub.f32 %v289_v10, %v9590_v60  ;;  %v13168_v20 = vand.u32 4294901760, %v9583_v62 }
  0xf0   : > { %1873 = vmatmul.f32.gmra.mxu2 %v8696_v36  ;;  %v9575_v58 = vpop.f32.mrf.mxu1  ;;  %2012 = vmatpush.msra.mxu1 %v2011_v31  ;;  %v927_v24 = vpop.f32.mrf.mxu3  ;;  %v9626_v10 = vsub.f32 %v281_v18, %v9599_v22 }
  0xf1   : > { %13162 = vst [vmem:[#allocation28_spill] sm:$0xff] %v9575_v58  ;;  %v9586_v37 = vpop.f32.mrf.mxu0  ;;  %2156 = vmatpush.msra.mxu3 %v9473_v27  ;;  %2102 = vmatpush.msra.mxu2 %v9520_v12  ;;  %v9643_v58 = vsub.f32 %v273_v38, %v9614_v8  ;;  %v338_v38 = vld [vmem:[%s8524_s11 + $0x228] sm:$0xff] }
  0xf2   : > { %13163 = vst [vmem:[#allocation29_spill] sm:$0xff] %v9586_v37  ;;  %v826_v31 = vpop.f32.mrf.mxu2  ;;  %2018 = vmatpush.msra.mxu1 %v2017_v1  ;;  %1943 = vmatpush.msra.mxu0 %v9499_v47  ;;  %v2029_v1 = vand.u32 4294901760, %v2028_v11  ;;  %v354_v11 = vld [vmem:[%s8524_s11 + $0x2a8] sm:$0xff] }
  0xf3   : > { %v827_v55 = vadd.f32 %v826_v31, %v9350_v56  ;;  %2158 = vmatpush.msra.mxu3 %v9499_v47  ;;  %2105 = vmatpush.msra.mxu2 %v9533_v52  ;;  %v9616_v56 = vand.u32 4294901760, %v362_v41  ;;  %v2035_v31 = vand.u32 4294901760, %v2034_v49  ;;  %v9635_v34 = vand.u32 4294901760, %v354_v11 }
  0xf4   : > { %1800 = vmatmul.f32.gmra.mxu1 %v13119_v39  ;;  %1945 = vmatpush.msra.mxu0 %v9506_v6 }
  0xf5   : > { %1754 = vmatmul.f32.gmra.mxu0 %v8767_v45  ;;  %v9607_v26 = vadd.f32 %v927_v24, %v827_v55  ;;  %2024 = vmatpush.msra.mxu1 %v2023_v2  ;;  %v13166_v55 = vand.u32 4294901760, %v9573_v51  ;;  %v9646_v49 = vsub.f32 %v362_v41, %v9616_v56 }
  0xf6   : > { %1922 = vmatmul.f32.gmra.mxu3 %v8733_v28  ;;  %1947 = vmatpush.msra.mxu0 %v9535_v29 }
  0xf7   : > { %13164 = vst [vmem:[#allocation30_spill] sm:$0xff] %v9607_v26  ;;  %2160 = vmatpush.msra.mxu3 %v9506_v6  ;;  %v2040_v24 = vsub.f32 %v9573_v51, %v13166_v55  ;;  %2108 = vmatpush.msra.mxu2 %v9556_v19  ;;  %v2046_v26 = vsub.f32 %v9583_v62, %v13168_v20  ;;  %v13178_v32 = vand.u32 4294901760, %v9646_v49 }
  0xf8   : > { %1877 = vmatmul.f32.gmra.mxu2 %v8733_v28  ;;  %v9629_v0 = vpop.f32.mrf.mxu1  ;;  %v931_v2 = vpop.f32.mrf.mxu3  ;;  %2030 = vmatpush.msra.mxu1 %v2029_v1  ;;  %13170 = vst [vmem:[#allocation34_spill] sm:$0xff] %v9646_v49 }
  0xf9   : > { %13167 = vst [vmem:[#allocation32_spill] sm:$0xff] %v9629_v0  ;;  %2162 = vmatpush.msra.mxu3 %v9535_v29  ;;  %v9638_v55 = vpop.f32.mrf.mxu0  ;;  %1949 = vmatpush.msra.mxu0 %v9551_v25  ;;  %v2041_v1 = vand.u32 4294901760, %v2040_v24  ;;  %v2047_v41 = vand.u32 4294901760, %v2046_v26  ;;  %v9659_v0 = vsub.f32 %v354_v11, %v9635_v34  ;;  %v9672_v26 = vand.u32 4294901760, %v338_v38 }
  0xfa   : > { %13169 = vst [vmem:[#allocation33_spill] sm:$0xff] %v9638_v55  ;;  %v834_v57 = vpop.f32.mrf.mxu2  ;;  %2111 = vmatpush.msra.mxu2 %v9573_v51  ;;  %2036 = vmatpush.msra.mxu1 %v2035_v31  ;;  %v13173_v31 = vand.u32 4294901760, %v9626_v10  ;;  %v2380_v37 = vsub.f32 %v9646_v49, %v13178_v32  ;;  %v3504_v32 = vld [vmem:[%s12782_s4 + $0x10] sm:$0xff] }
  0xfb   : > { %2164 = vmatpush.msra.mxu3 %v9551_v25  ;;  %v835_v20 = vadd.f32 %v834_v57, %v9436_v53  ;;  %1951 = vmatpush.msra.mxu0 %v9559_v43  ;;  %v13172_v57 = vand.u32 4294901760, %v9612_v9  ;;  %v9704_v18 = vsub.f32 %v338_v38, %v9672_v26  ;;  %v13180_v38 = vand.u32 4294901760, %v9659_v0 }
  0xfc   : > { %1806 = vmatmul.f32.gmra.mxu1 %v8795_v13  ;;  %2114 = vmatpush.msra.mxu2 %v9583_v62  ;;  %v2058_v11 = vsub.f32 %v9626_v10, %v13173_v31  ;;  %v2381_v55 = vand.u32 4294901760, %v2380_v37 }
  0xfd   : > { %1759 = vmatmul.f32.gmra.mxu0 %v8826_v30  ;;  %v9661_v40 = vadd.f32 %v931_v2, %v835_v20  ;;  %v2052_v24 = vsub.f32 %v9612_v9, %v13172_v57  ;;  %2166 = vmatpush.msra.mxu3 %v9559_v43  ;;  %v9679_v2 = vsub.f32 %v346_v4, %v9654_v33  ;;  %v330_v20 = vld [vmem:[%s8524_s11 + $0x1e8] sm:$0xff]  ;;  %v13177_v4 = vand.u32 4294901760, %v9643_v58 }
  0xfe   : > { %1926 = vmatmul.f32.gmra.mxu3 %v8800_v42  ;;  %1953 = vmatpush.msra.mxu0 %v9590_v60 }
  0xff   : > { %13171 = vst [vmem:[#allocation35_spill] sm:$0xff] %v9661_v40  ;;  %2042 = vmatpush.msra.mxu1 %v2041_v1  ;;  %2168 = vmatpush.msra.mxu3 %v9590_v60  ;;  %v2053_v1 = vand.u32 4294901760, %v2052_v24  ;;  %v2064_v31 = vsub.f32 %v9643_v58, %v13177_v4  ;;  %v2059_v24 = vand.u32 4294901760, %v2058_v11 }
 0x100   : > { %1881 = vmatmul.f32.gmra.mxu2 %v8800_v42  ;;  %v9684_v57 = vpop.f32.mrf.mxu1  ;;  %v9686_v53 = vpop.f32.mrf.mxu3  ;;  %1955 = vmatpush.msra.mxu0 %v9599_v22 }
 0x101   : > { %2117 = vmatpush.msra.mxu2 %v9612_v9  ;;  %13174 = vst [vmem:[#allocation36_spill] sm:$0xff] %v9684_v57  ;;  %v9689_v40 = vpop.f32.mrf.mxu0  ;;  %2048 = vmatpush.msra.mxu1 %v2047_v41  ;;  %v322_v57 = vld [vmem:[%s8524_s11 + $0x1a8] sm:$0xff]  ;;  %v9706_v41 = vand.u32 4294901760, %v330_v20  ;;  %v2065_v11 = vand.u32 4294901760, %v2064_v31 }
 0x102   : > { %13175 = vst [vmem:[#allocation37_spill] sm:$0xff] %v9686_v53  ;;  %v9699_v48 = vpop.f32.mrf.mxu2  ;;  %2170 = vmatpush.msra.mxu3 %v9599_v22  ;;  %1957 = vmatpush.msra.mxu0 %v9614_v8  ;;  %v2386_v53 = vsub.f32 %v9659_v0, %v13180_v38 }
 0x103   : > { %13176 = vst [vmem:[#allocation38_spill] sm:$0xff] %v9689_v40  ;;  %2120 = vmatpush.msra.mxu2 %v9626_v10  ;;  %v314_v40 = vld [vmem:[%s8524_s11 + $0x168] sm:$0xff]  ;;  %2054 = vmatpush.msra.mxu1 %v2053_v1  ;;  %v13181_v1 = vand.u32 4294901760, %v9679_v2 }
 0x104   : > { %13179 = vst [vmem:[#allocation39_spill] sm:$0xff] %v9699_v48  ;;  %1812 = vmatmul.f32.gmra.mxu1 %v8860_v16  ;;  %2172 = vmatpush.msra.mxu3 %v9614_v8  ;;  %v9720_v48 = vand.u32 4294901760, %v322_v57  ;;  %v9727_v8 = vsub.f32 %v330_v20, %v9706_v41  ;;  %v9729_v49 = vand.u32 4294901760, %v314_v40  ;;  %v2387_v20 = vand.u32 4294901760, %v2386_v53 }
 0x105   : > { %1963 = vmatmul.f32.vlgmr.msra.gmra.mxu0 %v8725_v61  ;;  %2123 = vmatpush.msra.mxu2 %v9643_v58  ;;  %v2392_v31 = vsub.f32 %v9679_v2, %v13181_v1 }
 0x106   : > { %2176 = vmatmul.f32.vlgmr.msra.gmra.mxu3 %v13160_v15  ;;  %3526 = vperm.xlu0 %8196, %v3504_v32   ;;  %v13183_v32 = vand.u32 4294901760, %v9452_v46  ;;  %v9743_v4 = vsub.f32 %v322_v57, %v9720_v48  ;;  %v9745_v15 = vand.u32 4294901760, %v306_v59  ;;  %v13187_v46 = vand.u32 4294901760, %v9704_v18 }
 0x107   : > { %2060 = vmatpush.msra.mxu1 %v2059_v24  ;;  %2317 = vmatpush.msrb.mxu2 %v9616_v56  ;;  %v298_v24 = vld [vmem:[%s8524_s11 + $0xe8] sm:$0xff]  ;;  %v12850_v57 = vand.u32 4294901760, %v9727_v8 }
 0x108   : > { %2126 = vmatmul.f32.vlgmr.msra.gmra.mxu2 %v13156_v21  ;;  %2205 = vmatpush.msrb.mxu0 %v13183_v32  ;;  %v9740_v38 = vpop.f32.mrf.mxu3  ;;  %v2398_v53 = vsub.f32 %v9704_v18, %v13187_v46  ;;  %v9759_v32 = vsub.f32 %v314_v40, %v9729_v49  ;;  %v9770_v46 = vsub.f32 %v306_v59, %v9745_v15 }
 0x109   : > { %v9736_v37 = vpop.f32.mrf.mxu1  ;;  %13184 = vst [vmem:[#allocation41_spill] sm:$0xff] %v9740_v38  ;;  %v9748_v21 = vpop.f32.mrf.mxu0  ;;  %2066 = vmatpush.msra.mxu1 %v2065_v11  ;;  %2382 = vmatpush.msrb.mxu3 %v2381_v55  ;;  %v290_v38 = vld [vmem:[%s8524_s11 + $0xa8] sm:$0xff]  ;;  %v13188_v55 = vand.u32 4294901760, %v9466_v63  ;;  %v2393_v11 = vand.u32 4294901760, %v2392_v31  ;;  %v2404_v59 = vsub.f32 %v9727_v8, %v12850_v57 }
 0x10a   : > { %13182 = vst [vmem:[#allocation40_spill] sm:$0xff] %v9736_v37  ;;  %v9750_v1 = vpop.f32.mrf.mxu2  ;;  %2319 = vmatpush.msrb.mxu2 %v9635_v34  ;;  %v3507_v63 = vld [vmem:[%s12782_s4 + $0x28] sm:$0xff]  ;;  %v9777_v40 = vand.u32 4294901760, %v290_v38  ;;  %v13196_v57 = vand.u32 4294901760, %v9759_v32 }
 0x10b   : > { %13185 = vst [vmem:[#allocation42_spill] sm:$0xff] %v9748_v21  ;;  %2272 = vmatpush.msrb.mxu1 %v9432_v17  ;;  %2209 = vmatpush.msrb.mxu0 %v13188_v55  ;;  %v282_v31 = vld [vmem:[%s8524_s11 + $0x68] sm:$0xff]  ;;  %v2399_v55 = vand.u32 4294901760, %v2398_v53  ;;  %v13192_v53 = vand.u32 4294901760, %v9743_v4 }
 0x10c   : > { %13186 = vst [vmem:[#allocation43_spill] sm:$0xff] %v9750_v1  ;;  %2068 = vmatmul.f32.vlgmr.msra.gmra.mxu1 %v8639_v54  ;;  %v9765_v1 = vand.u32 4294901760, %v298_v24  ;;  %2388 = vmatpush.msrb.mxu3 %v2387_v20  ;;  %v13189_v20 = vand.u32 4294901760, %v9482_v7  ;;  %v274_v21 = vld [vmem:[%s8524_s11 + $0x28] sm:$0xff]  ;;  %v9801_v17 = vand.u32 4294901760, %v282_v31 }
 0x10d   : > { %1971 = vmatmul.f32.gmra.mxu0 %v8789_v23  ;;  %2321 = vmatpush.msrb.mxu2 %v9654_v33 }
 0x10e   : > { %2182 = vmatmul.f32.gmra.mxu3 %v13119_v39  ;;  %2274 = vmatpush.msrb.mxu1 %v9445_v14  ;;  %v9789_v37 = vsub.f32 %v298_v24, %v9765_v1  ;;  %v13194_v24 = vand.u32 4294901760, %v9497_v5  ;;  %v9817_v39 = vand.u32 4294901760, %v274_v21  ;;  %v13197_v5 = vand.u32 4294901760, %v9520_v12 }
 0x10f   : > { %2213 = vmatpush.msrb.mxu0 %v13189_v20  ;;  %2394 = vmatpush.msrb.mxu3 %v2393_v11  ;;  %v2410_v20 = vsub.f32 %v9743_v4, %v13192_v53  ;;  %v2405_v53 = vand.u32 4294901760, %v2404_v59 }
 0x110   : > { %2131 = vmatmul.f32.gmra.mxu2 %v8708_v44  ;;  %3541 = vperm.xlu0 %8196, %v3507_v63   ;;  %v9795_v7 = vpop.f32.mrf.mxu3  ;;  %v9809_v63 = vsub.f32 %v290_v38, %v9777_v40 }
 0x111   : > { %2323 = vmatpush.msrb.mxu2 %v9672_v26  ;;  %v9793_v14 = vpop.f32.mrf.mxu1  ;;  %13191 = vst [vmem:[#allocation45_spill] sm:$0xff] %v9795_v7  ;;  %v9803_v11 = vpop.f32.mrf.mxu0  ;;  %2217 = vmatpush.msrb.mxu0 %v13194_v24  ;;  %v2416_v7 = vsub.f32 %v9759_v32, %v13196_v57  ;;  %v2411_v38 = vand.u32 4294901760, %v2410_v20  ;;  %v9829_v57 = vsub.f32 %v282_v31, %v9801_v17  ;;  %v13199_v24 = vand.u32 4294901760, %v9533_v52 }
 0x112   : > { %13190 = vst [vmem:[#allocation44_spill] sm:$0xff] %v9793_v14  ;;  %2276 = vmatpush.msrb.mxu1 %v9459_v35  ;;  %2400 = vmatpush.msrb.mxu3 %v2399_v55  ;;  %v12852_v35 = vand.u32 4294901760, %v9789_v37  ;;  %v13198_v55 = vand.u32 4294901760, %v9770_v46  ;;  %v2433_v12 = vand.u32 4294901760, %v9809_v63 }
 0x113   : > { %13193 = vst [vmem:[#allocation46_spill] sm:$0xff] %v9803_v11  ;;  %v9811_v14 = vpop.f32.mrf.mxu2  ;;  %2325 = vmatpush.msrb.mxu2 %v9706_v41  ;;  %2221 = vmatpush.msrb.mxu0 %v13197_v5  ;;  %v2417_v20 = vand.u32 4294901760, %v2416_v7  ;;  %v9840_v5 = vsub.f32 %v274_v21, %v9817_v39  ;;  %v2439_v7 = vand.u32 4294901760, %v9829_v57 }
 0x114   : > { %13195 = vst [vmem:[#allocation47_spill] sm:$0xff] %v9811_v14  ;;  %2072 = vmatmul.f32.gmra.mxu1 %v8696_v36  ;;  %v2422_v59 = vsub.f32 %v9770_v46, %v13198_v55  ;;  %2406 = vmatpush.msrb.mxu3 %v2405_v53  ;;  %v2428_v31 = vsub.f32 %v9789_v37, %v12852_v35 }
 0x115   : > { %1979 = vmatmul.f32.gmra.mxu0 %v8849_v50  ;;  %2278 = vmatpush.msrb.mxu1 %v9473_v27  ;;  %v3510_v27 = vld [vmem:[%s12782_s4 + $0x40] sm:$0xff]  ;;  %v2445_v35 = vand.u32 4294901760, %v9840_v5 }
 0x116   : > { %2188 = vmatmul.f32.gmra.mxu3 %v8795_v13  ;;  %2327 = vmatpush.msrb.mxu2 %v9720_v48  ;;  %v2423_v55 = vand.u32 4294901760, %v2422_v59  ;;  %v13205_v59 = vand.u32 4294901760, %v9573_v51  ;;  %v13206_v51 = vand.u32 4294901760, %v9583_v62 }
 0x117   : > { %2225 = vmatpush.msrb.mxu0 %v13199_v24  ;;  %2280 = vmatpush.msrb.mxu1 %v9499_v47  ;;  %v13203_v24 = vand.u32 4294901760, %v9556_v19  ;;  %v2434_v47 = vsub.f32 %v9809_v63, %v2433_v12  ;;  %v2440_v19 = vsub.f32 %v9829_v57, %v2439_v7 }
 0x118   : > { %2136 = vmatmul.f32.gmra.mxu2 %v8767_v45  ;;  %2412 = vmatpush.msrb.mxu3 %v2411_v38  ;;  %v9850_v53 = vpop.f32.mrf.mxu3 }
 0x119   : > { %2329 = vmatpush.msrb.mxu2 %v9729_v49  ;;  %v9848_v52 = vpop.f32.mrf.mxu1  ;;  %13201 = vst [vmem:[#allocation49_spill] sm:$0xff] %v9850_v53  ;;  %3556 = vperm.xlu0 %8196, %v3510_v27   ;;  %v9853_v21 = vpop.f32.mrf.mxu0  ;;  %v2429_v27 = vand.u32 4294901760, %v2428_v31  ;;  %v3513_v31 = vld [vmem:[%s12782_s4 + $0x58] sm:$0xff] }
 0x11a   : > { %13200 = vst [vmem:[#allocation48_spill] sm:$0xff] %v9848_v52  ;;  %2229 = vmatpush.msrb.mxu0 %v13203_v24  ;;  %2418 = vmatpush.msrb.mxu3 %v2417_v20  ;;  %v2446_v20 = vsub.f32 %v9840_v5, %v2445_v35  ;;  %v2441_v24 = vand.u32 4294901760, %v2440_v19  ;;  %v13213_v19 = vand.u32 4294901760, %v9643_v58 }
 0x11b   : > { %13202 = vst [vmem:[#allocation50_spill] sm:$0xff] %v9853_v21  ;;  %v9860_v38 = vpop.f32.mrf.mxu2  ;;  %2282 = vmatpush.msrb.mxu1 %v9506_v6  ;;  %2331 = vmatpush.msrb.mxu2 %v9745_v15  ;;  %v2435_v6 = vand.u32 4294901760, %v2434_v47 }
 0x11c   : > { %13204 = vst [vmem:[#allocation51_spill] sm:$0xff] %v9860_v38  ;;  %2233 = vmatpush.msrb.mxu0 %v13205_v59  ;;  %2424 = vmatpush.msrb.mxu3 %v2423_v55  ;;  %v13207_v55 = vand.u32 4294901760, %v9612_v9  ;;  %v2447_v9 = vand.u32 4294901760, %v2446_v20  ;;  %v324_v38 = vld [vmem:[%s8524_s11 + $0x1b8] sm:$0xff] }
 0x11d   : > { %1987 = vmatmul.f32.gmra.mxu0 %v8902_v3  ;;  %2076 = vmatmul.f32.gmra.mxu1 %v8733_v28 }
 0x11e   : > { %2194 = vmatmul.f32.gmra.mxu3 %v8860_v16  ;;  %2284 = vmatpush.msrb.mxu1 %v9535_v29  ;;  %v3505_v29 = vld [vmem:[%s12782_s4 + $0x18] sm:$0xff] }
 0x11f   : > { %2237 = vmatpush.msrb.mxu0 %v13206_v51  ;;  %2430 = vmatpush.msrb.mxu3 %v2429_v27  ;;  %v13212_v51 = vand.u32 4294901760, %v9626_v10 }
 0x120   : > { %2141 = vmatmul.f32.gmra.mxu2 %v8826_v30  ;;  %v9891_v47 = vpop.f32.mrf.mxu3  ;;  %2286 = vmatpush.msrb.mxu1 %v9551_v25  ;;  %v3508_v25 = vld [vmem:[%s12782_s4 + $0x30] sm:$0xff] }
 0x121   : > { %2333 = vmatpush.msrb.mxu2 %v9765_v1  ;;  %2241 = vmatpush.msrb.mxu0 %v13207_v55  ;;  %v9889_v62 = vpop.f32.mrf.mxu1  ;;  %13209 = vst [vmem:[#allocation53_spill] sm:$0xff] %v9891_v47 }
 0x122   : > { %13208 = vst [vmem:[#allocation52_spill] sm:$0xff] %v9889_v62  ;;  %2436 = vmatpush.msrb.mxu3 %v2435_v6  ;;  %v9894_v59 = vpop.f32.mrf.mxu0  ;;  %3571 = vperm.xlu0 %8196, %v3513_v31   ;;  %v13217_v6 = vld [vmem:[#allocation34_spill] sm:$0xff]  ;;  %v13220_v31 = vld [vmem:[#allocation31_spill] sm:$0xff] }
 0x123   : > { %13210 = vst [vmem:[#allocation54_spill] sm:$0xff] %v9894_v59  ;;  %2335 = vmatpush.msrb.mxu2 %v9777_v40  ;;  %v9897_v27 = vpop.f32.mrf.mxu2  ;;  %3531 = vperm.xlu1 %8197, %v3505_v29  }
 0x124   : > { %13211 = vst [vmem:[#allocation55_spill] sm:$0xff] %v9897_v27  ;;  %2245 = vmatpush.msrb.mxu0 %v13212_v51  ;;  %2442 = vmatpush.msrb.mxu3 %v2441_v24  ;;  %v13227_v51 = vand.u32 4294901760, %v9704_v18 }
 0x125   : > { %2288 = vmatpush.msrb.mxu1 %v9559_v43  ;;  %2337 = vmatpush.msrb.mxu2 %v9801_v17 }
 0x126   : > { %2249 = vmatpush.msrb.mxu0 %v13213_v19  ;;  %2448 = vmatpush.msrb.mxu3 %v2447_v9 }
 0x127   : > { %2080 = vmatmul.f32.gmra.mxu1 %v8800_v42  ;;  %2251 = vmatmul.f32.vlgmr.msrb.gmra.mxu0 %v8639_v54 }
 0x128   : > { %2290 = vmatpush.msrb.mxu1 %v9590_v60  ;;  %2450 = vmatmul.f32.vlgmr.msrb.gmra.mxu3 %v8639_v54  ;;  %v9915_v58 = vpop.f32.mrf.mxu3  ;;  %v13218_v60 = vand.u32 4294901760, %v13217_v6 }
 0x129   : > { %2339 = vmatpush.msrb.mxu2 %v9817_v39  ;;  %v9913_v43 = vpop.f32.mrf.mxu1  ;;  %13215 = vst [vmem:[#allocation57_spill] sm:$0xff] %v9915_v58  ;;  %2472 = vmatpush.msra.mxu0 %v13217_v6  ;;  %v13234_v6 = vand.u32 4294901760, %v9759_v32 }
 0x12a   : > { %13214 = vst [vmem:[#allocation56_spill] sm:$0xff] %v9913_v43  ;;  %2345 = vmatmul.f32.vlgmr.msrb.gmra.mxu2 %v8725_v61  ;;  %2292 = vmatpush.msrb.mxu1 %v9599_v22  ;;  %v9919_v10 = vpop.f32.mrf.mxu0  ;;  %v13221_v22 = vand.u32 4294901760, %v9659_v0 }
 0x12b   : > { %13216 = vst [vmem:[#allocation58_spill] sm:$0xff] %v9919_v10  ;;  %2587 = vmatpush.msra.mxu2 %v13218_v60  ;;  %v9924_v20 = vpop.f32.mrf.mxu2  ;;  %2654 = vmatpush.msra.mxu3 %v9616_v56  ;;  %v13235_v60 = vand.u32 4294901760, %v9770_v46 }
 0x12c   : > { %13219 = vst [vmem:[#allocation34_spill] sm:$0xff] %v9924_v20  ;;  %3546 = vperm.xlu1 %8197, %v3508_v25   ;;  %2294 = vmatpush.msrb.mxu1 %v13220_v31  ;;  %v363_v25 = vld [vmem:[%s8524_s11 + $0x2f0] sm:$0xff] }
 0x12d   : > { %2475 = vmatpush.msra.mxu0 %v9659_v0  ;;  %2656 = vmatpush.msra.mxu3 %v9635_v34  ;;  %v3511_v0 = vld [vmem:[%s12782_s4 + $0x48] sm:$0xff]  ;;  %v347_v31 = vld [vmem:[%s8524_s11 + $0x270] sm:$0xff] }
 0x12e   : > { %2591 = vmatpush.msra.mxu2 %v13221_v22  ;;  %2532 = vmatpush.msra.mxu1 %v9616_v56  ;;  %v13225_v56 = vand.u32 4294901760, %v9679_v2  ;;  %v13236_v22 = vand.u32 4294901760, %v9789_v37 }
 0x12f   : > { %2296 = vmatmul.f32.vlgmr.msrb.gmra.mxu1 %v8639_v54  ;;  %2478 = vmatpush.msra.mxu0 %v9679_v2  ;;  %v13228_v2 = vand.u32 4294901760, %v9727_v8 }
 0x130   : > { %2255 = vmatmul.f32.gmra.mxu0 %v8696_v36  ;;  %2454 = vmatmul.f32.gmra.mxu3 %v8696_v36 }
 0x131   : > { %2481 = vmatpush.msra.mxu0 %v9704_v18  ;;  %v9938_v55 = vpop.f32.mrf.mxu1  ;;  %v9940_v29 = vpop.f32.mrf.mxu3  ;;  %2658 = vmatpush.msra.mxu3 %v9654_v33 }
 0x132   : > { %13222 = vst [vmem:[#allocation31_spill] sm:$0xff] %v9938_v55  ;;  %2353 = vmatmul.f32.gmra.mxu2 %v8789_v23  ;;  %v9947_v24 = vpop.f32.mrf.mxu0  ;;  %2534 = vmatpush.msra.mxu1 %v9635_v34 }
 0x133   : > { %13223 = vst [vmem:[#allocation59_spill] sm:$0xff] %v9940_v29  ;;  %2595 = vmatpush.msra.mxu2 %v13225_v56  ;;  %v9952_v9 = vpop.f32.mrf.mxu2  ;;  %2660 = vmatpush.msra.mxu3 %v9672_v26  ;;  %v10013_v56 = vand.u32 4294901760, %v347_v31 }
 0x134   : > { %13224 = vst [vmem:[#allocation60_spill] sm:$0xff] %v9947_v24  ;;  %2484 = vmatpush.msra.mxu0 %v9727_v8  ;;  %3561 = vperm.xlu1 %8197, %v3511_v0  }
 0x135   : > { %13226 = vst [vmem:[#allocation61_spill] sm:$0xff] %v9952_v9  ;;  %2599 = vmatpush.msra.mxu2 %v13227_v51  ;;  %2662 = vmatpush.msra.mxu3 %v9706_v41  ;;  %v339_v51 = vld [vmem:[%s8524_s11 + $0x230] sm:$0xff] }
 0x136   : > { %2487 = vmatpush.msra.mxu0 %v9743_v4  ;;  %2536 = vmatpush.msra.mxu1 %v9654_v33  ;;  %v13232_v33 = vand.u32 4294901760, %v9743_v4  ;;  %v9989_v4 = vand.u32 4294901760, %v363_v25 }
 0x137   : > { %2603 = vmatpush.msra.mxu2 %v13228_v2  ;;  %2664 = vmatpush.msra.mxu3 %v9720_v48 }
 0x138   : > { %2259 = vmatmul.f32.gmra.mxu0 %v8733_v28  ;;  %2300 = vmatmul.f32.gmra.mxu1 %v8696_v36 }
 0x139   : > { %2458 = vmatmul.f32.gmra.mxu3 %v8733_v28  ;;  %v9967_v34 = vpop.f32.mrf.mxu1  ;;  %v9969_v18 = vpop.f32.mrf.mxu3  ;;  %2490 = vmatpush.msra.mxu0 %v9759_v32 }
 0x13a   : > { %13229 = vst [vmem:[#allocation62_spill] sm:$0xff] %v9967_v34  ;;  %2538 = vmatpush.msra.mxu1 %v9672_v26  ;;  %v9973_v8 = vpop.f32.mrf.mxu0  ;;  %2607 = vmatpush.msra.mxu2 %v13232_v33  ;;  %v355_v26 = vld [vmem:[%s8524_s11 + $0x2b0] sm:$0xff] }
 0x13b   : > { %13230 = vst [vmem:[#allocation63_spill] sm:$0xff] %v9969_v18  ;;  %2666 = vmatpush.msra.mxu3 %v9729_v49  ;;  %v9978_v19 = vpop.f32.mrf.mxu2  ;;  %2361 = vmatmul.f32.gmra.mxu2 %v8849_v50  ;;  %v9997_v32 = vand.u32 4294901760, %v355_v26  ;;  %v331_v33 = vld [vmem:[%s8524_s11 + $0x1f0] sm:$0xff]  ;;  %v356_v18 = vld [vmem:[%s8524_s11 + $0x2b8] sm:$0xff] }
 0x13c   : > { %13231 = vst [vmem:[#allocation64_spill] sm:$0xff] %v9973_v8  ;;  %2493 = vmatpush.msra.mxu0 %v9770_v46  ;;  %2611 = vmatpush.msra.mxu2 %v13234_v6  ;;  %v10043_v6 = vand.u32 4294901760, %v331_v33  ;;  %v10138_v43 = vand.u32 4294901760, %v356_v18  ;;  %v308_v50 = vld [vmem:[%s8524_s11 + $0x138] sm:$0xff] }
 0x13d   : > { %13233 = vst [vmem:[#allocation65_spill] sm:$0xff] %v9978_v19  ;;  %2668 = vmatpush.msra.mxu3 %v9745_v15  ;;  %2540 = vmatpush.msra.mxu1 %v9706_v41  ;;  %v10024_v2 = vsub.f32 %v355_v26, %v9997_v32 }
 0x13e   : > { %2496 = vmatpush.msra.mxu0 %v9789_v37  ;;  %2615 = vmatpush.msra.mxu2 %v13235_v60  ;;  %v10169_v24 = vsub.f32 %v356_v18, %v10138_v43 }
 0x13f   : > { %2670 = vmatpush.msra.mxu3 %v9765_v1  ;;  %2542 = vmatpush.msra.mxu1 %v9720_v48  ;;  %v10011_v48 = vsub.f32 %v363_v25, %v9989_v4  ;;  %v10031_v25 = vand.u32 4294901760, %v339_v51 }
 0x140   : > { %2499 = vmatpush.msra.mxu0 %v9809_v63  ;;  %2619 = vmatpush.msra.mxu2 %v13236_v22 }
 0x141   : > { %2672 = vmatpush.msra.mxu3 %v9777_v40  ;;  %v10002_v41 = vpop.f32.mrf.mxu1  ;;  %v10004_v46 = vpop.f32.mrf.mxu3  ;;  %2263 = vmatmul.f32.gmra.mxu0 %v8800_v42  ;;  %v12853_v63 = vand.u32 4294901760, %v10011_v48 }
 0x142   : > { %13237 = vst [vmem:[#allocation66_spill] sm:$0xff] %v10002_v41  ;;  %2304 = vmatmul.f32.gmra.mxu1 %v8733_v28  ;;  %v10008_v0 = vpop.f32.mrf.mxu0  ;;  %2462 = vmatmul.f32.gmra.mxu3 %v8800_v42  ;;  %v275_v41 = vld [vmem:[%s8524_s11 + $0x30] sm:$0xff] }
 0x143   : > { %13238 = vst [vmem:[#allocation67_spill] sm:$0xff] %v10004_v46  ;;  %2502 = vmatpush.msra.mxu0 %v9829_v57  ;;  %v10017_v37 = vpop.f32.mrf.mxu2  ;;  %2544 = vmatpush.msra.mxu1 %v9729_v49  ;;  %v10034_v49 = vsub.f32 %v347_v31, %v10013_v56  ;;  %v2762_v60 = vsub.f32 %v10011_v48, %v12853_v63 }
 0x144   : > { %13239 = vst [vmem:[#allocation68_spill] sm:$0xff] %v10008_v0  ;;  %2623 = vmatpush.msra.mxu2 %v2433_v12  ;;  %2674 = vmatpush.msra.mxu3 %v9801_v17  ;;  %v323_v12 = vld [vmem:[%s8524_s11 + $0x1b0] sm:$0xff]  ;;  %v10060_v31 = vsub.f32 %v339_v51, %v10031_v25  ;;  %v10077_v63 = vsub.f32 %v331_v33, %v10043_v6 }
 0x145   : > { %13240 = vst [vmem:[#allocation69_spill] sm:$0xff] %v10017_v37  ;;  %2369 = vmatmul.f32.gmra.mxu2 %v8902_v3  ;;  %2505 = vmatpush.msra.mxu0 %v9840_v5  ;;  %v13245_v5 = vld [vmem:[#allocation8_spill] sm:$0xff] }
 0x146   : > { %2546 = vmatpush.msra.mxu1 %v9745_v15  ;;  %2627 = vmatpush.msra.mxu2 %v2439_v7  ;;  %v12854_v15 = vand.u32 4294901760, %v10024_v2  ;;  %v315_v7 = vld [vmem:[%s8524_s11 + $0x170] sm:$0xff] }
 0x147   : > { %2676 = vmatpush.msra.mxu3 %v9817_v39  ;;  %2699 = vmatpush.msrb.mxu0 %v9989_v4 }
 0x148   : > { %2548 = vmatpush.msra.mxu1 %v9765_v1  ;;  %2631 = vmatpush.msra.mxu2 %v2445_v35  ;;  %v10064_v35 = vand.u32 4294901760, %v323_v12  ;;  %v2768_v51 = vsub.f32 %v10024_v2, %v12854_v15 }
 0x149   : > { %2914 = vmatpush.msrb.mxu3 %v9989_v4  ;;  %v10049_v26 = vpop.f32.mrf.mxu1  ;;  %v10051_v57 = vpop.f32.mrf.mxu3  ;;  %2701 = vmatpush.msrb.mxu0 %v9997_v32 }
 0x14a   : > { %13241 = vst [vmem:[#allocation70_spill] sm:$0xff] %v10049_v26  ;;  %2854 = vmatpush.msrb.mxu2 %v10011_v48  ;;  %v10062_v1 = vpop.f32.mrf.mxu0  ;;  %2550 = vmatpush.msra.mxu1 %v9777_v40  ;;  %v307_v40 = vld [vmem:[%s8524_s11 + $0x130] sm:$0xff]  ;;  %v13246_v26 = vand.u32 4294901760, %v10034_v49  ;;  %v10090_v33 = vsub.f32 %v323_v12, %v10064_v35 }
 0x14b   : > { %13242 = vst [vmem:[#allocation71_spill] sm:$0xff] %v10051_v57  ;;  %2916 = vmatpush.msrb.mxu3 %v9997_v32  ;;  %v10069_v22 = vpop.f32.mrf.mxu2  ;;  %2703 = vmatpush.msrb.mxu0 %v10013_v56  ;;  %v10079_v57 = vand.u32 4294901760, %v315_v7  ;;  %v299_v12 = vld [vmem:[%s8524_s11 + $0xf0] sm:$0xff] }
 0x14c   : > { %13243 = vst [vmem:[#allocation72_spill] sm:$0xff] %v10062_v1  ;;  %2857 = vmatpush.msrb.mxu2 %v10024_v2  ;;  %2308 = vmatmul.f32.gmra.mxu1 %v8800_v42  ;;  %v2774_v15 = vsub.f32 %v10034_v49, %v13246_v26  ;;  %v364_v1 = vld [vmem:[%s8524_s11 + $0x2f8] sm:$0xff] }
 0x14d   : > { %13244 = vst [vmem:[#allocation73_spill] sm:$0xff] %v10069_v22  ;;  %2918 = vmatpush.msrb.mxu3 %v10013_v56  ;;  %2508 = vmatmul.f32.vlgmr.msra.gmra.mxu0 %v13245_v5  ;;  %v2763_v22 = vand.u32 4294901760, %v2762_v60  ;;  %v10098_v60 = vand.u32 4294901760, %v307_v40  ;;  %v10101_v26 = vsub.f32 %v315_v7, %v10079_v57  ;;  %v13249_v7 = vand.u32 4294901760, %v10060_v31 }
 0x14e   : > { %2552 = vmatpush.msra.mxu1 %v9801_v17  ;;  %2678 = vmatmul.f32.vlgmr.msra.gmra.mxu3 %v8639_v54  ;;  %v2769_v17 = vand.u32 4294901760, %v2768_v51  ;;  %v2775_v51 = vand.u32 4294901760, %v2774_v15  ;;  %v10120_v9 = vand.u32 4294901760, %v364_v1  ;;  %v348_v15 = vld [vmem:[%s8524_s11 + $0x278] sm:$0xff] }
 0x14f   : > { %2705 = vmatpush.msrb.mxu0 %v10031_v25  ;;  %2860 = vmatpush.msrb.mxu2 %v10034_v49  ;;  %v2780_v20 = vsub.f32 %v10060_v31, %v13249_v7  ;;  %v13252_v7 = vand.u32 4294901760, %v10077_v63  ;;  %v10134_v46 = vsub.f32 %v307_v40, %v10098_v60  ;;  %v13254_v40 = vand.u32 4294901760, %v10090_v33 }
 0x150   : > { %2920 = vmatpush.msrb.mxu3 %v10031_v25  ;;  %2554 = vmatpush.msra.mxu1 %v9817_v39  ;;  %v291_v39 = vld [vmem:[%s8524_s11 + $0xb0] sm:$0xff]  ;;  %v10149_v37 = vsub.f32 %v364_v1, %v10120_v9  ;;  %v10151_v19 = vand.u32 4294901760, %v348_v15  ;;  %v13257_v1 = vand.u32 4294901760, %v10101_v26 }
 0x151   : > { %2633 = vmatmul.f32.vlgmr.msra.gmra.mxu2 %v8639_v54  ;;  %v10107_v0 = vpop.f32.mrf.mxu1  ;;  %v10109_v29 = vpop.f32.mrf.mxu3  ;;  %2707 = vmatpush.msrb.mxu0 %v10043_v6 }
 0x152   : > { %13247 = vst [vmem:[#allocation8_spill] sm:$0xff] %v10107_v0  ;;  %2764 = vmatpush.msrb.mxu1 %v2763_v22  ;;  %v10116_v58 = vpop.f32.mrf.mxu0  ;;  %2863 = vmatpush.msrb.mxu2 %v10060_v31  ;;  %v2786_v0 = vsub.f32 %v10077_v63, %v13252_v7  ;;  %v2792_v7 = vsub.f32 %v10090_v33, %v13254_v40 }
 0x153   : > { %13248 = vst [vmem:[#allocation74_spill] sm:$0xff] %v10109_v29  ;;  %2922 = vmatpush.msrb.mxu3 %v10043_v6  ;;  %v10124_v29 = vand.u32 4294901760, %v299_v12  ;;  %v10126_v22 = vpop.f32.mrf.mxu2  ;;  %2709 = vmatpush.msrb.mxu0 %v10064_v35  ;;  %v2798_v59 = vsub.f32 %v10101_v26, %v13257_v1  ;;  %v10185_v53 = vsub.f32 %v348_v15, %v10151_v19 }
 0x154   : > { %13250 = vst [vmem:[#allocation75_spill] sm:$0xff] %v10116_v58  ;;  %2770 = vmatpush.msrb.mxu1 %v2769_v17  ;;  %v283_v58 = vld [vmem:[%s8524_s11 + $0x70] sm:$0xff]  ;;  %2866 = vmatpush.msrb.mxu2 %v10077_v63  ;;  %v2781_v17 = vand.u32 4294901760, %v2780_v20  ;;  %v13256_v20 = vld [vmem:[#allocation9_spill] sm:$0xff]  ;;  %v2787_v40 = vand.u32 4294901760, %v2786_v0  ;;  %v2793_v1 = vand.u32 4294901760, %v2792_v7 }
 0x155   : > { %13251 = vst [vmem:[#allocation76_spill] sm:$0xff] %v10126_v22  ;;  %2924 = vmatpush.msrb.mxu3 %v10064_v35  ;;  %v10142_v22 = vand.u32 4294901760, %v291_v39  ;;  %2711 = vmatpush.msrb.mxu0 %v10079_v57  ;;  %v10156_v55 = vsub.f32 %v299_v12, %v10124_v29  ;;  %v10158_v34 = vand.u32 4294901760, %v283_v58  ;;  %v2799_v15 = vand.u32 4294901760, %v2798_v59 }
 0x156   : > { %2776 = vmatpush.msrb.mxu1 %v2775_v51  ;;  %2869 = vmatpush.msrb.mxu2 %v10090_v33  ;;  %v340_v51 = vld [vmem:[%s8524_s11 + $0x238] sm:$0xff]  ;;  %13261 = vst [vmem:[#allocation81_spill] sm:$0xff] %v10185_v53  ;;  %v13265_v59 = vand.u32 4294901760, %v10149_v37  ;;  %v13272_v3 = vand.u32 4294901760, %v10185_v53 }
 0x157   : > { %13253 = vst [vmem:[#allocation77_spill] sm:$0xff] %v10142_v22  ;;  %2926 = vmatpush.msrb.mxu3 %v10079_v57  ;;  %2513 = vmatmul.f32.gmra.mxu0 %v8708_v44  ;;  %v10174_v12 = vsub.f32 %v291_v39, %v10142_v22  ;;  %v10187_v47 = vand.u32 4294901760, %v340_v51  ;;  %v332_v39 = vld [vmem:[%s8524_s11 + $0x1f8] sm:$0xff] }
 0x158   : > { %13255 = vst [vmem:[#allocation78_spill] sm:$0xff] %v10158_v34  ;;  %2558 = vmatmul.f32.vlgmr.msra.gmra.mxu1 %v13256_v20  ;;  %2682 = vmatmul.f32.gmra.mxu3 %v8696_v36  ;;  %v10209_v7 = vand.u32 4294901760, %v332_v39 }
 0x159   : > { %2713 = vmatpush.msrb.mxu0 %v10098_v60  ;;  %v10176_v8 = vpop.f32.mrf.mxu1  ;;  %v10178_v0 = vpop.f32.mrf.mxu3  ;;  %2782 = vmatpush.msrb.mxu1 %v2781_v17  ;;  %v10195_v17 = vsub.f32 %v283_v58, %v10158_v34  ;;  %v10217_v14 = vsub.f32 %v340_v51, %v10187_v47  ;;  %v13266_v58 = vand.u32 4294901760, %v10156_v55 }
 0x15a   : > { %13258 = vst [vmem:[#allocation9_spill] sm:$0xff] %v10176_v8  ;;  %2872 = vmatpush.msrb.mxu2 %v10101_v26  ;;  %v10182_v18 = vpop.f32.mrf.mxu0  ;;  %2928 = vmatpush.msrb.mxu3 %v10098_v60  ;;  %v13264_v8 = vand.u32 4294901760, %v10134_v46  ;;  %v10241_v52 = vsub.f32 %v332_v39, %v10209_v7 }
 0x15b   : > { %13259 = vst [vmem:[#allocation79_spill] sm:$0xff] %v10178_v0  ;;  %2637 = vmatmul.f32.gmra.mxu2 %v8696_v36  ;;  %v10192_v0 = vand.u32 4294901760, %v275_v41  ;;  %v10198_v10 = vpop.f32.mrf.mxu2  ;;  %2715 = vmatpush.msrb.mxu0 %v10124_v29  ;;  %v2810_v27 = vsub.f32 %v10156_v55, %v13266_v58  ;;  %v3156_v36 = vsub.f32 %v10185_v53, %v13272_v3  ;;  %v292_v53 = vld [vmem:[%s8524_s11 + $0xb8] sm:$0xff] }
 0x15c   : > { %13260 = vst [vmem:[#allocation80_spill] sm:$0xff] %v10182_v18  ;;  %2788 = vmatpush.msrb.mxu1 %v2787_v40  ;;  %v2804_v18 = vsub.f32 %v10134_v46, %v13264_v8  ;;  %2875 = vmatpush.msrb.mxu2 %v10134_v46  ;;  %v3144_v40 = vsub.f32 %v10149_v37, %v13265_v59  ;;  %v10229_v59 = vand.u32 4294901760, %v324_v38  ;;  %v13267_v8 = vand.u32 4294901760, %v10169_v24 }
 0x15d   : > { %13262 = vst [vmem:[#allocation82_spill] sm:$0xff] %v10192_v0  ;;  %2930 = vmatpush.msrb.mxu3 %v10124_v29  ;;  %2717 = vmatpush.msrb.mxu0 %v10142_v22 }
 0x15e   : > { %13263 = vst [vmem:[#allocation83_spill] sm:$0xff] %v10198_v10  ;;  %2794 = vmatpush.msrb.mxu1 %v2793_v1  ;;  %v316_v10 = vld [vmem:[%s8524_s11 + $0x178] sm:$0xff]  ;;  %2878 = vmatpush.msrb.mxu2 %v10156_v55  ;;  %v10226_v1 = vsub.f32 %v275_v41, %v10192_v0  ;;  %v2805_v51 = vand.u32 4294901760, %v2804_v18  ;;  %v3150_v62 = vsub.f32 %v10169_v24, %v13267_v8  ;;  %v13268_v41 = vand.u32 4294901760, %v10174_v12 }
 0x15f   : > { %2932 = vmatpush.msrb.mxu3 %v10142_v22  ;;  %2719 = vmatpush.msrb.mxu0 %v10158_v34  ;;  %v13271_v8 = vld [vmem:[#allocation11_spill] sm:$0xff]  ;;  %v3145_v21 = vand.u32 4294901760, %v3144_v40 }
 0x160   : > { %2800 = vmatpush.msrb.mxu1 %v2799_v15  ;;  %2881 = vmatpush.msrb.mxu2 %v10174_v12  ;;  %v2816_v58 = vsub.f32 %v10174_v12, %v13268_v41  ;;  %v10245_v15 = vand.u32 4294901760, %v316_v10  ;;  %v3151_v41 = vand.u32 4294901760, %v3150_v62  ;;  %v13277_v62 = vand.u32 4294901760, %v10217_v14 }
 0x161   : > { %2934 = vmatpush.msrb.mxu3 %v10158_v34  ;;  %v10243_v11 = vpop.f32.mrf.mxu1  ;;  %v10247_v18 = vpop.f32.mrf.mxu3  ;;  %2518 = vmatmul.f32.gmra.mxu0 %v8767_v45  ;;  %v10265_v34 = vsub.f32 %v324_v38, %v10229_v59  ;;  %v10277_v38 = vand.u32 4294901760, %v308_v50 }
 0x162   : > { %13269 = vst [vmem:[#allocation84_spill] sm:$0xff] %v10243_v11  ;;  %2564 = vmatmul.f32.gmra.mxu1 %v13271_v8  ;;  %v10255_v39 = vpop.f32.mrf.mxu0  ;;  %2686 = vmatmul.f32.gmra.mxu3 %v8733_v28  ;;  %v13274_v11 = vand.u32 4294901760, %v10195_v17  ;;  %v10275_v40 = vsub.f32 %v316_v10, %v10245_v15 }
 0x163   : > { %13270 = vst [vmem:[#allocation85_spill] sm:$0xff] %v10247_v18  ;;  %2721 = vmatpush.msrb.mxu0 %v10192_v0  ;;  %v2811_v18 = vand.u32 4294901760, %v2810_v27  ;;  %v10267_v3 = vpop.f32.mrf.mxu2  ;;  %2806 = vmatpush.msrb.mxu1 %v2805_v51  ;;  %v2817_v27 = vand.u32 4294901760, %v2816_v58  ;;  %v3157_v51 = vand.u32 4294901760, %v3156_v36  ;;  %v284_v36 = vld [vmem:[%s8524_s11 + $0x78] sm:$0xff] }
 0x164   : > { %13273 = vst [vmem:[#allocation11_spill] sm:$0xff] %v10255_v39  ;;  %v2822_v45 = vsub.f32 %v10195_v17, %v13274_v11  ;;  %2884 = vmatpush.msrb.mxu2 %v10195_v17  ;;  %v300_v39 = vld [vmem:[%s8524_s11 + $0xf8] sm:$0xff]  ;;  %2936 = vmatpush.msrb.mxu3 %v10192_v0  ;;  %v3162_v0 = vsub.f32 %v10217_v14, %v13277_v62  ;;  %v13278_v11 = vand.u32 4294901760, %v10226_v1 }
 0x165   : > { %13275 = vst [vmem:[#allocation86_spill] sm:$0xff] %v10267_v3  ;;  %2641 = vmatmul.f32.gmra.mxu2 %v8733_v28  ;;  %v13276_v3 = vand.u32 4294901760, %v10011_v48  ;;  %2812 = vmatpush.msrb.mxu1 %v2811_v18  ;;  %v12870_v28 = vand.u32 4294901760, %v10265_v34  ;;  %v10290_v22 = vand.u32 4294901760, %v300_v39  ;;  %v13280_v48 = vand.u32 4294901760, %v10241_v52 }
 0x166   : > { %3146 = vmatpush.msra.mxu3 %v3145_v21  ;;  %2887 = vmatpush.msrb.mxu2 %v10226_v1  ;;  %v2823_v58 = vand.u32 4294901760, %v2822_v45  ;;  %v2828_v10 = vsub.f32 %v10226_v1, %v13278_v11  ;;  %v13279_v21 = vand.u32 4294901760, %v10024_v2  ;;  %v10303_v11 = vand.u32 4294901760, %v292_v53 }
 0x167   : > { %2969 = vmatpush.msra.mxu0 %v13276_v3  ;;  %2818 = vmatpush.msrb.mxu1 %v2817_v27  ;;  %v3168_v45 = vsub.f32 %v10241_v52, %v13280_v48  ;;  %v10301_v3 = vsub.f32 %v308_v50, %v10277_v38  ;;  %v3174_v50 = vsub.f32 %v10265_v34, %v12870_v28 }
 0x168   : > { %3081 = vmatpush.msra.mxu2 %v10120_v9  ;;  %3152 = vmatpush.msra.mxu3 %v3151_v41  ;;  %v3163_v41 = vand.u32 4294901760, %v3162_v0  ;;  %v2829_v48 = vand.u32 4294901760, %v2828_v10  ;;  %v10318_v18 = vsub.f32 %v300_v39, %v10290_v22  ;;  %v13284_v0 = vand.u32 4294901760, %v10060_v31 }
 0x169   : > { %2973 = vmatpush.msra.mxu0 %v13279_v21  ;;  %v10305_v62 = vpop.f32.mrf.mxu1  ;;  %v10307_v2 = vpop.f32.mrf.mxu3  ;;  %v13283_v21 = vand.u32 4294901760, %v10034_v49  ;;  %2824 = vmatpush.msrb.mxu1 %v2823_v58  ;;  %v276_v49 = vld [vmem:[%s8524_s11 + $0x38] sm:$0xff]  ;;  %v13285_v58 = vand.u32 4294901760, %v10275_v40  ;;  %v12871_v10 = vand.u32 4294901760, %v10301_v3  ;;  %v3175_v28 = vand.u32 4294901760, %v3174_v50 }
 0x16a   : > { %13281 = vst [vmem:[#allocation87_spill] sm:$0xff] %v10305_v62  ;;  %3083 = vmatpush.msra.mxu2 %v10138_v43  ;;  %v10312_v27 = vpop.f32.mrf.mxu0  ;;  %3158 = vmatpush.msra.mxu3 %v3157_v51  ;;  %v3169_v51 = vand.u32 4294901760, %v3168_v45  ;;  %v13288_v31 = vand.u32 4294901760, %v10090_v33  ;;  %v13290_v33 = vand.u32 4294901760, %v10101_v26 }
 0x16b   : > { %13282 = vst [vmem:[#allocation88_spill] sm:$0xff] %v10307_v2  ;;  %2977 = vmatpush.msra.mxu0 %v13283_v21  ;;  %v10320_v62 = vpop.f32.mrf.mxu2  ;;  %v10322_v2 = vand.u32 4294901760, %v284_v36  ;;  %2570 = vmatmul.f32.gmra.mxu1 %v8795_v13  ;;  %v3180_v39 = vsub.f32 %v10275_v40, %v13285_v58  ;;  %v10335_v21 = vsub.f32 %v292_v53, %v10303_v11  ;;  %v13286_v58 = vand.u32 4294901760, %v10077_v63 }
 0x16c   : > { %2523 = vmatmul.f32.gmra.mxu0 %v8826_v30  ;;  %2690 = vmatmul.f32.gmra.mxu3 %v8800_v42  ;;  %v13289_v63 = vand.u32 4294901760, %v10318_v18 }
 0x16d   : > { %2981 = vmatpush.msra.mxu0 %v13284_v0  ;;  %3085 = vmatpush.msra.mxu2 %v10151_v19  ;;  %v10341_v45 = vsub.f32 %v284_v36, %v10322_v2  ;;  %v10343_v0 = vand.u32 4294901760, %v276_v49  ;;  %v3181_v53 = vand.u32 4294901760, %v3180_v39 }
 0x16e   : > { %3164 = vmatpush.msra.mxu3 %v3163_v41  ;;  %2830 = vmatpush.msrb.mxu1 %v2829_v48  ;;  %v3186_v41 = vsub.f32 %v10301_v3, %v12871_v10  ;;  %v12874_v48 = vand.u32 4294901760, %v10335_v21 }
 0x16f   : > { %2645 = vmatmul.f32.gmra.mxu2 %v8800_v42  ;;  %2985 = vmatpush.msra.mxu0 %v13286_v58  ;;  %v12873_v39 = vand.u32 4294901760, %v10341_v45  ;;  %v10368_v58 = vsub.f32 %v276_v49, %v10343_v0  ;;  %v13291_v49 = vand.u32 4294901760, %v10134_v46  ;;  %v13292_v46 = vand.u32 4294901760, %v10156_v55 }
 0x170   : > { %3036 = vmatpush.msra.mxu1 %v9989_v4  ;;  %3087 = vmatpush.msra.mxu2 %v10187_v47  ;;  %v13294_v55 = vand.u32 4294901760, %v10195_v17 }
 0x171   : > { %3170 = vmatpush.msra.mxu3 %v3169_v51  ;;  %v10353_v50 = vpop.f32.mrf.mxu1  ;;  %v10355_v36 = vpop.f32.mrf.mxu3  ;;  %2989 = vmatpush.msra.mxu0 %v13288_v31  ;;  %v3192_v51 = vsub.f32 %v10318_v18, %v13289_v63  ;;  %v12872_v31 = vand.u32 4294901760, %v10368_v58 }
 0x172   : > { %13287 = vst [vmem:[#allocation89_spill] sm:$0xff] %v10355_v36  ;;  %3038 = vmatpush.msra.mxu1 %v9997_v32  ;;  %v10360_v4 = vpop.f32.mrf.mxu0  ;;  %3089 = vmatpush.msra.mxu2 %v10209_v7  ;;  %v3198_v32 = vsub.f32 %v10335_v21, %v12874_v48  ;;  %v13328_v48 = vld [vmem:[#allocation28_spill] sm:$0xff] }
 0x173   : > { %3176 = vmatpush.msra.mxu3 %v3175_v28  ;;  %v10370_v10 = vpop.f32.mrf.mxu2  ;;  %2993 = vmatpush.msra.mxu0 %v13290_v33  ;;  %v3187_v28 = vand.u32 4294901760, %v3186_v41  ;;  %v3193_v26 = vand.u32 4294901760, %v3192_v51  ;;  %v3210_v33 = vsub.f32 %v10368_v58, %v12872_v31 }
 0x174   : > { %3040 = vmatpush.msra.mxu1 %v10013_v56  ;;  %3091 = vmatpush.msra.mxu2 %v10229_v59  ;;  %v3204_v56 = vsub.f32 %v10341_v45, %v12873_v39 }
 0x175   : > { %3182 = vmatpush.msra.mxu3 %v3181_v53  ;;  %2576 = vmatmul.f32.gmra.mxu1 %v8860_v16  ;;  %v3199_v53 = vand.u32 4294901760, %v3198_v32  ;;  %v13293_v32 = vand.u32 4294901760, %v10174_v12 }
 0x176   : > { %2727 = vmatmul.f32.vlgmr.msrb.gmra.mxu0 %v8725_v61  ;;  %2940 = vmatmul.f32.vlgmr.msrb.gmra.mxu3 %v13256_v20 }
 0x177   : > { %2997 = vmatpush.msra.mxu0 %v13291_v49  ;;  %3042 = vmatpush.msra.mxu1 %v10031_v25  ;;  %v3205_v25 = vand.u32 4294901760, %v3204_v56  ;;  %v13300_v56 = vand.u32 4294901760, %v10169_v24 }
 0x178   : > { %3093 = vmatpush.msra.mxu2 %v10245_v15  ;;  %3188 = vmatpush.msra.mxu3 %v3187_v28 }
 0x179   : > { %2890 = vmatmul.f32.vlgmr.msrb.gmra.mxu2 %v13245_v5  ;;  %v10391_v41 = vpop.f32.mrf.mxu1  ;;  %3001 = vmatpush.msra.mxu0 %v13292_v46  ;;  %v10398_v51 = vpop.f32.mrf.mxu3 }
 0x17a   : > { %3044 = vmatpush.msra.mxu1 %v10043_v6  ;;  %v10396_v63 = vpop.f32.mrf.mxu0  ;;  %3095 = vmatpush.msra.mxu2 %v10277_v38  ;;  %v3211_v6 = vand.u32 4294901760, %v3210_v33  ;;  %v13306_v33 = vld [vmem:[#allocation14_spill] sm:$0xff] }
 0x17b   : > { %3194 = vmatpush.msra.mxu3 %v3193_v26  ;;  %v10404_v28 = vpop.f32.mrf.mxu2  ;;  %3005 = vmatpush.msra.mxu0 %v13293_v32  ;;  %v13299_v26 = vld [vmem:[#allocation81_spill] sm:$0xff]  ;;  %v13308_v32 = vld [vmem:[#allocation10_spill] sm:$0xff] }
 0x17c   : > { %3046 = vmatpush.msra.mxu1 %v10064_v35  ;;  %3097 = vmatpush.msra.mxu2 %v10290_v22  ;;  %v13295_v35 = vand.u32 4294901760, %v10226_v1  ;;  %v13298_v1 = vld [vmem:[#allocation77_spill] sm:$0xff] }
 0x17d   : > { %3200 = vmatpush.msra.mxu3 %v3199_v53  ;;  %3009 = vmatpush.msra.mxu0 %v13294_v55  ;;  %v13301_v53 = vld [vmem:[#allocation78_spill] sm:$0xff] }
 0x17e   : > { %3048 = vmatpush.msra.mxu1 %v10079_v57  ;;  %3099 = vmatpush.msra.mxu2 %v10303_v11  ;;  %v13309_v55 = vld [vmem:[#allocation82_spill] sm:$0xff] }
 0x17f   : > { %3206 = vmatpush.msra.mxu3 %v3205_v25  ;;  %2735 = vmatmul.f32.gmra.mxu0 %v8789_v23 }
 0x180   : > { %2832 = vmatmul.f32.vlgmr.msrb.gmra.mxu1 %v8639_v54  ;;  %2946 = vmatmul.f32.gmra.mxu3 %v13271_v8 }
 0x181   : > { %3013 = vmatpush.msra.mxu0 %v13295_v35  ;;  %v10419_v12 = vpop.f32.mrf.mxu1  ;;  %3050 = vmatpush.msra.mxu1 %v10098_v60  ;;  %v10425_v17 = vpop.f32.mrf.mxu3  ;;  %v13297_v60 = vand.u32 4294901760, %v10149_v37  ;;  %v13311_v35 = vld [vmem:[#allocation24_spill] sm:$0xff] }
 0x182   : > { %3101 = vmatpush.msra.mxu2 %v10322_v2  ;;  %v10423_v57 = vpop.f32.mrf.mxu0  ;;  %3212 = vmatpush.msra.mxu3 %v3211_v6  ;;  %v13310_v6 = vand.u32 4294901760, %v10217_v14 }
 0x183   : > { %13296 = vst [vmem:[#allocation90_spill] sm:$0xff] %v10423_v57  ;;  %3236 = vmatpush.msrb.mxu0 %v10149_v37  ;;  %v10428_v49 = vpop.f32.mrf.mxu2  ;;  %2895 = vmatmul.f32.gmra.mxu2 %v8708_v44  ;;  %v13303_v37 = vand.u32 4294901760, %v13299_v26 }
 0x184   : > { %3418 = vmatpush.msrb.mxu3 %v10120_v9  ;;  %3052 = vmatpush.msra.mxu1 %v10124_v29 }
 0x185   : > { %3103 = vmatpush.msra.mxu2 %v10343_v0  ;;  %3239 = vmatpush.msrb.mxu0 %v10169_v24 }
 0x186   : > { %3420 = vmatpush.msrb.mxu3 %v10138_v43  ;;  %3054 = vmatpush.msra.mxu1 %v13298_v1 }
 0x187   : > { %3351 = vmatpush.msrb.mxu2 %v13297_v60  ;;  %3242 = vmatpush.msrb.mxu0 %v13299_v26  ;;  %v13312_v60 = vld [vmem:[#allocation33_spill] sm:$0xff] }
 0x188   : > { %3422 = vmatpush.msrb.mxu3 %v10151_v19  ;;  %3056 = vmatpush.msra.mxu1 %v13301_v53  ;;  %v737_v1 = vadd.f32 %v13312_v60, %v13311_v35  ;;  %v13313_v26 = vld [vmem:[#allocation13_spill] sm:$0xff]  ;;  %v13322_v60 = vld [vmem:[#allocation26_spill] sm:$0xff] }
 0x189   : > { %3355 = vmatpush.msrb.mxu2 %v13300_v56  ;;  %v10444_v29 = vpop.f32.mrf.mxu1  ;;  %3245 = vmatpush.msrb.mxu0 %v10217_v14  ;;  %v10451_v25 = vpop.f32.mrf.mxu3  ;;  %v13314_v56 = vld [vmem:[#allocation22_spill] sm:$0xff]  ;;  %v13315_v53 = vld [vmem:[#allocation29_spill] sm:$0xff] }
 0x18a   : > { %13302 = vst [vmem:[#allocation77_spill] sm:$0xff] %v10444_v29  ;;  %v10449_v46 = vpop.f32.mrf.mxu0  ;;  %3424 = vmatpush.msrb.mxu3 %v10187_v47  ;;  %2743 = vmatmul.f32.gmra.mxu0 %v13306_v33 }
 0x18b   : > { %3359 = vmatpush.msrb.mxu2 %v13303_v37  ;;  %13304 = vst [vmem:[#allocation81_spill] sm:$0xff] %v10449_v46  ;;  %v10455_v24 = vpop.f32.mrf.mxu2  ;;  %2836 = vmatmul.f32.gmra.mxu1 %v13308_v32  ;;  %v733_v37 = vadd.f32 %v13315_v53, %v13314_v56  ;;  %v13323_v53 = vld [vmem:[#allocation32_spill] sm:$0xff] }
 0x18c   : > { %13305 = vst [vmem:[#allocation78_spill] sm:$0xff] %v10451_v25  ;;  %2952 = vmatmul.f32.gmra.mxu3 %v8795_v13  ;;  %3058 = vmatpush.msra.mxu1 %v13309_v55  ;;  %v13316_v55 = vld [vmem:[#allocation36_spill] sm:$0xff] }
 0x18d   : > { %13307 = vst [vmem:[#allocation14_spill] sm:$0xff] %v10455_v24  ;;  %3248 = vmatpush.msrb.mxu0 %v10241_v52  ;;  %3363 = vmatpush.msrb.mxu2 %v13310_v6  ;;  %v782_v31 = vadd.f32 %v13316_v55, %v737_v1  ;;  %v778_v1 = vadd.f32 %v13323_v53, %v733_v37  ;;  %v13331_v37 = vld [vmem:[#allocation12_spill] sm:$0xff]  ;;  %v13359_v24 = vld [vmem:[#allocation55_spill] sm:$0xff] }
 0x18e   : > { %3296 = vmatpush.msrb.mxu1 %v10120_v9  ;;  %3426 = vmatpush.msrb.mxu3 %v10209_v7  ;;  %v13317_v9 = vand.u32 4294901760, %v10241_v52  ;;  %v13324_v52 = vand.u32 4294901760, %v10265_v34 }
 0x18f   : > { %2900 = vmatmul.f32.gmra.mxu2 %v13313_v26  ;;  %3251 = vmatpush.msrb.mxu0 %v10265_v34  ;;  %v13330_v34 = vld [vmem:[#allocation15_spill] sm:$0xff] }
 0x190   : > { %3298 = vmatpush.msrb.mxu1 %v10138_v43  ;;  %3367 = vmatpush.msrb.mxu2 %v13317_v9  ;;  %v13321_v43 = vld [vmem:[#allocation18_spill] sm:$0xff]  ;;  %v13327_v9 = vld [vmem:[#allocation23_spill] sm:$0xff] }
 0x191   : > { %3428 = vmatpush.msrb.mxu3 %v10229_v59  ;;  %v10476_v14 = vpop.f32.mrf.mxu1  ;;  %3254 = vmatpush.msrb.mxu0 %v10275_v40  ;;  %v10482_v35 = vpop.f32.mrf.mxu3  ;;  %v729_v56 = vadd.f32 %v13322_v60, %v13321_v43  ;;  %v13329_v43 = vand.u32 4294901760, %v10275_v40  ;;  %v13332_v60 = vld [vmem:[#allocation25_spill] sm:$0xff] }
 0x192   : > { %13318 = vst [vmem:[#allocation10_spill] sm:$0xff] %v10476_v14  ;;  %3300 = vmatpush.msrb.mxu1 %v10151_v19  ;;  %v10480_v6 = vpop.f32.mrf.mxu0  ;;  %3371 = vmatpush.msrb.mxu2 %v13324_v52  ;;  %v13326_v19 = vld [vmem:[#allocation16_spill] sm:$0xff]  ;;  %v3474_v52 = vmax.f32 %v778_v1, 0.0 }
 0x193   : > { %13319 = vst [vmem:[#allocation82_spill] sm:$0xff] %v10480_v6  ;;  %3430 = vmatpush.msrb.mxu3 %v10245_v15  ;;  %v10490_v55 = vpop.f32.mrf.mxu2  ;;  %3257 = vmatpush.msrb.mxu0 %v10301_v3  ;;  %v725_v39 = vadd.f32 %v13327_v9, %v13326_v19  ;;  %v774_v25 = vadd.f32 %v13328_v48, %v729_v56  ;;  %v13335_v56 = vld [vmem:[#allocation39_spill] sm:$0xff] }
 0x194   : > { %13320 = vst [vmem:[#allocation24_spill] sm:$0xff] %v10482_v35  ;;  %3302 = vmatpush.msrb.mxu1 %v10187_v47  ;;  %v3482_v35 = vmax.f32 %v782_v31, 0.0  ;;  %3375 = vmatpush.msrb.mxu2 %v13329_v43  ;;  %v13333_v47 = vand.u32 4294901760, %v10301_v3  ;;  %v13334_v31 = vld [vmem:[#allocation17_spill] sm:$0xff]  ;;  %v10518_v19 = vand.u32 4294901760, %v3474_v52  ;;  %v13337_v3 = vand.u32 4294901760, %v10318_v18 }
 0x195   : > { %13325 = vst [vmem:[#allocation33_spill] sm:$0xff] %v10490_v55  ;;  %3432 = vmatpush.msrb.mxu3 %v10277_v38  ;;  %2751 = vmatmul.f32.gmra.mxu0 %v13330_v34  ;;  %v770_v53 = vadd.f32 %v13332_v60, %v725_v39  ;;  %v3466_v40 = vmax.f32 %v774_v25, 0.0  ;;  %v843_v39 = vadd.f32 %v13335_v56, %v13334_v31 }
 0x196   : > { %2840 = vmatmul.f32.gmra.mxu1 %v13331_v37  ;;  %2958 = vmatmul.f32.gmra.mxu3 %v8860_v16  ;;  %v10508_v48 = vand.u32 4294901760, %v3482_v35 }
 0x197   : > { %3260 = vmatpush.msrb.mxu0 %v10318_v18  ;;  %3304 = vmatpush.msrb.mxu1 %v10209_v7  ;;  %v3458_v7 = vmax.f32 %v770_v53, 0.0  ;;  %v13341_v18 = vand.u32 4294901760, %v10335_v21  ;;  %v13342_v53 = vld [vmem:[#allocation37_spill] sm:$0xff] }
 0x198   : > { %3379 = vmatpush.msrb.mxu2 %v13333_v47  ;;  %3434 = vmatpush.msrb.mxu3 %v10290_v22  ;;  %v10534_v60 = vsub.f32 %v3482_v35, %v10508_v48  ;;  %v936_v47 = vadd.f32 %v13342_v53, %v843_v39  ;;  %v10548_v35 = vsub.f32 %v3474_v52, %v10518_v19  ;;  %v13347_v52 = vld [vmem:[#allocation52_spill] sm:$0xff] }
 0x199   : > { %2905 = vmatmul.f32.gmra.mxu2 %v8826_v30  ;;  %3263 = vmatpush.msrb.mxu0 %v10335_v21  ;;  %v10516_v1 = vpop.f32.mrf.mxu3  ;;  %v10542_v56 = vand.u32 4294901760, %v3458_v7  ;;  %v13344_v21 = vld [vmem:[#allocation50_spill] sm:$0xff] }
 0x19a   : > { %3306 = vmatpush.msrb.mxu1 %v10229_v59  ;;  %13336 = vst [vmem:[#allocation13_spill] sm:$0xff] %v10516_v1  ;;  %3383 = vmatpush.msrb.mxu2 %v13337_v3  ;;  %v10523_v25 = vpop.f32.mrf.mxu0  ;;  %v10525_v9 = vpop.f32.mrf.mxu1  ;;  %v10531_v59 = vand.u32 4294901760, %v3466_v40  ;;  %v997_v3 = vadd.f32 %v13344_v21, %v936_v47  ;;  %v13349_v21 = vand.u32 4294901760, %v10368_v58  ;;  %v13350_v1 = vld [vmem:[#allocation30_spill] sm:$0xff] }
 0x19b   : > { %3436 = vmatpush.msrb.mxu3 %v10303_v11  ;;  %13338 = vst [vmem:[#allocation22_spill] sm:$0xff] %v10523_v25  ;;  %3266 = vmatpush.msrb.mxu0 %v10341_v45  ;;  %v10529_v43 = vpop.f32.mrf.mxu2  ;;  %v10570_v39 = vsub.f32 %v3458_v7, %v10542_v56 }
 0x19c   : > { %13339 = vst [vmem:[#allocation29_spill] sm:$0xff] %v10525_v9  ;;  %3308 = vmatpush.msrb.mxu1 %v10245_v15  ;;  %3387 = vmatpush.msrb.mxu2 %v13341_v18  ;;  %v13343_v15 = vand.u32 4294901760, %v10341_v45  ;;  %v13345_v45 = vld [vmem:[#allocation35_spill] sm:$0xff]  ;;  %v13346_v18 = vld [vmem:[#allocation46_spill] sm:$0xff] }
 0x19d   : > { %13340 = vst [vmem:[#allocation36_spill] sm:$0xff] %v10529_v43  ;;  %3438 = vmatpush.msrb.mxu3 %v10322_v2  ;;  %3269 = vmatpush.msrb.mxu0 %v10368_v58  ;;  %v992_v53 = vadd.f32 %v13346_v18, %v13345_v45  ;;  %v13351_v45 = vld [vmem:[#allocation42_spill] sm:$0xff] }
 0x19e   : > { %3310 = vmatpush.msrb.mxu1 %v10277_v38  ;;  %3391 = vmatpush.msrb.mxu2 %v13343_v15  ;;  %v10557_v38 = vsub.f32 %v3466_v40, %v10531_v59  ;;  %v1050_v15 = vadd.f32 %v13347_v52, %v997_v3  ;;  %v987_v18 = vadd.f32 %v13351_v45, %v13350_v1  ;;  %v13352_v3 = vld [vmem:[#allocation48_spill] sm:$0xff]  ;;  %v13356_v1 = vld [vmem:[#allocation27_spill] sm:$0xff] }
 0x19f   : > { %3440 = vmatpush.msrb.mxu3 %v10343_v0  ;;  %2844 = vmatmul.f32.gmra.mxu1 %v8800_v42  ;;  %v1044_v52 = vadd.f32 %v13352_v3, %v992_v53  ;;  %v13357_v53 = vld [vmem:[#allocation38_spill] sm:$0xff] }
 0x1a0   : > { %3015 = vmatmul.f32.vlgmr.msra.gmra.mxu0 %v8639_v54  ;;  %3214 = vmatmul.f32.vlgmr.msra.gmra.mxu3 %v8639_v54  ;;  %v982_v45 = vadd.f32 %v13357_v53, %v13356_v1  ;;  %v13362_v53 = vld [vmem:[#allocation40_spill] sm:$0xff]  ;;  %v13366_v1 = vld [vmem:[#allocation53_spill] sm:$0xff] }
 0x1a1   : > { %3624 = vmatpush.msra.mxu0 %v10508_v48  ;;  %3911 = vmatpush.msra.mxu3 %v10508_v48  ;;  %v10564_v47 = vpop.f32.mrf.mxu3 }
 0x1a2   : > { %3312 = vmatpush.msrb.mxu1 %v10290_v22  ;;  %13348 = vst [vmem:[#allocation18_spill] sm:$0xff] %v10564_v47  ;;  %3395 = vmatpush.msrb.mxu2 %v13349_v21  ;;  %v13353_v22 = vand.u32 4294901760, %v10534_v60  ;;  %v1119_v47 = vadd.f32 %v13359_v24, %v1050_v15 }
 0x1a3   : > { %3626 = vmatpush.msra.mxu0 %v10518_v19  ;;  %3109 = vmatmul.f32.vlgmr.msra.gmra.mxu2 %v8725_v61  ;;  %v13358_v61 = vld [vmem:[#allocation44_spill] sm:$0xff] }
 0x1a4   : > { %3913 = vmatpush.msra.mxu3 %v10518_v19  ;;  %3827 = vmatpush.msra.mxu2 %v10534_v60  ;;  %v3743_v58 = vsub.f32 %v10534_v60, %v13353_v22  ;;  %v10584_v21 = vpop.f32.mrf.mxu1  ;;  %v10586_v40 = vpop.f32.mrf.mxu0  ;;  %v1038_v3 = vadd.f32 %v13358_v61, %v987_v18  ;;  %v13361_v22 = vand.u32 4294901760, %v10548_v35  ;;  %v1032_v18 = vadd.f32 %v13362_v53, %v982_v45  ;;  %v13363_v61 = vld [vmem:[#allocation51_spill] sm:$0xff] }
 0x1a5   : > { %3314 = vmatpush.msrb.mxu1 %v10303_v11  ;;  %13354 = vst [vmem:[#allocation26_spill] sm:$0xff] %v10584_v21  ;;  %3628 = vmatpush.msra.mxu0 %v10531_v59  ;;  %v10594_v11 = vpop.f32.mrf.mxu2  ;;  %v1115_v24 = vadd.f32 %v13363_v61, %v1044_v52  ;;  %v1164_v43 = vadd.f32 %v13366_v1, %v1119_v47  ;;  %v13367_v45 = vand.u32 4294901760, %v10570_v39  ;;  %v13369_v61 = vld [vmem:[#allocation49_spill] sm:$0xff]  ;;  %v13371_v47 = vmov 0  }
 0x1a6   : > { %13355 = vst [vmem:[#allocation32_spill] sm:$0xff] %v10586_v40  ;;  %3915 = vmatpush.msra.mxu3 %v10531_v59  ;;  %3830 = vmatpush.msra.mxu2 %v10548_v35  ;;  %v3749_v7 = vsub.f32 %v10548_v35, %v13361_v22  ;;  %v3744_v15 = vand.u32 4294901760, %v3743_v58  ;;  %v13365_v22 = vld [vmem:[#allocation47_spill] sm:$0xff] }
 0x1a7   : > { %13360 = vst [vmem:[#allocation16_spill] sm:$0xff] %v10594_v11  ;;  %3316 = vmatpush.msrb.mxu1 %v10322_v2  ;;  %3630 = vmatpush.msra.mxu0 %v10542_v56  ;;  %v13364_v2 = vand.u32 4294901760, %v10557_v38  ;;  %v1111_v55 = vadd.f32 %v13365_v22, %v1038_v3  ;;  %v13368_v58 = vld [vmem:[#allocation43_spill] sm:$0xff]  ;;  %v3483_v22 = vmax.f32 %v1164_v43, 0.0 }
 0x1a8   : > { %3917 = vmatpush.msra.mxu3 %v10542_v56  ;;  %3833 = vmatpush.msra.mxu2 %v10557_v38  ;;  %v3750_v52 = vand.u32 4294901760, %v3749_v7  ;;  %v1107_v53 = vadd.f32 %v13368_v58, %v1032_v18 }
 0x1a9   : > { %3318 = vmatpush.msrb.mxu1 %v10343_v0  ;;  %v3755_v40 = vsub.f32 %v10557_v38, %v13364_v2  ;;  %3019 = vmatmul.f32.gmra.mxu0 %v13308_v32  ;;  %v3761_v0 = vsub.f32 %v10570_v39, %v13367_v45  ;;  %v1160_v2 = vadd.f32 %v13369_v61, %v1115_v24  ;;  %v13375_v24 = vld [vmem:[#allocation41_spill] sm:$0xff] }
 0x1aa   : > { %3060 = vmatmul.f32.vlgmr.msra.gmra.mxu1 %v8639_v54  ;;  %3218 = vmatmul.f32.gmra.mxu3 %v13308_v32  ;;  %v1152_v58 = vadd.f32 %v13375_v24, %v1107_v53 }
 0x1ab   : > { %3745 = vmatpush.msra.mxu1 %v3744_v15  ;;  %3836 = vmatpush.msra.mxu2 %v10570_v39  ;;  %v10622_v3 = vpop.f32.mrf.mxu3  ;;  %v3756_v1 = vand.u32 4294901760, %v3755_v40  ;;  %v13372_v15 = vld [vmem:[#allocation45_spill] sm:$0xff]  ;;  %v3762_v29 = vand.u32 4294901760, %v3761_v0  ;;  %v3475_v61 = vmax.f32 %v1160_v2, 0.0 }
 0x1ac   : > { %13370 = vst [vmem:[#allocation23_spill] sm:$0xff] %v10622_v3  ;;  %8198 = vset.pattern.permute.xlu2 %v13371_v47  ;;  %3117 = vmatmul.f32.gmra.mxu2 %v8789_v23  ;;  %v1156_v7 = vadd.f32 %v13372_v15, %v1111_v55  ;;  %v10629_v18 = vpop.f32.mrf.mxu1  ;;  %v10634_v3 = vand.u32 4294901760, %v3483_v22  ;;  %v3459_v23 = vmax.f32 %v1152_v58, 0.0 }
 0x1ad   : > { %3751 = vmatpush.msra.mxu1 %v3750_v52  ;;  %v10627_v45 = vpop.f32.mrf.mxu0  ;;  %13374 = vst [vmem:[#allocation15_spill] sm:$0xff] %v10629_v18  ;;  %v10632_v11 = vpop.f32.mrf.mxu2  ;;  %v10639_v55 = vand.u32 4294901760, %v3475_v61 }
 0x1ae   : > { %13373 = vst [vmem:[#allocation28_spill] sm:$0xff] %v10627_v45  ;;  %v3467_v47 = vmax.f32 %v1156_v7, 0.0  ;;  %v10645_v40 = vsub.f32 %v3483_v22, %v10634_v3  ;;  %v10649_v52 = vand.u32 4294901760, %v3459_v23 }
 0x1af   : > { %3757 = vmatpush.msra.mxu1 %v3756_v1  ;;  %13376 = vst [vmem:[#allocation12_spill] sm:$0xff] %v10632_v11  ;;  %v10652_v0 = vsub.f32 %v3475_v61, %v10639_v55 }
 0x1b0   : > { %v10642_v43 = vand.u32 4294901760, %v3467_v47  ;;  %v10668_v7 = vsub.f32 %v3459_v23, %v10649_v52 }
 0x1b1   : > { %3763 = vmatpush.msra.mxu1 %v3762_v29  ;;  %3023 = vmatmul.f32.gmra.mxu0 %v13331_v37  ;;  %v12876_v22 = vand.u32 4294901760, %v10652_v0 }
 0x1b2   : > { %3064 = vmatmul.f32.gmra.mxu1 %v13308_v32  ;;  %3222 = vmatmul.f32.gmra.mxu3 %v13331_v37  ;;  %v10659_v1 = vsub.f32 %v3467_v47, %v10642_v43 }
 0x1b3   : > { %v10647_v29 = vpop.f32.mrf.mxu3  ;;  %v4275_v61 = vsub.f32 %v10652_v0, %v12876_v22 }
 0x1b4   : > { %3125 = vmatmul.f32.gmra.mxu2 %v13306_v33  ;;  %13377 = vst [vmem:[#allocation25_spill] sm:$0xff] %v10647_v29  ;;  %v12875_v33 = vand.u32 4294901760, %v10645_v40  ;;  %v12877_v58 = vand.u32 4294901760, %v10659_v1 }
 0x1b5   : > { %v10654_v53 = vpop.f32.mrf.mxu0  ;;  %v10656_v2 = vpop.f32.mrf.mxu1  ;;  %v4276_v47 = vand.u32 4294901760, %v4275_v61 }
 0x1b6   : > { %13378 = vst [vmem:[#allocation39_spill] sm:$0xff] %v10654_v53  ;;  %v10664_v15 = vpop.f32.mrf.mxu2  ;;  %v4269_v24 = vsub.f32 %v10645_v40, %v12875_v33  ;;  %v13382_v33 = vand.u32 4294901760, %v10534_v60 }
 0x1b7   : > { %13379 = vst [vmem:[#allocation37_spill] sm:$0xff] %v10656_v2 }
 0x1b8   : > { %13380 = vst [vmem:[#allocation50_spill] sm:$0xff] %v10664_v15  ;;  %v4270_v23 = vand.u32 4294901760, %v4269_v24 }
 0x1b9   : > { %3027 = vmatmul.f32.gmra.mxu0 %v8800_v42 }
 0x1ba   : > { %3068 = vmatmul.f32.gmra.mxu1 %v13331_v37  ;;  %3226 = vmatmul.f32.gmra.mxu3 %v8800_v42 }
 0x1bc   : > { %3133 = vmatmul.f32.gmra.mxu2 %v13330_v34  ;;  %v10680_v29 = vpop.f32.mrf.mxu3  ;;  %v4281_v34 = vsub.f32 %v10659_v1, %v12877_v58  ;;  %v13387_v58 = vand.u32 4294901760, %v10548_v35 }
 0x1bd   : > { %13381 = vst [vmem:[#allocation35_spill] sm:$0xff] %v10680_v29  ;;  %v13385_v29 = vand.u32 4294901760, %v10668_v7 }
 0x1be   : > { %v10690_v11 = vpop.f32.mrf.mxu0  ;;  %v10697_v24 = vpop.f32.mrf.mxu2  ;;  %v4282_v60 = vand.u32 4294901760, %v4281_v34  ;;  %v3492_v34 = vld [vmem:[%s12781_s3 + $0x10] sm:$0xff] }
 0x1bf   : > { %13383 = vst [vmem:[#allocation46_spill] sm:$0xff] %v10690_v11  ;;  %v10692_v22 = vpop.f32.mrf.mxu1  ;;  %v3500_v11 = vld [vmem:[%s12781_s3 + $0x50] sm:$0xff] }
 0x1c0   : > { %13384 = vst [vmem:[#allocation52_spill] sm:$0xff] %v10692_v22  ;;  %v3606_v57 = vsel %vm3574_vm1, %v3500_v11, 0  ;;  %v13460_v11 = vld [vmem:[#allocation64_spill] sm:$0xff] }
 0x1c1   : > { %3272 = vmatmul.f32.vlgmr.msrb.gmra.mxu0 %v13245_v5  ;;  %v4287_v5 = vsub.f32 %v10668_v7, %v13385_v29  ;;  %13386 = vst [vmem:[#allocation30_spill] sm:$0xff] %v10697_v24  ;;  %v13389_v29 = vand.u32 4294901760, %v10570_v39 }
 0x1c2   : > { %3072 = vmatmul.f32.gmra.mxu1 %v8800_v42  ;;  %3442 = vmatmul.f32.vlgmr.msrb.gmra.mxu3 %v8639_v54 }
 0x1c3   : > { %4006 = vmatpush.msrb.mxu0 %v13382_v33  ;;  %4271 = vmatpush.msrb.mxu3 %v4270_v23  ;;  %v13388_v33 = vand.u32 4294901760, %v10557_v38  ;;  %v4288_v61 = vand.u32 4294901760, %v4287_v5 }
 0x1c4   : > { %3397 = vmatmul.f32.vlgmr.msrb.gmra.mxu2 %v8639_v54  ;;  %v3490_v54 = vld [vmem:[%s12781_s3] sm:$0xff] }
 0x1c5   : > { %4010 = vmatpush.msrb.mxu0 %v13387_v58  ;;  %4150 = vmatpush.msrb.mxu2 %v10634_v3  ;;  %v10712_v35 = vpop.f32.mrf.mxu3  ;;  %v3576_v39 = vsel %vm3574_vm1, %v3490_v54, 0 }
 0x1c6   : > { %4277 = vmatpush.msrb.mxu3 %v4276_v47  ;;  %13390 = vst [vmem:[#allocation42_spill] sm:$0xff] %v10712_v35 }
 0x1c7   : > { %4014 = vmatpush.msrb.mxu0 %v13388_v33  ;;  %4152 = vmatpush.msrb.mxu2 %v10639_v55 }
 0x1c8   : > { %4283 = vmatpush.msrb.mxu3 %v4282_v60  ;;  %v10726_v47 = vpop.f32.mrf.mxu2  ;;  %v3582_v60 = vsel %vm3574_vm1, %v3492_v34, 0 }
 0x1c9   : > { %4018 = vmatpush.msrb.mxu0 %v13389_v29  ;;  %4154 = vmatpush.msrb.mxu2 %v10642_v43  ;;  %v10720_v38 = vpop.f32.mrf.mxu1  ;;  %13393 = vst [vmem:[#allocation38_spill] sm:$0xff] %v10726_v47 }
 0x1ca   : > { %4289 = vmatpush.msrb.mxu3 %v4288_v61  ;;  %3277 = vmatmul.f32.gmra.mxu0 %v8708_v44  ;;  %13391 = vst [vmem:[#allocation48_spill] sm:$0xff] %v10720_v38  ;;  %v10722_v58 = vpop.f32.mrf.mxu0  ;;  %v10728_v44 = vand.u32 4294901760, %v3576_v39 }
 0x1cb   : > { %3322 = vmatmul.f32.vlgmr.msrb.gmra.mxu1 %v13256_v20  ;;  %3446 = vmatmul.f32.gmra.mxu3 %v13308_v32  ;;  %13392 = vst [vmem:[#allocation27_spill] sm:$0xff] %v10722_v58  ;;  %v3491_v20 = vld [vmem:[%s12781_s3 + $0x8] sm:$0xff] }
 0x1cc   : > { %4081 = vmatpush.msrb.mxu1 %v10508_v48  ;;  %4156 = vmatpush.msrb.mxu2 %v10649_v52 }
 0x1cd   : > { %3401 = vmatmul.f32.gmra.mxu2 %v13308_v32  ;;  %v10738_v32 = vsub.f32 %v3576_v39, %v10728_v44 }
 0x1ce   : > { %4083 = vmatpush.msrb.mxu1 %v10518_v19  ;;  %v3579_v19 = vsel %vm3574_vm1, %v3491_v20, 0  ;;  %v3493_v20 = vld [vmem:[%s12781_s3 + $0x18] sm:$0xff] }
 0x1cf   : > { %13394 = vst [vmem:[#allocation44_spill] sm:$0xff] %v10738_v32  ;;  %v3585_v34 = vsel %vm3574_vm1, %v3493_v20, 0  ;;  %v13414_v20 = vand.u32 4294901760, %v10652_v0 }
 0x1d0   : > { %4085 = vmatpush.msrb.mxu1 %v10531_v59  ;;  %v10746_v59 = vand.u32 4294901760, %v10738_v32 }
 0x1d1   : > { %v10741_v48 = vpop.f32.mrf.mxu3 }
 0x1d2   : > { %4087 = vmatpush.msrb.mxu1 %v10542_v56  ;;  %3282 = vmatmul.f32.gmra.mxu0 %v13313_v26  ;;  %13395 = vst [vmem:[#allocation55_spill] sm:$0xff] %v10741_v48 }
 0x1d3   : > { %3328 = vmatmul.f32.gmra.mxu1 %v13271_v8  ;;  %3450 = vmatmul.f32.gmra.mxu3 %v13331_v37  ;;  %13396 = vst [vmem:[#allocation40_spill] sm:$0xff] %v10746_v59  ;;  %v10754_v8 = vand.u32 4294901760, %v3579_v19 }
 0x1d4   : > { %v10748_v56 = vpop.f32.mrf.mxu0  ;;  %v10752_v26 = vpop.f32.mrf.mxu2 }
 0x1d5   : > { %3405 = vmatmul.f32.gmra.mxu2 %v13331_v37  ;;  %13397 = vst [vmem:[#allocation51_spill] sm:$0xff] %v10748_v56  ;;  %v10750_v23 = vpop.f32.mrf.mxu1  ;;  %v3634_v37 = vsub.f32 %v10738_v32, %v10746_v59  ;;  %v10765_v5 = vsub.f32 %v3579_v19, %v10754_v8 }
 0x1d6   : > { %13398 = vst [vmem:[#allocation47_spill] sm:$0xff] %v10750_v23 }
 0x1d7   : > { %13399 = vst [vmem:[#allocation53_spill] sm:$0xff] %v10752_v26  ;;  %v10771_v61 = vand.u32 4294901760, %v3634_v37 }
 0x1d8   : > { %13400 = vst [vmem:[#allocation43_spill] sm:$0xff] %v10765_v5 }
 0x1d9   : > { %13402 = vst [vmem:[#allocation45_spill] sm:$0xff] %v10771_v61 }
 0x1da   : > { %3287 = vmatmul.f32.gmra.mxu0 %v8826_v30  ;;  %v10774_v30 = vand.u32 4294901760, %v10765_v5 }
 0x1db   : > { %3334 = vmatmul.f32.gmra.mxu1 %v8795_v13  ;;  %3454 = vmatmul.f32.gmra.mxu3 %v8800_v42  ;;  %v10769_v33 = vpop.f32.mrf.mxu3  ;;  %v10776_v13 = vand.u32 4294901760, %v3582_v60 }
 0x1dc   : > { %13401 = vst [vmem:[#allocation49_spill] sm:$0xff] %v10769_v33  ;;  %v10811_v33 = vand.u32 4294901760, %v3585_v34 }
 0x1dd   : > { %3409 = vmatmul.f32.gmra.mxu2 %v8800_v42  ;;  %13403 = vst [vmem:[#allocation41_spill] sm:$0xff] %v10774_v30  ;;  %v3642_v42 = vsub.f32 %v10765_v5, %v10774_v30  ;;  %v10794_v19 = vsub.f32 %v3582_v60, %v10776_v13 }
 0x1de   : > { %13404 = vst [vmem:[#allocation91_spill] sm:$0xff] %v10776_v13  ;;  %v10778_v29 = vpop.f32.mrf.mxu0  ;;  %v10782_v39 = vpop.f32.mrf.mxu2  ;;  %v10834_v26 = vsub.f32 %v3585_v34, %v10811_v33 }
 0x1df   : > { %13405 = vst [vmem:[#allocation92_spill] sm:$0xff] %v10778_v29  ;;  %v10780_v54 = vpop.f32.mrf.mxu1  ;;  %v10804_v37 = vand.u32 4294901760, %v3642_v42  ;;  %v10807_v60 = vand.u32 4294901760, %v10794_v19  ;;  %v13415_v42 = vand.u32 4294901760, %v10659_v1 }
 0x1e0   : > { %13406 = vst [vmem:[#allocation93_spill] sm:$0xff] %v10780_v54 }
 0x1e1   : > { %13407 = vst [vmem:[#allocation94_spill] sm:$0xff] %v10782_v39  ;;  %v13420_v39 = vand.u32 4294901760, %v10668_v7 }
 0x1e2   : > { %3636 = vmatmul.f32.vlgmr.msra.gmra.mxu0 %v10771_v61  ;;  %13408 = vst [vmem:[#allocation95_spill] sm:$0xff] %v10794_v19 }
 0x1e3   : > { %3340 = vmatmul.f32.gmra.mxu1 %v8860_v16  ;;  %3921 = vmatmul.f32.vlgmr.msra.gmra.mxu3 %v10746_v59  ;;  %v13409_v16 = vand.u32 4294901760, %v10645_v40  ;;  %13410 = vst [vmem:[#allocation96_spill] sm:$0xff] %v10804_v37 }
 0x1e4   : > { %4353 = vmatpush.msra.mxu0 %v10645_v40  ;;  %4607 = vmatpush.msra.mxu3 %v10634_v3  ;;  %13411 = vst [vmem:[#allocation97_spill] sm:$0xff] %v10807_v60  ;;  %v3494_v40 = vld [vmem:[%s12781_s3 + $0x20] sm:$0xff] }
 0x1e5   : > { %3839 = vmatmul.f32.vlgmr.msra.gmra.mxu2 %v10738_v32  ;;  %v10809_v48 = vpop.f32.mrf.mxu3  ;;  %13413 = vst [vmem:[#allocation99_spill] sm:$0xff] %v10811_v33  ;;  %v13488_v32 = vld [vmem:[#allocation59_spill] sm:$0xff] }
 0x1e6   : > { %4356 = vmatpush.msra.mxu0 %v10652_v0  ;;  %4532 = vmatpush.msra.mxu2 %v13409_v16  ;;  %13412 = vst [vmem:[#allocation98_spill] sm:$0xff] %v10809_v48  ;;  %v3650_v0 = vsub.f32 %v10794_v19, %v10807_v60 }
 0x1e7   : > { %4609 = vmatpush.msra.mxu3 %v10639_v55  ;;  %13419 = vst [vmem:[#allocation103_spill] sm:$0xff] %v10834_v26 }
 0x1e8   : > { %4359 = vmatpush.msra.mxu0 %v10659_v1  ;;  %4536 = vmatpush.msra.mxu2 %v13414_v20  ;;  %v10825_v48 = vpop.f32.mrf.mxu1  ;;  %v10831_v20 = vpop.f32.mrf.mxu2  ;;  %v3588_v1 = vsel %vm3574_vm1, %v3494_v40, 0  ;;  %v10846_v34 = vand.u32 4294901760, %v3650_v0 }
 0x1e9   : > { %4611 = vmatpush.msra.mxu3 %v10642_v43  ;;  %v10823_v16 = vpop.f32.mrf.mxu0  ;;  %13417 = vst [vmem:[#allocation101_spill] sm:$0xff] %v10825_v48 }
 0x1ea   : > { %4362 = vmatpush.msra.mxu0 %v10668_v7  ;;  %4540 = vmatpush.msra.mxu2 %v13415_v42  ;;  %13416 = vst [vmem:[#allocation100_spill] sm:$0xff] %v10823_v16  ;;  %v3502_v42 = vld [vmem:[%s12782_s4] sm:$0xff]  ;;  %v3495_v7 = vld [vmem:[%s12781_s3 + $0x28] sm:$0xff] }
 0x1eb   : > { %4613 = vmatpush.msra.mxu3 %v10649_v52  ;;  %3644 = vmatmul.f32.gmra.mxu0 %v10804_v37  ;;  %13418 = vst [vmem:[#allocation102_spill] sm:$0xff] %v10831_v20  ;;  %v10849_v20 = vand.u32 4294901760, %v10834_v26 }
 0x1ec   : > { %3765 = vmatmul.f32.vlgmr.msra.gmra.mxu1 %v10728_v44  ;;  %3927 = vmatmul.f32.gmra.mxu3 %v10774_v30  ;;  %13421 = vst [vmem:[#allocation104_spill] sm:$0xff] %v10846_v34  ;;  %v13474_v30 = vld [vmem:[#allocation31_spill] sm:$0xff] }
 0x1ed   : > { %4437 = vmatpush.msra.mxu1 %v10634_v3  ;;  %4544 = vmatpush.msra.mxu2 %v13420_v39  ;;  %13422 = vst [vmem:[#allocation105_spill] sm:$0xff] %v10849_v20  ;;  %v10851_v3 = vand.u32 4294901760, %v3588_v1 }
 0x1ee   : > { %3516 = vperm.xlu2 %8198, %v3502_v42   ;;  %3844 = vmatmul.f32.gmra.mxu2 %v10765_v5  ;;  %v3591_v42 = vsel %vm3574_vm1, %v3495_v7, 0  ;;  %v3496_v7 = vld [vmem:[%s12781_s3 + $0x30] sm:$0xff] }
 0x1ef   : > { %4439 = vmatpush.msra.mxu1 %v10639_v55  ;;  %v10854_v40 = vpop.f32.mrf.mxu3  ;;  %v3658_v55 = vsub.f32 %v10834_v26, %v10849_v20  ;;  %v10865_v39 = vsub.f32 %v3588_v1, %v10851_v3  ;;  %v10884_v54 = vand.u32 4294901760, %v3591_v42 }
 0x1f0   : > { %13423 = vst [vmem:[#allocation106_spill] sm:$0xff] %v10854_v40 }
 0x1f1   : > { %4441 = vmatpush.msra.mxu1 %v10642_v43  ;;  %13424 = vst [vmem:[#allocation107_spill] sm:$0xff] %v10865_v39  ;;  %v10879_v23 = vand.u32 4294901760, %v3658_v55  ;;  %v10882_v1 = vand.u32 4294901760, %v10865_v39  ;;  %v10896_v55 = vsub.f32 %v3591_v42, %v10884_v54  ;;  %v3497_v42 = vld [vmem:[%s12781_s3 + $0x38] sm:$0xff] }
 0x1f2   : > { %v10868_v43 = vpop.f32.mrf.mxu1  ;;  %v10876_v40 = vpop.f32.mrf.mxu2 }
 0x1f3   : > { %4443 = vmatpush.msra.mxu1 %v10649_v52  ;;  %3652 = vmatmul.f32.gmra.mxu0 %v10846_v34  ;;  %13425 = vst [vmem:[#allocation108_spill] sm:$0xff] %v10868_v43  ;;  %v10870_v0 = vpop.f32.mrf.mxu0  ;;  %v3503_v52 = vld [vmem:[%s12782_s4 + $0x8] sm:$0xff]  ;;  %v10910_v29 = vand.u32 4294901760, %v10896_v55 }
 0x1f4   : > { %3769 = vmatmul.f32.gmra.mxu1 %v10754_v8  ;;  %3933 = vmatmul.f32.gmra.mxu3 %v10807_v60  ;;  %13426 = vst [vmem:[#allocation109_spill] sm:$0xff] %v10870_v0 }
 0x1f5   : > { %13427 = vst [vmem:[#allocation110_spill] sm:$0xff] %v10876_v40  ;;  %v3594_v40 = vsel %vm3574_vm1, %v3496_v7, 0  ;;  %v3674_v7 = vsub.f32 %v10896_v55, %v10910_v29 }
 0x1f6   : > { %3521 = vperm.xlu2 %8198, %v3503_v52   ;;  %3849 = vmatmul.f32.gmra.mxu2 %v10794_v19  ;;  %13428 = vst [vmem:[#allocation111_spill] sm:$0xff] %v10879_v23  ;;  %v3666_v52 = vsub.f32 %v10865_v39, %v10882_v1  ;;  %v13482_v19 = vld [vmem:[#allocation67_spill] sm:$0xff] }
 0x1f7   : > { %13429 = vst [vmem:[#allocation112_spill] sm:$0xff] %v10882_v1 }
 0x1f8   : > { %13431 = vst [vmem:[#allocation114_spill] sm:$0xff] %v10896_v55  ;;  %v10905_v56 = vand.u32 4294901760, %v3666_v52 }
 0x1f9   : > { %v10893_v0 = vpop.f32.mrf.mxu3  ;;  %13436 = vst [vmem:[#allocation119_spill] sm:$0xff] %v10910_v29 }
 0x1fa   : > { %13430 = vst [vmem:[#allocation113_spill] sm:$0xff] %v10893_v0  ;;  %v10912_v0 = vand.u32 4294901760, %v3594_v40 }
 0x1fb   : > { %3660 = vmatmul.f32.gmra.mxu0 %v10879_v23  ;;  %13434 = vst [vmem:[#allocation117_spill] sm:$0xff] %v10905_v56 }
 0x1fc   : > { %3773 = vmatmul.f32.gmra.mxu1 %v10776_v13  ;;  %3939 = vmatmul.f32.gmra.mxu3 %v10849_v20  ;;  %v10901_v58 = vpop.f32.mrf.mxu0  ;;  %v10907_v43 = vpop.f32.mrf.mxu2  ;;  %13437 = vst [vmem:[#allocation120_spill] sm:$0xff] %v10912_v0  ;;  %v10922_v52 = vsub.f32 %v3594_v40, %v10912_v0 }
 0x1fd   : > { %13432 = vst [vmem:[#allocation115_spill] sm:$0xff] %v10901_v58  ;;  %v10903_v48 = vpop.f32.mrf.mxu1  ;;  %v10929_v58 = vand.u32 4294901760, %v3674_v7 }
 0x1fe   : > { %3854 = vmatmul.f32.gmra.mxu2 %v10834_v26  ;;  %13433 = vst [vmem:[#allocation116_spill] sm:$0xff] %v10903_v48  ;;  %v10932_v16 = vand.u32 4294901760, %v10922_v52  ;;  %v13473_v26 = vld [vmem:[#allocation62_spill] sm:$0xff] }
 0x1ff   : > { %13435 = vst [vmem:[#allocation118_spill] sm:$0xff] %v10907_v43  ;;  %v3597_v43 = vsel %vm3574_vm1, %v3497_v42, 0  ;;  %v3498_v42 = vld [vmem:[%s12781_s3 + $0x40] sm:$0xff] }
 0x200   : > { %13438 = vst [vmem:[#allocation121_spill] sm:$0xff] %v10922_v52  ;;  %v10934_v35 = vand.u32 4294901760, %v3597_v43  ;;  %v3682_v7 = vsub.f32 %v10922_v52, %v10932_v16 }
 0x201   : > { %13440 = vst [vmem:[#allocation123_spill] sm:$0xff] %v10929_v58 }
 0x202   : > { %13441 = vst [vmem:[#allocation124_spill] sm:$0xff] %v10932_v16 }
 0x203   : > { %3668 = vmatmul.f32.gmra.mxu0 %v10905_v56  ;;  %v10926_v48 = vpop.f32.mrf.mxu3 }
 0x204   : > { %3777 = vmatmul.f32.gmra.mxu1 %v10811_v33  ;;  %3945 = vmatmul.f32.gmra.mxu3 %v10882_v1  ;;  %13439 = vst [vmem:[#allocation122_spill] sm:$0xff] %v10926_v48  ;;  %v10950_v48 = vsub.f32 %v3597_v43, %v10934_v35 }
 0x206   : > { %3859 = vmatmul.f32.gmra.mxu2 %v10865_v39  ;;  %v10940_v40 = vpop.f32.mrf.mxu2  ;;  %13445 = vst [vmem:[#allocation128_spill] sm:$0xff] %v10950_v48  ;;  %v10963_v18 = vand.u32 4294901760, %v10950_v48  ;;  %v13471_v39 = vld [vmem:[#allocation20_spill] sm:$0xff] }
 0x207   : > { %v10936_v15 = vpop.f32.mrf.mxu0  ;;  %13444 = vst [vmem:[#allocation127_spill] sm:$0xff] %v10940_v40  ;;  %v3506_v40 = vld [vmem:[%s12782_s4 + $0x20] sm:$0xff] }
 0x208   : > { %13442 = vst [vmem:[#allocation125_spill] sm:$0xff] %v10936_v15  ;;  %v10938_v24 = vpop.f32.mrf.mxu1  ;;  %3536 = vperm.xlu2 %8198, %v3506_v40   ;;  %v10958_v15 = vand.u32 4294901760, %v3682_v7  ;;  %v3690_v7 = vsub.f32 %v10950_v48, %v10963_v18 }
 0x209   : > { %13443 = vst [vmem:[#allocation126_spill] sm:$0xff] %v10938_v24  ;;  %v3600_v24 = vsel %vm3574_vm1, %v3498_v42, 0  ;;  %v3499_v42 = vld [vmem:[%s12781_s3 + $0x48] sm:$0xff] }
 0x20a   : > { %13446 = vst [vmem:[#allocation129_spill] sm:$0xff] %v10958_v15  ;;  %v10965_v43 = vand.u32 4294901760, %v3600_v24  ;;  %v3603_v45 = vsel %vm3574_vm1, %v3499_v42, 0  ;;  %v10984_v38 = vand.u32 4294901760, %v3690_v7 }
 0x20b   : > { %3676 = vmatmul.f32.gmra.mxu0 %v10929_v58  ;;  %13448 = vst [vmem:[#allocation131_spill] sm:$0xff] %v10963_v18  ;;  %v10989_v53 = vand.u32 4294901760, %v3603_v45 }
 0x20c   : > { %3781 = vmatmul.f32.gmra.mxu1 %v10851_v3  ;;  %3951 = vmatmul.f32.gmra.mxu3 %v10910_v29  ;;  %13452 = vst [vmem:[#allocation135_spill] sm:$0xff] %v10984_v38 }
 0x20d   : > { %v11000_v7 = vsub.f32 %v3603_v45, %v10989_v53 }
 0x20e   : > { %3864 = vmatmul.f32.gmra.mxu2 %v10896_v55 }
 0x20f   : > { %v10960_v47 = vpop.f32.mrf.mxu3  ;;  %13454 = vst [vmem:[#allocation137_spill] sm:$0xff] %v11000_v7  ;;  %v11010_v25 = vand.u32 4294901760, %v11000_v7 }
 0x210   : > { %13447 = vst [vmem:[#allocation130_spill] sm:$0xff] %v10960_v47  ;;  %v10979_v47 = vsub.f32 %v3600_v24, %v10965_v43 }
 0x211   : > { %13457 = vst [vmem:[#allocation140_spill] sm:$0xff] %v11010_v25 }
 0x212   : > { %v2752_v2 = vpop.f32.mrf.mxu0  ;;  %v10974_v40 = vpop.f32.mrf.mxu2  ;;  %13451 = vst [vmem:[#allocation134_spill] sm:$0xff] %v10979_v47 }
 0x213   : > { %v10970_v22 = vpop.f32.mrf.mxu1  ;;  %3684 = vmatmul.f32.gmra.mxu0 %v10958_v15  ;;  %13450 = vst [vmem:[#allocation133_spill] sm:$0xff] %v10974_v40  ;;  %v2753_v24 = vadd.f32 %v2752_v2, %v13334_v31 }
 0x214   : > { %13449 = vst [vmem:[#allocation132_spill] sm:$0xff] %v10970_v22  ;;  %3785 = vmatmul.f32.gmra.mxu1 %v10884_v54  ;;  %3957 = vmatmul.f32.gmra.mxu3 %v10932_v16  ;;  %v10987_v22 = vand.u32 4294901760, %v10979_v47  ;;  %v11012_v16 = vand.u32 4294901760, %v3606_v57 }
 0x216   : > { %3869 = vmatmul.f32.gmra.mxu2 %v10922_v52  ;;  %13453 = vst [vmem:[#allocation136_spill] sm:$0xff] %v10987_v22  ;;  %v3698_v42 = vsub.f32 %v10979_v47, %v10987_v22 }
 0x217   : > { %13458 = vst [vmem:[#allocation141_spill] sm:$0xff] %v11012_v16 }
 0x218   : > { %v11007_v6 = vand.u32 4294901760, %v3698_v42  ;;  %v13462_v42 = vld [vmem:[#allocation21_spill] sm:$0xff] }
 0x219   : > { %v2959_v40 = vpop.f32.mrf.mxu3 }
 0x21a   : > { %13456 = vst [vmem:[#allocation139_spill] sm:$0xff] %v11007_v6 }
 0x21b   : > { %3692 = vmatmul.f32.gmra.mxu0 %v10984_v38 }
 0x21c   : > { %3789 = vmatmul.f32.gmra.mxu1 %v10912_v0  ;;  %3963 = vmatmul.f32.gmra.mxu3 %v10963_v18  ;;  %v2845_v14 = vpop.f32.mrf.mxu1  ;;  %v2906_v46 = vpop.f32.mrf.mxu2  ;;  %v13464_v18 = vld [vmem:[#allocation19_spill] sm:$0xff] }
 0x21d   : > { %v11003_v9 = vpop.f32.mrf.mxu0  ;;  %v2846_v21 = vadd.f32 %v2845_v14, %v2753_v24  ;;  %v1225_v14 = vadd.f32 %v13460_v11, %v13334_v31  ;;  %v11026_v24 = vsub.f32 %v3606_v57, %v11012_v16  ;;  %v3509_v11 = vld [vmem:[%s12782_s4 + $0x38] sm:$0xff] }
 0x21e   : > { %13455 = vst [vmem:[#allocation138_spill] sm:$0xff] %v11003_v9  ;;  %3874 = vmatmul.f32.gmra.mxu2 %v10950_v48  ;;  %v3501_v9 = vld [vmem:[%s12781_s3 + $0x58] sm:$0xff]  ;;  %v13465_v48 = vld [vmem:[#allocation58_spill] sm:$0xff]  ;;  %3551 = vperm.xlu2 %8198, %v3509_v11  }
 0x21f   : > { %v2907_v2 = vadd.f32 %v2906_v46, %v2846_v21  ;;  %v3706_v21 = vsub.f32 %v11000_v7, %v11010_v25  ;;  %13461 = vst [vmem:[#allocation64_spill] sm:$0xff] %v11026_v24  ;;  %v1209_v29 = vadd.f32 %v13465_v48, %v13464_v18  ;;  %v13472_v48 = vld [vmem:[#allocation54_spill] sm:$0xff] }
 0x221   : > { %v11014_v45 = vadd.f32 %v2959_v40, %v2907_v2  ;;  %v3609_v40 = vsel %vm3574_vm1, %v3501_v9, 0  ;;  %v13463_v2 = vld [vmem:[#allocation60_spill] sm:$0xff]  ;;  %v11043_v55 = vand.u32 4294901760, %v3706_v21 }
 0x222   : > { %v11048_v20 = vand.u32 4294901760, %v3609_v40 }
 0x223   : > { %13459 = vst [vmem:[#allocation142_spill] sm:$0xff] %v11014_v45  ;;  %3700 = vmatmul.f32.gmra.mxu0 %v11007_v6  ;;  %v3215_v46 = vpop.f32.mrf.mxu3  ;;  %v1217_v45 = vadd.f32 %v13463_v2, %v13462_v42  ;;  %v11046_v2 = vand.u32 4294901760, %v11026_v24 }
 0x224   : > { %3793 = vmatmul.f32.gmra.mxu1 %v10934_v35  ;;  %3969 = vmatmul.f32.gmra.mxu3 %v10987_v22  ;;  %v13468_v22 = vld [vmem:[#allocation66_spill] sm:$0xff] }
 0x225   : > { %v1318_v1 = vadd.f32 %v13468_v22, %v1225_v14  ;;  %13469 = vst [vmem:[#allocation66_spill] sm:$0xff] %v11043_v55  ;;  %v13475_v22 = vld [vmem:[#allocation69_spill] sm:$0xff]  ;;  %v3714_v21 = vsub.f32 %v11026_v24, %v11046_v2 }
 0x226   : > { %3879 = vmatmul.f32.gmra.mxu2 %v10979_v47  ;;  %v11038_v52 = vpop.f32.mrf.mxu0  ;;  %v3110_v9 = vpop.f32.mrf.mxu2  ;;  %13470 = vst [vmem:[#allocation143_spill] sm:$0xff] %v11046_v2  ;;  %v1201_v47 = vadd.f32 %v13472_v48, %v13471_v39  ;;  %v13477_v48 = vld [vmem:[#allocation56_spill] sm:$0xff] }
 0x227   : > { %13466 = vst [vmem:[#allocation60_spill] sm:$0xff] %v11038_v52  ;;  %v11040_v57 = vpop.f32.mrf.mxu1  ;;  %v3111_v60 = vadd.f32 %v3110_v9, %v13471_v39  ;;  %v1314_v52 = vadd.f32 %v13473_v26, %v1217_v45  ;;  %v1379_v14 = vadd.f32 %v13475_v22, %v1318_v1  ;;  %v11063_v9 = vsub.f32 %v3609_v40, %v11048_v20  ;;  %v13478_v45 = vld [vmem:[#allocation65_spill] sm:$0xff] }
 0x228   : > { %13467 = vst [vmem:[#allocation58_spill] sm:$0xff] %v11040_v57  ;;  %v1310_v57 = vadd.f32 %v13474_v30, %v1209_v29  ;;  %v1306_v26 = vadd.f32 %v13477_v48, %v1201_v47  ;;  %v11075_v40 = vand.u32 4294901760, %v3714_v21 }
 0x229   : > { %v11055_v11 = vadd.f32 %v3215_v46, %v3111_v60  ;;  %13476 = vst [vmem:[#allocation54_spill] sm:$0xff] %v11063_v9  ;;  %v1374_v30 = vadd.f32 %v13478_v45, %v1314_v52  ;;  %v13479_v60 = vld [vmem:[#allocation61_spill] sm:$0xff]  ;;  %v1432_v59 = vadd.f32 %v13482_v19, %v1379_v14  ;;  %v13485_v52 = vld [vmem:[#allocation34_spill] sm:$0xff]  ;;  %v13486_v45 = vld [vmem:[#allocation63_spill] sm:$0xff] }
 0x22a   : > { %v1369_v46 = vadd.f32 %v13479_v60, %v1310_v57  ;;  %13483 = vst [vmem:[#allocation69_spill] sm:$0xff] %v11075_v40  ;;  %v1364_v48 = vadd.f32 %v13485_v52, %v1306_v26  ;;  %v13487_v60 = vld [vmem:[#allocation80_spill] sm:$0xff]  ;;  %v13491_v26 = vld [vmem:[#allocation57_spill] sm:$0xff] }
 0x22b   : > { %3708 = vmatmul.f32.gmra.mxu0 %v11043_v55  ;;  %v1426_v57 = vadd.f32 %v13486_v45, %v1374_v30  ;;  %v13490_v14 = vld [vmem:[#allocation84_spill] sm:$0xff] }
 0x22c   : > { %3797 = vmatmul.f32.gmra.mxu1 %v10965_v43  ;;  %3975 = vmatmul.f32.gmra.mxu3 %v11010_v25  ;;  %v11078_v25 = vand.u32 4294901760, %v11063_v9  ;;  %v1414_v30 = vadd.f32 %v13491_v26, %v1364_v48 }
 0x22d   : > { %v3219_v29 = vpop.f32.mrf.mxu3 }
 0x22e   : > { %3884 = vmatmul.f32.gmra.mxu2 %v11000_v7  ;;  %v11070_v1 = vpop.f32.mrf.mxu0  ;;  %13484 = vst [vmem:[#allocation56_spill] sm:$0xff] %v11078_v25  ;;  %v1501_v7 = vadd.f32 %v13487_v60, %v1432_v59  ;;  %v13492_v59 = vld [vmem:[#allocation72_spill] sm:$0xff] }
 0x22f   : > { %13480 = vst [vmem:[#allocation62_spill] sm:$0xff] %v11070_v1  ;;  %v11072_v22 = vpop.f32.mrf.mxu1  ;;  %v3118_v5 = vpop.f32.mrf.mxu2  ;;  %v1420_v1 = vadd.f32 %v13488_v32, %v1369_v46  ;;  %v13493_v32 = vld [vmem:[#allocation9_spill] sm:$0xff] }
 0x230   : > { %13481 = vst [vmem:[#allocation31_spill] sm:$0xff] %v11072_v22  ;;  %v3119_v47 = vadd.f32 %v3118_v5, %v13464_v18  ;;  %v13489_v22 = vld [vmem:[#allocation75_spill] sm:$0xff]  ;;  %v1546_v21 = vadd.f32 %v13490_v14, %v1501_v7  ;;  %v3722_v5 = vsub.f32 %v11063_v9, %v11078_v25 }
 0x231   : > { %v1497_v19 = vadd.f32 %v13489_v22, %v1426_v57  ;;  %v1493_v52 = vadd.f32 %v13492_v59, %v1420_v1  ;;  %v13497_v57 = vld [vmem:[#allocation8_spill] sm:$0xff]  ;;  %v13499_v1 = vld [vmem:[#allocation70_spill] sm:$0xff] }
 0x232   : > { %v11085_v36 = vadd.f32 %v3219_v29, %v3119_v47  ;;  %v13496_v47 = vld [vmem:[#allocation68_spill] sm:$0xff]  ;;  %v3484_v14 = vmax.f32 %v1546_v21, 0.0 }
 0x233   : > { %3716 = vmatmul.f32.gmra.mxu0 %v11075_v40  ;;  %v1542_v29 = vadd.f32 %v13493_v32, %v1497_v19  ;;  %v1489_v45 = vadd.f32 %v13496_v47, %v1414_v30  ;;  %v1538_v60 = vadd.f32 %v13497_v57, %v1493_v52 }
 0x234   : > { %3801 = vmatmul.f32.gmra.mxu1 %v10989_v53  ;;  %3981 = vmatmul.f32.gmra.mxu3 %v11046_v2  ;;  %v11104_v2 = vand.u32 4294901760, %v3722_v5 }
 0x235   : > { %v3223_v46 = vpop.f32.mrf.mxu3  ;;  %v1534_v26 = vadd.f32 %v13499_v1, %v1489_v45  ;;  %v3476_v19 = vmax.f32 %v1542_v29, 0.0  ;;  %v3468_v32 = vmax.f32 %v1538_v60, 0.0  ;;  %v3512_v29 = vld [vmem:[%s12782_s4 + $0x50] sm:$0xff] }
 0x236   : > { %3889 = vmatmul.f32.gmra.mxu2 %v11026_v24  ;;  %v11098_v22 = vpop.f32.mrf.mxu0  ;;  %13498 = vst [vmem:[#allocation67_spill] sm:$0xff] %v11104_v2  ;;  %v11110_v24 = vand.u32 4294901760, %v3484_v14  ;;  %3566 = vperm.xlu2 %8198, %v3512_v29  }
 0x237   : > { %13494 = vst [vmem:[#allocation65_spill] sm:$0xff] %v11098_v22  ;;  %v11100_v7 = vpop.f32.mrf.mxu1  ;;  %v3126_v40 = vpop.f32.mrf.mxu2  ;;  %v3460_v21 = vmax.f32 %v1534_v26, 0.0  ;;  %v11115_v30 = vand.u32 4294901760, %v3476_v19 }
 0x238   : > { %13495 = vst [vmem:[#allocation61_spill] sm:$0xff] %v11100_v7  ;;  %v3127_v48 = vadd.f32 %v3126_v40, %v13462_v42  ;;  %v11126_v47 = vsub.f32 %v3484_v14, %v11110_v24 }
 0x239   : > { %v11129_v60 = vand.u32 4294901760, %v3460_v21 }
 0x23a   : > { %v11108_v59 = vadd.f32 %v3223_v46, %v3127_v48  ;;  %v11123_v46 = vand.u32 4294901760, %v3468_v32  ;;  %v11132_v48 = vsub.f32 %v3476_v19, %v11115_v30  ;;  %v12926_v26 = vand.u32 4294901760, %v11126_v47 }
 0x23b   : > { %3724 = vmatmul.f32.gmra.mxu0 %v11104_v2  ;;  %v11146_v19 = vsub.f32 %v3460_v21, %v11129_v60 }
 0x23c   : > { %3805 = vmatmul.f32.gmra.mxu1 %v11012_v16  ;;  %3987 = vmatmul.f32.gmra.mxu3 %v11078_v25  ;;  %v11140_v14 = vsub.f32 %v3468_v32, %v11123_v46  ;;  %v4795_v7 = vsub.f32 %v11126_v47, %v12926_v26 }
 0x23d   : > { %v3227_v5 = vpop.f32.mrf.mxu3  ;;  %v12932_v22 = vand.u32 4294901760, %v11146_v19 }
 0x23e   : > { %3894 = vmatmul.f32.gmra.mxu2 %v11063_v9  ;;  %v3273_v52 = vpop.f32.mrf.mxu0  ;;  %v12927_v21 = vand.u32 4294901760, %v11140_v14  ;;  %v4796_v26 = vand.u32 4294901760, %v4795_v7 }
 0x23f   : > { %v11118_v40 = vpop.f32.mrf.mxu1  ;;  %v3134_v45 = vpop.f32.mrf.mxu2 }
 0x240   : > { %13500 = vst [vmem:[#allocation34_spill] sm:$0xff] %v11118_v40  ;;  %v3135_v57 = vadd.f32 %v3134_v45, %v13334_v31  ;;  %v3274_v45 = vadd.f32 %v3273_v52, %v11055_v11  ;;  %v13501_v52 = vand.u32 4294901760, %v11132_v48 }
 0x242   : > { %v11134_v1 = vadd.f32 %v3227_v5, %v3135_v57  ;;  %v4801_v40 = vsub.f32 %v11132_v48, %v13501_v52 }
 0x243   : > { %4020 = vmatmul.f32.vlgmr.msrb.gmra.mxu0 %v10728_v44 }
 0x244   : > { %3809 = vmatmul.f32.gmra.mxu1 %v11048_v20  ;;  %4291 = vmatmul.f32.vlgmr.msrb.gmra.mxu3 %v10728_v44 }
 0x245   : > { %4676 = vmatpush.msrb.mxu0 %v11110_v24  ;;  %4963 = vmatpush.msrb.mxu3 %v11110_v24  ;;  %v3443_v29 = vpop.f32.mrf.mxu3 }
 0x246   : > { %4162 = vmatmul.f32.vlgmr.msrb.gmra.mxu2 %v10771_v61 }
 0x247   : > { %4678 = vmatpush.msrb.mxu0 %v11115_v30  ;;  %4879 = vmatpush.msrb.mxu2 %v11126_v47  ;;  %v3278_v32 = vpop.f32.mrf.mxu0  ;;  %v3398_v11 = vpop.f32.mrf.mxu2 }
 0x248   : > { %4965 = vmatpush.msrb.mxu3 %v11115_v30  ;;  %v3323_v57 = vpop.f32.mrf.mxu1  ;;  %v3279_v7 = vadd.f32 %v3278_v32, %v11085_v36 }
 0x249   : > { %4680 = vmatpush.msrb.mxu0 %v11123_v46  ;;  %v3324_v5 = vadd.f32 %v3323_v57, %v3274_v45  ;;  %4882 = vmatpush.msrb.mxu2 %v11132_v48  ;;  %v4807_v45 = vsub.f32 %v11140_v14, %v12927_v21 }
 0x24a   : > { %4967 = vmatpush.msrb.mxu3 %v11123_v46 }
 0x24b   : > { %v3399_v61 = vadd.f32 %v3398_v11, %v3324_v5  ;;  %4682 = vmatpush.msrb.mxu0 %v11129_v60  ;;  %4885 = vmatpush.msrb.mxu2 %v11140_v14  ;;  %v4802_v5 = vand.u32 4294901760, %v4801_v40  ;;  %v4813_v11 = vsub.f32 %v11146_v19, %v12932_v22 }
 0x24c   : > { %4969 = vmatpush.msrb.mxu3 %v11129_v60  ;;  %4024 = vmatmul.f32.gmra.mxu0 %v10754_v8 }
 0x24d   : > { %v11171_v57 = vadd.f32 %v3443_v29, %v3399_v61  ;;  %4089 = vmatmul.f32.vlgmr.msrb.gmra.mxu1 %v10728_v44  ;;  %4295 = vmatmul.f32.gmra.mxu3 %v10754_v8  ;;  %v4808_v61 = vand.u32 4294901760, %v4807_v45 }
 0x24e   : > { %4797 = vmatpush.msrb.mxu1 %v4796_v26  ;;  %4888 = vmatpush.msrb.mxu2 %v11146_v19  ;;  %v3447_v52 = vpop.f32.mrf.mxu3  ;;  %v4814_v26 = vand.u32 4294901760, %v4813_v11 }
 0x24f   : > { %13502 = vst [vmem:[#allocation63_spill] sm:$0xff] %v11171_v57  ;;  %4170 = vmatmul.f32.gmra.mxu2 %v10804_v37  ;;  %v3283_v29 = vpop.f32.mrf.mxu0  ;;  %v13517_v37 = vld [vmem:[#allocation74_spill] sm:$0xff] }
 0x250   : > { %4803 = vmatpush.msrb.mxu1 %v4802_v5  ;;  %v3329_v21 = vpop.f32.mrf.mxu1  ;;  %v3402_v25 = vpop.f32.mrf.mxu2  ;;  %v3284_v36 = vadd.f32 %v3283_v29, %v11108_v59 }
 0x251   : > { %v3330_v57 = vadd.f32 %v3329_v21, %v3279_v7 }
 0x252   : > { %4809 = vmatpush.msrb.mxu1 %v4808_v61 }
 0x253   : > { %v3403_v40 = vadd.f32 %v3402_v25, %v3330_v57 }
 0x254   : > { %4815 = vmatpush.msrb.mxu1 %v4814_v26  ;;  %4028 = vmatmul.f32.gmra.mxu0 %v10776_v13 }
 0x255   : > { %v11182_v9 = vadd.f32 %v3447_v52, %v3403_v40  ;;  %4093 = vmatmul.f32.gmra.mxu1 %v10754_v8  ;;  %4299 = vmatmul.f32.gmra.mxu3 %v10776_v13  ;;  %v11196_v40 = vpop.permute.xlu2 %3516 }
 0x256   : > { %v3451_v32 = vpop.f32.mrf.mxu3  ;;  %13505 = vst [vmem:[#allocation75_spill] sm:$0xff] %v11196_v40 }
 0x257   : > { %13503 = vst [vmem:[#allocation80_spill] sm:$0xff] %v11182_v9  ;;  %4178 = vmatmul.f32.gmra.mxu2 %v10846_v34  ;;  %v3288_v45 = vpop.f32.mrf.mxu0 }
 0x258   : > { %v3335_v21 = vpop.f32.mrf.mxu1  ;;  %v3406_v7 = vpop.f32.mrf.mxu2  ;;  %v3289_v57 = vadd.f32 %v3288_v45, %v11134_v1 }
 0x259   : > { %v3336_v5 = vadd.f32 %v3335_v21, %v3284_v36 }
 0x25b   : > { %v3407_v11 = vadd.f32 %v3406_v7, %v3336_v5 }
 0x25c   : > { %4032 = vmatmul.f32.gmra.mxu0 %v10811_v33 }
 0x25d   : > { %v11189_v25 = vadd.f32 %v3451_v32, %v3407_v11  ;;  %4097 = vmatmul.f32.gmra.mxu1 %v10776_v13  ;;  %4303 = vmatmul.f32.gmra.mxu3 %v10811_v33 }
 0x25e   : > { %v3455_v52 = vpop.f32.mrf.mxu3 }
 0x25f   : > { %13504 = vst [vmem:[#allocation59_spill] sm:$0xff] %v11189_v25  ;;  %4186 = vmatmul.f32.gmra.mxu2 %v10879_v23  ;;  %v3637_v61 = vpop.f32.mrf.mxu0 }
 0x260   : > { %v3341_v59 = vpop.f32.mrf.mxu1  ;;  %v3410_v26 = vpop.f32.mrf.mxu2  ;;  %v3638_v1 = vadd.f32 %v3637_v61, %v11196_v40 }
 0x261   : > { %v3342_v29 = vadd.f32 %v3341_v59, %v3289_v57  ;;  %v11205_v57 = vpop.permute.xlu2 %3521 }
 0x262   : > { %13507 = vst [vmem:[#allocation57_spill] sm:$0xff] %v11205_v57 }
 0x263   : > { %v3411_v36 = vadd.f32 %v3410_v26, %v3342_v29 }
 0x264   : > { %4036 = vmatmul.f32.gmra.mxu0 %v10851_v3 }
 0x265   : > { %v11198_v32 = vadd.f32 %v3455_v52, %v3411_v36  ;;  %4101 = vmatmul.f32.gmra.mxu1 %v10811_v33  ;;  %4307 = vmatmul.f32.gmra.mxu3 %v10851_v3 }
 0x266   : > { %v3922_v45 = vpop.f32.mrf.mxu3 }
 0x267   : > { %13506 = vst [vmem:[#allocation84_spill] sm:$0xff] %v11198_v32  ;;  %4194 = vmatmul.f32.gmra.mxu2 %v10905_v56  ;;  %v11232_v32 = vpop.permute.xlu1 %3531  ;;  %v13514_v56 = vld [vmem:[#allocation73_spill] sm:$0xff] }
 0x268   : > { %v3645_v21 = vpop.f32.mrf.mxu0  ;;  %v3840_v11 = vpop.f32.mrf.mxu2  ;;  %13511 = vst [vmem:[#allocation9_spill] sm:$0xff] %v11232_v32  ;;  %v1583_v23 = vadd.f32 %v13514_v56, %v13471_v39 }
 0x269   : > { %v3766_v5 = vpop.f32.mrf.mxu1  ;;  %v3646_v61 = vadd.f32 %v3645_v21, %v11205_v57 }
 0x26a   : > { %v3767_v7 = vadd.f32 %v3766_v5, %v3638_v1 }
 0x26c   : > { %v3841_v59 = vadd.f32 %v3840_v11, %v3767_v7  ;;  %4040 = vmatmul.f32.gmra.mxu0 %v10884_v54 }
 0x26d   : > { %4105 = vmatmul.f32.gmra.mxu1 %v10851_v3  ;;  %4311 = vmatmul.f32.gmra.mxu3 %v10884_v54 }
 0x26e   : > { %v11209_v52 = vadd.f32 %v3922_v45, %v3841_v59  ;;  %v11219_v45 = vpop.permute.xlu0 %3526 }
 0x26f   : > { %4202 = vmatmul.f32.gmra.mxu2 %v10929_v58  ;;  %v3928_v29 = vpop.f32.mrf.mxu3  ;;  %13508 = vst [vmem:[#allocation72_spill] sm:$0xff] %v11219_v45 }
 0x270   : > { %v3653_v26 = vpop.f32.mrf.mxu0 }
 0x271   : > { %v3770_v36 = vpop.f32.mrf.mxu1  ;;  %v3845_v5 = vpop.f32.mrf.mxu2  ;;  %v3654_v21 = vadd.f32 %v3653_v26, %v11219_v45 }
 0x272   : > { %v3771_v1 = vadd.f32 %v3770_v36, %v3646_v61 }
 0x274   : > { %v3846_v22 = vadd.f32 %v3845_v5, %v3771_v1  ;;  %4044 = vmatmul.f32.gmra.mxu0 %v10912_v0  ;;  %v13509_v5 = vld [vmem:[#allocation86_spill] sm:$0xff] }
 0x275   : > { %4109 = vmatmul.f32.gmra.mxu1 %v10884_v54  ;;  %4315 = vmatmul.f32.gmra.mxu3 %v10912_v0  ;;  %v1607_v25 = vadd.f32 %v13509_v5, %v13334_v31  ;;  %v13513_v5 = vld [vmem:[#allocation85_spill] sm:$0xff] }
 0x276   : > { %v11216_v7 = vadd.f32 %v3928_v29, %v3846_v22  ;;  %v13510_v29 = vld [vmem:[#allocation83_spill] sm:$0xff] }
 0x277   : > { %4210 = vmatmul.f32.gmra.mxu2 %v10958_v15  ;;  %v3934_v11 = vpop.f32.mrf.mxu3  ;;  %v1599_v26 = vadd.f32 %v13510_v29, %v13462_v42  ;;  %v1700_v31 = vadd.f32 %v13513_v5, %v1607_v25  ;;  %v13515_v29 = vld [vmem:[#allocation79_spill] sm:$0xff] }
 0x278   : > { %v3661_v59 = vpop.f32.mrf.mxu0 }
 0x279   : > { %v3774_v9 = vpop.f32.mrf.mxu1  ;;  %v3850_v36 = vpop.f32.mrf.mxu2  ;;  %v1696_v42 = vadd.f32 %v13515_v29, %v1599_v26  ;;  %v1761_v34 = vadd.f32 %v10396_v63, %v1700_v31  ;;  %v13518_v63 = vld [vmem:[#allocation71_spill] sm:$0xff] }
 0x27a   : > { %v3775_v61 = vadd.f32 %v3774_v9, %v3654_v21  ;;  %v3662_v9 = vadd.f32 %v3661_v59, %v11232_v32  ;;  %v11243_v59 = vpop.permute.xlu2 %3536  ;;  %v1688_v31 = vadd.f32 %v13518_v63, %v1583_v23  ;;  %v11272_v29 = vpop.permute.xlu0 %3541 }
 0x27b   : > { %13516 = vst [vmem:[#allocation68_spill] sm:$0xff] %v11243_v59  ;;  %v1814_v25 = vadd.f32 %v10419_v12, %v1761_v34  ;;  %v13519_v12 = vld [vmem:[#allocation11_spill] sm:$0xff] }
 0x27c   : > { %v3851_v1 = vadd.f32 %v3850_v36, %v3775_v61  ;;  %4048 = vmatmul.f32.gmra.mxu0 %v10934_v35  ;;  %v13512_v61 = vld [vmem:[#allocation76_spill] sm:$0xff]  ;;  %v1746_v34 = vadd.f32 %v13519_v12, %v1688_v31  ;;  %13521 = vst [vmem:[#allocation8_spill] sm:$0xff] %v11272_v29 }
 0x27d   : > { %4113 = vmatmul.f32.gmra.mxu1 %v10912_v0  ;;  %4319 = vmatmul.f32.gmra.mxu3 %v10934_v35  ;;  %v1591_v36 = vadd.f32 %v13512_v61, %v13464_v18  ;;  %v1756_v61 = vadd.f32 %v10360_v4, %v1696_v42 }
 0x27e   : > { %v11227_v22 = vadd.f32 %v3934_v11, %v3851_v1 }
 0x27f   : > { %4218 = vmatmul.f32.gmra.mxu2 %v10984_v38  ;;  %v3940_v21 = vpop.f32.mrf.mxu3  ;;  %v1692_v32 = vadd.f32 %v13517_v37, %v1591_v36  ;;  %v1808_v37 = vadd.f32 %v10391_v41, %v1756_v61 }
 0x280   : > { %v3669_v15 = vpop.f32.mrf.mxu0 }
 0x281   : > { %v3778_v11 = vpop.f32.mrf.mxu1  ;;  %v3855_v58 = vpop.f32.mrf.mxu2  ;;  %v3670_v56 = vadd.f32 %v3669_v15, %v11243_v59  ;;  %v13520_v15 = vld [vmem:[#allocation87_spill] sm:$0xff]  ;;  %v1879_v23 = vadd.f32 %v10404_v28, %v1808_v37  ;;  %v13523_v37 = vld [vmem:[#allocation88_spill] sm:$0xff] }
 0x282   : > { %v3779_v1 = vadd.f32 %v3778_v11, %v3662_v9  ;;  %v1796_v11 = vadd.f32 %v13520_v15, %v1746_v34 }
 0x284   : > { %v3856_v38 = vadd.f32 %v3855_v58, %v3779_v1  ;;  %4052 = vmatmul.f32.gmra.mxu0 %v10965_v43  ;;  %v1751_v58 = vadd.f32 %v10312_v27, %v1692_v32  ;;  %v1924_v1 = vadd.f32 %v10398_v51, %v1879_v23 }
 0x285   : > { %4117 = vmatmul.f32.gmra.mxu1 %v10934_v35  ;;  %4323 = vmatmul.f32.gmra.mxu3 %v10965_v43 }
 0x286   : > { %v11250_v9 = vadd.f32 %v3940_v21, %v3856_v38  ;;  %v1802_v42 = vadd.f32 %v10353_v50, %v1751_v58  ;;  %v1883_v38 = vadd.f32 %v10428_v49, %v1814_v25  ;;  %v1871_v49 = vadd.f32 %v10320_v62, %v1796_v11 }
 0x287   : > { %4226 = vmatmul.f32.gmra.mxu2 %v11007_v6  ;;  %v3946_v4 = vpop.f32.mrf.mxu3  ;;  %v3477_v12 = vmax.f32 %v1924_v1, 0.0 }
 0x288   : > { %v3677_v26 = vpop.f32.mrf.mxu0  ;;  %v1875_v41 = vadd.f32 %v10370_v10, %v1802_v42  ;;  %v1928_v32 = vadd.f32 %v10425_v17, %v1883_v38  ;;  %v13522_v17 = vld [vmem:[#allocation89_spill] sm:$0xff] }
 0x289   : > { %v3782_v21 = vpop.f32.mrf.mxu1  ;;  %v3860_v5 = vpop.f32.mrf.mxu2  ;;  %v3678_v28 = vadd.f32 %v3677_v26, %v11272_v29  ;;  %v11285_v26 = vand.u32 4294901760, %v3477_v12 }
 0x28a   : > { %v3783_v36 = vadd.f32 %v3782_v21, %v3670_v56  ;;  %v1920_v61 = vadd.f32 %v13522_v17, %v1875_v41  ;;  %v3485_v25 = vmax.f32 %v1928_v32, 0.0  ;;  %v11287_v21 = vpop.permute.xlu1 %3546 }
 0x28b   : > { %13524 = vst [vmem:[#allocation70_spill] sm:$0xff] %v11287_v21 }
 0x28c   : > { %v3861_v27 = vadd.f32 %v3860_v5, %v3783_v36  ;;  %4056 = vmatmul.f32.gmra.mxu0 %v10989_v53  ;;  %v3469_v34 = vmax.f32 %v1920_v61, 0.0  ;;  %v11278_v51 = vand.u32 4294901760, %v3485_v25  ;;  %v13525_v5 = vld [vmem:[#allocation69_spill] sm:$0xff] }
 0x28d   : > { %4121 = vmatmul.f32.gmra.mxu1 %v10965_v43  ;;  %4327 = vmatmul.f32.gmra.mxu3 %v10989_v53 }
 0x28e   : > { %v11267_v50 = vadd.f32 %v3946_v4, %v3861_v27  ;;  %v1916_v4 = vadd.f32 %v13523_v37, %v1871_v49  ;;  %v11291_v11 = vand.u32 4294901760, %v3469_v34  ;;  %v11294_v23 = vsub.f32 %v3485_v25, %v11278_v51 }
 0x28f   : > { %4234 = vmatmul.f32.gmra.mxu2 %v11043_v55  ;;  %v3952_v10 = vpop.f32.mrf.mxu3 }
 0x290   : > { %v3685_v56 = vpop.f32.mrf.mxu0  ;;  %v3461_v38 = vmax.f32 %v1916_v4, 0.0  ;;  %v11304_v61 = vsub.f32 %v3469_v34, %v11291_v11 }
 0x291   : > { %v3786_v63 = vpop.f32.mrf.mxu1  ;;  %v3865_v58 = vpop.f32.mrf.mxu2  ;;  %v3686_v36 = vadd.f32 %v3685_v56, %v11287_v21  ;;  %v12951_v56 = vand.u32 4294901760, %v11294_v23 }
 0x292   : > { %v3787_v31 = vadd.f32 %v3786_v63, %v3678_v28  ;;  %v11296_v1 = vand.u32 4294901760, %v3461_v38  ;;  %v11299_v28 = vsub.f32 %v3477_v12, %v11285_v26  ;;  %v12952_v34 = vand.u32 4294901760, %v11304_v61 }
 0x294   : > { %v3866_v62 = vadd.f32 %v3865_v58, %v3787_v31  ;;  %4060 = vmatmul.f32.gmra.mxu0 %v11012_v16  ;;  %v11314_v31 = vsub.f32 %v3461_v38, %v11296_v1  ;;  %v12953_v58 = vand.u32 4294901760, %v11299_v28 }
 0x295   : > { %4125 = vmatmul.f32.gmra.mxu1 %v10989_v53  ;;  %4331 = vmatmul.f32.gmra.mxu3 %v11012_v16 }
 0x296   : > { %v11282_v42 = vadd.f32 %v3952_v10, %v3866_v62  ;;  %v11301_v10 = vpop.permute.xlu2 %3551  ;;  %v5321_v62 = vsub.f32 %v11294_v23, %v12951_v56  ;;  %v5327_v38 = vsub.f32 %v11299_v28, %v12953_v58 }
 0x297   : > { %4242 = vmatmul.f32.gmra.mxu2 %v13525_v5  ;;  %v3958_v15 = vpop.f32.mrf.mxu3  ;;  %13526 = vst [vmem:[#allocation86_spill] sm:$0xff] %v11301_v10 }
 0x298   : > { %v3693_v27 = vpop.f32.mrf.mxu0 }
 0x299   : > { %v3790_v41 = vpop.f32.mrf.mxu1  ;;  %v3870_v49 = vpop.f32.mrf.mxu2  ;;  %v3694_v63 = vadd.f32 %v3693_v27, %v11301_v10  ;;  %v12954_v27 = vand.u32 4294901760, %v11314_v31 }
 0x29a   : > { %v3791_v32 = vadd.f32 %v3790_v41, %v3686_v36 }
 0x29c   : > { %v3871_v17 = vadd.f32 %v3870_v49, %v3791_v32  ;;  %4064 = vmatmul.f32.gmra.mxu0 %v11048_v20  ;;  %v13527_v32 = vld [vmem:[#allocation44_spill] sm:$0xff]  ;;  %v5322_v49 = vand.u32 4294901760, %v5321_v62 }
 0x29d   : > { %4129 = vmatmul.f32.gmra.mxu1 %v11012_v16  ;;  %4335 = vmatmul.f32.gmra.mxu3 %v11048_v20 }
 0x29e   : > { %v11309_v25 = vadd.f32 %v3958_v15, %v3871_v17  ;;  %v5333_v17 = vsub.f32 %v11304_v61, %v12952_v34 }
 0x29f   : > { %4250 = vmatmul.f32.gmra.mxu2 %v11104_v2  ;;  %v3964_v37 = vpop.f32.mrf.mxu3 }
 0x2a0   : > { %v3701_v4 = vpop.f32.mrf.mxu0 }
 0x2a1   : > { %v3794_v12 = vpop.f32.mrf.mxu1  ;;  %v3875_v15 = vpop.f32.mrf.mxu2 }
 0x2a2   : > { %v3795_v36 = vadd.f32 %v3794_v12, %v3694_v63  ;;  %v13528_v63 = vand.u32 4294901760, %v11126_v47  ;;  %v11336_v12 = vpop.permute.xlu0 %3556  ;;  %v5334_v47 = vand.u32 4294901760, %v5333_v17  ;;  %v13532_v17 = vld [vmem:[#allocation43_spill] sm:$0xff] }
 0x2a3   : > { %v3702_v62 = vadd.f32 %v3701_v4, %v11336_v12 }
 0x2a4   : > { %v3876_v41 = vadd.f32 %v3875_v15, %v3795_v36  ;;  %4365 = vmatmul.f32.vlgmr.msra.gmra.mxu0 %v13527_v32  ;;  %v5328_v36 = vand.u32 4294901760, %v5327_v38  ;;  %v5339_v15 = vsub.f32 %v11314_v31, %v12954_v27  ;;  %v13530_v38 = vand.u32 4294901760, %v11140_v14  ;;  %v11356_v14 = vpop.permute.xlu1 %3561 }
 0x2a5   : > { %4133 = vmatmul.f32.gmra.mxu1 %v11048_v20  ;;  %4615 = vmatmul.f32.vlgmr.msra.gmra.mxu3 %v10728_v44  ;;  %13534 = vst [vmem:[#allocation83_spill] sm:$0xff] %v11356_v14 }
 0x2a6   : > { %v11331_v56 = vadd.f32 %v3964_v37, %v3876_v41  ;;  %5058 = vmatpush.msra.mxu0 %v13528_v63  ;;  %5323 = vmatpush.msra.mxu3 %v5322_v49  ;;  %v13529_v37 = vand.u32 4294901760, %v11132_v48  ;;  %v5340_v4 = vand.u32 4294901760, %v5339_v15  ;;  %v13531_v48 = vand.u32 4294901760, %v11146_v19 }
 0x2a7   : > { %4546 = vmatmul.f32.vlgmr.msra.gmra.mxu2 %v10728_v44  ;;  %v3970_v41 = vpop.f32.mrf.mxu3 }
 0x2a8   : > { %5062 = vmatpush.msra.mxu0 %v13529_v37  ;;  %5202 = vmatpush.msra.mxu2 %v11278_v51  ;;  %v3709_v63 = vpop.f32.mrf.mxu0  ;;  %v13533_v37 = vld [vmem:[#allocation40_spill] sm:$0xff] }
 0x2a9   : > { %5329 = vmatpush.msra.mxu3 %v5328_v36  ;;  %v3798_v34 = vpop.f32.mrf.mxu1  ;;  %v3880_v58 = vpop.f32.mrf.mxu2 }
 0x2aa   : > { %5066 = vmatpush.msra.mxu0 %v13530_v38  ;;  %v3799_v49 = vadd.f32 %v3798_v34, %v3702_v62  ;;  %5204 = vmatpush.msra.mxu2 %v11285_v26  ;;  %v13537_v38 = vld [vmem:[#allocation41_spill] sm:$0xff] }
 0x2ab   : > { %5335 = vmatpush.msra.mxu3 %v5334_v47 }
 0x2ac   : > { %v3881_v27 = vadd.f32 %v3880_v58, %v3799_v49  ;;  %5070 = vmatpush.msra.mxu0 %v13531_v48  ;;  %5206 = vmatpush.msra.mxu2 %v11291_v11  ;;  %v3710_v58 = vadd.f32 %v3709_v63, %v11356_v14  ;;  %v13536_v63 = vld [vmem:[#allocation95_spill] sm:$0xff] }
 0x2ad   : > { %5341 = vmatpush.msra.mxu3 %v5340_v4  ;;  %4370 = vmatmul.f32.gmra.mxu0 %v13532_v17 }
 0x2ae   : > { %v11352_v36 = vadd.f32 %v3970_v41, %v3881_v27  ;;  %4447 = vmatmul.f32.vlgmr.msra.gmra.mxu1 %v13533_v37  ;;  %4619 = vmatmul.f32.gmra.mxu3 %v10754_v8  ;;  %v11365_v41 = vpop.permute.xlu2 %3566 }
 0x2af   : > { %5133 = vmatpush.msra.mxu1 %v11110_v24  ;;  %5208 = vmatpush.msra.mxu2 %v11296_v1  ;;  %v3976_v19 = vpop.f32.mrf.mxu3  ;;  %13535 = vst [vmem:[#allocation76_spill] sm:$0xff] %v11365_v41 }
 0x2b0   : > { %4550 = vmatmul.f32.gmra.mxu2 %v10754_v8  ;;  %v3717_v34 = vpop.f32.mrf.mxu0 }
 0x2b1   : > { %5135 = vmatpush.msra.mxu1 %v11115_v30  ;;  %v3802_v27 = vpop.f32.mrf.mxu1  ;;  %v3885_v62 = vpop.f32.mrf.mxu2  ;;  %v3718_v49 = vadd.f32 %v3717_v34, %v11365_v41 }
 0x2b2   : > { %v3803_v15 = vadd.f32 %v3802_v27, %v3710_v58 }
 0x2b3   : > { %5137 = vmatpush.msra.mxu1 %v11123_v46 }
 0x2b4   : > { %v3886_v47 = vadd.f32 %v3885_v62, %v3803_v15  ;;  %v11379_v62 = vpop.permute.xlu0 %3571 }
 0x2b5   : > { %5139 = vmatpush.msra.mxu1 %v11129_v60  ;;  %4375 = vmatmul.f32.gmra.mxu0 %v13536_v63  ;;  %v13538_v60 = vld [vmem:[#allocation103_spill] sm:$0xff]  ;;  %13540 = vst [vmem:[#allocation85_spill] sm:$0xff] %v11379_v62 }
 0x2b6   : > { %v11368_v24 = vadd.f32 %v3976_v19, %v3886_v47  ;;  %4453 = vmatmul.f32.gmra.mxu1 %v13537_v38  ;;  %4623 = vmatmul.f32.gmra.mxu3 %v10776_v13  ;;  %v13539_v19 = vld [vmem:[#allocation97_spill] sm:$0xff] }
 0x2b7   : > { %v3982_v30 = vpop.f32.mrf.mxu3 }
 0x2b8   : > { %4554 = vmatmul.f32.gmra.mxu2 %v10776_v13  ;;  %v3725_v4 = vpop.f32.mrf.mxu0 }
 0x2b9   : > { %v3806_v46 = vpop.f32.mrf.mxu1  ;;  %v3890_v58 = vpop.f32.mrf.mxu2  ;;  %v3726_v34 = vadd.f32 %v3725_v4, %v11379_v62 }
 0x2ba   : > { %v3807_v48 = vadd.f32 %v3806_v46, %v3718_v49 }
 0x2bc   : > { %v3891_v27 = vadd.f32 %v3890_v58, %v3807_v48  ;;  %v13541_v58 = vld [vmem:[#allocation107_spill] sm:$0xff] }
 0x2bd   : > { %4380 = vmatmul.f32.gmra.mxu0 %v13538_v60 }
 0x2be   : > { %v11375_v15 = vadd.f32 %v3982_v30, %v3891_v27  ;;  %4459 = vmatmul.f32.gmra.mxu1 %v13539_v19  ;;  %4627 = vmatmul.f32.gmra.mxu3 %v10811_v33  ;;  %v13542_v27 = vld [vmem:[#allocation105_spill] sm:$0xff] }
 0x2bf   : > { %v3988_v47 = vpop.f32.mrf.mxu3 }
 0x2c0   : > { %4558 = vmatmul.f32.gmra.mxu2 %v10811_v33  ;;  %v4021_v5 = vpop.f32.mrf.mxu0 }
 0x2c1   : > { %v3810_v2 = vpop.f32.mrf.mxu1  ;;  %v3895_v46 = vpop.f32.mrf.mxu2  ;;  %v4022_v4 = vadd.f32 %v4021_v5, %v11209_v52 }
 0x2c2   : > { %v3811_v49 = vadd.f32 %v3810_v2, %v3726_v34 }
 0x2c4   : > { %v3896_v30 = vadd.f32 %v3895_v46, %v3811_v49 }
 0x2c5   : > { %4385 = vmatmul.f32.gmra.mxu0 %v13541_v58  ;;  %v13544_v58 = vld [vmem:[#allocation112_spill] sm:$0xff] }
 0x2c6   : > { %v11384_v48 = vadd.f32 %v3988_v47, %v3896_v30  ;;  %4465 = vmatmul.f32.gmra.mxu1 %v13542_v27  ;;  %4631 = vmatmul.f32.gmra.mxu3 %v10851_v3  ;;  %v8199_v47 = vld [vmem:[%s8524_s11] sm:$0xff]  ;;  %v13543_v30 = vld [vmem:[#allocation114_spill] sm:$0xff] }
 0x2c7   : > { %v4292_v55 = vpop.f32.mrf.mxu3 }
 0x2c8   : > { %4562 = vmatmul.f32.gmra.mxu2 %v10851_v3 }
 0x2c9   : > { %v4025_v39 = vpop.f32.mrf.mxu0  ;;  %v4163_v2 = vpop.f32.mrf.mxu2 }
 0x2ca   : > { %v4090_v18 = vpop.f32.mrf.mxu1  ;;  %v4164_v34 = vadd.f32 %v4163_v2, %v11196_v40 }
 0x2cb   : > { %v4091_v6 = vadd.f32 %v4090_v18, %v4022_v4  ;;  %v4026_v18 = vadd.f32 %v4025_v39, %v11216_v7 }
 0x2cc   : > { %v11393_v46 = vadd.f32 %v4292_v55, %v4164_v34  ;;  %v8200_v34 = vld [vmem:[%s8524_s11 + $0x40] sm:$0xff] }
 0x2cd   : > { %v7819_v49 = vadd.f32 %v8199_v47, %v4091_v6  ;;  %4390 = vmatmul.f32.gmra.mxu0 %v13543_v30  ;;  %v13545_v30 = vld [vmem:[#allocation121_spill] sm:$0xff] }
 0x2ce   : > { %4471 = vmatmul.f32.gmra.mxu1 %v13544_v58  ;;  %4635 = vmatmul.f32.gmra.mxu3 %v10884_v54 }
 0x2cf   : > { %7915 = vst [vmem:[%s11399_s14] sm:$0xff] %v7819_v49  ;;  %v13546_v49 = vld [vmem:[#allocation119_spill] sm:$0xff] }
 0x2d0   : > { %4566 = vmatmul.f32.gmra.mxu2 %v10884_v54  ;;  %v4296_v52 = vpop.f32.mrf.mxu3 }
 0x2d1   : > { %v4029_v6 = vpop.f32.mrf.mxu0 }
 0x2d2   : > { %v4094_v55 = vpop.f32.mrf.mxu1  ;;  %v4171_v4 = vpop.f32.mrf.mxu2  ;;  %v4030_v39 = vadd.f32 %v4029_v6, %v11227_v22 }
 0x2d3   : > { %v4095_v5 = vadd.f32 %v4094_v55, %v4026_v18  ;;  %v4172_v2 = vadd.f32 %v4171_v4, %v11205_v57 }
 0x2d5   : > { %v7827_v47 = vadd.f32 %v8200_v34, %v4095_v5  ;;  %v11407_v40 = vadd.f32 %v4296_v52, %v4172_v2  ;;  %4395 = vmatmul.f32.gmra.mxu0 %v13545_v30  ;;  %v8201_v5 = vld [vmem:[%s8524_s11 + $0x80] sm:$0xff] }
 0x2d6   : > { %4477 = vmatmul.f32.gmra.mxu1 %v13546_v49  ;;  %4639 = vmatmul.f32.gmra.mxu3 %v10912_v0  ;;  %v13547_v30 = vld [vmem:[#allocation128_spill] sm:$0xff] }
 0x2d7   : > { %7923 = vst [vmem:[%s11399_s14 + $0x40] sm:$0xff] %v7827_v47  ;;  %v13548_v47 = vld [vmem:[#allocation124_spill] sm:$0xff] }
 0x2d8   : > { %4570 = vmatmul.f32.gmra.mxu2 %v10912_v0  ;;  %v4300_v7 = vpop.f32.mrf.mxu3  ;;  %v13550_v0 = vld [vmem:[#allocation134_spill] sm:$0xff] }
 0x2d9   : > { %v4033_v18 = vpop.f32.mrf.mxu0 }
 0x2da   : > { %v4098_v55 = vpop.f32.mrf.mxu1  ;;  %v4179_v57 = vpop.f32.mrf.mxu2  ;;  %v4034_v22 = vadd.f32 %v4033_v18, %v11250_v9 }
 0x2db   : > { %v4099_v4 = vadd.f32 %v4098_v55, %v4030_v39  ;;  %v4180_v52 = vadd.f32 %v4179_v57, %v11219_v45 }
 0x2dd   : > { %v7835_v2 = vadd.f32 %v8201_v5, %v4099_v4  ;;  %v11417_v34 = vadd.f32 %v4300_v7, %v4180_v52  ;;  %4400 = vmatmul.f32.gmra.mxu0 %v13547_v30  ;;  %v13549_v4 = vld [vmem:[#allocation9_spill] sm:$0xff]  ;;  %v8202_v52 = vld [vmem:[%s8524_s11 + $0xc0] sm:$0xff] }
 0x2de   : > { %4483 = vmatmul.f32.gmra.mxu1 %v13548_v47  ;;  %4643 = vmatmul.f32.gmra.mxu3 %v10934_v35 }
 0x2df   : > { %7931 = vst [vmem:[%s11399_s14 + $0x80] sm:$0xff] %v7835_v2  ;;  %v13551_v2 = vld [vmem:[#allocation131_spill] sm:$0xff] }
 0x2e0   : > { %4574 = vmatmul.f32.gmra.mxu2 %v10934_v35  ;;  %v4304_v6 = vpop.f32.mrf.mxu3 }
 0x2e1   : > { %v4037_v39 = vpop.f32.mrf.mxu0 }
 0x2e2   : > { %v4102_v57 = vpop.f32.mrf.mxu1  ;;  %v4187_v45 = vpop.f32.mrf.mxu2  ;;  %v4038_v9 = vadd.f32 %v4037_v39, %v11267_v50 }
 0x2e3   : > { %v4103_v55 = vadd.f32 %v4102_v57, %v4034_v22  ;;  %v4188_v7 = vadd.f32 %v4187_v45, %v13549_v4 }
 0x2e5   : > { %v7843_v5 = vadd.f32 %v8202_v52, %v4103_v55  ;;  %v11427_v30 = vadd.f32 %v4304_v6, %v4188_v7  ;;  %4405 = vmatmul.f32.gmra.mxu0 %v13550_v0  ;;  %v8203_v55 = vld [vmem:[%s8524_s11 + $0x100] sm:$0xff]  ;;  %v13552_v0 = vld [vmem:[#allocation137_spill] sm:$0xff] }
 0x2e6   : > { %4489 = vmatmul.f32.gmra.mxu1 %v13551_v2  ;;  %4647 = vmatmul.f32.gmra.mxu3 %v10965_v43 }
 0x2e7   : > { %7939 = vst [vmem:[%s11399_s14 + $0xc0] sm:$0xff] %v7843_v5  ;;  %v13553_v5 = vld [vmem:[#allocation136_spill] sm:$0xff] }
 0x2e8   : > { %4578 = vmatmul.f32.gmra.mxu2 %v10965_v43  ;;  %v4308_v18 = vpop.f32.mrf.mxu3 }
 0x2e9   : > { %v4041_v22 = vpop.f32.mrf.mxu0 }
 0x2ea   : > { %v4106_v45 = vpop.f32.mrf.mxu1  ;;  %v4195_v4 = vpop.f32.mrf.mxu2  ;;  %v4042_v50 = vadd.f32 %v4041_v22, %v11282_v42 }
 0x2eb   : > { %v4107_v57 = vadd.f32 %v4106_v45, %v4038_v9  ;;  %v4196_v6 = vadd.f32 %v4195_v4, %v11243_v59 }
 0x2ed   : > { %v7851_v7 = vadd.f32 %v8203_v55, %v4107_v57  ;;  %v11437_v52 = vadd.f32 %v4308_v18, %v4196_v6  ;;  %4410 = vmatmul.f32.gmra.mxu0 %v13552_v0  ;;  %v8204_v57 = vld [vmem:[%s8524_s11 + $0x140] sm:$0xff] }
 0x2ee   : > { %4495 = vmatmul.f32.gmra.mxu1 %v13553_v5  ;;  %4651 = vmatmul.f32.gmra.mxu3 %v10989_v53  ;;  %v13554_v0 = vld [vmem:[#allocation64_spill] sm:$0xff] }
 0x2ef   : > { %7947 = vst [vmem:[%s11399_s14 + $0x100] sm:$0xff] %v7851_v7  ;;  %v13555_v7 = vld [vmem:[#allocation140_spill] sm:$0xff] }
 0x2f0   : > { %4582 = vmatmul.f32.gmra.mxu2 %v10989_v53  ;;  %v4312_v39 = vpop.f32.mrf.mxu3 }
 0x2f1   : > { %v4045_v9 = vpop.f32.mrf.mxu0 }
 0x2f2   : > { %v4110_v4 = vpop.f32.mrf.mxu1  ;;  %v4203_v59 = vpop.f32.mrf.mxu2  ;;  %v4046_v42 = vadd.f32 %v4045_v9, %v11309_v25 }
 0x2f3   : > { %v4111_v45 = vadd.f32 %v4110_v4, %v4042_v50  ;;  %v4204_v18 = vadd.f32 %v4203_v59, %v11272_v29 }
 0x2f5   : > { %v7859_v6 = vadd.f32 %v8204_v57, %v4111_v45  ;;  %v11447_v55 = vadd.f32 %v4312_v39, %v4204_v18  ;;  %4415 = vmatmul.f32.gmra.mxu0 %v13554_v0  ;;  %v8205_v45 = vld [vmem:[%s8524_s11 + $0x180] sm:$0xff]  ;;  %v13556_v0 = vld [vmem:[#allocation54_spill] sm:$0xff] }
 0x2f6   : > { %4501 = vmatmul.f32.gmra.mxu1 %v13555_v7  ;;  %4655 = vmatmul.f32.gmra.mxu3 %v11012_v16 }
 0x2f7   : > { %7955 = vst [vmem:[%s11399_s14 + $0x140] sm:$0xff] %v7859_v6  ;;  %v13557_v6 = vld [vmem:[#allocation143_spill] sm:$0xff] }
 0x2f8   : > { %4586 = vmatmul.f32.gmra.mxu2 %v11012_v16  ;;  %v4316_v22 = vpop.f32.mrf.mxu3 }
 0x2f9   : > { %v4049_v50 = vpop.f32.mrf.mxu0 }
 0x2fa   : > { %v4114_v59 = vpop.f32.mrf.mxu1  ;;  %v4211_v29 = vpop.f32.mrf.mxu2  ;;  %v4050_v25 = vadd.f32 %v4049_v50, %v11331_v56  ;;  %v13560_v50 = vand.u32 4294901760, %v11294_v23 }
 0x2fb   : > { %v4115_v4 = vadd.f32 %v4114_v59, %v4046_v42  ;;  %v4212_v39 = vadd.f32 %v4211_v29, %v11287_v21 }
 0x2fd   : > { %v7867_v18 = vadd.f32 %v8205_v45, %v4115_v4  ;;  %v11457_v57 = vadd.f32 %v4316_v22, %v4212_v39  ;;  %4420 = vmatmul.f32.gmra.mxu0 %v13556_v0  ;;  %v8206_v4 = vld [vmem:[%s8524_s11 + $0x1c0] sm:$0xff] }
 0x2fe   : > { %4507 = vmatmul.f32.gmra.mxu1 %v13557_v6  ;;  %4659 = vmatmul.f32.gmra.mxu3 %v11048_v20  ;;  %v13558_v0 = vld [vmem:[#allocation56_spill] sm:$0xff] }
 0x2ff   : > { %7963 = vst [vmem:[%s11399_s14 + $0x180] sm:$0xff] %v7867_v18  ;;  %v13559_v18 = vld [vmem:[#allocation45_spill] sm:$0xff] }
 0x300   : > { %4590 = vmatmul.f32.gmra.mxu2 %v11048_v20  ;;  %v4320_v9 = vpop.f32.mrf.mxu3 }
 0x301   : > { %v4053_v42 = vpop.f32.mrf.mxu0 }
 0x302   : > { %v4118_v29 = vpop.f32.mrf.mxu1  ;;  %v4219_v21 = vpop.f32.mrf.mxu2  ;;  %v4054_v56 = vadd.f32 %v4053_v42, %v11352_v36  ;;  %v8207_v42 = vld [vmem:[%s8524_s11 + $0x200] sm:$0xff] }
 0x303   : > { %v4119_v59 = vadd.f32 %v4118_v29, %v4050_v25  ;;  %v4220_v22 = vadd.f32 %v4219_v21, %v11301_v10 }
 0x305   : > { %v7875_v39 = vadd.f32 %v8206_v4, %v4119_v59  ;;  %v11467_v45 = vadd.f32 %v4320_v9, %v4220_v22  ;;  %4688 = vmatmul.f32.vlgmr.msrb.gmra.mxu0 %v13559_v18  ;;  %v13561_v22 = vand.u32 4294901760, %v11299_v28 }
 0x306   : > { %4513 = vmatmul.f32.gmra.mxu1 %v13558_v0  ;;  %4973 = vmatmul.f32.vlgmr.msrb.gmra.mxu3 %v13533_v37 }
 0x307   : > { %7971 = vst [vmem:[%s11399_s14 + $0x1c0] sm:$0xff] %v7875_v39  ;;  %5405 = vmatpush.msrb.mxu0 %v11294_v23  ;;  %5659 = vmatpush.msrb.mxu3 %v11278_v51  ;;  %v13562_v23 = vand.u32 4294901760, %v11304_v61 }
 0x308   : > { %4891 = vmatmul.f32.vlgmr.msrb.gmra.mxu2 %v13527_v32  ;;  %v4324_v21 = vpop.f32.mrf.mxu3 }
 0x309   : > { %5408 = vmatpush.msrb.mxu0 %v11299_v28  ;;  %5584 = vmatpush.msrb.mxu2 %v13560_v50  ;;  %v4057_v25 = vpop.f32.mrf.mxu0 }
 0x30a   : > { %5661 = vmatpush.msrb.mxu3 %v11285_v26  ;;  %v4122_v9 = vpop.f32.mrf.mxu1  ;;  %v4227_v59 = vpop.f32.mrf.mxu2  ;;  %v4058_v28 = vadd.f32 %v4057_v25, %v11368_v24  ;;  %v13565_v24 = vld [vmem:[#allocation104_spill] sm:$0xff] }
 0x30b   : > { %5411 = vmatpush.msrb.mxu0 %v11304_v61  ;;  %v4123_v29 = vadd.f32 %v4122_v9, %v4054_v56  ;;  %5588 = vmatpush.msrb.mxu2 %v13561_v22  ;;  %v4228_v36 = vadd.f32 %v4227_v59, %v11336_v12  ;;  %v13563_v56 = vld [vmem:[#allocation96_spill] sm:$0xff]  ;;  %v13564_v61 = vand.u32 4294901760, %v11314_v31 }
 0x30c   : > { %5663 = vmatpush.msrb.mxu3 %v11291_v11 }
 0x30d   : > { %v7883_v4 = vadd.f32 %v8207_v42, %v4123_v29  ;;  %5414 = vmatpush.msrb.mxu0 %v11314_v31  ;;  %5592 = vmatpush.msrb.mxu2 %v13562_v23  ;;  %v11491_v39 = vadd.f32 %v4324_v21, %v4228_v36 }
 0x30e   : > { %5665 = vmatpush.msrb.mxu3 %v11296_v1  ;;  %4696 = vmatmul.f32.gmra.mxu0 %v13563_v56 }
 0x30f   : > { %7979 = vst [vmem:[%s11399_s14 + $0x200] sm:$0xff] %v7883_v4  ;;  %4817 = vmatmul.f32.vlgmr.msrb.gmra.mxu1 %v10728_v44  ;;  %4979 = vmatmul.f32.gmra.mxu3 %v13537_v38  ;;  %v13589_v38 = vld [vmem:[#allocation16_spill] sm:$0xff] }
 0x310   : > { %5489 = vmatpush.msrb.mxu1 %v11278_v51  ;;  %5596 = vmatpush.msrb.mxu2 %v13564_v61  ;;  %v4328_v50 = vpop.f32.mrf.mxu3  ;;  %v8208_v51 = vld [vmem:[%s8524_s11 + $0x240] sm:$0xff] }
 0x311   : > { %4896 = vmatmul.f32.gmra.mxu2 %v13532_v17  ;;  %v4061_v21 = vpop.f32.mrf.mxu0 }
 0x312   : > { %5491 = vmatpush.msrb.mxu1 %v11285_v26  ;;  %v4126_v9 = vpop.f32.mrf.mxu1  ;;  %v4235_v59 = vpop.f32.mrf.mxu2  ;;  %v4062_v26 = vadd.f32 %v4061_v21, %v11375_v15 }
 0x313   : > { %v4127_v29 = vadd.f32 %v4126_v9, %v4058_v28  ;;  %v4236_v22 = vadd.f32 %v4235_v59, %v11356_v14  ;;  %v8209_v28 = vld [vmem:[%s8524_s11 + $0x280] sm:$0xff]  ;;  %v13566_v9 = vld [vmem:[#allocation111_spill] sm:$0xff] }
 0x314   : > { %5493 = vmatpush.msrb.mxu1 %v11291_v11 }
 0x315   : > { %v7891_v36 = vadd.f32 %v8208_v51, %v4127_v29  ;;  %v11507_v31 = vadd.f32 %v4328_v50, %v4236_v22 }
 0x316   : > { %5495 = vmatpush.msrb.mxu1 %v11296_v1  ;;  %4704 = vmatmul.f32.gmra.mxu0 %v13565_v24 }
 0x317   : > { %7987 = vst [vmem:[%s11399_s14 + $0x240] sm:$0xff] %v7891_v36  ;;  %4821 = vmatmul.f32.gmra.mxu1 %v10754_v8  ;;  %4985 = vmatmul.f32.gmra.mxu3 %v13539_v19 }
 0x318   : > { %v4332_v11 = vpop.f32.mrf.mxu3 }
 0x319   : > { %4901 = vmatmul.f32.gmra.mxu2 %v13536_v63  ;;  %v4065_v25 = vpop.f32.mrf.mxu0 }
 0x31a   : > { %v4130_v42 = vpop.f32.mrf.mxu1  ;;  %v4243_v23 = vpop.f32.mrf.mxu2  ;;  %v4066_v15 = vadd.f32 %v4065_v25, %v11384_v48 }
 0x31b   : > { %v4131_v4 = vadd.f32 %v4130_v42, %v4062_v26  ;;  %v4244_v1 = vadd.f32 %v4243_v23, %v11365_v41  ;;  %v8210_v26 = vld [vmem:[%s8524_s11 + $0x2c0] sm:$0xff]  ;;  %v13568_v23 = vld [vmem:[#allocation107_spill] sm:$0xff]  ;;  %v13590_v41 = vld [vmem:[#allocation66_spill] sm:$0xff] }
 0x31d   : > { %v7899_v61 = vadd.f32 %v8209_v28, %v4131_v4  ;;  %v11517_v50 = vadd.f32 %v4332_v11, %v4244_v1  ;;  %v13567_v4 = vld [vmem:[#allocation117_spill] sm:$0xff] }
 0x31e   : > { %4712 = vmatmul.f32.gmra.mxu0 %v13566_v9 }
 0x31f   : > { %7995 = vst [vmem:[%s11399_s14 + $0x280] sm:$0xff] %v7899_v61  ;;  %4825 = vmatmul.f32.gmra.mxu1 %v10776_v13  ;;  %4991 = vmatmul.f32.gmra.mxu3 %v13542_v27  ;;  %v13584_v27 = vld [vmem:[#allocation26_spill] sm:$0xff] }
 0x320   : > { %v4336_v21 = vpop.f32.mrf.mxu3 }
 0x321   : > { %4906 = vmatmul.f32.gmra.mxu2 %v13538_v60  ;;  %v4366_v59 = vpop.f32.mrf.mxu0 }
 0x322   : > { %v4134_v29 = vpop.f32.mrf.mxu1  ;;  %v4251_v51 = vpop.f32.mrf.mxu2  ;;  %v4367_v25 = vadd.f32 %v4366_v59, %v11393_v46  ;;  %v13570_v59 = vld [vmem:[#allocation114_spill] sm:$0xff] }
 0x323   : > { %v4135_v22 = vadd.f32 %v4134_v29, %v4066_v15  ;;  %v4252_v36 = vadd.f32 %v4251_v51, %v11379_v62  ;;  %v13569_v29 = vld [vmem:[#allocation123_spill] sm:$0xff] }
 0x325   : > { %v7907_v11 = vadd.f32 %v8210_v26, %v4135_v22  ;;  %v11527_v42 = vadd.f32 %v4336_v21, %v4252_v36  ;;  %v8211_v36 = vld [vmem:[%s8524_s11 + $0x8] sm:$0xff] }
 0x326   : > { %4720 = vmatmul.f32.gmra.mxu0 %v13567_v4 }
 0x327   : > { %8003 = vst [vmem:[%s11399_s14 + $0x2c0] sm:$0xff] %v7907_v11  ;;  %4829 = vmatmul.f32.gmra.mxu1 %v10811_v33  ;;  %4997 = vmatmul.f32.gmra.mxu3 %v13544_v58 }
 0x328   : > { %v4616_v48 = vpop.f32.mrf.mxu3 }
 0x329   : > { %4911 = vmatmul.f32.gmra.mxu2 %v13568_v23 }
 0x32a   : > { %v4371_v1 = vpop.f32.mrf.mxu0  ;;  %v4547_v15 = vpop.f32.mrf.mxu2 }
 0x32b   : > { %v4448_v28 = vpop.f32.mrf.mxu1  ;;  %v4372_v51 = vadd.f32 %v4371_v1, %v11407_v40  ;;  %v8212_v1 = vld [vmem:[%s8524_s11 + $0x48] sm:$0xff] }
 0x32c   : > { %v4449_v61 = vadd.f32 %v4448_v28, %v4367_v25 }
 0x32e   : > { %v4548_v21 = vadd.f32 %v4547_v15, %v4449_v61  ;;  %4728 = vmatmul.f32.gmra.mxu0 %v13569_v29  ;;  %v13571_v15 = vld [vmem:[#allocation129_spill] sm:$0xff] }
 0x32f   : > { %4833 = vmatmul.f32.gmra.mxu1 %v10851_v3  ;;  %5003 = vmatmul.f32.gmra.mxu3 %v13546_v49 }
 0x330   : > { %v4617_v22 = vadd.f32 %v4616_v48, %v4548_v21 }
 0x331   : > { %4916 = vmatmul.f32.gmra.mxu2 %v13570_v59  ;;  %v4620_v26 = vpop.f32.mrf.mxu3  ;;  %v13577_v59 = vld [vmem:[#allocation22_spill] sm:$0xff] }
 0x332   : > { %v7820_v46 = vadd.f32 %v8211_v36, %v4617_v22  ;;  %v4376_v11 = vpop.f32.mrf.mxu0  ;;  %v13572_v22 = vld [vmem:[#allocation121_spill] sm:$0xff] }
 0x333   : > { %v4454_v58 = vpop.f32.mrf.mxu1  ;;  %v4551_v28 = vpop.f32.mrf.mxu2  ;;  %v4377_v40 = vadd.f32 %v4376_v11, %v11417_v34  ;;  %v8213_v11 = vld [vmem:[%s8524_s11 + $0x88] sm:$0xff] }
 0x334   : > { %7916 = vst [vmem:[%s11399_s14 + $0x8] sm:$0xff] %v7820_v46  ;;  %v4455_v25 = vadd.f32 %v4454_v58, %v4372_v51 }
 0x336   : > { %v4552_v61 = vadd.f32 %v4551_v28, %v4455_v25  ;;  %4736 = vmatmul.f32.gmra.mxu0 %v13571_v15  ;;  %v13573_v28 = vld [vmem:[#allocation135_spill] sm:$0xff] }
 0x337   : > { %4837 = vmatmul.f32.gmra.mxu1 %v10884_v54  ;;  %5009 = vmatmul.f32.gmra.mxu3 %v13548_v47 }
 0x338   : > { %v4621_v48 = vadd.f32 %v4620_v26, %v4552_v61  ;;  %v13574_v26 = vld [vmem:[#allocation120_spill] sm:$0xff] }
 0x339   : > { %4921 = vmatmul.f32.gmra.mxu2 %v13572_v22  ;;  %v4624_v36 = vpop.f32.mrf.mxu3 }
 0x33a   : > { %v7828_v21 = vadd.f32 %v8212_v1, %v4621_v48  ;;  %v4381_v49 = vpop.f32.mrf.mxu0  ;;  %v13575_v1 = vld [vmem:[#allocation128_spill] sm:$0xff] }
 0x33b   : > { %v4460_v46 = vpop.f32.mrf.mxu1  ;;  %v4555_v51 = vpop.f32.mrf.mxu2  ;;  %v4382_v34 = vadd.f32 %v4381_v49, %v11427_v30  ;;  %v13579_v49 = vld [vmem:[#allocation21_spill] sm:$0xff] }
 0x33c   : > { %7924 = vst [vmem:[%s11399_s14 + $0x48] sm:$0xff] %v7828_v21  ;;  %v4461_v58 = vadd.f32 %v4460_v46, %v4377_v40 }
 0x33e   : > { %v4556_v25 = vadd.f32 %v4555_v51, %v4461_v58  ;;  %4744 = vmatmul.f32.gmra.mxu0 %v13573_v28  ;;  %v13576_v51 = vld [vmem:[#allocation17_spill] sm:$0xff] }
 0x33f   : > { %4841 = vmatmul.f32.gmra.mxu1 %v13574_v26  ;;  %5015 = vmatmul.f32.gmra.mxu3 %v13551_v2 }
 0x340   : > { %v4625_v61 = vadd.f32 %v4624_v36, %v4556_v25  ;;  %v1989_v36 = vadd.f32 %v13577_v59, %v13576_v51  ;;  %v13578_v25 = vld [vmem:[#allocation139_spill] sm:$0xff] }
 0x341   : > { %4926 = vmatmul.f32.gmra.mxu2 %v13575_v1  ;;  %v4628_v47 = vpop.f32.mrf.mxu3  ;;  %v13583_v1 = vld [vmem:[#allocation81_spill] sm:$0xff] }
 0x342   : > { %v7836_v48 = vadd.f32 %v8213_v11, %v4625_v61  ;;  %v4386_v22 = vpop.f32.mrf.mxu0  ;;  %v13580_v61 = vld [vmem:[#allocation82_spill] sm:$0xff]  ;;  %v2082_v23 = vadd.f32 %v13584_v27, %v1989_v36 }
 0x343   : > { %v4466_v21 = vpop.f32.mrf.mxu1  ;;  %v4559_v46 = vpop.f32.mrf.mxu2  ;;  %v1981_v11 = vadd.f32 %v13580_v61, %v13579_v49  ;;  %v4387_v2 = vadd.f32 %v4386_v22, %v11437_v52  ;;  %v13586_v61 = vld [vmem:[#allocation90_spill] sm:$0xff]  ;;  %v13587_v52 = vld [vmem:[#allocation29_spill] sm:$0xff] }
 0x344   : > { %7932 = vst [vmem:[%s11399_s14 + $0x88] sm:$0xff] %v7836_v48  ;;  %v4467_v40 = vadd.f32 %v4466_v21, %v4382_v34  ;;  %v8214_v48 = vld [vmem:[%s8524_s11 + $0xc8] sm:$0xff]  ;;  %v13581_v21 = vld [vmem:[#allocation134_spill] sm:$0xff]  ;;  %v2143_v63 = vadd.f32 %v13589_v38, %v2082_v23 }
 0x345   : > { %v2078_v22 = vadd.f32 %v13587_v52, %v1981_v11  ;;  %v8215_v11 = vld [vmem:[%s8524_s11 + $0x108] sm:$0xff] }
 0x346   : > { %v4560_v58 = vadd.f32 %v4559_v46, %v4467_v40  ;;  %4752 = vmatmul.f32.gmra.mxu0 %v13578_v25  ;;  %v13582_v46 = vld [vmem:[#allocation19_spill] sm:$0xff]  ;;  %v13594_v38 = vld [vmem:[#allocation33_spill] sm:$0xff] }
 0x347   : > { %4845 = vmatmul.f32.gmra.mxu1 %v10934_v35  ;;  %5021 = vmatmul.f32.gmra.mxu3 %v13553_v5  ;;  %v1973_v59 = vadd.f32 %v13583_v1, %v13582_v46  ;;  %v13585_v5 = vld [vmem:[#allocation20_spill] sm:$0xff] }
 0x348   : > { %v4629_v30 = vadd.f32 %v4628_v47, %v4560_v58  ;;  %v1965_v60 = vadd.f32 %v13586_v61, %v13585_v5  ;;  %v13592_v1 = vld [vmem:[#allocation36_spill] sm:$0xff]  ;;  %v13595_v61 = vld [vmem:[#allocation18_spill] sm:$0xff] }
 0x349   : > { %4931 = vmatmul.f32.gmra.mxu2 %v13581_v21  ;;  %v4632_v40 = vpop.f32.mrf.mxu3  ;;  %v2138_v36 = vadd.f32 %v13592_v1, %v2078_v22  ;;  %v2196_v52 = vadd.f32 %v13595_v61, %v2143_v63  ;;  %v13597_v22 = vld [vmem:[#allocation13_spill] sm:$0xff]  ;;  %v13599_v1 = vld [vmem:[#allocation24_spill] sm:$0xff] }
 0x34a   : > { %v7844_v34 = vadd.f32 %v8214_v48, %v4629_v30  ;;  %v4391_v62 = vpop.f32.mrf.mxu0  ;;  %v13588_v48 = vld [vmem:[#allocation10_spill] sm:$0xff]  ;;  %v13602_v63 = vld [vmem:[#allocation69_spill] sm:$0xff] }
 0x34b   : > { %v4472_v19 = vpop.f32.mrf.mxu1  ;;  %v4563_v58 = vpop.f32.mrf.mxu2  ;;  %v2074_v21 = vadd.f32 %v13588_v48, %v1973_v59 }
 0x34c   : > { %7940 = vst [vmem:[%s11399_s14 + $0xc8] sm:$0xff] %v7844_v34  ;;  %v4473_v47 = vadd.f32 %v4472_v19, %v4387_v2  ;;  %v13591_v19 = vld [vmem:[#allocation77_spill] sm:$0xff]  ;;  %v4392_v34 = vadd.f32 %v4391_v62, %v11447_v55  ;;  %v13598_v62 = vld [vmem:[#allocation46_spill] sm:$0xff] }
 0x34d   : > { %v2070_v2 = vadd.f32 %v13591_v19, %v1965_v60  ;;  %v2133_v23 = vadd.f32 %v13594_v38, %v2074_v21  ;;  %v2190_v19 = vadd.f32 %v13597_v22, %v2138_v36  ;;  %v2265_v55 = vadd.f32 %v13598_v62, %v2196_v52  ;;  %v13601_v21 = vld [vmem:[#allocation48_spill] sm:$0xff]  ;;  %v8216_v52 = vld [vmem:[%s8524_s11 + $0x148] sm:$0xff] }
 0x34e   : > { %v4564_v30 = vadd.f32 %v4563_v58, %v4473_v47  ;;  %4760 = vmatmul.f32.gmra.mxu0 %v13590_v41  ;;  %v13593_v58 = vld [vmem:[#allocation137_spill] sm:$0xff]  ;;  %v13604_v36 = vld [vmem:[#allocation28_spill] sm:$0xff] }
 0x34f   : > { %4849 = vmatmul.f32.gmra.mxu1 %v10965_v43  ;;  %5027 = vmatmul.f32.gmra.mxu3 %v13555_v7  ;;  %v13596_v7 = vld [vmem:[#allocation14_spill] sm:$0xff]  ;;  %v2310_v38 = vadd.f32 %v13601_v21, %v2265_v55  ;;  %v13607_v22 = vld [vmem:[#allocation32_spill] sm:$0xff]  ;;  %v13608_v62 = vld [vmem:[#allocation37_spill] sm:$0xff] }
 0x350   : > { %v4633_v27 = vadd.f32 %v4632_v40, %v4564_v30  ;;  %v2128_v60 = vadd.f32 %v13596_v7, %v2070_v2  ;;  %v13603_v7 = vld [vmem:[#allocation78_spill] sm:$0xff]  ;;  %v13609_v21 = vld [vmem:[#allocation15_spill] sm:$0xff] }
 0x351   : > { %4936 = vmatmul.f32.gmra.mxu2 %v13593_v58  ;;  %v4636_v59 = vpop.f32.mrf.mxu3  ;;  %v13600_v58 = vld [vmem:[#allocation39_spill] sm:$0xff] }
 0x352   : > { %v7852_v47 = vadd.f32 %v8215_v11, %v4633_v27  ;;  %v4396_v48 = vpop.f32.mrf.mxu0  ;;  %v2184_v11 = vadd.f32 %v13599_v1, %v2133_v23  ;;  %v2261_v37 = vadd.f32 %v13600_v58, %v2190_v19  ;;  %v2178_v2 = vadd.f32 %v13603_v7, %v2128_v60 }
 0x353   : > { %v4478_v14 = vpop.f32.mrf.mxu1  ;;  %v4567_v30 = vpop.f32.mrf.mxu2  ;;  %v4397_v23 = vadd.f32 %v4396_v48, %v11457_v57 }
 0x354   : > { %7948 = vst [vmem:[%s11399_s14 + $0x108] sm:$0xff] %v7852_v47  ;;  %v4479_v40 = vadd.f32 %v4478_v14, %v4392_v34  ;;  %v2257_v34 = vadd.f32 %v13604_v36, %v2184_v11  ;;  %v13605_v47 = vld [vmem:[#allocation52_spill] sm:$0xff]  ;;  %v2253_v19 = vadd.f32 %v13607_v22, %v2178_v2  ;;  %v13610_v36 = vld [vmem:[#allocation67_spill] sm:$0xff] }
 0x355   : > { %v2306_v61 = vadd.f32 %v13605_v47, %v2261_v37 }
 0x356   : > { %v4568_v27 = vadd.f32 %v4567_v30, %v4479_v40  ;;  %4768 = vmatmul.f32.gmra.mxu0 %v13602_v63  ;;  %v13606_v40 = vld [vmem:[#allocation64_spill] sm:$0xff]  ;;  %v2302_v55 = vadd.f32 %v13608_v62, %v2257_v34  ;;  %v2298_v37 = vadd.f32 %v13609_v21, %v2253_v19 }
 0x357   : > { %4853 = vmatmul.f32.gmra.mxu1 %v10989_v53  ;;  %5033 = vmatmul.f32.gmra.mxu3 %v13557_v6  ;;  %v3478_v7 = vmax.f32 %v2306_v61, 0.0  ;;  %v13611_v61 = vld [vmem:[#allocation54_spill] sm:$0xff] }
 0x358   : > { %v4637_v14 = vadd.f32 %v4636_v59, %v4568_v27  ;;  %v3486_v59 = vmax.f32 %v2310_v38, 0.0  ;;  %v3470_v48 = vmax.f32 %v2302_v55, 0.0  ;;  %v3462_v38 = vmax.f32 %v2298_v37, 0.0 }
 0x359   : > { %4941 = vmatmul.f32.gmra.mxu2 %v13606_v40  ;;  %v4640_v30 = vpop.f32.mrf.mxu3  ;;  %v11610_v34 = vand.u32 4294901760, %v3478_v7 }
 0x35a   : > { %v7860_v58 = vadd.f32 %v8216_v52, %v4637_v14  ;;  %v4401_v27 = vpop.f32.mrf.mxu0  ;;  %v11605_v14 = vand.u32 4294901760, %v3486_v59  ;;  %v11615_v22 = vand.u32 4294901760, %v3470_v48 }
 0x35b   : > { %v4484_v1 = vpop.f32.mrf.mxu1  ;;  %v4571_v11 = vpop.f32.mrf.mxu2  ;;  %v4402_v47 = vadd.f32 %v4401_v27, %v11467_v45  ;;  %v11624_v45 = vsub.f32 %v3478_v7, %v11610_v34 }
 0x35c   : > { %7956 = vst [vmem:[%s11399_s14 + $0x148] sm:$0xff] %v7860_v58  ;;  %v4485_v60 = vadd.f32 %v4484_v1, %v4397_v23  ;;  %v8217_v23 = vld [vmem:[%s8524_s11 + $0x188] sm:$0xff]  ;;  %v11618_v19 = vsub.f32 %v3486_v59, %v11605_v14  ;;  %v11630_v59 = vsub.f32 %v3470_v48, %v11615_v22 }
 0x35d   : > { %v12997_v7 = vand.u32 4294901760, %v11624_v45 }
 0x35e   : > { %v4572_v57 = vadd.f32 %v4571_v11, %v4485_v60  ;;  %4776 = vmatmul.f32.gmra.mxu0 %v13610_v36  ;;  %v11621_v60 = vand.u32 4294901760, %v3462_v38  ;;  %v12998_v11 = vand.u32 4294901760, %v11618_v19 }
 0x35f   : > { %4857 = vmatmul.f32.gmra.mxu1 %v11012_v16  ;;  %5039 = vmatmul.f32.gmra.mxu3 %v13558_v0  ;;  %v13625_v0 = vld [vmem:[#allocation108_spill] sm:$0xff] }
 0x360   : > { %v4641_v2 = vadd.f32 %v4640_v30, %v4572_v57  ;;  %v11636_v37 = vsub.f32 %v3462_v38, %v11621_v60  ;;  %v5847_v38 = vsub.f32 %v11618_v19, %v12998_v11 }
 0x361   : > { %4946 = vmatmul.f32.gmra.mxu2 %v13611_v61  ;;  %v4644_v58 = vpop.f32.mrf.mxu3 }
 0x362   : > { %v7868_v52 = vadd.f32 %v8217_v23, %v4641_v2  ;;  %v4406_v62 = vpop.f32.mrf.mxu0  ;;  %v8218_v2 = vld [vmem:[%s8524_s11 + $0x1c8] sm:$0xff] }
 0x363   : > { %v4490_v55 = vpop.f32.mrf.mxu1  ;;  %v4575_v1 = vpop.f32.mrf.mxu2  ;;  %v4407_v57 = vadd.f32 %v4406_v62, %v11491_v39 }
 0x364   : > { %7964 = vst [vmem:[%s11399_s14 + $0x188] sm:$0xff] %v7868_v52  ;;  %v4491_v30 = vadd.f32 %v4490_v55, %v4402_v47  ;;  %v5853_v55 = vsub.f32 %v11624_v45, %v12997_v7 }
 0x366   : > { %v4576_v27 = vadd.f32 %v4575_v1, %v4491_v30  ;;  %5072 = vmatmul.f32.vlgmr.msra.gmra.mxu0 %v10728_v44  ;;  %v12996_v30 = vand.u32 4294901760, %v11636_v37 }
 0x367   : > { %4861 = vmatmul.f32.gmra.mxu1 %v11048_v20  ;;  %5343 = vmatmul.f32.vlgmr.msra.gmra.mxu3 %v10728_v44 }
 0x368   : > { %v4645_v21 = vadd.f32 %v4644_v58, %v4576_v27  ;;  %5728 = vmatpush.msra.mxu0 %v11605_v14  ;;  %6015 = vmatpush.msra.mxu3 %v11605_v14  ;;  %v12995_v58 = vand.u32 4294901760, %v11630_v59  ;;  %v5848_v27 = vand.u32 4294901760, %v5847_v38  ;;  %v8219_v38 = vld [vmem:[%s8524_s11 + $0x208] sm:$0xff] }
 0x369   : > { %5214 = vmatmul.f32.vlgmr.msra.gmra.mxu2 %v13559_v18  ;;  %v4648_v48 = vpop.f32.mrf.mxu3 }
 0x36a   : > { %v7876_v47 = vadd.f32 %v8218_v2, %v4645_v21  ;;  %5730 = vmatpush.msra.mxu0 %v11610_v34  ;;  %5931 = vmatpush.msra.mxu2 %v11618_v19  ;;  %v4411_v23 = vpop.f32.mrf.mxu0  ;;  %v5859_v21 = vsub.f32 %v11630_v59, %v12995_v58  ;;  %v5854_v2 = vand.u32 4294901760, %v5853_v55 }
 0x36b   : > { %6017 = vmatpush.msra.mxu3 %v11610_v34  ;;  %v4496_v52 = vpop.f32.mrf.mxu1  ;;  %v4579_v62 = vpop.f32.mrf.mxu2 }
 0x36c   : > { %7972 = vst [vmem:[%s11399_s14 + $0x1c8] sm:$0xff] %v7876_v47  ;;  %5732 = vmatpush.msra.mxu0 %v11615_v22  ;;  %v4497_v39 = vadd.f32 %v4496_v52, %v4407_v57  ;;  %5934 = vmatpush.msra.mxu2 %v11624_v45  ;;  %v5865_v47 = vsub.f32 %v11636_v37, %v12996_v30 }
 0x36d   : > { %6019 = vmatpush.msra.mxu3 %v11615_v22  ;;  %v4412_v52 = vadd.f32 %v4411_v23, %v11507_v31 }
 0x36e   : > { %v4580_v1 = vadd.f32 %v4579_v62, %v4497_v39  ;;  %5734 = vmatpush.msra.mxu0 %v11621_v60  ;;  %5937 = vmatpush.msra.mxu2 %v11630_v59  ;;  %v5860_v62 = vand.u32 4294901760, %v5859_v21  ;;  %v5866_v30 = vand.u32 4294901760, %v5865_v47  ;;  %v8220_v21 = vld [vmem:[%s8524_s11 + $0x248] sm:$0xff] }
 0x36f   : > { %6021 = vmatpush.msra.mxu3 %v11621_v60  ;;  %5076 = vmatmul.f32.gmra.mxu0 %v10754_v8 }
 0x370   : > { %v4649_v57 = vadd.f32 %v4648_v48, %v4580_v1  ;;  %5141 = vmatmul.f32.vlgmr.msra.gmra.mxu1 %v10728_v44  ;;  %5347 = vmatmul.f32.gmra.mxu3 %v10754_v8 }
 0x371   : > { %5849 = vmatpush.msra.mxu1 %v5848_v27  ;;  %5940 = vmatpush.msra.mxu2 %v11636_v37  ;;  %v4652_v48 = vpop.f32.mrf.mxu3 }
 0x372   : > { %v7884_v39 = vadd.f32 %v8219_v38, %v4649_v57  ;;  %5222 = vmatmul.f32.gmra.mxu2 %v13563_v56  ;;  %v4416_v1 = vpop.f32.mrf.mxu0  ;;  %v13624_v56 = vld [vmem:[#allocation92_spill] sm:$0xff] }
 0x373   : > { %5855 = vmatpush.msra.mxu1 %v5854_v2  ;;  %v4502_v58 = vpop.f32.mrf.mxu1  ;;  %v4583_v27 = vpop.f32.mrf.mxu2  ;;  %v4417_v23 = vadd.f32 %v4416_v1, %v11517_v50 }
 0x374   : > { %7980 = vst [vmem:[%s11399_s14 + $0x208] sm:$0xff] %v7884_v39  ;;  %v4503_v55 = vadd.f32 %v4502_v58, %v4412_v52  ;;  %v8221_v39 = vld [vmem:[%s8524_s11 + $0x288] sm:$0xff] }
 0x375   : > { %5861 = vmatpush.msra.mxu1 %v5860_v62 }
 0x376   : > { %v4584_v7 = vadd.f32 %v4583_v27, %v4503_v55 }
 0x377   : > { %5867 = vmatpush.msra.mxu1 %v5866_v30  ;;  %5080 = vmatmul.f32.gmra.mxu0 %v10776_v13 }
 0x378   : > { %v4653_v31 = vadd.f32 %v4652_v48, %v4584_v7  ;;  %5145 = vmatmul.f32.gmra.mxu1 %v10754_v8  ;;  %5351 = vmatmul.f32.gmra.mxu3 %v10776_v13 }
 0x379   : > { %v4656_v2 = vpop.f32.mrf.mxu3 }
 0x37a   : > { %v7892_v57 = vadd.f32 %v8220_v21, %v4653_v31  ;;  %5230 = vmatmul.f32.gmra.mxu2 %v13565_v24  ;;  %v4421_v58 = vpop.f32.mrf.mxu0  ;;  %v13623_v24 = vld [vmem:[#allocation25_spill] sm:$0xff] }
 0x37b   : > { %v4508_v52 = vpop.f32.mrf.mxu1  ;;  %v4587_v7 = vpop.f32.mrf.mxu2  ;;  %v4422_v50 = vadd.f32 %v4421_v58, %v11527_v42 }
 0x37c   : > { %7988 = vst [vmem:[%s11399_s14 + $0x248] sm:$0xff] %v7892_v57  ;;  %v4509_v30 = vadd.f32 %v4508_v52, %v4417_v23  ;;  %v13612_v57 = vld [vmem:[#allocation75_spill] sm:$0xff] }
 0x37e   : > { %v4588_v47 = vadd.f32 %v4587_v7, %v4509_v30 }
 0x37f   : > { %5084 = vmatmul.f32.gmra.mxu0 %v10811_v33 }
 0x380   : > { %v4657_v38 = vadd.f32 %v4656_v2, %v4588_v47  ;;  %5149 = vmatmul.f32.gmra.mxu1 %v10776_v13  ;;  %5355 = vmatmul.f32.gmra.mxu3 %v10811_v33  ;;  %v8222_v2 = vld [vmem:[%s8524_s11 + $0x2c8] sm:$0xff] }
 0x381   : > { %v4660_v62 = vpop.f32.mrf.mxu3 }
 0x382   : > { %v7900_v48 = vadd.f32 %v8221_v39, %v4657_v38  ;;  %5238 = vmatmul.f32.gmra.mxu2 %v13566_v9  ;;  %v4689_v55 = vpop.f32.mrf.mxu0  ;;  %v13613_v39 = vld [vmem:[#allocation57_spill] sm:$0xff] }
 0x383   : > { %v4514_v1 = vpop.f32.mrf.mxu1  ;;  %v4591_v31 = vpop.f32.mrf.mxu2  ;;  %v4690_v42 = vadd.f32 %v4689_v55, %v13612_v57 }
 0x384   : > { %7996 = vst [vmem:[%s11399_s14 + $0x288] sm:$0xff] %v7900_v48  ;;  %v4515_v27 = vadd.f32 %v4514_v1, %v4422_v50 }
 0x386   : > { %v4592_v23 = vadd.f32 %v4591_v31, %v4515_v27 }
 0x387   : > { %5088 = vmatmul.f32.gmra.mxu0 %v10851_v3 }
 0x388   : > { %v4661_v21 = vadd.f32 %v4660_v62, %v4592_v23  ;;  %5153 = vmatmul.f32.gmra.mxu1 %v10811_v33  ;;  %5359 = vmatmul.f32.gmra.mxu3 %v10851_v3 }
 0x389   : > { %v4974_v52 = vpop.f32.mrf.mxu3 }
 0x38a   : > { %v7908_v58 = vadd.f32 %v8222_v2, %v4661_v21  ;;  %5246 = vmatmul.f32.gmra.mxu2 %v13567_v4  ;;  %v13614_v2 = vld [vmem:[#allocation72_spill] sm:$0xff]  ;;  %v13621_v4 = vld [vmem:[#allocation35_spill] sm:$0xff] }
 0x38b   : > { %v4697_v30 = vpop.f32.mrf.mxu0  ;;  %v4892_v38 = vpop.f32.mrf.mxu2 }
 0x38c   : > { %8004 = vst [vmem:[%s11399_s14 + $0x2c8] sm:$0xff] %v7908_v58  ;;  %v4818_v7 = vpop.f32.mrf.mxu1  ;;  %v4698_v48 = vadd.f32 %v4697_v30, %v13613_v39 }
 0x38d   : > { %v4819_v47 = vadd.f32 %v4818_v7, %v4690_v42 }
 0x38f   : > { %v4893_v50 = vadd.f32 %v4892_v38, %v4819_v47  ;;  %5092 = vmatmul.f32.gmra.mxu0 %v10884_v54 }
 0x390   : > { %5157 = vmatmul.f32.gmra.mxu1 %v10851_v3  ;;  %5363 = vmatmul.f32.gmra.mxu3 %v10884_v54 }
 0x391   : > { %v11698_v62 = vadd.f32 %v4974_v52, %v4893_v50 }
 0x392   : > { %5254 = vmatmul.f32.gmra.mxu2 %v13569_v29  ;;  %v4980_v1 = vpop.f32.mrf.mxu3 }
 0x393   : > { %v4705_v55 = vpop.f32.mrf.mxu0 }
 0x394   : > { %v4822_v27 = vpop.f32.mrf.mxu1  ;;  %v4897_v23 = vpop.f32.mrf.mxu2  ;;  %v4706_v58 = vadd.f32 %v4705_v55, %v13614_v2  ;;  %v13616_v55 = vld [vmem:[#allocation30_spill] sm:$0xff] }
 0x395   : > { %v4823_v31 = vadd.f32 %v4822_v27, %v4698_v48  ;;  %v13615_v48 = vld [vmem:[#allocation38_spill] sm:$0xff] }
 0x396   : > { %v2371_v27 = vadd.f32 %v13615_v48, %v13576_v51  ;;  %v13619_v51 = vld [vmem:[#allocation42_spill] sm:$0xff] }
 0x397   : > { %v4898_v21 = vadd.f32 %v4897_v23, %v4823_v31  ;;  %5096 = vmatmul.f32.gmra.mxu0 %v13574_v26  ;;  %v2363_v31 = vadd.f32 %v13616_v55, %v13579_v49  ;;  %v13617_v23 = vld [vmem:[#allocation9_spill] sm:$0xff]  ;;  %v13622_v55 = vld [vmem:[#allocation100_spill] sm:$0xff] }
 0x398   : > { %5161 = vmatmul.f32.gmra.mxu1 %v10884_v54  ;;  %5367 = vmatmul.f32.gmra.mxu3 %v13574_v26 }
 0x399   : > { %v11704_v42 = vadd.f32 %v4980_v1, %v4898_v21  ;;  %v2460_v9 = vadd.f32 %v13621_v4, %v2363_v31  ;;  %v13627_v4 = vld [vmem:[#allocation23_spill] sm:$0xff] }
 0x39a   : > { %5262 = vmatmul.f32.gmra.mxu2 %v13571_v15  ;;  %v4986_v52 = vpop.f32.mrf.mxu3 }
 0x39b   : > { %v4713_v30 = vpop.f32.mrf.mxu0  ;;  %v2520_v18 = vadd.f32 %v13624_v56, %v2460_v9 }
 0x39c   : > { %v4826_v7 = vpop.f32.mrf.mxu1  ;;  %v4902_v38 = vpop.f32.mrf.mxu2  ;;  %v4714_v21 = vadd.f32 %v4713_v30, %v13617_v23 }
 0x39d   : > { %v4827_v47 = vadd.f32 %v4826_v7, %v4706_v58  ;;  %v13618_v7 = vld [vmem:[#allocation50_spill] sm:$0xff] }
 0x39f   : > { %v4903_v50 = vadd.f32 %v4902_v38, %v4827_v47  ;;  %5100 = vmatmul.f32.gmra.mxu0 %v10934_v35  ;;  %v2355_v47 = vadd.f32 %v13618_v7, %v13582_v46  ;;  %v2464_v38 = vadd.f32 %v13619_v51, %v2371_v27  ;;  %v13628_v51 = vld [vmem:[#allocation51_spill] sm:$0xff] }
 0x3a0   : > { %5165 = vmatmul.f32.gmra.mxu1 %v13574_v26  ;;  %5371 = vmatmul.f32.gmra.mxu3 %v10934_v35 }
 0x3a1   : > { %v11713_v1 = vadd.f32 %v4986_v52, %v4903_v50  ;;  %v13620_v50 = vld [vmem:[#allocation12_spill] sm:$0xff]  ;;  %v2525_v49 = vadd.f32 %v13622_v55, %v2464_v38  ;;  %v13629_v38 = vld [vmem:[#allocation101_spill] sm:$0xff] }
 0x3a2   : > { %5270 = vmatmul.f32.gmra.mxu2 %v13573_v28  ;;  %v4992_v58 = vpop.f32.mrf.mxu3  ;;  %v2347_v29 = vadd.f32 %v13620_v50, %v13585_v5  ;;  %v2456_v28 = vadd.f32 %v13623_v24, %v2355_v47  ;;  %v2572_v24 = vadd.f32 %v13629_v38, %v2520_v18  ;;  %v13633_v5 = vld [vmem:[#allocation47_spill] sm:$0xff]  ;;  %v13636_v38 = vld [vmem:[#allocation106_spill] sm:$0xff] }
 0x3a3   : > { %v4721_v48 = vpop.f32.mrf.mxu0  ;;  %v2578_v7 = vadd.f32 %v13625_v0, %v2525_v49  ;;  %v13630_v0 = vld [vmem:[#allocation27_spill] sm:$0xff]  ;;  %v13631_v49 = vld [vmem:[#allocation93_spill] sm:$0xff] }
 0x3a4   : > { %v4830_v11 = vpop.f32.mrf.mxu1  ;;  %v4907_v52 = vpop.f32.mrf.mxu2  ;;  %v2452_v31 = vadd.f32 %v13627_v4, %v2347_v29  ;;  %v13634_v29 = vld [vmem:[#allocation102_spill] sm:$0xff] }
 0x3a5   : > { %v4831_v15 = vadd.f32 %v4830_v11, %v4714_v21  ;;  %v13626_v11 = vld [vmem:[#allocation68_spill] sm:$0xff]  ;;  %v2643_v4 = vadd.f32 %v13634_v29, %v2572_v24 }
 0x3a6   : > { %v4722_v27 = vadd.f32 %v4721_v48, %v13626_v11  ;;  %v2510_v9 = vadd.f32 %v13630_v0, %v2452_v31 }
 0x3a7   : > { %v4908_v30 = vadd.f32 %v4907_v52, %v4831_v15  ;;  %5104 = vmatmul.f32.gmra.mxu0 %v10965_v43  ;;  %v2515_v15 = vadd.f32 %v13628_v51, %v2456_v28  ;;  %v13632_v52 = vld [vmem:[#allocation110_spill] sm:$0xff] }
 0x3a8   : > { %5169 = vmatmul.f32.gmra.mxu1 %v10934_v35  ;;  %5375 = vmatmul.f32.gmra.mxu3 %v10965_v43  ;;  %v2647_v50 = vadd.f32 %v13632_v52, %v2578_v7  ;;  %v2560_v46 = vadd.f32 %v13633_v5, %v2510_v9  ;;  %v13635_v51 = vld [vmem:[#allocation94_spill] sm:$0xff]  ;;  %v13637_v7 = vld [vmem:[#allocation53_spill] sm:$0xff]  ;;  %v13639_v5 = vld [vmem:[#allocation8_spill] sm:$0xff] }
 0x3a9   : > { %v11733_v21 = vadd.f32 %v4992_v58, %v4908_v30  ;;  %v2566_v47 = vadd.f32 %v13631_v49, %v2515_v15  ;;  %v13638_v15 = vld [vmem:[#allocation98_spill] sm:$0xff]  ;;  %v13640_v49 = vld [vmem:[#allocation49_spill] sm:$0xff] }
 0x3aa   : > { %5278 = vmatmul.f32.gmra.mxu2 %v13578_v25  ;;  %v4998_v56 = vpop.f32.mrf.mxu3  ;;  %v2692_v25 = vadd.f32 %v13636_v38, %v2647_v50  ;;  %v2688_v0 = vadd.f32 %v13638_v15, %v2643_v4 }
 0x3ab   : > { %v4729_v48 = vpop.f32.mrf.mxu0  ;;  %v2639_v18 = vadd.f32 %v13635_v51, %v2566_v47 }
 0x3ac   : > { %v4834_v58 = vpop.f32.mrf.mxu1  ;;  %v4912_v30 = vpop.f32.mrf.mxu2  ;;  %v4730_v9 = vadd.f32 %v4729_v48, %v13639_v5  ;;  %v3487_v52 = vmax.f32 %v2692_v25, 0.0 }
 0x3ad   : > { %v4835_v55 = vadd.f32 %v4834_v58, %v4722_v27  ;;  %v2635_v27 = vadd.f32 %v13637_v7, %v2560_v46  ;;  %v2684_v47 = vadd.f32 %v13640_v49, %v2639_v18  ;;  %v13642_v18 = vld [vmem:[#allocation70_spill] sm:$0xff] }
 0x3ae   : > { %v11758_v46 = vand.u32 4294901760, %v3487_v52 }
 0x3af   : > { %v4913_v28 = vadd.f32 %v4912_v30, %v4835_v55  ;;  %5108 = vmatmul.f32.gmra.mxu0 %v10989_v53  ;;  %v3471_v38 = vmax.f32 %v2684_v47, 0.0 }
 0x3b0   : > { %5173 = vmatmul.f32.gmra.mxu1 %v10965_v43  ;;  %5379 = vmatmul.f32.gmra.mxu3 %v10989_v53 }
 0x3b1   : > { %v11749_v31 = vadd.f32 %v4998_v56, %v4913_v28  ;;  %v13641_v56 = vld [vmem:[#allocation55_spill] sm:$0xff]  ;;  %v3479_v28 = vmax.f32 %v2688_v0, 0.0  ;;  %v11769_v15 = vand.u32 4294901760, %v3471_v38  ;;  %v11772_v0 = vsub.f32 %v3487_v52, %v11758_v46 }
 0x3b2   : > { %5286 = vmatmul.f32.gmra.mxu2 %v13590_v41  ;;  %v5004_v24 = vpop.f32.mrf.mxu3  ;;  %v2680_v29 = vadd.f32 %v13641_v56, %v2635_v27 }
 0x3b3   : > { %v4737_v50 = vpop.f32.mrf.mxu0  ;;  %v11765_v4 = vand.u32 4294901760, %v3479_v28  ;;  %v13014_v56 = vand.u32 4294901760, %v11772_v0 }
 0x3b4   : > { %v4838_v58 = vpop.f32.mrf.mxu1  ;;  %v4917_v30 = vpop.f32.mrf.mxu2  ;;  %v3463_v25 = vmax.f32 %v2680_v29, 0.0  ;;  %v4738_v7 = vadd.f32 %v4737_v50, %v13642_v18  ;;  %v11780_v50 = vsub.f32 %v3471_v38, %v11769_v15 }
 0x3b5   : > { %v4839_v55 = vadd.f32 %v4838_v58, %v4730_v9 }
 0x3b6   : > { %v11774_v58 = vand.u32 4294901760, %v3463_v25 }
 0x3b7   : > { %v4918_v51 = vadd.f32 %v4917_v30, %v4839_v55  ;;  %5112 = vmatmul.f32.gmra.mxu0 %v11012_v16  ;;  %v11777_v55 = vsub.f32 %v3479_v28, %v11765_v4 }
 0x3b8   : > { %5177 = vmatmul.f32.gmra.mxu1 %v10989_v53  ;;  %5383 = vmatmul.f32.gmra.mxu3 %v11012_v16 }
 0x3b9   : > { %v11762_v48 = vadd.f32 %v5004_v24, %v4918_v51  ;;  %v11790_v51 = vsub.f32 %v3463_v25, %v11774_v58  ;;  %v13018_v28 = vand.u32 4294901760, %v11777_v55 }
 0x3ba   : > { %5294 = vmatmul.f32.gmra.mxu2 %v13602_v63  ;;  %v5010_v27 = vpop.f32.mrf.mxu3 }
 0x3bb   : > { %v4745_v9 = vpop.f32.mrf.mxu0  ;;  %v6379_v25 = vsub.f32 %v11777_v55, %v13018_v28 }
 0x3bc   : > { %v4842_v49 = vpop.f32.mrf.mxu1  ;;  %v4922_v24 = vpop.f32.mrf.mxu2  ;;  %v4746_v52 = vadd.f32 %v4745_v9, %v11301_v10  ;;  %v13016_v9 = vand.u32 4294901760, %v11780_v50 }
 0x3bd   : > { %v4843_v47 = vadd.f32 %v4842_v49, %v4738_v7 }
 0x3bf   : > { %v4923_v30 = vadd.f32 %v4922_v24, %v4843_v47  ;;  %5116 = vmatmul.f32.gmra.mxu0 %v11048_v20  ;;  %v6373_v47 = vsub.f32 %v11772_v0, %v13014_v56  ;;  %v6385_v56 = vsub.f32 %v11780_v50, %v13016_v9 }
 0x3c0   : > { %5181 = vmatmul.f32.gmra.mxu1 %v11012_v16  ;;  %5387 = vmatmul.f32.gmra.mxu3 %v11048_v20 }
 0x3c1   : > { %v11786_v29 = vadd.f32 %v5010_v27, %v4923_v30  ;;  %v13017_v30 = vand.u32 4294901760, %v11790_v51 }
 0x3c2   : > { %5302 = vmatmul.f32.gmra.mxu2 %v13610_v36  ;;  %v5016_v38 = vpop.f32.mrf.mxu3  ;;  %v6374_v36 = vand.u32 4294901760, %v6373_v47  ;;  %v13644_v47 = vand.u32 4294901760, %v11624_v45  ;;  %v13646_v45 = vand.u32 4294901760, %v11636_v37 }
 0x3c3   : > { %v4753_v7 = vpop.f32.mrf.mxu0 }
 0x3c4   : > { %v4846_v49 = vpop.f32.mrf.mxu1  ;;  %v4927_v24 = vpop.f32.mrf.mxu2 }
 0x3c5   : > { %v4847_v27 = vadd.f32 %v4846_v49, %v4746_v52  ;;  %v13643_v52 = vand.u32 4294901760, %v11618_v19  ;;  %v6380_v49 = vand.u32 4294901760, %v6379_v25 }
 0x3c7   : > { %v4928_v63 = vadd.f32 %v4927_v24, %v4847_v27  ;;  %5417 = vmatmul.f32.vlgmr.msrb.gmra.mxu0 %v13527_v32  ;;  %v6391_v27 = vsub.f32 %v11790_v51, %v13017_v30  ;;  %v4754_v24 = vadd.f32 %v4753_v7, %v11336_v12 }
 0x3c8   : > { %5185 = vmatmul.f32.gmra.mxu1 %v11048_v20  ;;  %5667 = vmatmul.f32.vlgmr.msrb.gmra.mxu3 %v10728_v44 }
 0x3c9   : > { %v11807_v41 = vadd.f32 %v5016_v38, %v4928_v63  ;;  %6110 = vmatpush.msrb.mxu0 %v13643_v52  ;;  %6375 = vmatpush.msrb.mxu3 %v6374_v36  ;;  %v6386_v38 = vand.u32 4294901760, %v6385_v56  ;;  %v13645_v36 = vand.u32 4294901760, %v11630_v59  ;;  %v6392_v7 = vand.u32 4294901760, %v6391_v27  ;;  %v13647_v56 = vld [vmem:[#allocation40_spill] sm:$0xff]  ;;  %v13648_v59 = vld [vmem:[#allocation83_spill] sm:$0xff] }
 0x3ca   : > { %5598 = vmatmul.f32.vlgmr.msrb.gmra.mxu2 %v10728_v44  ;;  %v5022_v63 = vpop.f32.mrf.mxu3 }
 0x3cb   : > { %6114 = vmatpush.msrb.mxu0 %v13644_v47  ;;  %6254 = vmatpush.msrb.mxu2 %v11758_v46  ;;  %v4761_v19 = vpop.f32.mrf.mxu0 }
 0x3cc   : > { %6381 = vmatpush.msrb.mxu3 %v6380_v49  ;;  %v4850_v52 = vpop.f32.mrf.mxu1  ;;  %v4932_v9 = vpop.f32.mrf.mxu2 }
 0x3cd   : > { %6118 = vmatpush.msrb.mxu0 %v13645_v36  ;;  %v4851_v25 = vadd.f32 %v4850_v52, %v4754_v24  ;;  %6256 = vmatpush.msrb.mxu2 %v11765_v4  ;;  %v4762_v24 = vadd.f32 %v4761_v19, %v13648_v59  ;;  %v13650_v19 = vld [vmem:[#allocation95_spill] sm:$0xff]  ;;  %v13651_v36 = vld [vmem:[#allocation41_spill] sm:$0xff] }
 0x3ce   : > { %6387 = vmatpush.msrb.mxu3 %v6386_v38  ;;  %v13649_v38 = vld [vmem:[#allocation76_spill] sm:$0xff] }
 0x3cf   : > { %v4933_v30 = vadd.f32 %v4932_v9, %v4851_v25  ;;  %6122 = vmatpush.msrb.mxu0 %v13646_v45  ;;  %6258 = vmatpush.msrb.mxu2 %v11769_v15 }
 0x3d0   : > { %6393 = vmatpush.msrb.mxu3 %v6392_v7  ;;  %5422 = vmatmul.f32.gmra.mxu0 %v13532_v17 }
 0x3d1   : > { %v11826_v49 = vadd.f32 %v5022_v63, %v4933_v30  ;;  %5499 = vmatmul.f32.vlgmr.msrb.gmra.mxu1 %v13647_v56  ;;  %5671 = vmatmul.f32.gmra.mxu3 %v10754_v8 }
 0x3d2   : > { %6185 = vmatpush.msrb.mxu1 %v11605_v14  ;;  %6260 = vmatpush.msrb.mxu2 %v11774_v58  ;;  %v5028_v9 = vpop.f32.mrf.mxu3 }
 0x3d3   : > { %5602 = vmatmul.f32.gmra.mxu2 %v10754_v8  ;;  %v4769_v37 = vpop.f32.mrf.mxu0 }
 0x3d4   : > { %6187 = vmatpush.msrb.mxu1 %v11610_v34  ;;  %v4854_v30 = vpop.f32.mrf.mxu1  ;;  %v4937_v47 = vpop.f32.mrf.mxu2  ;;  %v4770_v14 = vadd.f32 %v4769_v37, %v13649_v38  ;;  %v13654_v37 = vld [vmem:[#allocation85_spill] sm:$0xff] }
 0x3d5   : > { %v4855_v27 = vadd.f32 %v4854_v30, %v4762_v24 }
 0x3d6   : > { %6189 = vmatpush.msrb.mxu1 %v11615_v22 }
 0x3d7   : > { %v4938_v63 = vadd.f32 %v4937_v47, %v4855_v27 }
 0x3d8   : > { %6191 = vmatpush.msrb.mxu1 %v11621_v60  ;;  %5427 = vmatmul.f32.gmra.mxu0 %v13650_v19  ;;  %v13652_v60 = vld [vmem:[#allocation103_spill] sm:$0xff] }
 0x3d9   : > { %v11839_v52 = vadd.f32 %v5028_v9, %v4938_v63  ;;  %5505 = vmatmul.f32.gmra.mxu1 %v13651_v36  ;;  %5675 = vmatmul.f32.gmra.mxu3 %v10776_v13  ;;  %v13653_v9 = vld [vmem:[#allocation97_spill] sm:$0xff] }
 0x3da   : > { %v5034_v34 = vpop.f32.mrf.mxu3 }
 0x3db   : > { %5606 = vmatmul.f32.gmra.mxu2 %v10776_v13  ;;  %v4777_v25 = vpop.f32.mrf.mxu0 }
 0x3dc   : > { %v4858_v7 = vpop.f32.mrf.mxu1  ;;  %v4942_v22 = vpop.f32.mrf.mxu2  ;;  %v4778_v27 = vadd.f32 %v4777_v25, %v13654_v37 }
 0x3dd   : > { %v4859_v45 = vadd.f32 %v4858_v7, %v4770_v14 }
 0x3df   : > { %v4943_v24 = vadd.f32 %v4942_v22, %v4859_v45  ;;  %v13656_v22 = vld [vmem:[#allocation105_spill] sm:$0xff] }
 0x3e0   : > { %5432 = vmatmul.f32.gmra.mxu0 %v13652_v60 }
 0x3e1   : > { %v11845_v30 = vadd.f32 %v5034_v34, %v4943_v24  ;;  %5511 = vmatmul.f32.gmra.mxu1 %v13653_v9  ;;  %5679 = vmatmul.f32.gmra.mxu3 %v10811_v33  ;;  %v13655_v34 = vld [vmem:[#allocation107_spill] sm:$0xff] }
 0x3e2   : > { %v5040_v47 = vpop.f32.mrf.mxu3 }
 0x3e3   : > { %5610 = vmatmul.f32.gmra.mxu2 %v10811_v33  ;;  %v5073_v28 = vpop.f32.mrf.mxu0 }
 0x3e4   : > { %v4862_v63 = vpop.f32.mrf.mxu1  ;;  %v4947_v14 = vpop.f32.mrf.mxu2  ;;  %v5074_v25 = vadd.f32 %v5073_v28, %v11698_v62 }
 0x3e5   : > { %v4863_v13 = vadd.f32 %v4862_v63, %v4778_v27 }
 0x3e7   : > { %v4948_v7 = vadd.f32 %v4947_v14, %v4863_v13 }
 0x3e8   : > { %5437 = vmatmul.f32.gmra.mxu0 %v13655_v34  ;;  %v13658_v34 = vld [vmem:[#allocation112_spill] sm:$0xff] }
 0x3e9   : > { %v11852_v45 = vadd.f32 %v5040_v47, %v4948_v7  ;;  %5517 = vmatmul.f32.gmra.mxu1 %v13656_v22  ;;  %5683 = vmatmul.f32.gmra.mxu3 %v10851_v3  ;;  %v8223_v47 = vld [vmem:[%s8524_s11 + $0x10] sm:$0xff] }
 0x3ea   : > { %v5344_v24 = vpop.f32.mrf.mxu3  ;;  %v13657_v7 = vld [vmem:[#allocation114_spill] sm:$0xff] }
 0x3eb   : > { %5614 = vmatmul.f32.gmra.mxu2 %v10851_v3 }
 0x3ec   : > { %v5077_v33 = vpop.f32.mrf.mxu0  ;;  %v5215_v27 = vpop.f32.mrf.mxu2 }
 0x3ed   : > { %v5142_v37 = vpop.f32.mrf.mxu1  ;;  %v5216_v13 = vadd.f32 %v5215_v27, %v13612_v57  ;;  %v5078_v62 = vadd.f32 %v5077_v33, %v11704_v42 }
 0x3ee   : > { %v5143_v60 = vadd.f32 %v5142_v37, %v5074_v25 }
 0x3ef   : > { %v11861_v14 = vadd.f32 %v5344_v24, %v5216_v13  ;;  %v8224_v24 = vld [vmem:[%s8524_s11 + $0x50] sm:$0xff] }
 0x3f0   : > { %v7821_v63 = vadd.f32 %v8223_v47, %v5143_v60  ;;  %5442 = vmatmul.f32.gmra.mxu0 %v13657_v7  ;;  %v13659_v7 = vld [vmem:[#allocation121_spill] sm:$0xff] }
 0x3f1   : > { %5523 = vmatmul.f32.gmra.mxu1 %v13658_v34  ;;  %5687 = vmatmul.f32.gmra.mxu3 %v10884_v54 }
 0x3f2   : > { %7917 = vst [vmem:[%s11399_s14 + $0x10] sm:$0xff] %v7821_v63  ;;  %v13660_v63 = vld [vmem:[#allocation119_spill] sm:$0xff] }
 0x3f3   : > { %5618 = vmatmul.f32.gmra.mxu2 %v10884_v54  ;;  %v5348_v28 = vpop.f32.mrf.mxu3 }
 0x3f4   : > { %v5081_v37 = vpop.f32.mrf.mxu0 }
 0x3f5   : > { %v5146_v25 = vpop.f32.mrf.mxu1  ;;  %v5223_v57 = vpop.f32.mrf.mxu2  ;;  %v5082_v33 = vadd.f32 %v5081_v37, %v11713_v1 }
 0x3f6   : > { %v5147_v27 = vadd.f32 %v5146_v25, %v5078_v62  ;;  %v5224_v60 = vadd.f32 %v5223_v57, %v13613_v39 }
 0x3f8   : > { %v7829_v13 = vadd.f32 %v8224_v24, %v5147_v27  ;;  %v11871_v47 = vadd.f32 %v5348_v28, %v5224_v60  ;;  %5447 = vmatmul.f32.gmra.mxu0 %v13659_v7  ;;  %v8225_v27 = vld [vmem:[%s8524_s11 + $0x90] sm:$0xff]  ;;  %v13661_v7 = vld [vmem:[#allocation128_spill] sm:$0xff] }
 0x3f9   : > { %5529 = vmatmul.f32.gmra.mxu1 %v13660_v63  ;;  %5691 = vmatmul.f32.gmra.mxu3 %v13574_v26 }
 0x3fa   : > { %7925 = vst [vmem:[%s11399_s14 + $0x50] sm:$0xff] %v7829_v13  ;;  %v13662_v13 = vld [vmem:[#allocation124_spill] sm:$0xff] }
 0x3fb   : > { %5622 = vmatmul.f32.gmra.mxu2 %v13574_v26  ;;  %v5352_v42 = vpop.f32.mrf.mxu3 }
 0x3fc   : > { %v5085_v62 = vpop.f32.mrf.mxu0 }
 0x3fd   : > { %v5150_v57 = vpop.f32.mrf.mxu1  ;;  %v5231_v39 = vpop.f32.mrf.mxu2  ;;  %v5086_v1 = vadd.f32 %v5085_v62, %v11733_v21 }
 0x3fe   : > { %v5151_v25 = vadd.f32 %v5150_v57, %v5082_v33  ;;  %v5232_v28 = vadd.f32 %v5231_v39, %v13614_v2 }
 0x400   : > { %v7837_v60 = vadd.f32 %v8225_v27, %v5151_v25  ;;  %v11881_v24 = vadd.f32 %v5352_v42, %v5232_v28  ;;  %5452 = vmatmul.f32.gmra.mxu0 %v13661_v7  ;;  %v8226_v25 = vld [vmem:[%s8524_s11 + $0xd0] sm:$0xff] }
 0x401   : > { %5535 = vmatmul.f32.gmra.mxu1 %v13662_v13  ;;  %5695 = vmatmul.f32.gmra.mxu3 %v10934_v35  ;;  %v13663_v7 = vld [vmem:[#allocation134_spill] sm:$0xff] }
 0x402   : > { %7933 = vst [vmem:[%s11399_s14 + $0x90] sm:$0xff] %v7837_v60  ;;  %v13664_v60 = vld [vmem:[#allocation131_spill] sm:$0xff] }
 0x403   : > { %5626 = vmatmul.f32.gmra.mxu2 %v10934_v35  ;;  %v5356_v37 = vpop.f32.mrf.mxu3 }
 0x404   : > { %v5089_v33 = vpop.f32.mrf.mxu0 }
 0x405   : > { %v5154_v39 = vpop.f32.mrf.mxu1  ;;  %v5239_v2 = vpop.f32.mrf.mxu2  ;;  %v5090_v21 = vadd.f32 %v5089_v33, %v11749_v31 }
 0x406   : > { %v5155_v57 = vadd.f32 %v5154_v39, %v5086_v1  ;;  %v5240_v42 = vadd.f32 %v5239_v2, %v13617_v23 }
 0x408   : > { %v7845_v28 = vadd.f32 %v8226_v25, %v5155_v57  ;;  %v11891_v27 = vadd.f32 %v5356_v37, %v5240_v42  ;;  %5457 = vmatmul.f32.gmra.mxu0 %v13663_v7  ;;  %v8227_v57 = vld [vmem:[%s8524_s11 + $0x110] sm:$0xff]  ;;  %v13665_v7 = vld [vmem:[#allocation137_spill] sm:$0xff] }
 0x409   : > { %5541 = vmatmul.f32.gmra.mxu1 %v13664_v60  ;;  %5699 = vmatmul.f32.gmra.mxu3 %v10965_v43 }
 0x40a   : > { %7941 = vst [vmem:[%s11399_s14 + $0xd0] sm:$0xff] %v7845_v28  ;;  %v13666_v28 = vld [vmem:[#allocation136_spill] sm:$0xff] }
 0x40b   : > { %5630 = vmatmul.f32.gmra.mxu2 %v10965_v43  ;;  %v5360_v62 = vpop.f32.mrf.mxu3 }
 0x40c   : > { %v5093_v1 = vpop.f32.mrf.mxu0 }
 0x40d   : > { %v5158_v2 = vpop.f32.mrf.mxu1  ;;  %v5247_v23 = vpop.f32.mrf.mxu2  ;;  %v5094_v31 = vadd.f32 %v5093_v1, %v11762_v48 }
 0x40e   : > { %v5159_v39 = vadd.f32 %v5158_v2, %v5090_v21  ;;  %v5248_v37 = vadd.f32 %v5247_v23, %v13626_v11 }
 0x410   : > { %v7853_v42 = vadd.f32 %v8227_v57, %v5159_v39  ;;  %v11901_v25 = vadd.f32 %v5360_v62, %v5248_v37  ;;  %5462 = vmatmul.f32.gmra.mxu0 %v13665_v7  ;;  %v8228_v39 = vld [vmem:[%s8524_s11 + $0x150] sm:$0xff] }
 0x411   : > { %5547 = vmatmul.f32.gmra.mxu1 %v13666_v28  ;;  %5703 = vmatmul.f32.gmra.mxu3 %v10989_v53 }
 0x412   : > { %7949 = vst [vmem:[%s11399_s14 + $0x110] sm:$0xff] %v7853_v42  ;;  %v13667_v42 = vld [vmem:[#allocation140_spill] sm:$0xff] }
 0x413   : > { %5634 = vmatmul.f32.gmra.mxu2 %v10989_v53  ;;  %v5364_v33 = vpop.f32.mrf.mxu3 }
 0x414   : > { %v5097_v21 = vpop.f32.mrf.mxu0 }
 0x415   : > { %v5162_v23 = vpop.f32.mrf.mxu1  ;;  %v5255_v11 = vpop.f32.mrf.mxu2  ;;  %v5098_v48 = vadd.f32 %v5097_v21, %v11786_v29 }
 0x416   : > { %v5163_v2 = vadd.f32 %v5162_v23, %v5094_v31  ;;  %v5256_v62 = vadd.f32 %v5255_v11, %v13639_v5 }
 0x418   : > { %v7861_v37 = vadd.f32 %v8228_v39, %v5163_v2  ;;  %v11911_v57 = vadd.f32 %v5364_v33, %v5256_v62  ;;  %5467 = vmatmul.f32.gmra.mxu0 %v13606_v40  ;;  %v8229_v2 = vld [vmem:[%s8524_s11 + $0x190] sm:$0xff] }
 0x419   : > { %5553 = vmatmul.f32.gmra.mxu1 %v13667_v42  ;;  %5707 = vmatmul.f32.gmra.mxu3 %v11012_v16 }
 0x41a   : > { %7957 = vst [vmem:[%s11399_s14 + $0x150] sm:$0xff] %v7861_v37 }
 0x41b   : > { %5638 = vmatmul.f32.gmra.mxu2 %v11012_v16  ;;  %v5368_v1 = vpop.f32.mrf.mxu3 }
 0x41c   : > { %v5101_v31 = vpop.f32.mrf.mxu0 }
 0x41d   : > { %v5166_v11 = vpop.f32.mrf.mxu1  ;;  %v5263_v5 = vpop.f32.mrf.mxu2  ;;  %v5102_v29 = vadd.f32 %v5101_v31, %v11807_v41 }
 0x41e   : > { %v5167_v23 = vadd.f32 %v5166_v11, %v5098_v48  ;;  %v5264_v33 = vadd.f32 %v5263_v5, %v13642_v18  ;;  %v13668_v18 = vld [vmem:[#allocation56_spill] sm:$0xff] }
 0x420   : > { %v7869_v62 = vadd.f32 %v8229_v2, %v5167_v23  ;;  %v11921_v39 = vadd.f32 %v5368_v1, %v5264_v33  ;;  %5472 = vmatmul.f32.gmra.mxu0 %v13611_v61  ;;  %v8230_v23 = vld [vmem:[%s8524_s11 + $0x1d0] sm:$0xff] }
 0x421   : > { %5559 = vmatmul.f32.gmra.mxu1 %v13557_v6  ;;  %5711 = vmatmul.f32.gmra.mxu3 %v11048_v20 }
 0x422   : > { %7965 = vst [vmem:[%s11399_s14 + $0x190] sm:$0xff] %v7869_v62  ;;  %v13669_v62 = vld [vmem:[#allocation45_spill] sm:$0xff] }
 0x423   : > { %5642 = vmatmul.f32.gmra.mxu2 %v11048_v20  ;;  %v5372_v21 = vpop.f32.mrf.mxu3 }
 0x424   : > { %v5105_v37 = vpop.f32.mrf.mxu0 }
 0x425   : > { %v5170_v5 = vpop.f32.mrf.mxu1  ;;  %v5271_v11 = vpop.f32.mrf.mxu2  ;;  %v5106_v41 = vadd.f32 %v5105_v37, %v11826_v49  ;;  %v8231_v37 = vld [vmem:[%s8524_s11 + $0x210] sm:$0xff] }
 0x426   : > { %v5171_v48 = vadd.f32 %v5170_v5, %v5102_v29  ;;  %v5272_v1 = vadd.f32 %v5271_v11, %v11301_v10  ;;  %v13670_v29 = vand.u32 4294901760, %v11772_v0 }
 0x428   : > { %v7877_v33 = vadd.f32 %v8230_v23, %v5171_v48  ;;  %v11931_v2 = vadd.f32 %v5372_v21, %v5272_v1  ;;  %5740 = vmatmul.f32.vlgmr.msra.gmra.mxu0 %v13669_v62  ;;  %v13671_v1 = vand.u32 4294901760, %v11777_v55 }
 0x429   : > { %5565 = vmatmul.f32.gmra.mxu1 %v13668_v18  ;;  %6025 = vmatmul.f32.vlgmr.msra.gmra.mxu3 %v13647_v56 }
 0x42a   : > { %7973 = vst [vmem:[%s11399_s14 + $0x1d0] sm:$0xff] %v7877_v33  ;;  %6457 = vmatpush.msra.mxu0 %v11772_v0  ;;  %6711 = vmatpush.msra.mxu3 %v11758_v46  ;;  %v13672_v0 = vand.u32 4294901760, %v11780_v50 }
 0x42b   : > { %5943 = vmatmul.f32.vlgmr.msra.gmra.mxu2 %v13527_v32  ;;  %v5376_v31 = vpop.f32.mrf.mxu3 }
 0x42c   : > { %6460 = vmatpush.msra.mxu0 %v11777_v55  ;;  %6636 = vmatpush.msra.mxu2 %v13670_v29  ;;  %v5109_v21 = vpop.f32.mrf.mxu0 }
 0x42d   : > { %6713 = vmatpush.msra.mxu3 %v11765_v4  ;;  %v5174_v5 = vpop.f32.mrf.mxu1  ;;  %v5279_v11 = vpop.f32.mrf.mxu2  ;;  %v5110_v55 = vadd.f32 %v5109_v21, %v11839_v52  ;;  %v13675_v52 = vld [vmem:[#allocation104_spill] sm:$0xff] }
 0x42e   : > { %6463 = vmatpush.msra.mxu0 %v11780_v50  ;;  %v5175_v48 = vadd.f32 %v5174_v5, %v5106_v41  ;;  %6640 = vmatpush.msra.mxu2 %v13671_v1  ;;  %v5280_v49 = vadd.f32 %v5279_v11, %v11336_v12  ;;  %v13673_v41 = vld [vmem:[#allocation96_spill] sm:$0xff]  ;;  %v13674_v50 = vand.u32 4294901760, %v11790_v51 }
 0x42f   : > { %6715 = vmatpush.msra.mxu3 %v11769_v15 }
 0x430   : > { %v7885_v23 = vadd.f32 %v8231_v37, %v5175_v48  ;;  %6466 = vmatpush.msra.mxu0 %v11790_v51  ;;  %6644 = vmatpush.msra.mxu2 %v13672_v0  ;;  %v11955_v33 = vadd.f32 %v5376_v31, %v5280_v49 }
 0x431   : > { %6717 = vmatpush.msra.mxu3 %v11774_v58  ;;  %5748 = vmatmul.f32.gmra.mxu0 %v13673_v41 }
 0x432   : > { %7981 = vst [vmem:[%s11399_s14 + $0x210] sm:$0xff] %v7885_v23  ;;  %5869 = vmatmul.f32.vlgmr.msra.gmra.mxu1 %v10728_v44  ;;  %6031 = vmatmul.f32.gmra.mxu3 %v13651_v36  ;;  %v13699_v36 = vld [vmem:[#allocation66_spill] sm:$0xff] }
 0x433   : > { %6541 = vmatpush.msra.mxu1 %v11758_v46  ;;  %6648 = vmatpush.msra.mxu2 %v13674_v50  ;;  %v5380_v29 = vpop.f32.mrf.mxu3  ;;  %v8232_v46 = vld [vmem:[%s8524_s11 + $0x250] sm:$0xff] }
 0x434   : > { %5948 = vmatmul.f32.gmra.mxu2 %v13532_v17  ;;  %v5113_v31 = vpop.f32.mrf.mxu0 }
 0x435   : > { %6543 = vmatpush.msra.mxu1 %v11765_v4  ;;  %v5178_v5 = vpop.f32.mrf.mxu1  ;;  %v5287_v11 = vpop.f32.mrf.mxu2  ;;  %v5114_v4 = vadd.f32 %v5113_v31, %v11845_v30 }
 0x436   : > { %v5179_v48 = vadd.f32 %v5178_v5, %v5110_v55  ;;  %v5288_v1 = vadd.f32 %v5287_v11, %v13648_v59  ;;  %v8233_v55 = vld [vmem:[%s8524_s11 + $0x290] sm:$0xff]  ;;  %v13676_v5 = vld [vmem:[#allocation111_spill] sm:$0xff] }
 0x437   : > { %6545 = vmatpush.msra.mxu1 %v11769_v15  ;;  %v13678_v11 = vld [vmem:[#allocation103_spill] sm:$0xff] }
 0x438   : > { %v7893_v49 = vadd.f32 %v8232_v46, %v5179_v48  ;;  %v11971_v51 = vadd.f32 %v5380_v29, %v5288_v1  ;;  %v13677_v48 = vld [vmem:[#allocation91_spill] sm:$0xff] }
 0x439   : > { %6547 = vmatpush.msra.mxu1 %v11774_v58  ;;  %5756 = vmatmul.f32.gmra.mxu0 %v13675_v52 }
 0x43a   : > { %7989 = vst [vmem:[%s11399_s14 + $0x250] sm:$0xff] %v7893_v49  ;;  %5873 = vmatmul.f32.gmra.mxu1 %v10754_v8  ;;  %6037 = vmatmul.f32.gmra.mxu3 %v13653_v9 }
 0x43b   : > { %v5384_v15 = vpop.f32.mrf.mxu3 }
 0x43c   : > { %5953 = vmatmul.f32.gmra.mxu2 %v13650_v19  ;;  %v5117_v21 = vpop.f32.mrf.mxu0  ;;  %v13709_v19 = vld [vmem:[#allocation34_spill] sm:$0xff] }
 0x43d   : > { %v5182_v37 = vpop.f32.mrf.mxu1  ;;  %v5295_v0 = vpop.f32.mrf.mxu2  ;;  %v5118_v30 = vadd.f32 %v5117_v21, %v11852_v45 }
 0x43e   : > { %v5183_v23 = vadd.f32 %v5182_v37, %v5114_v4  ;;  %v5296_v58 = vadd.f32 %v5295_v0, %v13649_v38  ;;  %v13679_v37 = vld [vmem:[#allocation85_spill] sm:$0xff] }
 0x440   : > { %v7901_v50 = vadd.f32 %v8233_v55, %v5183_v23  ;;  %v11981_v29 = vadd.f32 %v5384_v15, %v5296_v58  ;;  %v8234_v23 = vld [vmem:[%s8524_s11 + $0x2d0] sm:$0xff]  ;;  %v13680_v55 = vld [vmem:[#allocation117_spill] sm:$0xff] }
 0x441   : > { %5764 = vmatmul.f32.gmra.mxu0 %v13676_v5 }
 0x442   : > { %7997 = vst [vmem:[%s11399_s14 + $0x290] sm:$0xff] %v7901_v50  ;;  %5877 = vmatmul.f32.gmra.mxu1 %v13677_v48  ;;  %6043 = vmatmul.f32.gmra.mxu3 %v13656_v22  ;;  %v13681_v50 = vld [vmem:[#allocation99_spill] sm:$0xff] }
 0x443   : > { %v5388_v31 = vpop.f32.mrf.mxu3  ;;  %v13682_v22 = vld [vmem:[#allocation107_spill] sm:$0xff] }
 0x444   : > { %5958 = vmatmul.f32.gmra.mxu2 %v13678_v11  ;;  %v5418_v46 = vpop.f32.mrf.mxu0 }
 0x445   : > { %v5186_v1 = vpop.f32.mrf.mxu1  ;;  %v5303_v4 = vpop.f32.mrf.mxu2  ;;  %v5419_v21 = vadd.f32 %v5418_v46, %v11861_v14  ;;  %v13684_v46 = vld [vmem:[#allocation114_spill] sm:$0xff] }
 0x446   : > { %v5187_v49 = vadd.f32 %v5186_v1, %v5118_v30  ;;  %v5304_v15 = vadd.f32 %v5303_v4, %v13679_v37 }
 0x448   : > { %v7909_v0 = vadd.f32 %v8234_v23, %v5187_v49  ;;  %v11991_v58 = vadd.f32 %v5388_v31, %v5304_v15  ;;  %v13683_v15 = vld [vmem:[#allocation123_spill] sm:$0xff] }
 0x449   : > { %5772 = vmatmul.f32.gmra.mxu0 %v13680_v55 }
 0x44a   : > { %8005 = vst [vmem:[%s11399_s14 + $0x2d0] sm:$0xff] %v7909_v0  ;;  %5881 = vmatmul.f32.gmra.mxu1 %v13681_v50  ;;  %6049 = vmatmul.f32.gmra.mxu3 %v13658_v34  ;;  %v8235_v34 = vld [vmem:[%s8524_s11 + $0x18] sm:$0xff] }
 0x44b   : > { %v5668_v45 = vpop.f32.mrf.mxu3 }
 0x44c   : > { %5963 = vmatmul.f32.gmra.mxu2 %v13682_v22 }
 0x44d   : > { %v5423_v30 = vpop.f32.mrf.mxu0  ;;  %v5599_v49 = vpop.f32.mrf.mxu2 }
 0x44e   : > { %v5500_v1 = vpop.f32.mrf.mxu1  ;;  %v5424_v0 = vadd.f32 %v5423_v30, %v11871_v47 }
 0x44f   : > { %v5501_v4 = vadd.f32 %v5500_v1, %v5419_v21 }
 0x451   : > { %v5600_v31 = vadd.f32 %v5599_v49, %v5501_v4  ;;  %5780 = vmatmul.f32.gmra.mxu0 %v13683_v15  ;;  %v13685_v49 = vld [vmem:[#allocation129_spill] sm:$0xff] }
 0x452   : > { %5885 = vmatmul.f32.gmra.mxu1 %v10851_v3  ;;  %6055 = vmatmul.f32.gmra.mxu3 %v13660_v63 }
 0x453   : > { %v5669_v23 = vadd.f32 %v5668_v45, %v5600_v31  ;;  %v13686_v31 = vld [vmem:[#allocation121_spill] sm:$0xff] }
 0x454   : > { %5968 = vmatmul.f32.gmra.mxu2 %v13684_v46  ;;  %v5672_v22 = vpop.f32.mrf.mxu3 }
 0x455   : > { %v7822_v14 = vadd.f32 %v8235_v34, %v5669_v23  ;;  %v5428_v37 = vpop.f32.mrf.mxu0  ;;  %v8236_v34 = vld [vmem:[%s8524_s11 + $0x58] sm:$0xff] }
 0x456   : > { %v5506_v9 = vpop.f32.mrf.mxu1  ;;  %v5603_v1 = vpop.f32.mrf.mxu2  ;;  %v5429_v47 = vadd.f32 %v5428_v37, %v11881_v24  ;;  %v8237_v37 = vld [vmem:[%s8524_s11 + $0x98] sm:$0xff] }
 0x457   : > { %7918 = vst [vmem:[%s11399_s14 + $0x18] sm:$0xff] %v7822_v14  ;;  %v5507_v21 = vadd.f32 %v5506_v9, %v5424_v0 }
 0x459   : > { %v5604_v4 = vadd.f32 %v5603_v1, %v5507_v21  ;;  %5788 = vmatmul.f32.gmra.mxu0 %v13685_v49  ;;  %v13687_v1 = vld [vmem:[#allocation135_spill] sm:$0xff] }
 0x45a   : > { %5889 = vmatmul.f32.gmra.mxu1 %v10884_v54  ;;  %6061 = vmatmul.f32.gmra.mxu3 %v13662_v13 }
 0x45b   : > { %v5673_v45 = vadd.f32 %v5672_v22, %v5604_v4 }
 0x45c   : > { %5973 = vmatmul.f32.gmra.mxu2 %v13686_v31  ;;  %v5676_v23 = vpop.f32.mrf.mxu3  ;;  %v13693_v31 = vld [vmem:[#allocation19_spill] sm:$0xff] }
 0x45d   : > { %v7830_v30 = vadd.f32 %v8236_v34, %v5673_v45  ;;  %v5433_v63 = vpop.f32.mrf.mxu0  ;;  %v13688_v45 = vld [vmem:[#allocation128_spill] sm:$0xff] }
 0x45e   : > { %v5512_v14 = vpop.f32.mrf.mxu1  ;;  %v5607_v0 = vpop.f32.mrf.mxu2  ;;  %v5434_v24 = vadd.f32 %v5433_v63, %v11891_v27  ;;  %v8238_v27 = vld [vmem:[%s8524_s11 + $0xd8] sm:$0xff] }
 0x45f   : > { %7926 = vst [vmem:[%s11399_s14 + $0x58] sm:$0xff] %v7830_v30  ;;  %v5513_v9 = vadd.f32 %v5512_v14, %v5429_v47 }
 0x461   : > { %v5608_v21 = vadd.f32 %v5607_v0, %v5513_v9  ;;  %5796 = vmatmul.f32.gmra.mxu0 %v13687_v1  ;;  %v13689_v0 = vld [vmem:[#allocation139_spill] sm:$0xff] }
 0x462   : > { %5893 = vmatmul.f32.gmra.mxu1 %v13574_v26  ;;  %6067 = vmatmul.f32.gmra.mxu3 %v13664_v60  ;;  %v13691_v60 = vld [vmem:[#allocation21_spill] sm:$0xff] }
 0x463   : > { %v5677_v22 = vadd.f32 %v5676_v23, %v5608_v21 }
 0x464   : > { %5978 = vmatmul.f32.gmra.mxu2 %v13688_v45  ;;  %v5680_v34 = vpop.f32.mrf.mxu3 }
 0x465   : > { %v7838_v4 = vadd.f32 %v8237_v37, %v5677_v22  ;;  %v5438_v13 = vpop.f32.mrf.mxu0  ;;  %v13690_v22 = vld [vmem:[#allocation134_spill] sm:$0xff] }
 0x466   : > { %v5518_v30 = vpop.f32.mrf.mxu1  ;;  %v5611_v14 = vpop.f32.mrf.mxu2  ;;  %v5439_v63 = vadd.f32 %v5438_v13, %v11901_v25  ;;  %v13696_v25 = vld [vmem:[#allocation20_spill] sm:$0xff] }
 0x467   : > { %7934 = vst [vmem:[%s11399_s14 + $0x98] sm:$0xff] %v7838_v4  ;;  %v5519_v47 = vadd.f32 %v5518_v30, %v5434_v24  ;;  %v13692_v4 = vld [vmem:[#allocation125_spill] sm:$0xff] }
 0x468   : > { %v2745_v45 = vadd.f32 %v13692_v4, %v13691_v60  ;;  %v13701_v4 = vld [vmem:[#allocation133_spill] sm:$0xff] }
 0x469   : > { %v5612_v9 = vadd.f32 %v5611_v14, %v5519_v47  ;;  %5804 = vmatmul.f32.gmra.mxu0 %v13689_v0 }
 0x46a   : > { %5897 = vmatmul.f32.gmra.mxu1 %v10934_v35  ;;  %6073 = vmatmul.f32.gmra.mxu3 %v13666_v28  ;;  %v13695_v28 = vld [vmem:[#allocation132_spill] sm:$0xff] }
 0x46b   : > { %v5681_v23 = vadd.f32 %v5680_v34, %v5612_v9  ;;  %v13694_v34 = vld [vmem:[#allocation115_spill] sm:$0xff]  ;;  %v2842_v46 = vadd.f32 %v13695_v28, %v2745_v45 }
 0x46c   : > { %5983 = vmatmul.f32.gmra.mxu2 %v13690_v22  ;;  %v5684_v37 = vpop.f32.mrf.mxu3  ;;  %v2737_v9 = vadd.f32 %v13694_v34, %v13693_v31  ;;  %v13698_v22 = vld [vmem:[#allocation126_spill] sm:$0xff]  ;;  %v8239_v45 = vld [vmem:[%s8524_s11 + $0x118] sm:$0xff] }
 0x46d   : > { %v7846_v21 = vadd.f32 %v8238_v27, %v5681_v23  ;;  %v5443_v24 = vpop.f32.mrf.mxu0  ;;  %v13697_v23 = vld [vmem:[#allocation109_spill] sm:$0xff]  ;;  %v2902_v31 = vadd.f32 %v13701_v4, %v2842_v46  ;;  %v13705_v46 = vld [vmem:[#allocation142_spill] sm:$0xff] }
 0x46e   : > { %v5524_v30 = vpop.f32.mrf.mxu1  ;;  %v5615_v14 = vpop.f32.mrf.mxu2  ;;  %v2729_v27 = vadd.f32 %v13697_v23, %v13696_v25  ;;  %v2838_v11 = vadd.f32 %v13698_v22, %v2737_v9  ;;  %v5444_v28 = vadd.f32 %v5443_v24, %v11911_v57  ;;  %v13706_v4 = vld [vmem:[#allocation65_spill] sm:$0xff] }
 0x46f   : > { %7942 = vst [vmem:[%s11399_s14 + $0xd8] sm:$0xff] %v7846_v21  ;;  %v5525_v47 = vadd.f32 %v5524_v30, %v5439_v63  ;;  %v13700_v63 = vld [vmem:[#allocation116_spill] sm:$0xff]  ;;  %v3029_v57 = vadd.f32 %v13706_v4, %v13705_v46  ;;  %v13715_v46 = vld [vmem:[#allocation31_spill] sm:$0xff] }
 0x470   : > { %v2834_v21 = vadd.f32 %v13700_v63, %v2729_v27  ;;  %v13704_v27 = vld [vmem:[#allocation130_spill] sm:$0xff] }
 0x471   : > { %v5616_v13 = vadd.f32 %v5615_v14, %v5525_v47  ;;  %5812 = vmatmul.f32.gmra.mxu0 %v13699_v36  ;;  %v13702_v14 = vld [vmem:[#allocation127_spill] sm:$0xff]  ;;  %v2954_v63 = vadd.f32 %v13704_v27, %v2902_v31  ;;  %v13714_v27 = vld [vmem:[#allocation138_spill] sm:$0xff] }
 0x472   : > { %5901 = vmatmul.f32.gmra.mxu1 %v10965_v43  ;;  %6079 = vmatmul.f32.gmra.mxu3 %v13667_v42  ;;  %v2897_v22 = vadd.f32 %v13702_v14, %v2838_v11  ;;  %v13708_v42 = vld [vmem:[#allocation62_spill] sm:$0xff]  ;;  %v3074_v11 = vadd.f32 %v13709_v19, %v3029_v57  ;;  %v13710_v14 = vld [vmem:[#allocation69_spill] sm:$0xff] }
 0x473   : > { %v5685_v60 = vadd.f32 %v5684_v37, %v5616_v13  ;;  %v13703_v13 = vld [vmem:[#allocation118_spill] sm:$0xff] }
 0x474   : > { %5988 = vmatmul.f32.gmra.mxu2 %v13665_v7  ;;  %v5688_v47 = vpop.f32.mrf.mxu3  ;;  %v2892_v23 = vadd.f32 %v13703_v13, %v2834_v21  ;;  %v3025_v7 = vadd.f32 %v13708_v42, %v2954_v63  ;;  %v13711_v21 = vld [vmem:[#allocation113_spill] sm:$0xff] }
 0x475   : > { %v7854_v30 = vadd.f32 %v8239_v45, %v5685_v60  ;;  %v5448_v34 = vpop.f32.mrf.mxu0  ;;  %v13707_v60 = vld [vmem:[#allocation122_spill] sm:$0xff]  ;;  %v13713_v13 = vld [vmem:[#allocation61_spill] sm:$0xff] }
 0x476   : > { %v5530_v9 = vpop.f32.mrf.mxu1  ;;  %v5619_v37 = vpop.f32.mrf.mxu2  ;;  %v2948_v45 = vadd.f32 %v13707_v60, %v2897_v22  ;;  %v2942_v31 = vadd.f32 %v13711_v21, %v2892_v23  ;;  %v5449_v22 = vadd.f32 %v5448_v34, %v11921_v39 }
 0x477   : > { %7950 = vst [vmem:[%s11399_s14 + $0x118] sm:$0xff] %v7854_v30  ;;  %v5531_v25 = vadd.f32 %v5530_v9, %v5444_v28  ;;  %v13712_v30 = vld [vmem:[#allocation60_spill] sm:$0xff] }
 0x478   : > { %v3021_v9 = vadd.f32 %v13712_v30, %v2948_v45  ;;  %v3017_v63 = vadd.f32 %v13714_v27, %v2942_v31  ;;  %v13716_v45 = vld [vmem:[#allocation58_spill] sm:$0xff]  ;;  %v13717_v30 = vld [vmem:[#allocation67_spill] sm:$0xff] }
 0x479   : > { %v5620_v24 = vadd.f32 %v5619_v37, %v5531_v25  ;;  %5820 = vmatmul.f32.gmra.mxu0 %v13710_v14  ;;  %v3070_v25 = vadd.f32 %v13713_v13, %v3025_v7  ;;  %v8240_v37 = vld [vmem:[%s8524_s11 + $0x158] sm:$0xff] }
 0x47a   : > { %5905 = vmatmul.f32.gmra.mxu1 %v10989_v53  ;;  %6085 = vmatmul.f32.gmra.mxu3 %v13557_v6  ;;  %v3066_v4 = vadd.f32 %v13715_v46, %v3021_v9  ;;  %v3062_v7 = vadd.f32 %v13716_v45, %v3017_v63 }
 0x47b   : > { %v5689_v28 = vadd.f32 %v5688_v47, %v5620_v24  ;;  %v3488_v47 = vmax.f32 %v3074_v11, 0.0  ;;  %v3480_v21 = vmax.f32 %v3070_v25, 0.0 }
 0x47c   : > { %5993 = vmatmul.f32.gmra.mxu2 %v13606_v40  ;;  %v5692_v19 = vpop.f32.mrf.mxu3  ;;  %v3472_v34 = vmax.f32 %v3066_v4, 0.0  ;;  %v3464_v11 = vmax.f32 %v3062_v7, 0.0 }
 0x47d   : > { %v7862_v42 = vadd.f32 %v8240_v37, %v5689_v28  ;;  %v5453_v57 = vpop.f32.mrf.mxu0  ;;  %v12065_v28 = vand.u32 4294901760, %v3488_v47  ;;  %v12070_v9 = vand.u32 4294901760, %v3480_v21 }
 0x47e   : > { %v5536_v24 = vpop.f32.mrf.mxu1  ;;  %v5623_v60 = vpop.f32.mrf.mxu2  ;;  %v5454_v13 = vadd.f32 %v5453_v57, %v11931_v2 }
 0x47f   : > { %7958 = vst [vmem:[%s11399_s14 + $0x158] sm:$0xff] %v7862_v42  ;;  %v5537_v23 = vadd.f32 %v5536_v24, %v5449_v22  ;;  %v8241_v22 = vld [vmem:[%s8524_s11 + $0x198] sm:$0xff]  ;;  %v12075_v42 = vand.u32 4294901760, %v3472_v34  ;;  %v12078_v27 = vsub.f32 %v3488_v47, %v12065_v28  ;;  %v12081_v24 = vand.u32 4294901760, %v3464_v11 }
 0x480   : > { %v12084_v2 = vsub.f32 %v3480_v21, %v12070_v9 }
 0x481   : > { %v5624_v39 = vadd.f32 %v5623_v60, %v5537_v23  ;;  %5828 = vmatmul.f32.gmra.mxu0 %v13717_v30  ;;  %v13044_v23 = vand.u32 4294901760, %v12078_v27  ;;  %v12090_v47 = vsub.f32 %v3472_v34, %v12075_v42  ;;  %v12096_v45 = vsub.f32 %v3464_v11, %v12081_v24 }
 0x482   : > { %5909 = vmatmul.f32.gmra.mxu1 %v11012_v16  ;;  %6091 = vmatmul.f32.gmra.mxu3 %v13668_v18  ;;  %v13043_v7 = vand.u32 4294901760, %v12084_v2 }
 0x483   : > { %v5693_v31 = vadd.f32 %v5692_v19, %v5624_v39  ;;  %v8242_v39 = vld [vmem:[%s8524_s11 + $0x1d8] sm:$0xff]  ;;  %v6899_v11 = vsub.f32 %v12078_v27, %v13044_v23 }
 0x484   : > { %5998 = vmatmul.f32.gmra.mxu2 %v13611_v61  ;;  %v5696_v25 = vpop.f32.mrf.mxu3 }
 0x485   : > { %v7870_v37 = vadd.f32 %v8241_v22, %v5693_v31  ;;  %v5458_v63 = vpop.f32.mrf.mxu0 }
 0x486   : > { %v5542_v46 = vpop.f32.mrf.mxu1  ;;  %v5627_v4 = vpop.f32.mrf.mxu2  ;;  %v5459_v21 = vadd.f32 %v5458_v63, %v11955_v33  ;;  %v6905_v63 = vsub.f32 %v12084_v2, %v13043_v7 }
 0x487   : > { %7966 = vst [vmem:[%s11399_s14 + $0x198] sm:$0xff] %v7870_v37  ;;  %v5543_v19 = vadd.f32 %v5542_v46, %v5454_v13  ;;  %v13042_v37 = vand.u32 4294901760, %v12090_v47  ;;  %v13041_v46 = vand.u32 4294901760, %v12096_v45 }
 0x489   : > { %v5628_v57 = vadd.f32 %v5627_v4, %v5543_v19  ;;  %6124 = vmatmul.f32.vlgmr.msrb.gmra.mxu0 %v10728_v44  ;;  %v6900_v4 = vand.u32 4294901760, %v6899_v11 }
 0x48a   : > { %5913 = vmatmul.f32.gmra.mxu1 %v11048_v20  ;;  %6395 = vmatmul.f32.vlgmr.msrb.gmra.mxu3 %v10728_v44 }
 0x48b   : > { %v5697_v60 = vadd.f32 %v5696_v25, %v5628_v57  ;;  %6780 = vmatpush.msrb.mxu0 %v12065_v28  ;;  %7067 = vmatpush.msrb.mxu3 %v12065_v28  ;;  %v6911_v57 = vsub.f32 %v12090_v47, %v13042_v37 }
 0x48c   : > { %6266 = vmatmul.f32.vlgmr.msrb.gmra.mxu2 %v13669_v62  ;;  %v5700_v34 = vpop.f32.mrf.mxu3 }
 0x48d   : > { %v7878_v31 = vadd.f32 %v8242_v39, %v5697_v60  ;;  %6782 = vmatpush.msrb.mxu0 %v12070_v9  ;;  %6983 = vmatpush.msrb.mxu2 %v12078_v27  ;;  %v5463_v13 = vpop.f32.mrf.mxu0  ;;  %v6917_v39 = vsub.f32 %v12096_v45, %v13041_v46 }
 0x48e   : > { %7069 = vmatpush.msrb.mxu3 %v12070_v9  ;;  %v5548_v22 = vpop.f32.mrf.mxu1  ;;  %v5631_v25 = vpop.f32.mrf.mxu2 }
 0x48f   : > { %7974 = vst [vmem:[%s11399_s14 + $0x1d8] sm:$0xff] %v7878_v31  ;;  %6784 = vmatpush.msrb.mxu0 %v12075_v42  ;;  %v5549_v33 = vadd.f32 %v5548_v22, %v5459_v21  ;;  %6986 = vmatpush.msrb.mxu2 %v12084_v2  ;;  %v6906_v21 = vand.u32 4294901760, %v6905_v63  ;;  %v5464_v31 = vadd.f32 %v5463_v13, %v11971_v51  ;;  %v8243_v22 = vld [vmem:[%s8524_s11 + $0x218] sm:$0xff]  ;;  %v6918_v46 = vand.u32 4294901760, %v6917_v39 }
 0x490   : > { %7071 = vmatpush.msrb.mxu3 %v12075_v42 }
 0x491   : > { %v5632_v19 = vadd.f32 %v5631_v25, %v5549_v33  ;;  %6786 = vmatpush.msrb.mxu0 %v12081_v24  ;;  %6989 = vmatpush.msrb.mxu2 %v12090_v47  ;;  %v6912_v33 = vand.u32 4294901760, %v6911_v57  ;;  %v8244_v57 = vld [vmem:[%s8524_s11 + $0x258] sm:$0xff] }
 0x492   : > { %7073 = vmatpush.msrb.mxu3 %v12081_v24  ;;  %6128 = vmatmul.f32.gmra.mxu0 %v10754_v8 }
 0x493   : > { %v5701_v60 = vadd.f32 %v5700_v34, %v5632_v19  ;;  %6193 = vmatmul.f32.vlgmr.msrb.gmra.mxu1 %v10728_v44  ;;  %6399 = vmatmul.f32.gmra.mxu3 %v10754_v8 }
 0x494   : > { %6901 = vmatpush.msrb.mxu1 %v6900_v4  ;;  %6992 = vmatpush.msrb.mxu2 %v12096_v45  ;;  %v5704_v34 = vpop.f32.mrf.mxu3 }
 0x495   : > { %v7886_v11 = vadd.f32 %v8243_v22, %v5701_v60  ;;  %6274 = vmatmul.f32.gmra.mxu2 %v13673_v41  ;;  %v5468_v25 = vpop.f32.mrf.mxu0 }
 0x496   : > { %6907 = vmatpush.msrb.mxu1 %v6906_v21  ;;  %v5554_v19 = vpop.f32.mrf.mxu1  ;;  %v5635_v4 = vpop.f32.mrf.mxu2  ;;  %v5469_v13 = vadd.f32 %v5468_v25, %v11981_v29 }
 0x497   : > { %7982 = vst [vmem:[%s11399_s14 + $0x218] sm:$0xff] %v7886_v11  ;;  %v5555_v63 = vadd.f32 %v5554_v19, %v5464_v31 }
 0x498   : > { %6913 = vmatpush.msrb.mxu1 %v6912_v33 }
 0x499   : > { %v5636_v37 = vadd.f32 %v5635_v4, %v5555_v63 }
 0x49a   : > { %6919 = vmatpush.msrb.mxu1 %v6918_v46  ;;  %6132 = vmatmul.f32.gmra.mxu0 %v13677_v48 }
 0x49b   : > { %v5705_v51 = vadd.f32 %v5704_v34, %v5636_v37  ;;  %6197 = vmatmul.f32.gmra.mxu1 %v10754_v8  ;;  %6403 = vmatmul.f32.gmra.mxu3 %v13677_v48  ;;  %v8245_v34 = vld [vmem:[%s8524_s11 + $0x298] sm:$0xff] }
 0x49c   : > { %v5708_v21 = vpop.f32.mrf.mxu3 }
 0x49d   : > { %v7894_v60 = vadd.f32 %v8244_v57, %v5705_v51  ;;  %6282 = vmatmul.f32.gmra.mxu2 %v13675_v52  ;;  %v5473_v31 = vpop.f32.mrf.mxu0 }
 0x49e   : > { %v5560_v22 = vpop.f32.mrf.mxu1  ;;  %v5639_v37 = vpop.f32.mrf.mxu2  ;;  %v5474_v29 = vadd.f32 %v5473_v31, %v11991_v58 }
 0x49f   : > { %7990 = vst [vmem:[%s11399_s14 + $0x258] sm:$0xff] %v7894_v60  ;;  %v5561_v46 = vadd.f32 %v5560_v22, %v5469_v13  ;;  %v13718_v60 = vld [vmem:[#allocation75_spill] sm:$0xff] }
 0x4a1   : > { %v5640_v39 = vadd.f32 %v5639_v37, %v5561_v46 }
 0x4a2   : > { %6136 = vmatmul.f32.gmra.mxu0 %v13681_v50 }
 0x4a3   : > { %v5709_v11 = vadd.f32 %v5708_v21, %v5640_v39  ;;  %6201 = vmatmul.f32.gmra.mxu1 %v13677_v48  ;;  %6407 = vmatmul.f32.gmra.mxu3 %v13681_v50  ;;  %v8246_v21 = vld [vmem:[%s8524_s11 + $0x2d8] sm:$0xff] }
 0x4a4   : > { %v5712_v25 = vpop.f32.mrf.mxu3 }
 0x4a5   : > { %v7902_v33 = vadd.f32 %v8245_v34, %v5709_v11  ;;  %6290 = vmatmul.f32.gmra.mxu2 %v13676_v5  ;;  %v5741_v63 = vpop.f32.mrf.mxu0  ;;  %v13719_v34 = vld [vmem:[#allocation57_spill] sm:$0xff] }
 0x4a6   : > { %v5566_v19 = vpop.f32.mrf.mxu1  ;;  %v5643_v51 = vpop.f32.mrf.mxu2  ;;  %v5742_v58 = vadd.f32 %v5741_v63, %v13718_v60 }
 0x4a7   : > { %7998 = vst [vmem:[%s11399_s14 + $0x298] sm:$0xff] %v7902_v33  ;;  %v5567_v4 = vadd.f32 %v5566_v19, %v5474_v29 }
 0x4a9   : > { %v5644_v13 = vadd.f32 %v5643_v51, %v5567_v4 }
 0x4aa   : > { %6140 = vmatmul.f32.gmra.mxu0 %v10851_v3 }
 0x4ab   : > { %v5713_v57 = vadd.f32 %v5712_v25, %v5644_v13  ;;  %6205 = vmatmul.f32.gmra.mxu1 %v13681_v50  ;;  %6411 = vmatmul.f32.gmra.mxu3 %v10851_v3 }
 0x4ac   : > { %v6026_v22 = vpop.f32.mrf.mxu3 }
 0x4ad   : > { %v7910_v31 = vadd.f32 %v8246_v21, %v5713_v57  ;;  %6298 = vmatmul.f32.gmra.mxu2 %v13680_v55  ;;  %v13720_v21 = vld [vmem:[#allocation72_spill] sm:$0xff] }
 0x4ae   : > { %v5749_v46 = vpop.f32.mrf.mxu0  ;;  %v5944_v11 = vpop.f32.mrf.mxu2  ;;  %v13726_v55 = vld [vmem:[#allocation80_spill] sm:$0xff] }
 0x4af   : > { %8006 = vst [vmem:[%s11399_s14 + $0x2d8] sm:$0xff] %v7910_v31  ;;  %v5870_v37 = vpop.f32.mrf.mxu1  ;;  %v5750_v33 = vadd.f32 %v5749_v46, %v13719_v34  ;;  %v3473_v5 = vmax.f32 %v13726_v55, 0.0 }
 0x4b0   : > { %v5871_v39 = vadd.f32 %v5870_v37, %v5742_v58 }
 0x4b1   : > { %v12205_v55 = vand.u32 4294901760, %v3473_v5 }
 0x4b2   : > { %v5945_v29 = vadd.f32 %v5944_v11, %v5871_v39  ;;  %6144 = vmatmul.f32.gmra.mxu0 %v10884_v54 }
 0x4b3   : > { %6209 = vmatmul.f32.gmra.mxu1 %v10851_v3  ;;  %6415 = vmatmul.f32.gmra.mxu3 %v10884_v54 }
 0x4b4   : > { %v12158_v25 = vadd.f32 %v6026_v22, %v5945_v29 }
 0x4b5   : > { %6306 = vmatmul.f32.gmra.mxu2 %v13683_v15  ;;  %v6032_v19 = vpop.f32.mrf.mxu3 }
 0x4b6   : > { %v5757_v63 = vpop.f32.mrf.mxu0 }
 0x4b7   : > { %v5874_v4 = vpop.f32.mrf.mxu1  ;;  %v5949_v13 = vpop.f32.mrf.mxu2  ;;  %v5758_v31 = vadd.f32 %v5757_v63, %v13720_v21 }
 0x4b8   : > { %v5875_v51 = vadd.f32 %v5874_v4, %v5750_v33 }
 0x4ba   : > { %v5950_v57 = vadd.f32 %v5949_v13, %v5875_v51  ;;  %6148 = vmatmul.f32.gmra.mxu0 %v13574_v26 }
 0x4bb   : > { %6213 = vmatmul.f32.gmra.mxu1 %v10884_v54  ;;  %6419 = vmatmul.f32.gmra.mxu3 %v13574_v26 }
 0x4bc   : > { %v12164_v58 = vadd.f32 %v6032_v19, %v5950_v57  ;;  %v13721_v19 = vld [vmem:[#allocation9_spill] sm:$0xff] }
 0x4bd   : > { %6314 = vmatmul.f32.gmra.mxu2 %v13685_v49  ;;  %v6038_v22 = vpop.f32.mrf.mxu3 }
 0x4be   : > { %v5765_v46 = vpop.f32.mrf.mxu0 }
 0x4bf   : > { %v5878_v37 = vpop.f32.mrf.mxu1  ;;  %v5954_v11 = vpop.f32.mrf.mxu2  ;;  %v5766_v4 = vadd.f32 %v5765_v46, %v13721_v19 }
 0x4c0   : > { %v5879_v39 = vadd.f32 %v5878_v37, %v5758_v31  ;;  %v13722_v37 = vld [vmem:[#allocation68_spill] sm:$0xff] }
 0x4c2   : > { %v5955_v29 = vadd.f32 %v5954_v11, %v5879_v39  ;;  %6152 = vmatmul.f32.gmra.mxu0 %v10934_v35 }
 0x4c3   : > { %6217 = vmatmul.f32.gmra.mxu1 %v13574_v26  ;;  %6423 = vmatmul.f32.gmra.mxu3 %v10934_v35 }
 0x4c4   : > { %v12171_v33 = vadd.f32 %v6038_v22, %v5955_v29 }
 0x4c5   : > { %6322 = vmatmul.f32.gmra.mxu2 %v13687_v1  ;;  %v6044_v63 = vpop.f32.mrf.mxu3 }
 0x4c6   : > { %v5773_v51 = vpop.f32.mrf.mxu0 }
 0x4c7   : > { %v5882_v13 = vpop.f32.mrf.mxu1  ;;  %v5959_v7 = vpop.f32.mrf.mxu2  ;;  %v5774_v39 = vadd.f32 %v5773_v51, %v13722_v37 }
 0x4c8   : > { %v5883_v57 = vadd.f32 %v5882_v13, %v5766_v4 }
 0x4ca   : > { %v5960_v31 = vadd.f32 %v5959_v7, %v5883_v57  ;;  %6156 = vmatmul.f32.gmra.mxu0 %v10965_v43  ;;  %v13724_v57 = vld [vmem:[#allocation84_spill] sm:$0xff] }
 0x4cb   : > { %6221 = vmatmul.f32.gmra.mxu1 %v10934_v35  ;;  %6427 = vmatmul.f32.gmra.mxu3 %v10965_v43 }
 0x4cc   : > { %v12179_v22 = vadd.f32 %v6044_v63, %v5960_v31  ;;  %v13723_v63 = vld [vmem:[#allocation8_spill] sm:$0xff]  ;;  %v3489_v31 = vmax.f32 %v13724_v57, 0.0 }
 0x4cd   : > { %6330 = vmatmul.f32.gmra.mxu2 %v13689_v0  ;;  %v6050_v46 = vpop.f32.mrf.mxu3 }
 0x4ce   : > { %v5781_v11 = vpop.f32.mrf.mxu0 }
 0x4cf   : > { %v5886_v29 = vpop.f32.mrf.mxu1  ;;  %v5964_v1 = vpop.f32.mrf.mxu2  ;;  %v5782_v51 = vadd.f32 %v5781_v11, %v13723_v63 }
 0x4d0   : > { %v5887_v23 = vadd.f32 %v5886_v29, %v5774_v39 }
 0x4d2   : > { %v5965_v4 = vadd.f32 %v5964_v1, %v5887_v23  ;;  %6160 = vmatmul.f32.gmra.mxu0 %v10989_v53  ;;  %v13725_v1 = vld [vmem:[#allocation59_spill] sm:$0xff] }
 0x4d3   : > { %6225 = vmatmul.f32.gmra.mxu1 %v10965_v43  ;;  %6431 = vmatmul.f32.gmra.mxu3 %v10989_v53  ;;  %v3481_v23 = vmax.f32 %v13725_v1, 0.0 }
 0x4d4   : > { %v12185_v7 = vadd.f32 %v6050_v46, %v5965_v4  ;;  %v12193_v46 = vand.u32 4294901760, %v3489_v31  ;;  %v13727_v4 = vld [vmem:[#allocation63_spill] sm:$0xff] }
 0x4d5   : > { %6338 = vmatmul.f32.gmra.mxu2 %v13699_v36  ;;  %v6056_v13 = vpop.f32.mrf.mxu3  ;;  %v3465_v57 = vmax.f32 %v13727_v4, 0.0  ;;  %v12201_v36 = vand.u32 4294901760, %v3481_v23 }
 0x4d6   : > { %v5789_v0 = vpop.f32.mrf.mxu0 }
 0x4d7   : > { %v5890_v49 = vpop.f32.mrf.mxu1  ;;  %v5969_v29 = vpop.f32.mrf.mxu2  ;;  %v12210_v41 = vand.u32 4294901760, %v3465_v57  ;;  %v12213_v4 = vsub.f32 %v3481_v23, %v12201_v36 }
 0x4d8   : > { %v5891_v39 = vadd.f32 %v5890_v49, %v5782_v51  ;;  %v13728_v49 = vld [vmem:[#allocation70_spill] sm:$0xff] }
 0x4d9   : > { %v5790_v51 = vadd.f32 %v5789_v0, %v13728_v49  ;;  %v12216_v0 = vsub.f32 %v3473_v5, %v12205_v55  ;;  %v13066_v23 = vand.u32 4294901760, %v12213_v4 }
 0x4da   : > { %v5970_v15 = vadd.f32 %v5969_v29, %v5891_v39  ;;  %6164 = vmatmul.f32.gmra.mxu0 %v11012_v16  ;;  %v12208_v29 = vsub.f32 %v3489_v31, %v12193_v46 }
 0x4db   : > { %6229 = vmatmul.f32.gmra.mxu1 %v10989_v53  ;;  %6435 = vmatmul.f32.gmra.mxu3 %v11012_v16 }
 0x4dc   : > { %v12197_v11 = vadd.f32 %v6056_v13, %v5970_v15  ;;  %13729 = vst [vmem:[#allocation73_spill] sm:$0xff] %v12208_v29 }
 0x4dd   : > { %6346 = vmatmul.f32.gmra.mxu2 %v13710_v14  ;;  %v6062_v39 = vpop.f32.mrf.mxu3  ;;  %v13061_v14 = vand.u32 4294901760, %v12208_v29 }
 0x4de   : > { %v5797_v1 = vpop.f32.mrf.mxu0 }
 0x4df   : > { %v5894_v52 = vpop.f32.mrf.mxu1  ;;  %v5974_v13 = vpop.f32.mrf.mxu2  ;;  %v5798_v31 = vadd.f32 %v5797_v1, %v11301_v10  ;;  %v13064_v1 = vand.u32 4294901760, %v12216_v0 }
 0x4e0   : > { %v5895_v15 = vadd.f32 %v5894_v52, %v5790_v51  ;;  %v12226_v52 = vsub.f32 %v3465_v57, %v12210_v41  ;;  %v7431_v57 = vsub.f32 %v12213_v4, %v13066_v23 }
 0x4e2   : > { %v5975_v62 = vadd.f32 %v5974_v13, %v5895_v15  ;;  %6168 = vmatmul.f32.gmra.mxu0 %v11048_v20  ;;  %v7425_v13 = vsub.f32 %v12208_v29, %v13061_v14  ;;  %v13065_v10 = vand.u32 4294901760, %v12226_v52  ;;  %v7437_v14 = vsub.f32 %v12216_v0, %v13064_v1 }
 0x4e3   : > { %6233 = vmatmul.f32.gmra.mxu1 %v11012_v16  ;;  %6439 = vmatmul.f32.gmra.mxu3 %v11048_v20 }
 0x4e4   : > { %v12222_v18 = vadd.f32 %v6062_v39, %v5975_v62 }
 0x4e5   : > { %6354 = vmatmul.f32.gmra.mxu2 %v13717_v30  ;;  %v6068_v5 = vpop.f32.mrf.mxu3  ;;  %v7426_v30 = vand.u32 4294901760, %v7425_v13  ;;  %v13731_v13 = vand.u32 4294901760, %v12084_v2  ;;  %v13733_v2 = vand.u32 4294901760, %v12096_v45 }
 0x4e6   : > { %v5805_v51 = vpop.f32.mrf.mxu0 }
 0x4e7   : > { %v5898_v15 = vpop.f32.mrf.mxu1  ;;  %v5979_v39 = vpop.f32.mrf.mxu2 }
 0x4e8   : > { %v5899_v62 = vadd.f32 %v5898_v15, %v5798_v31  ;;  %v13730_v31 = vand.u32 4294901760, %v12078_v27  ;;  %v7432_v15 = vand.u32 4294901760, %v7431_v57 }
 0x4ea   : > { %v5980_v6 = vadd.f32 %v5979_v39, %v5899_v62  ;;  %6469 = vmatmul.f32.vlgmr.msra.gmra.mxu0 %v13527_v32  ;;  %v7443_v62 = vsub.f32 %v12226_v52, %v13065_v10  ;;  %v5806_v39 = vadd.f32 %v5805_v51, %v11336_v12 }
 0x4eb   : > { %6237 = vmatmul.f32.gmra.mxu1 %v11048_v20  ;;  %6719 = vmatmul.f32.vlgmr.msra.gmra.mxu3 %v10728_v44 }
 0x4ec   : > { %v12243_v29 = vadd.f32 %v6068_v5, %v5980_v6  ;;  %7162 = vmatpush.msra.mxu0 %v13730_v31  ;;  %7427 = vmatpush.msra.mxu3 %v7426_v30  ;;  %v7438_v5 = vand.u32 4294901760, %v7437_v14  ;;  %v13732_v30 = vand.u32 4294901760, %v12090_v47  ;;  %v7444_v51 = vand.u32 4294901760, %v7443_v62 }
 0x4ed   : > { %6650 = vmatmul.f32.vlgmr.msra.gmra.mxu2 %v10728_v44  ;;  %v6074_v6 = vpop.f32.mrf.mxu3 }
 0x4ee   : > { %7166 = vmatpush.msra.mxu0 %v13731_v13  ;;  %7306 = vmatpush.msra.mxu2 %v12193_v46  ;;  %v5813_v27 = vpop.f32.mrf.mxu0 }
 0x4ef   : > { %7433 = vmatpush.msra.mxu3 %v7432_v15  ;;  %v5902_v31 = vpop.f32.mrf.mxu1  ;;  %v5984_v1 = vpop.f32.mrf.mxu2  ;;  %v5814_v14 = vadd.f32 %v5813_v27, %v13648_v59 }
 0x4f0   : > { %7170 = vmatpush.msra.mxu0 %v13732_v30  ;;  %v5903_v57 = vadd.f32 %v5902_v31, %v5806_v39  ;;  %7308 = vmatpush.msra.mxu2 %v12201_v36 }
 0x4f1   : > { %7439 = vmatpush.msra.mxu3 %v7438_v5  ;;  %v13735_v5 = vld [vmem:[#allocation41_spill] sm:$0xff] }
 0x4f2   : > { %v5985_v10 = vadd.f32 %v5984_v1, %v5903_v57  ;;  %7174 = vmatpush.msra.mxu0 %v13733_v2  ;;  %7310 = vmatpush.msra.mxu2 %v12205_v55  ;;  %v13737_v2 = vld [vmem:[#allocation97_spill] sm:$0xff] }
 0x4f3   : > { %7445 = vmatpush.msra.mxu3 %v7444_v51  ;;  %6474 = vmatmul.f32.gmra.mxu0 %v13532_v17 }
 0x4f4   : > { %v12262_v15 = vadd.f32 %v6074_v6, %v5985_v10  ;;  %6551 = vmatmul.f32.vlgmr.msra.gmra.mxu1 %v13647_v56  ;;  %6723 = vmatmul.f32.gmra.mxu3 %v10754_v8  ;;  %v13734_v6 = vld [vmem:[#allocation95_spill] sm:$0xff] }
 0x4f5   : > { %7237 = vmatpush.msra.mxu1 %v12065_v28  ;;  %7312 = vmatpush.msra.mxu2 %v12210_v41  ;;  %v6080_v47 = vpop.f32.mrf.mxu3 }
 0x4f6   : > { %6654 = vmatmul.f32.gmra.mxu2 %v10754_v8  ;;  %v5821_v45 = vpop.f32.mrf.mxu0 }
 0x4f7   : > { %7239 = vmatpush.msra.mxu1 %v12070_v9  ;;  %v5906_v10 = vpop.f32.mrf.mxu1  ;;  %v5989_v62 = vpop.f32.mrf.mxu2  ;;  %v5822_v28 = vadd.f32 %v5821_v45, %v13649_v38 }
 0x4f8   : > { %v5907_v1 = vadd.f32 %v5906_v10, %v5814_v14  ;;  %v13738_v14 = vld [vmem:[#allocation85_spill] sm:$0xff] }
 0x4f9   : > { %7241 = vmatpush.msra.mxu1 %v12075_v42 }
 0x4fa   : > { %v5990_v39 = vadd.f32 %v5989_v62, %v5907_v1 }
 0x4fb   : > { %7243 = vmatpush.msra.mxu1 %v12081_v24  ;;  %6479 = vmatmul.f32.gmra.mxu0 %v13734_v6  ;;  %v13736_v24 = vld [vmem:[#allocation103_spill] sm:$0xff] }
 0x4fc   : > { %v12275_v13 = vadd.f32 %v6080_v47, %v5990_v39  ;;  %6557 = vmatmul.f32.gmra.mxu1 %v13735_v5  ;;  %6727 = vmatmul.f32.gmra.mxu3 %v13677_v48 }
 0x4fd   : > { %v6086_v9 = vpop.f32.mrf.mxu3 }
 0x4fe   : > { %6658 = vmatmul.f32.gmra.mxu2 %v13677_v48  ;;  %v5829_v27 = vpop.f32.mrf.mxu0 }
 0x4ff   : > { %v5910_v31 = vpop.f32.mrf.mxu1  ;;  %v5994_v42 = vpop.f32.mrf.mxu2  ;;  %v5830_v47 = vadd.f32 %v5829_v27, %v13738_v14 }
 0x500   : > { %v5911_v30 = vadd.f32 %v5910_v31, %v5822_v28 }
 0x502   : > { %v5995_v57 = vadd.f32 %v5994_v42, %v5911_v30  ;;  %v13740_v30 = vld [vmem:[#allocation105_spill] sm:$0xff] }
 0x503   : > { %6484 = vmatmul.f32.gmra.mxu0 %v13736_v24 }
 0x504   : > { %v12281_v51 = vadd.f32 %v6086_v9, %v5995_v57  ;;  %6563 = vmatmul.f32.gmra.mxu1 %v13737_v2  ;;  %6731 = vmatmul.f32.gmra.mxu3 %v13681_v50  ;;  %v13739_v9 = vld [vmem:[#allocation107_spill] sm:$0xff] }
 0x505   : > { %v6092_v45 = vpop.f32.mrf.mxu3 }
 0x506   : > { %6662 = vmatmul.f32.gmra.mxu2 %v13681_v50  ;;  %v6125_v1 = vpop.f32.mrf.mxu0 }
 0x507   : > { %v5914_v10 = vpop.f32.mrf.mxu1  ;;  %v5999_v39 = vpop.f32.mrf.mxu2  ;;  %v6126_v27 = vadd.f32 %v6125_v1, %v12158_v25 }
 0x508   : > { %v5915_v62 = vadd.f32 %v5914_v10, %v5830_v47 }
 0x50a   : > { %v6000_v28 = vadd.f32 %v5999_v39, %v5915_v62 }
 0x50b   : > { %6489 = vmatmul.f32.gmra.mxu0 %v13739_v9  ;;  %v13742_v9 = vld [vmem:[#allocation112_spill] sm:$0xff] }
 0x50c   : > { %v12288_v31 = vadd.f32 %v6092_v45, %v6000_v28  ;;  %6569 = vmatmul.f32.gmra.mxu1 %v13740_v30  ;;  %6735 = vmatmul.f32.gmra.mxu3 %v10851_v3  ;;  %v8247_v45 = vld [vmem:[%s8524_s11 + $0x20] sm:$0xff]  ;;  %v13741_v28 = vld [vmem:[#allocation114_spill] sm:$0xff] }
 0x50d   : > { %v6396_v42 = vpop.f32.mrf.mxu3 }
 0x50e   : > { %6666 = vmatmul.f32.gmra.mxu2 %v10851_v3 }
 0x50f   : > { %v6129_v57 = vpop.f32.mrf.mxu0  ;;  %v6267_v47 = vpop.f32.mrf.mxu2 }
 0x510   : > { %v6194_v23 = vpop.f32.mrf.mxu1  ;;  %v6268_v10 = vadd.f32 %v6267_v47, %v13718_v60  ;;  %v6130_v25 = vadd.f32 %v6129_v57, %v12164_v58 }
 0x511   : > { %v6195_v50 = vadd.f32 %v6194_v23, %v6126_v27 }
 0x512   : > { %v12297_v39 = vadd.f32 %v6396_v42, %v6268_v10  ;;  %v8248_v42 = vld [vmem:[%s8524_s11 + $0x60] sm:$0xff] }
 0x513   : > { %v7823_v62 = vadd.f32 %v8247_v45, %v6195_v50  ;;  %6494 = vmatmul.f32.gmra.mxu0 %v13741_v28  ;;  %v13743_v28 = vld [vmem:[#allocation121_spill] sm:$0xff] }
 0x514   : > { %6575 = vmatmul.f32.gmra.mxu1 %v13742_v9  ;;  %6739 = vmatmul.f32.gmra.mxu3 %v10884_v54 }
 0x515   : > { %7919 = vst [vmem:[%s11399_s14 + $0x20] sm:$0xff] %v7823_v62  ;;  %v13744_v62 = vld [vmem:[#allocation119_spill] sm:$0xff] }
 0x516   : > { %6670 = vmatmul.f32.gmra.mxu2 %v10884_v54  ;;  %v6400_v23 = vpop.f32.mrf.mxu3 }
 0x517   : > { %v6133_v1 = vpop.f32.mrf.mxu0 }
 0x518   : > { %v6198_v27 = vpop.f32.mrf.mxu1  ;;  %v6275_v60 = vpop.f32.mrf.mxu2  ;;  %v6134_v58 = vadd.f32 %v6133_v1, %v12171_v33 }
 0x519   : > { %v6199_v47 = vadd.f32 %v6198_v27, %v6130_v25  ;;  %v6276_v50 = vadd.f32 %v6275_v60, %v13719_v34 }
 0x51b   : > { %v7831_v10 = vadd.f32 %v8248_v42, %v6199_v47  ;;  %v12307_v45 = vadd.f32 %v6400_v23, %v6276_v50  ;;  %6499 = vmatmul.f32.gmra.mxu0 %v13743_v28  ;;  %v8249_v47 = vld [vmem:[%s8524_s11 + $0xa0] sm:$0xff] }
 0x51c   : > { %6581 = vmatmul.f32.gmra.mxu1 %v13744_v62  ;;  %6743 = vmatmul.f32.gmra.mxu3 %v13574_v26  ;;  %v13745_v28 = vld [vmem:[#allocation128_spill] sm:$0xff] }
 0x51d   : > { %7927 = vst [vmem:[%s11399_s14 + $0x60] sm:$0xff] %v7831_v10  ;;  %v13746_v10 = vld [vmem:[#allocation124_spill] sm:$0xff] }
 0x51e   : > { %6674 = vmatmul.f32.gmra.mxu2 %v13574_v26  ;;  %v6404_v57 = vpop.f32.mrf.mxu3 }
 0x51f   : > { %v6137_v25 = vpop.f32.mrf.mxu0 }
 0x520   : > { %v6202_v60 = vpop.f32.mrf.mxu1  ;;  %v6283_v34 = vpop.f32.mrf.mxu2  ;;  %v6138_v33 = vadd.f32 %v6137_v25, %v12179_v22 }
 0x521   : > { %v6203_v27 = vadd.f32 %v6202_v60, %v6134_v58  ;;  %v6284_v23 = vadd.f32 %v6283_v34, %v13720_v21 }
 0x523   : > { %v7839_v50 = vadd.f32 %v8249_v47, %v6203_v27  ;;  %v12317_v42 = vadd.f32 %v6404_v57, %v6284_v23  ;;  %6504 = vmatmul.f32.gmra.mxu0 %v13745_v28  ;;  %v8250_v27 = vld [vmem:[%s8524_s11 + $0xe0] sm:$0xff]  ;;  %v13747_v28 = vld [vmem:[#allocation134_spill] sm:$0xff] }
 0x524   : > { %6587 = vmatmul.f32.gmra.mxu1 %v13746_v10  ;;  %6747 = vmatmul.f32.gmra.mxu3 %v10934_v35 }
 0x525   : > { %7935 = vst [vmem:[%s11399_s14 + $0xa0] sm:$0xff] %v7839_v50  ;;  %v13748_v50 = vld [vmem:[#allocation131_spill] sm:$0xff] }
 0x526   : > { %6678 = vmatmul.f32.gmra.mxu2 %v10934_v35  ;;  %v6408_v1 = vpop.f32.mrf.mxu3 }
 0x527   : > { %v6141_v58 = vpop.f32.mrf.mxu0 }
 0x528   : > { %v6206_v34 = vpop.f32.mrf.mxu1  ;;  %v6291_v21 = vpop.f32.mrf.mxu2  ;;  %v6142_v22 = vadd.f32 %v6141_v58, %v12185_v7 }
 0x529   : > { %v6207_v60 = vadd.f32 %v6206_v34, %v6138_v33  ;;  %v6292_v57 = vadd.f32 %v6291_v21, %v13721_v19 }
 0x52b   : > { %v7847_v23 = vadd.f32 %v8250_v27, %v6207_v60  ;;  %v12327_v47 = vadd.f32 %v6408_v1, %v6292_v57  ;;  %6509 = vmatmul.f32.gmra.mxu0 %v13747_v28  ;;  %v8251_v60 = vld [vmem:[%s8524_s11 + $0x120] sm:$0xff]  ;;  %v13749_v28 = vld [vmem:[#allocation137_spill] sm:$0xff] }
 0x52c   : > { %6593 = vmatmul.f32.gmra.mxu1 %v13748_v50  ;;  %6751 = vmatmul.f32.gmra.mxu3 %v10965_v43 }
 0x52d   : > { %7943 = vst [vmem:[%s11399_s14 + $0xe0] sm:$0xff] %v7847_v23  ;;  %v13750_v23 = vld [vmem:[#allocation136_spill] sm:$0xff] }
 0x52e   : > { %6682 = vmatmul.f32.gmra.mxu2 %v10965_v43  ;;  %v6412_v25 = vpop.f32.mrf.mxu3 }
 0x52f   : > { %v6145_v33 = vpop.f32.mrf.mxu0 }
 0x530   : > { %v6210_v21 = vpop.f32.mrf.mxu1  ;;  %v6299_v19 = vpop.f32.mrf.mxu2  ;;  %v6146_v7 = vadd.f32 %v6145_v33, %v12197_v11 }
 0x531   : > { %v6211_v34 = vadd.f32 %v6210_v21, %v6142_v22  ;;  %v6300_v1 = vadd.f32 %v6299_v19, %v13722_v37 }
 0x533   : > { %v7855_v57 = vadd.f32 %v8251_v60, %v6211_v34  ;;  %v12337_v27 = vadd.f32 %v6412_v25, %v6300_v1  ;;  %6514 = vmatmul.f32.gmra.mxu0 %v13749_v28  ;;  %v8252_v34 = vld [vmem:[%s8524_s11 + $0x160] sm:$0xff] }
 0x534   : > { %6599 = vmatmul.f32.gmra.mxu1 %v13750_v23  ;;  %6755 = vmatmul.f32.gmra.mxu3 %v10989_v53 }
 0x535   : > { %7951 = vst [vmem:[%s11399_s14 + $0x120] sm:$0xff] %v7855_v57  ;;  %v13751_v57 = vld [vmem:[#allocation140_spill] sm:$0xff] }
 0x536   : > { %6686 = vmatmul.f32.gmra.mxu2 %v10989_v53  ;;  %v6416_v58 = vpop.f32.mrf.mxu3 }
 0x537   : > { %v6149_v22 = vpop.f32.mrf.mxu0 }
 0x538   : > { %v6214_v19 = vpop.f32.mrf.mxu1  ;;  %v6307_v37 = vpop.f32.mrf.mxu2  ;;  %v6150_v11 = vadd.f32 %v6149_v22, %v12222_v18 }
 0x539   : > { %v6215_v21 = vadd.f32 %v6214_v19, %v6146_v7  ;;  %v6308_v25 = vadd.f32 %v6307_v37, %v13723_v63 }
 0x53b   : > { %v7863_v1 = vadd.f32 %v8252_v34, %v6215_v21  ;;  %v12347_v60 = vadd.f32 %v6416_v58, %v6308_v25  ;;  %6519 = vmatmul.f32.gmra.mxu0 %v13606_v40  ;;  %v8253_v21 = vld [vmem:[%s8524_s11 + $0x1a0] sm:$0xff] }
 0x53c   : > { %6605 = vmatmul.f32.gmra.mxu1 %v13751_v57  ;;  %6759 = vmatmul.f32.gmra.mxu3 %v11012_v16 }
 0x53d   : > { %7959 = vst [vmem:[%s11399_s14 + $0x160] sm:$0xff] %v7863_v1  ;;  %v13752_v1 = vld [vmem:[#allocation143_spill] sm:$0xff] }
 0x53e   : > { %6690 = vmatmul.f32.gmra.mxu2 %v11012_v16  ;;  %v6420_v33 = vpop.f32.mrf.mxu3  ;;  %v13754_v16 = vld [vmem:[#allocation56_spill] sm:$0xff] }
 0x53f   : > { %v6153_v7 = vpop.f32.mrf.mxu0 }
 0x540   : > { %v6218_v37 = vpop.f32.mrf.mxu1  ;;  %v6315_v63 = vpop.f32.mrf.mxu2  ;;  %v6154_v18 = vadd.f32 %v6153_v7, %v12243_v29  ;;  %v13756_v29 = vld [vmem:[#allocation73_spill] sm:$0xff] }
 0x541   : > { %v6219_v19 = vadd.f32 %v6218_v37, %v6150_v11  ;;  %v6316_v58 = vadd.f32 %v6315_v63, %v13728_v49 }
 0x543   : > { %v7871_v25 = vadd.f32 %v8253_v21, %v6219_v19  ;;  %v12357_v34 = vadd.f32 %v6420_v33, %v6316_v58  ;;  %6524 = vmatmul.f32.gmra.mxu0 %v13611_v61  ;;  %v13753_v19 = vld [vmem:[#allocation86_spill] sm:$0xff]  ;;  %v8254_v58 = vld [vmem:[%s8524_s11 + $0x1e0] sm:$0xff] }
 0x544   : > { %6611 = vmatmul.f32.gmra.mxu1 %v13752_v1  ;;  %6763 = vmatmul.f32.gmra.mxu3 %v11048_v20 }
 0x545   : > { %7967 = vst [vmem:[%s11399_s14 + $0x1a0] sm:$0xff] %v7871_v25  ;;  %v13755_v25 = vld [vmem:[#allocation45_spill] sm:$0xff] }
 0x546   : > { %6694 = vmatmul.f32.gmra.mxu2 %v11048_v20  ;;  %v6424_v22 = vpop.f32.mrf.mxu3 }
 0x547   : > { %v6157_v11 = vpop.f32.mrf.mxu0 }
 0x548   : > { %v6222_v63 = vpop.f32.mrf.mxu1  ;;  %v6323_v49 = vpop.f32.mrf.mxu2  ;;  %v6158_v7 = vadd.f32 %v6157_v11, %v12262_v15  ;;  %v8255_v11 = vld [vmem:[%s8524_s11 + $0x220] sm:$0xff] }
 0x549   : > { %v6223_v37 = vadd.f32 %v6222_v63, %v6154_v18  ;;  %v6324_v33 = vadd.f32 %v6323_v49, %v13753_v19  ;;  %v13757_v18 = vand.u32 4294901760, %v13756_v29 }
 0x54b   : > { %v7879_v21 = vadd.f32 %v8254_v58, %v6223_v37  ;;  %v12367_v61 = vadd.f32 %v6424_v22, %v6324_v33  ;;  %6792 = vmatmul.f32.vlgmr.msrb.gmra.mxu0 %v13755_v25  ;;  %v13758_v58 = vand.u32 4294901760, %v12213_v4 }
 0x54c   : > { %6617 = vmatmul.f32.gmra.mxu1 %v13754_v16  ;;  %7077 = vmatmul.f32.vlgmr.msrb.gmra.mxu3 %v13647_v56 }
 0x54d   : > { %7975 = vst [vmem:[%s11399_s14 + $0x1e0] sm:$0xff] %v7879_v21  ;;  %7509 = vmatpush.msrb.mxu0 %v13756_v29  ;;  %7763 = vmatpush.msrb.mxu3 %v12193_v46  ;;  %v13759_v29 = vand.u32 4294901760, %v12216_v0 }
 0x54e   : > { %6995 = vmatmul.f32.vlgmr.msrb.gmra.mxu2 %v13527_v32  ;;  %v6428_v49 = vpop.f32.mrf.mxu3 }
 0x54f   : > { %7512 = vmatpush.msrb.mxu0 %v12213_v4  ;;  %7688 = vmatpush.msrb.mxu2 %v13757_v18  ;;  %v6161_v22 = vpop.f32.mrf.mxu0  ;;  %v13761_v4 = vand.u32 4294901760, %v12226_v52 }
 0x550   : > { %7765 = vmatpush.msrb.mxu3 %v12201_v36  ;;  %v6226_v63 = vpop.f32.mrf.mxu1  ;;  %v6331_v33 = vpop.f32.mrf.mxu2 }
 0x551   : > { %7515 = vmatpush.msrb.mxu0 %v12216_v0  ;;  %v6227_v37 = vadd.f32 %v6226_v63, %v6158_v7  ;;  %7692 = vmatpush.msrb.mxu2 %v13758_v58  ;;  %v6332_v15 = vadd.f32 %v6331_v33, %v11336_v12  ;;  %v13760_v7 = vld [vmem:[#allocation96_spill] sm:$0xff]  ;;  %v6162_v63 = vadd.f32 %v6161_v22, %v12275_v13 }
 0x552   : > { %7767 = vmatpush.msrb.mxu3 %v12205_v55  ;;  %v13762_v22 = vld [vmem:[#allocation104_spill] sm:$0xff] }
 0x553   : > { %v7887_v21 = vadd.f32 %v8255_v11, %v6227_v37  ;;  %7518 = vmatpush.msrb.mxu0 %v12226_v52  ;;  %7696 = vmatpush.msrb.mxu2 %v13759_v29  ;;  %v12391_v18 = vadd.f32 %v6428_v49, %v6332_v15  ;;  %v8256_v52 = vld [vmem:[%s8524_s11 + $0x260] sm:$0xff] }
 0x554   : > { %7769 = vmatpush.msrb.mxu3 %v12210_v41  ;;  %6800 = vmatmul.f32.gmra.mxu0 %v13760_v7 }
 0x555   : > { %7983 = vst [vmem:[%s11399_s14 + $0x220] sm:$0xff] %v7887_v21  ;;  %6921 = vmatmul.f32.vlgmr.msrb.gmra.mxu1 %v10728_v44  ;;  %7700 = vmatpush.msrb.mxu2 %v13761_v4 }
 0x556   : > { %7593 = vmatpush.msrb.mxu1 %v12193_v46  ;;  %7000 = vmatmul.f32.gmra.mxu2 %v13532_v17  ;;  %v6432_v0 = vpop.f32.mrf.mxu3 }
 0x557   : > { %7083 = vmatmul.f32.gmra.mxu3 %v13735_v5  ;;  %v6165_v49 = vpop.f32.mrf.mxu0 }
 0x558   : > { %7595 = vmatpush.msrb.mxu1 %v12201_v36  ;;  %v6230_v37 = vpop.f32.mrf.mxu1  ;;  %v6339_v58 = vpop.f32.mrf.mxu2  ;;  %v6166_v36 = vadd.f32 %v6165_v49, %v12281_v51 }
 0x559   : > { %v6231_v33 = vadd.f32 %v6230_v37, %v6162_v63  ;;  %v6340_v46 = vadd.f32 %v6339_v58, %v13648_v59  ;;  %v8257_v63 = vld [vmem:[%s8524_s11 + $0x2a0] sm:$0xff] }
 0x55a   : > { %7597 = vmatpush.msrb.mxu1 %v12205_v55 }
 0x55b   : > { %v7895_v15 = vadd.f32 %v8256_v52, %v6231_v33  ;;  %v12407_v13 = vadd.f32 %v6432_v0, %v6340_v46  ;;  %v13763_v33 = vld [vmem:[#allocation111_spill] sm:$0xff] }
 0x55c   : > { %7599 = vmatpush.msrb.mxu1 %v12210_v41  ;;  %6808 = vmatmul.f32.gmra.mxu0 %v13762_v22 }
 0x55d   : > { %7991 = vst [vmem:[%s11399_s14 + $0x260] sm:$0xff] %v7895_v15  ;;  %6925 = vmatmul.f32.gmra.mxu1 %v10754_v8 }
 0x55e   : > { %7005 = vmatmul.f32.gmra.mxu2 %v13734_v6  ;;  %v6436_v55 = vpop.f32.mrf.mxu3 }
 0x55f   : > { %7089 = vmatmul.f32.gmra.mxu3 %v13737_v2  ;;  %v6169_v11 = vpop.f32.mrf.mxu0 }
 0x560   : > { %v6234_v21 = vpop.f32.mrf.mxu1  ;;  %v6347_v4 = vpop.f32.mrf.mxu2  ;;  %v6170_v51 = vadd.f32 %v6169_v11, %v12288_v31  ;;  %v13766_v31 = vld [vmem:[#allocation107_spill] sm:$0xff] }
 0x561   : > { %v6235_v29 = vadd.f32 %v6234_v21, %v6166_v36  ;;  %v6348_v41 = vadd.f32 %v6347_v4, %v13649_v38  ;;  %v13764_v4 = vld [vmem:[#allocation117_spill] sm:$0xff] }
 0x563   : > { %v7903_v0 = vadd.f32 %v8257_v63, %v6235_v29  ;;  %v12417_v37 = vadd.f32 %v6436_v55, %v6348_v41  ;;  %v8258_v55 = vld [vmem:[%s8524_s11 + $0x2e0] sm:$0xff]  ;;  %v13765_v41 = vld [vmem:[#allocation99_spill] sm:$0xff] }
 0x564   : > { %6816 = vmatmul.f32.gmra.mxu0 %v13763_v33 }
 0x565   : > { %7999 = vst [vmem:[%s11399_s14 + $0x2a0] sm:$0xff] %v7903_v0  ;;  %6929 = vmatmul.f32.gmra.mxu1 %v13677_v48 }
 0x566   : > { %7010 = vmatmul.f32.gmra.mxu2 %v13736_v24  ;;  %v6440_v49 = vpop.f32.mrf.mxu3 }
 0x567   : > { %7095 = vmatmul.f32.gmra.mxu3 %v13740_v30  ;;  %v6470_v46 = vpop.f32.mrf.mxu0 }
 0x568   : > { %v6238_v58 = vpop.f32.mrf.mxu1  ;;  %v6355_v15 = vpop.f32.mrf.mxu2  ;;  %v6471_v63 = vadd.f32 %v6470_v46, %v12297_v39 }
 0x569   : > { %v6239_v52 = vadd.f32 %v6238_v58, %v6170_v51  ;;  %v6356_v36 = vadd.f32 %v6355_v15, %v13738_v14  ;;  %v13767_v15 = vld [vmem:[#allocation123_spill] sm:$0xff] }
 0x56b   : > { %v7911_v21 = vadd.f32 %v8258_v55, %v6239_v52  ;;  %v12427_v29 = vadd.f32 %v6440_v49, %v6356_v36  ;;  %v13768_v55 = vld [vmem:[#allocation114_spill] sm:$0xff] }
 0x56c   : > { %6824 = vmatmul.f32.gmra.mxu0 %v13764_v4 }
 0x56d   : > { %8007 = vst [vmem:[%s11399_s14 + $0x2e0] sm:$0xff] %v7911_v21  ;;  %6933 = vmatmul.f32.gmra.mxu1 %v13765_v41 }
 0x56e   : > { %7015 = vmatmul.f32.gmra.mxu2 %v13766_v31  ;;  %v6720_v11 = vpop.f32.mrf.mxu3 }
 0x56f   : > { %7101 = vmatmul.f32.gmra.mxu3 %v13742_v9  ;;  %v8259_v9 = vld [vmem:[%s8524_s11 + $0x28] sm:$0xff] }
 0x570   : > { %v6475_v0 = vpop.f32.mrf.mxu0  ;;  %v6651_v52 = vpop.f32.mrf.mxu2 }
 0x571   : > { %v6552_v51 = vpop.f32.mrf.mxu1  ;;  %v6476_v21 = vadd.f32 %v6475_v0, %v12307_v45 }
 0x572   : > { %v6553_v58 = vadd.f32 %v6552_v51, %v6471_v63 }
 0x574   : > { %v6652_v49 = vadd.f32 %v6651_v52, %v6553_v58  ;;  %6832 = vmatmul.f32.gmra.mxu0 %v13767_v15  ;;  %v13769_v52 = vld [vmem:[#allocation129_spill] sm:$0xff] }
 0x575   : > { %6937 = vmatmul.f32.gmra.mxu1 %v10851_v3 }
 0x576   : > { %v6721_v36 = vadd.f32 %v6720_v11, %v6652_v49  ;;  %7020 = vmatmul.f32.gmra.mxu2 %v13768_v55  ;;  %v13770_v49 = vld [vmem:[#allocation121_spill] sm:$0xff] }
 0x577   : > { %7107 = vmatmul.f32.gmra.mxu3 %v13744_v62  ;;  %v6724_v46 = vpop.f32.mrf.mxu3 }
 0x578   : > { %v7824_v39 = vadd.f32 %v8259_v9, %v6721_v36  ;;  %v6480_v30 = vpop.f32.mrf.mxu0  ;;  %v8260_v9 = vld [vmem:[%s8524_s11 + $0x68] sm:$0xff] }
 0x579   : > { %v6558_v31 = vpop.f32.mrf.mxu1  ;;  %v6655_v51 = vpop.f32.mrf.mxu2  ;;  %v6481_v45 = vadd.f32 %v6480_v30, %v12317_v42  ;;  %v8261_v42 = vld [vmem:[%s8524_s11 + $0xa8] sm:$0xff] }
 0x57a   : > { %7920 = vst [vmem:[%s11399_s14 + $0x28] sm:$0xff] %v7824_v39  ;;  %v6559_v63 = vadd.f32 %v6558_v31, %v6476_v21 }
 0x57c   : > { %v6656_v58 = vadd.f32 %v6655_v51, %v6559_v63  ;;  %6840 = vmatmul.f32.gmra.mxu0 %v13769_v52  ;;  %v13771_v51 = vld [vmem:[#allocation135_spill] sm:$0xff] }
 0x57d   : > { %6941 = vmatmul.f32.gmra.mxu1 %v10884_v54 }
 0x57e   : > { %v6725_v11 = vadd.f32 %v6724_v46, %v6656_v58  ;;  %7025 = vmatmul.f32.gmra.mxu2 %v13770_v49  ;;  %v13772_v58 = vld [vmem:[#allocation128_spill] sm:$0xff] }
 0x57f   : > { %7113 = vmatmul.f32.gmra.mxu3 %v13746_v10  ;;  %v6728_v36 = vpop.f32.mrf.mxu3 }
 0x580   : > { %v7832_v0 = vadd.f32 %v8260_v9, %v6725_v11  ;;  %v6485_v62 = vpop.f32.mrf.mxu0 }
 0x581   : > { %v6564_v39 = vpop.f32.mrf.mxu1  ;;  %v6659_v21 = vpop.f32.mrf.mxu2  ;;  %v6486_v30 = vadd.f32 %v6485_v62, %v12327_v47  ;;  %v8262_v47 = vld [vmem:[%s8524_s11 + $0xe8] sm:$0xff] }
 0x582   : > { %7928 = vst [vmem:[%s11399_s14 + $0x68] sm:$0xff] %v7832_v0  ;;  %v6565_v31 = vadd.f32 %v6564_v39, %v6481_v45 }
 0x584   : > { %v6660_v63 = vadd.f32 %v6659_v21, %v6565_v31  ;;  %6848 = vmatmul.f32.gmra.mxu0 %v13771_v51  ;;  %v13773_v21 = vld [vmem:[#allocation139_spill] sm:$0xff] }
 0x585   : > { %6945 = vmatmul.f32.gmra.mxu1 %v13574_v26 }
 0x586   : > { %v6729_v46 = vadd.f32 %v6728_v36, %v6660_v63  ;;  %7030 = vmatmul.f32.gmra.mxu2 %v13772_v58  ;;  %v13774_v63 = vld [vmem:[#allocation134_spill] sm:$0xff] }
 0x587   : > { %7119 = vmatmul.f32.gmra.mxu3 %v13748_v50  ;;  %v6732_v9 = vpop.f32.mrf.mxu3 }
 0x588   : > { %v7840_v11 = vadd.f32 %v8261_v42, %v6729_v46  ;;  %v6490_v10 = vpop.f32.mrf.mxu0 }
 0x589   : > { %v6570_v0 = vpop.f32.mrf.mxu1  ;;  %v6663_v39 = vpop.f32.mrf.mxu2  ;;  %v6491_v62 = vadd.f32 %v6490_v10, %v12337_v27  ;;  %v8263_v27 = vld [vmem:[%s8524_s11 + $0x128] sm:$0xff] }
 0x58a   : > { %7936 = vst [vmem:[%s11399_s14 + $0xa8] sm:$0xff] %v7840_v11  ;;  %v6571_v45 = vadd.f32 %v6570_v0, %v6486_v30 }
 0x58c   : > { %v6664_v31 = vadd.f32 %v6663_v39, %v6571_v45  ;;  %6856 = vmatmul.f32.gmra.mxu0 %v13773_v21  ;;  %v13775_v39 = vld [vmem:[#allocation66_spill] sm:$0xff] }
 0x58d   : > { %6949 = vmatmul.f32.gmra.mxu1 %v10934_v35 }
 0x58e   : > { %v6733_v36 = vadd.f32 %v6732_v9, %v6664_v31  ;;  %7035 = vmatmul.f32.gmra.mxu2 %v13774_v63 }
 0x58f   : > { %7125 = vmatmul.f32.gmra.mxu3 %v13750_v23  ;;  %v6736_v42 = vpop.f32.mrf.mxu3 }
 0x590   : > { %v7848_v46 = vadd.f32 %v8262_v47, %v6733_v36  ;;  %v6495_v50 = vpop.f32.mrf.mxu0 }
 0x591   : > { %v6576_v11 = vpop.f32.mrf.mxu1  ;;  %v6667_v0 = vpop.f32.mrf.mxu2  ;;  %v6496_v10 = vadd.f32 %v6495_v50, %v12347_v60  ;;  %v8264_v60 = vld [vmem:[%s8524_s11 + $0x168] sm:$0xff] }
 0x592   : > { %7944 = vst [vmem:[%s11399_s14 + $0xe8] sm:$0xff] %v7848_v46  ;;  %v6577_v30 = vadd.f32 %v6576_v11, %v6491_v62 }
 0x594   : > { %v6668_v45 = vadd.f32 %v6667_v0, %v6577_v30  ;;  %6864 = vmatmul.f32.gmra.mxu0 %v13775_v39  ;;  %v13776_v0 = vld [vmem:[#allocation69_spill] sm:$0xff] }
 0x595   : > { %6953 = vmatmul.f32.gmra.mxu1 %v10965_v43 }
 0x596   : > { %v6737_v9 = vadd.f32 %v6736_v42, %v6668_v45  ;;  %7040 = vmatmul.f32.gmra.mxu2 %v13749_v28 }
 0x597   : > { %7131 = vmatmul.f32.gmra.mxu3 %v13751_v57  ;;  %v6740_v36 = vpop.f32.mrf.mxu3  ;;  %v13779_v57 = vld [vmem:[#allocation54_spill] sm:$0xff] }
 0x598   : > { %v7856_v31 = vadd.f32 %v8263_v27, %v6737_v9  ;;  %v6500_v47 = vpop.f32.mrf.mxu0 }
 0x599   : > { %v6582_v46 = vpop.f32.mrf.mxu1  ;;  %v6671_v11 = vpop.f32.mrf.mxu2  ;;  %v6501_v50 = vadd.f32 %v6500_v47, %v12357_v34  ;;  %v8265_v47 = vld [vmem:[%s8524_s11 + $0x1a8] sm:$0xff] }
 0x59a   : > { %7952 = vst [vmem:[%s11399_s14 + $0x128] sm:$0xff] %v7856_v31  ;;  %v6583_v62 = vadd.f32 %v6582_v46, %v6496_v10 }
 0x59c   : > { %v6672_v30 = vadd.f32 %v6671_v11, %v6583_v62  ;;  %6872 = vmatmul.f32.gmra.mxu0 %v13776_v0  ;;  %v13777_v11 = vld [vmem:[#allocation67_spill] sm:$0xff] }
 0x59d   : > { %6957 = vmatmul.f32.gmra.mxu1 %v10989_v53 }
 0x59e   : > { %v6741_v42 = vadd.f32 %v6740_v36, %v6672_v30  ;;  %7045 = vmatmul.f32.gmra.mxu2 %v13606_v40  ;;  %v13778_v36 = vld [vmem:[#allocation141_spill] sm:$0xff] }
 0x59f   : > { %7137 = vmatmul.f32.gmra.mxu3 %v13752_v1  ;;  %v6744_v9 = vpop.f32.mrf.mxu3 }
 0x5a0   : > { %v7864_v45 = vadd.f32 %v8264_v60, %v6741_v42  ;;  %v6505_v27 = vpop.f32.mrf.mxu0 }
 0x5a1   : > { %v6588_v31 = vpop.f32.mrf.mxu1  ;;  %v6675_v46 = vpop.f32.mrf.mxu2  ;;  %v6506_v34 = vadd.f32 %v6505_v27, %v12367_v61  ;;  %v8266_v27 = vld [vmem:[%s8524_s11 + $0x1e8] sm:$0xff] }
 0x5a2   : > { %7960 = vst [vmem:[%s11399_s14 + $0x168] sm:$0xff] %v7864_v45  ;;  %v6589_v10 = vadd.f32 %v6588_v31, %v6501_v50 }
 0x5a4   : > { %v6676_v62 = vadd.f32 %v6675_v46, %v6589_v10  ;;  %6880 = vmatmul.f32.gmra.mxu0 %v13777_v11 }
 0x5a5   : > { %6961 = vmatmul.f32.gmra.mxu1 %v13778_v36 }
 0x5a6   : > { %v6745_v30 = vadd.f32 %v6744_v9, %v6676_v62  ;;  %7050 = vmatmul.f32.gmra.mxu2 %v13779_v57 }
 0x5a7   : > { %7143 = vmatmul.f32.gmra.mxu3 %v13754_v16  ;;  %v6748_v60 = vpop.f32.mrf.mxu3 }
 0x5a8   : > { %v7872_v42 = vadd.f32 %v8265_v47, %v6745_v30  ;;  %v6510_v1 = vpop.f32.mrf.mxu0 }
 0x5a9   : > { %v6594_v45 = vpop.f32.mrf.mxu1  ;;  %v6679_v31 = vpop.f32.mrf.mxu2  ;;  %v6511_v61 = vadd.f32 %v6510_v1, %v12391_v18  ;;  %v8267_v18 = vld [vmem:[%s8524_s11 + $0x228] sm:$0xff] }
 0x5aa   : > { %7968 = vst [vmem:[%s11399_s14 + $0x1a8] sm:$0xff] %v7872_v42  ;;  %v6595_v50 = vadd.f32 %v6594_v45, %v6506_v34 }
 0x5ac   : > { %v6680_v10 = vadd.f32 %v6679_v31, %v6595_v50  ;;  %7176 = vmatmul.f32.vlgmr.msra.gmra.mxu0 %v10728_v44 }
 0x5ad   : > { %6965 = vmatmul.f32.gmra.mxu1 %v11048_v20 }
 0x5ae   : > { %v6749_v9 = vadd.f32 %v6748_v60, %v6680_v10  ;;  %7318 = vmatmul.f32.vlgmr.msra.gmra.mxu2 %v13755_v25 }
 0x5af   : > { %7447 = vmatmul.f32.vlgmr.msra.gmra.mxu3 %v10728_v44  ;;  %v6752_v62 = vpop.f32.mrf.mxu3 }
 0x5b0   : > { %v7880_v46 = vadd.f32 %v8266_v27, %v6749_v9  ;;  %v6515_v30 = vpop.f32.mrf.mxu0 }
 0x5b1   : > { %v6600_v47 = vpop.f32.mrf.mxu1  ;;  %v6683_v42 = vpop.f32.mrf.mxu2  ;;  %v6516_v1 = vadd.f32 %v6515_v30, %v12407_v13 }
 0x5b2   : > { %7976 = vst [vmem:[%s11399_s14 + $0x1e8] sm:$0xff] %v7880_v46  ;;  %v6601_v34 = vadd.f32 %v6600_v47, %v6511_v61  ;;  %v8268_v46 = vld [vmem:[%s8524_s11 + $0x268] sm:$0xff] }
 0x5b4   : > { %v6684_v45 = vadd.f32 %v6683_v42, %v6601_v34  ;;  %7180 = vmatmul.f32.gmra.mxu0 %v10754_v8 }
 0x5b5   : > { %7245 = vmatmul.f32.vlgmr.msra.gmra.mxu1 %v10728_v44 }
 0x5b6   : > { %v6753_v25 = vadd.f32 %v6752_v62, %v6684_v45  ;;  %7326 = vmatmul.f32.gmra.mxu2 %v13760_v7 }
 0x5b7   : > { %7451 = vmatmul.f32.gmra.mxu3 %v10754_v8  ;;  %v6756_v50 = vpop.f32.mrf.mxu3 }
 0x5b8   : > { %v7888_v60 = vadd.f32 %v8267_v18, %v6753_v25  ;;  %v6520_v31 = vpop.f32.mrf.mxu0 }
 0x5b9   : > { %v6606_v10 = vpop.f32.mrf.mxu1  ;;  %v6687_v61 = vpop.f32.mrf.mxu2  ;;  %v6521_v13 = vadd.f32 %v6520_v31, %v12417_v37 }
 0x5ba   : > { %7984 = vst [vmem:[%s11399_s14 + $0x228] sm:$0xff] %v7888_v60  ;;  %v6607_v9 = vadd.f32 %v6606_v10, %v6516_v1  ;;  %v8269_v1 = vld [vmem:[%s8524_s11 + $0x2a8] sm:$0xff] }
 0x5bc   : > { %v6688_v27 = vadd.f32 %v6687_v61, %v6607_v9  ;;  %7184 = vmatmul.f32.gmra.mxu0 %v13677_v48 }
 0x5bd   : > { %7249 = vmatmul.f32.gmra.mxu1 %v10754_v8 }
 0x5be   : > { %v6757_v7 = vadd.f32 %v6756_v50, %v6688_v27  ;;  %7334 = vmatmul.f32.gmra.mxu2 %v13762_v22  ;;  %v13780_v27 = vld [vmem:[#allocation75_spill] sm:$0xff] }
 0x5bf   : > { %7455 = vmatmul.f32.gmra.mxu3 %v13677_v48  ;;  %v6760_v30 = vpop.f32.mrf.mxu3 }
 0x5c0   : > { %v7896_v62 = vadd.f32 %v8268_v46, %v6757_v7  ;;  %v6525_v47 = vpop.f32.mrf.mxu0 }
 0x5c1   : > { %v6612_v34 = vpop.f32.mrf.mxu1  ;;  %v6691_v45 = vpop.f32.mrf.mxu2  ;;  %v6526_v37 = vadd.f32 %v6525_v47, %v12427_v29  ;;  %v8270_v29 = vld [vmem:[%s8524_s11 + $0x2e8] sm:$0xff] }
 0x5c2   : > { %7992 = vst [vmem:[%s11399_s14 + $0x268] sm:$0xff] %v7896_v62  ;;  %v6613_v42 = vadd.f32 %v6612_v34, %v6521_v13 }
 0x5c4   : > { %v6692_v25 = vadd.f32 %v6691_v45, %v6613_v42  ;;  %7188 = vmatmul.f32.gmra.mxu0 %v13765_v41  ;;  %v13781_v45 = vld [vmem:[#allocation57_spill] sm:$0xff] }
 0x5c5   : > { %7253 = vmatmul.f32.gmra.mxu1 %v13677_v48 }
 0x5c6   : > { %v6761_v22 = vadd.f32 %v6760_v30, %v6692_v25  ;;  %7342 = vmatmul.f32.gmra.mxu2 %v13763_v33 }
 0x5c7   : > { %7459 = vmatmul.f32.gmra.mxu3 %v13765_v41  ;;  %v6764_v60 = vpop.f32.mrf.mxu3 }
 0x5c8   : > { %v7904_v18 = vadd.f32 %v8269_v1, %v6761_v22  ;;  %v6793_v31 = vpop.f32.mrf.mxu0 }
 0x5c9   : > { %v6618_v50 = vpop.f32.mrf.mxu1  ;;  %v6695_v9 = vpop.f32.mrf.mxu2  ;;  %v6794_v7 = vadd.f32 %v6793_v31, %v13780_v27 }
 0x5ca   : > { %8000 = vst [vmem:[%s11399_s14 + $0x2a8] sm:$0xff] %v7904_v18  ;;  %v6619_v10 = vadd.f32 %v6618_v50, %v6526_v37 }
 0x5cc   : > { %v6696_v61 = vadd.f32 %v6695_v9, %v6619_v10  ;;  %7192 = vmatmul.f32.gmra.mxu0 %v10851_v3  ;;  %v13782_v10 = vld [vmem:[#allocation72_spill] sm:$0xff] }
 0x5cd   : > { %7257 = vmatmul.f32.gmra.mxu1 %v13765_v41 }
 0x5ce   : > { %v6765_v33 = vadd.f32 %v6764_v60, %v6696_v61  ;;  %7350 = vmatmul.f32.gmra.mxu2 %v13764_v4 }
 0x5cf   : > { %7463 = vmatmul.f32.gmra.mxu3 %v10851_v3  ;;  %v7078_v46 = vpop.f32.mrf.mxu3 }
 0x5d0   : > { %v7912_v13 = vadd.f32 %v8270_v29, %v6765_v33 }
 0x5d1   : > { %v6801_v62 = vpop.f32.mrf.mxu0  ;;  %v6996_v34 = vpop.f32.mrf.mxu2 }
 0x5d2   : > { %8008 = vst [vmem:[%s11399_s14 + $0x2e8] sm:$0xff] %v7912_v13  ;;  %v6922_v30 = vpop.f32.mrf.mxu1  ;;  %v6802_v25 = vadd.f32 %v6801_v62, %v13781_v45 }
 0x5d3   : > { %v6923_v47 = vadd.f32 %v6922_v30, %v6794_v7 }
 0x5d4   : > { %7196 = vmatmul.f32.gmra.mxu0 %v10884_v54 }
 0x5d5   : > { %v6997_v42 = vadd.f32 %v6996_v34, %v6923_v47  ;;  %7261 = vmatmul.f32.gmra.mxu1 %v10851_v3 }
 0x5d6   : > { %7358 = vmatmul.f32.gmra.mxu2 %v13767_v15 }
 0x5d7   : > { %v12522_v22 = vadd.f32 %v7078_v46, %v6997_v42  ;;  %7467 = vmatmul.f32.gmra.mxu3 %v10884_v54 }
 0x5d9   : > { %v6809_v4 = vpop.f32.mrf.mxu0  ;;  %v7001_v18 = vpop.f32.mrf.mxu2 }
 0x5da   : > { %v6926_v37 = vpop.f32.mrf.mxu1  ;;  %v7084_v60 = vpop.f32.mrf.mxu3  ;;  %v6810_v15 = vadd.f32 %v6809_v4, %v13782_v10 }
 0x5db   : > { %v6927_v1 = vadd.f32 %v6926_v37, %v6802_v25  ;;  %v13784_v37 = vld [vmem:[#allocation68_spill] sm:$0xff] }
 0x5dc   : > { %7200 = vmatmul.f32.gmra.mxu0 %v13574_v26 }
 0x5dd   : > { %v7002_v50 = vadd.f32 %v7001_v18, %v6927_v1  ;;  %7265 = vmatmul.f32.gmra.mxu1 %v10884_v54 }
 0x5de   : > { %7366 = vmatmul.f32.gmra.mxu2 %v13769_v52  ;;  %v13783_v52 = vld [vmem:[#allocation9_spill] sm:$0xff] }
 0x5df   : > { %v12528_v31 = vadd.f32 %v7084_v60, %v7002_v50  ;;  %7471 = vmatmul.f32.gmra.mxu3 %v13574_v26 }
 0x5e1   : > { %v6817_v9 = vpop.f32.mrf.mxu0  ;;  %v7006_v7 = vpop.f32.mrf.mxu2 }
 0x5e2   : > { %v6930_v61 = vpop.f32.mrf.mxu1  ;;  %v7090_v29 = vpop.f32.mrf.mxu3  ;;  %v6818_v62 = vadd.f32 %v6817_v9, %v13783_v52 }
 0x5e3   : > { %v6931_v33 = vadd.f32 %v6930_v61, %v6810_v15 }
 0x5e4   : > { %7204 = vmatmul.f32.gmra.mxu0 %v10934_v35 }
 0x5e5   : > { %v7007_v13 = vadd.f32 %v7006_v7, %v6931_v33  ;;  %7269 = vmatmul.f32.gmra.mxu1 %v13574_v26  ;;  %v13785_v7 = vld [vmem:[#allocation8_spill] sm:$0xff] }
 0x5e6   : > { %7374 = vmatmul.f32.gmra.mxu2 %v13771_v51 }
 0x5e7   : > { %v12535_v46 = vadd.f32 %v7090_v29, %v7007_v13  ;;  %7475 = vmatmul.f32.gmra.mxu3 %v10934_v35 }
 0x5e9   : > { %v6825_v30 = vpop.f32.mrf.mxu0  ;;  %v7011_v42 = vpop.f32.mrf.mxu2 }
 0x5ea   : > { %v6934_v47 = vpop.f32.mrf.mxu1  ;;  %v7096_v25 = vpop.f32.mrf.mxu3  ;;  %v6826_v1 = vadd.f32 %v6825_v30, %v13784_v37 }
 0x5eb   : > { %v6935_v34 = vadd.f32 %v6934_v47, %v6818_v62 }
 0x5ec   : > { %7208 = vmatmul.f32.gmra.mxu0 %v10965_v43 }
 0x5ed   : > { %v7012_v4 = vadd.f32 %v7011_v42, %v6935_v34  ;;  %7273 = vmatmul.f32.gmra.mxu1 %v10934_v35 }
 0x5ee   : > { %7382 = vmatmul.f32.gmra.mxu2 %v13773_v21 }
 0x5ef   : > { %v12543_v18 = vadd.f32 %v7096_v25, %v7012_v4  ;;  %7479 = vmatmul.f32.gmra.mxu3 %v10965_v43 }
 0x5f1   : > { %v6833_v51 = vpop.f32.mrf.mxu0  ;;  %v7016_v15 = vpop.f32.mrf.mxu2 }
 0x5f2   : > { %v6938_v60 = vpop.f32.mrf.mxu1  ;;  %v7102_v9 = vpop.f32.mrf.mxu3  ;;  %v6834_v21 = vadd.f32 %v6833_v51, %v13785_v7 }
 0x5f3   : > { %v6939_v50 = vadd.f32 %v6938_v60, %v6826_v1 }
 0x5f4   : > { %7212 = vmatmul.f32.gmra.mxu0 %v10989_v53 }
 0x5f5   : > { %v7017_v61 = vadd.f32 %v7016_v15, %v6939_v50  ;;  %7277 = vmatmul.f32.gmra.mxu1 %v10965_v43 }
 0x5f6   : > { %7390 = vmatmul.f32.gmra.mxu2 %v13775_v39  ;;  %v13786_v39 = vld [vmem:[#allocation70_spill] sm:$0xff] }
 0x5f7   : > { %v12549_v33 = vadd.f32 %v7102_v9, %v7017_v61  ;;  %7483 = vmatmul.f32.gmra.mxu3 %v10989_v53 }
 0x5f9   : > { %v6841_v29 = vpop.f32.mrf.mxu0  ;;  %v7021_v30 = vpop.f32.mrf.mxu2 }
 0x5fa   : > { %v6942_v13 = vpop.f32.mrf.mxu1  ;;  %v7108_v47 = vpop.f32.mrf.mxu3  ;;  %v6842_v25 = vadd.f32 %v6841_v29, %v13786_v39 }
 0x5fb   : > { %v6943_v62 = vadd.f32 %v6942_v13, %v6834_v21 }
 0x5fc   : > { %7216 = vmatmul.f32.gmra.mxu0 %v13778_v36 }
 0x5fd   : > { %v7022_v34 = vadd.f32 %v7021_v30, %v6943_v62  ;;  %7281 = vmatmul.f32.gmra.mxu1 %v10989_v53 }
 0x5fe   : > { %7398 = vmatmul.f32.gmra.mxu2 %v13776_v0 }
 0x5ff   : > { %v12556_v42 = vadd.f32 %v7108_v47, %v7022_v34  ;;  %7487 = vmatmul.f32.gmra.mxu3 %v13778_v36 }
 0x601   : > { %v6849_v4 = vpop.f32.mrf.mxu0  ;;  %v7026_v60 = vpop.f32.mrf.mxu2 }
 0x602   : > { %v6946_v1 = vpop.f32.mrf.mxu1  ;;  %v7114_v50 = vpop.f32.mrf.mxu3  ;;  %v6850_v9 = vadd.f32 %v6849_v4, %v13753_v19 }
 0x603   : > { %v6947_v51 = vadd.f32 %v6946_v1, %v6842_v25 }
 0x604   : > { %7220 = vmatmul.f32.gmra.mxu0 %v11048_v20 }
 0x605   : > { %v7027_v15 = vadd.f32 %v7026_v60, %v6947_v51  ;;  %7285 = vmatmul.f32.gmra.mxu1 %v13778_v36 }
 0x606   : > { %7406 = vmatmul.f32.gmra.mxu2 %v13777_v11 }
 0x607   : > { %v12564_v61 = vadd.f32 %v7114_v50, %v7027_v15  ;;  %7491 = vmatmul.f32.gmra.mxu3 %v11048_v20 }
 0x609   : > { %v6857_v0 = vpop.f32.mrf.mxu0  ;;  %v7031_v13 = vpop.f32.mrf.mxu2 }
 0x60a   : > { %v6950_v21 = vpop.f32.mrf.mxu1  ;;  %v7120_v62 = vpop.f32.mrf.mxu3  ;;  %v6858_v11 = vadd.f32 %v6857_v0, %v11336_v12 }
 0x60b   : > { %v6951_v29 = vadd.f32 %v6950_v21, %v6850_v9 }
 0x60c   : > { %7521 = vmatmul.f32.vlgmr.msrb.gmra.mxu0 %v13527_v32 }
 0x60d   : > { %v7032_v30 = vadd.f32 %v7031_v13, %v6951_v29  ;;  %7289 = vmatmul.f32.gmra.mxu1 %v11048_v20 }
 0x60e   : > { %7702 = vmatmul.f32.vlgmr.msrb.gmra.mxu2 %v10728_v44 }
 0x60f   : > { %v12570_v47 = vadd.f32 %v7120_v62, %v7032_v30  ;;  %7771 = vmatmul.f32.vlgmr.msrb.gmra.mxu3 %v10728_v44 }
 0x611   : > { %v6865_v34 = vpop.f32.mrf.mxu0  ;;  %v7036_v1 = vpop.f32.mrf.mxu2 }
 0x612   : > { %v6954_v25 = vpop.f32.mrf.mxu1  ;;  %v7126_v51 = vpop.f32.mrf.mxu3  ;;  %v6866_v44 = vadd.f32 %v6865_v34, %v13648_v59 }
 0x613   : > { %v6955_v4 = vadd.f32 %v6954_v25, %v6858_v11 }
 0x614   : > { %7526 = vmatmul.f32.gmra.mxu0 %v13532_v17 }
 0x615   : > { %v7037_v60 = vadd.f32 %v7036_v1, %v6955_v4  ;;  %7603 = vmatmul.f32.vlgmr.msrb.gmra.mxu1 %v13647_v56 }
 0x616   : > { %7706 = vmatmul.f32.gmra.mxu2 %v10754_v8 }
 0x617   : > { %v12577_v50 = vadd.f32 %v7126_v51, %v7037_v60  ;;  %7775 = vmatmul.f32.gmra.mxu3 %v10754_v8 }
 0x619   : > { %v6873_v32 = vpop.f32.mrf.mxu0  ;;  %v7041_v0 = vpop.f32.mrf.mxu2 }
 0x61a   : > { %v6958_v15 = vpop.f32.mrf.mxu1  ;;  %v7132_v21 = vpop.f32.mrf.mxu3  ;;  %v6874_v17 = vadd.f32 %v6873_v32, %v13649_v38 }
 0x61b   : > { %v6959_v9 = vadd.f32 %v6958_v15, %v6866_v44  ;;  %v13787_v44 = vld [vmem:[#allocation107_spill] sm:$0xff] }
 0x61c   : > { %7531 = vmatmul.f32.gmra.mxu0 %v13734_v6 }
 0x61d   : > { %v7042_v29 = vadd.f32 %v7041_v0, %v6959_v9  ;;  %7609 = vmatmul.f32.gmra.mxu1 %v13735_v5 }
 0x61e   : > { %7710 = vmatmul.f32.gmra.mxu2 %v13677_v48 }
 0x61f   : > { %v12585_v56 = vadd.f32 %v7132_v21, %v7042_v29  ;;  %7779 = vmatmul.f32.gmra.mxu3 %v13677_v48 }
 0x621   : > { %v6881_v8 = vpop.f32.mrf.mxu0  ;;  %v7046_v30 = vpop.f32.mrf.mxu2 }
 0x622   : > { %v6962_v13 = vpop.f32.mrf.mxu1  ;;  %v7138_v11 = vpop.f32.mrf.mxu3  ;;  %v6882_v5 = vadd.f32 %v6881_v8, %v13738_v14 }
 0x623   : > { %v6963_v62 = vadd.f32 %v6962_v13, %v6874_v17  ;;  %v8271_v17 = vld [vmem:[%s8524_s11 + $0x30] sm:$0xff]  ;;  %v13789_v13 = vld [vmem:[#allocation112_spill] sm:$0xff] }
 0x624   : > { %7536 = vmatmul.f32.gmra.mxu0 %v13736_v24  ;;  %v13788_v24 = vld [vmem:[#allocation105_spill] sm:$0xff] }
 0x625   : > { %v7047_v34 = vadd.f32 %v7046_v30, %v6963_v62  ;;  %7615 = vmatmul.f32.gmra.mxu1 %v13737_v2 }
 0x626   : > { %7714 = vmatmul.f32.gmra.mxu2 %v13765_v41 }
 0x627   : > { %v12591_v6 = vadd.f32 %v7138_v11, %v7047_v34  ;;  %7783 = vmatmul.f32.gmra.mxu3 %v13765_v41 }
 0x629   : > { %v7177_v48 = vpop.f32.mrf.mxu0  ;;  %v7051_v1 = vpop.f32.mrf.mxu2 }
 0x62a   : > { %v6966_v25 = vpop.f32.mrf.mxu1  ;;  %v7144_v51 = vpop.f32.mrf.mxu3  ;;  %v7178_v41 = vadd.f32 %v7177_v48, %v12522_v22  ;;  %v13790_v48 = vld [vmem:[#allocation119_spill] sm:$0xff] }
 0x62b   : > { %v6967_v4 = vadd.f32 %v6966_v25, %v6882_v5 }
 0x62c   : > { %7541 = vmatmul.f32.gmra.mxu0 %v13787_v44 }
 0x62d   : > { %v7052_v60 = vadd.f32 %v7051_v1, %v6967_v4  ;;  %7621 = vmatmul.f32.gmra.mxu1 %v13788_v24 }
 0x62e   : > { %7718 = vmatmul.f32.gmra.mxu2 %v10851_v3 }
 0x62f   : > { %v12598_v2 = vadd.f32 %v7144_v51, %v7052_v60  ;;  %7787 = vmatmul.f32.gmra.mxu3 %v10851_v3 }
 0x631   : > { %v7181_v32 = vpop.f32.mrf.mxu0  ;;  %v7319_v0 = vpop.f32.mrf.mxu2 }
 0x632   : > { %v7246_v15 = vpop.f32.mrf.mxu1  ;;  %v7448_v21 = vpop.f32.mrf.mxu3  ;;  %v7320_v29 = vadd.f32 %v7319_v0, %v13780_v27  ;;  %v7182_v3 = vadd.f32 %v7181_v32, %v12528_v31 }
 0x633   : > { %v7247_v9 = vadd.f32 %v7246_v15, %v7178_v41  ;;  %v13791_v41 = vld [vmem:[#allocation124_spill] sm:$0xff] }
 0x634   : > { %7546 = vmatmul.f32.gmra.mxu0 %v13768_v55  ;;  %v12607_v62 = vadd.f32 %v7448_v21, %v7320_v29  ;;  %v8272_v55 = vld [vmem:[%s8524_s11 + $0x70] sm:$0xff] }
 0x635   : > { %v7825_v8 = vadd.f32 %v8271_v17, %v7247_v9  ;;  %7627 = vmatmul.f32.gmra.mxu1 %v13789_v13  ;;  %v13792_v17 = vld [vmem:[#allocation131_spill] sm:$0xff] }
 0x636   : > { %7722 = vmatmul.f32.gmra.mxu2 %v10884_v54 }
 0x637   : > { %7921 = vst [vmem:[%s11399_s14 + $0x30] sm:$0xff] %v7825_v8  ;;  %7791 = vmatmul.f32.gmra.mxu3 %v10884_v54 }
 0x639   : > { %v7185_v22 = vpop.f32.mrf.mxu0  ;;  %v7327_v11 = vpop.f32.mrf.mxu2 }
 0x63a   : > { %v7250_v30 = vpop.f32.mrf.mxu1  ;;  %v7452_v34 = vpop.f32.mrf.mxu3  ;;  %v7328_v5 = vadd.f32 %v7327_v11, %v13781_v45  ;;  %v7186_v54 = vadd.f32 %v7185_v22, %v12535_v46 }
 0x63b   : > { %v7251_v27 = vadd.f32 %v7250_v30, %v7182_v3 }
 0x63c   : > { %7551 = vmatmul.f32.gmra.mxu0 %v13770_v49  ;;  %v12617_v4 = vadd.f32 %v7452_v34, %v7328_v5  ;;  %v8273_v49 = vld [vmem:[%s8524_s11 + $0xb0] sm:$0xff] }
 0x63d   : > { %v7833_v25 = vadd.f32 %v8272_v55, %v7251_v27  ;;  %7633 = vmatmul.f32.gmra.mxu1 %v13790_v48  ;;  %v13793_v48 = vld [vmem:[#allocation140_spill] sm:$0xff] }
 0x63e   : > { %7726 = vmatmul.f32.gmra.mxu2 %v13574_v26 }
 0x63f   : > { %7929 = vst [vmem:[%s11399_s14 + $0x70] sm:$0xff] %v7833_v25  ;;  %7795 = vmatmul.f32.gmra.mxu3 %v13574_v26 }
 0x641   : > { %v7189_v31 = vpop.f32.mrf.mxu0  ;;  %v7335_v51 = vpop.f32.mrf.mxu2 }
 0x642   : > { %v7254_v1 = vpop.f32.mrf.mxu1  ;;  %v7456_v60 = vpop.f32.mrf.mxu3  ;;  %v7336_v44 = vadd.f32 %v7335_v51, %v13782_v10  ;;  %v7190_v26 = vadd.f32 %v7189_v31, %v12543_v18 }
 0x643   : > { %v7255_v45 = vadd.f32 %v7254_v1, %v7186_v54 }
 0x644   : > { %7556 = vmatmul.f32.gmra.mxu0 %v13772_v58  ;;  %v12627_v32 = vadd.f32 %v7456_v60, %v7336_v44  ;;  %v8274_v58 = vld [vmem:[%s8524_s11 + $0xf0] sm:$0xff]  ;;  %v13794_v44 = vld [vmem:[#allocation143_spill] sm:$0xff] }
 0x645   : > { %v7841_v24 = vadd.f32 %v8273_v49, %v7255_v45  ;;  %7639 = vmatmul.f32.gmra.mxu1 %v13791_v41 }
 0x646   : > { %7730 = vmatmul.f32.gmra.mxu2 %v10934_v35 }
 0x647   : > { %7937 = vst [vmem:[%s11399_s14 + $0xb0] sm:$0xff] %v7841_v24  ;;  %7799 = vmatmul.f32.gmra.mxu3 %v10934_v35 }
 0x649   : > { %v7193_v46 = vpop.f32.mrf.mxu0  ;;  %v7343_v9 = vpop.f32.mrf.mxu2 }
 0x64a   : > { %v7258_v15 = vpop.f32.mrf.mxu1  ;;  %v7460_v0 = vpop.f32.mrf.mxu3  ;;  %v7344_v21 = vadd.f32 %v7343_v9, %v13783_v52  ;;  %v7194_v35 = vadd.f32 %v7193_v46, %v12549_v33  ;;  %v8278_v46 = vld [vmem:[%s8524_s11 + $0x1f0] sm:$0xff] }
 0x64b   : > { %v7259_v10 = vadd.f32 %v7258_v15, %v7190_v26 }
 0x64c   : > { %7561 = vmatmul.f32.gmra.mxu0 %v13774_v63  ;;  %v12637_v8 = vadd.f32 %v7460_v0, %v7344_v21  ;;  %v8275_v63 = vld [vmem:[%s8524_s11 + $0x130] sm:$0xff] }
 0x64d   : > { %v7849_v29 = vadd.f32 %v8274_v58, %v7259_v10  ;;  %7645 = vmatmul.f32.gmra.mxu1 %v13792_v17 }
 0x64e   : > { %7734 = vmatmul.f32.gmra.mxu2 %v10965_v43 }
 0x64f   : > { %7945 = vst [vmem:[%s11399_s14 + $0xf0] sm:$0xff] %v7849_v29  ;;  %7803 = vmatmul.f32.gmra.mxu3 %v10965_v43 }
 0x651   : > { %v7197_v18 = vpop.f32.mrf.mxu0  ;;  %v7351_v3 = vpop.f32.mrf.mxu2 }
 0x652   : > { %v7262_v13 = vpop.f32.mrf.mxu1  ;;  %v7464_v22 = vpop.f32.mrf.mxu3  ;;  %v7352_v30 = vadd.f32 %v7351_v3, %v13784_v37  ;;  %v7198_v43 = vadd.f32 %v7197_v18, %v12556_v42 }
 0x653   : > { %v7263_v52 = vadd.f32 %v7262_v13, %v7194_v35 }
 0x654   : > { %7566 = vmatmul.f32.gmra.mxu0 %v13749_v28  ;;  %v12647_v11 = vadd.f32 %v7464_v22, %v7352_v30  ;;  %v8276_v28 = vld [vmem:[%s8524_s11 + $0x170] sm:$0xff] }
 0x655   : > { %v7857_v27 = vadd.f32 %v8275_v63, %v7263_v52  ;;  %7651 = vmatmul.f32.gmra.mxu1 %v13750_v23  ;;  %v8280_v30 = vld [vmem:[%s8524_s11 + $0x270] sm:$0xff] }
 0x656   : > { %7738 = vmatmul.f32.gmra.mxu2 %v10989_v53 }
 0x657   : > { %7953 = vst [vmem:[%s11399_s14 + $0x130] sm:$0xff] %v7857_v27  ;;  %7807 = vmatmul.f32.gmra.mxu3 %v10989_v53 }
 0x659   : > { %v7201_v33 = vpop.f32.mrf.mxu0  ;;  %v7359_v5 = vpop.f32.mrf.mxu2 }
 0x65a   : > { %v7266_v34 = vpop.f32.mrf.mxu1  ;;  %v7468_v55 = vpop.f32.mrf.mxu3  ;;  %v7360_v25 = vadd.f32 %v7359_v5, %v13785_v7  ;;  %v7202_v53 = vadd.f32 %v7201_v33, %v12564_v61 }
 0x65b   : > { %v7267_v37 = vadd.f32 %v7266_v34, %v7198_v43 }
 0x65c   : > { %7571 = vmatmul.f32.gmra.mxu0 %v13606_v40  ;;  %v12657_v54 = vadd.f32 %v7468_v55, %v7360_v25  ;;  %v8277_v40 = vld [vmem:[%s8524_s11 + $0x1b0] sm:$0xff] }
 0x65d   : > { %v7865_v23 = vadd.f32 %v8276_v28, %v7267_v37  ;;  %7657 = vmatmul.f32.gmra.mxu1 %v13793_v48  ;;  %v8281_v55 = vld [vmem:[%s8524_s11 + $0x2b0] sm:$0xff] }
 0x65e   : > { %7742 = vmatmul.f32.gmra.mxu2 %v13778_v36 }
 0x65f   : > { %7961 = vst [vmem:[%s11399_s14 + $0x170] sm:$0xff] %v7865_v23  ;;  %7811 = vmatmul.f32.gmra.mxu3 %v13778_v36 }
 0x661   : > { %v7205_v42 = vpop.f32.mrf.mxu0  ;;  %v7367_v1 = vpop.f32.mrf.mxu2 }
 0x662   : > { %v7270_v31 = vpop.f32.mrf.mxu1  ;;  %v7472_v45 = vpop.f32.mrf.mxu3  ;;  %v7368_v51 = vadd.f32 %v7367_v1, %v13786_v39  ;;  %v7206_v36 = vadd.f32 %v7205_v42, %v12570_v47 }
 0x663   : > { %v7271_v7 = vadd.f32 %v7270_v31, %v7202_v53 }
 0x664   : > { %7576 = vmatmul.f32.gmra.mxu0 %v13779_v57  ;;  %v12667_v49 = vadd.f32 %v7472_v45, %v7368_v51 }
 0x665   : > { %v7873_v60 = vadd.f32 %v8277_v40, %v7271_v7  ;;  %7663 = vmatmul.f32.gmra.mxu1 %v13794_v44  ;;  %v8282_v7 = vld [vmem:[%s8524_s11 + $0x2f0] sm:$0xff] }
 0x666   : > { %7746 = vmatmul.f32.gmra.mxu2 %v11048_v20 }
 0x667   : > { %7969 = vst [vmem:[%s11399_s14 + $0x1b0] sm:$0xff] %v7873_v60  ;;  %7815 = vmatmul.f32.gmra.mxu3 %v11048_v20 }
 0x669   : > { %v7209_v61 = vpop.f32.mrf.mxu0  ;;  %v7375_v41 = vpop.f32.mrf.mxu2 }
 0x66a   : > { %v7274_v24 = vpop.f32.mrf.mxu1  ;;  %v7476_v26 = vpop.f32.mrf.mxu3  ;;  %v7376_v57 = vadd.f32 %v7375_v41, %v13753_v19  ;;  %v7210_v20 = vadd.f32 %v7209_v61, %v12577_v50  ;;  %v8279_v19 = vld [vmem:[%s8524_s11 + $0x230] sm:$0xff] }
 0x66b   : > { %v7275_v39 = vadd.f32 %v7274_v24, %v7206_v36 }
 0x66c   : > { %v12676_v10 = vadd.f32 %v7476_v26, %v7376_v57 }
 0x66d   : > { %v7881_v15 = vadd.f32 %v8278_v46, %v7275_v39  ;;  %7669 = vmatmul.f32.gmra.mxu1 %v13754_v16 }
 0x66f   : > { %7977 = vst [vmem:[%s11399_s14 + $0x1f0] sm:$0xff] %v7881_v15 }
 0x671   : > { %v7213_v9 = vpop.f32.mrf.mxu0  ;;  %v7383_v21 = vpop.f32.mrf.mxu2 }
 0x672   : > { %v7278_v47 = vpop.f32.mrf.mxu1  ;;  %v7480_v58 = vpop.f32.mrf.mxu3  ;;  %v7384_v29 = vadd.f32 %v7383_v21, %v11336_v12  ;;  %v7214_v16 = vadd.f32 %v7213_v9, %v12585_v56 }
 0x673   : > { %v7279_v0 = vadd.f32 %v7278_v47, %v7210_v20  ;;  %v8284_v47 = vld [vmem:[%s8524_s11 + $0x78] sm:$0xff] }
 0x674   : > { %v12682_v35 = vadd.f32 %v7480_v58, %v7384_v29 }
 0x675   : > { %v7889_v17 = vadd.f32 %v8279_v19, %v7279_v0 }
 0x677   : > { %7985 = vst [vmem:[%s11399_s14 + $0x230] sm:$0xff] %v7889_v17 }
 0x679   : > { %v7217_v18 = vpop.f32.mrf.mxu0  ;;  %v7391_v52 = vpop.f32.mrf.mxu2 }
 0x67a   : > { %v7282_v13 = vpop.f32.mrf.mxu1  ;;  %v7484_v3 = vpop.f32.mrf.mxu3  ;;  %v7392_v22 = vadd.f32 %v7391_v52, %v13648_v59  ;;  %v7218_v12 = vadd.f32 %v7217_v18, %v12591_v6 }
 0x67b   : > { %v7283_v50 = vadd.f32 %v7282_v13, %v7214_v16  ;;  %v8285_v13 = vld [vmem:[%s8524_s11 + $0xb8] sm:$0xff] }
 0x67c   : > { %v12688_v27 = vadd.f32 %v7484_v3, %v7392_v22 }
 0x67d   : > { %v7897_v63 = vadd.f32 %v8280_v30, %v7283_v50 }
 0x67f   : > { %7993 = vst [vmem:[%s11399_s14 + $0x270] sm:$0xff] %v7897_v63 }
 0x681   : > { %v7221_v43 = vpop.f32.mrf.mxu0  ;;  %v7399_v34 = vpop.f32.mrf.mxu2 }
 0x682   : > { %v7286_v33 = vpop.f32.mrf.mxu1  ;;  %v7488_v37 = vpop.f32.mrf.mxu3  ;;  %v7400_v5 = vadd.f32 %v7399_v34, %v13649_v38  ;;  %v7222_v59 = vadd.f32 %v7221_v43, %v12598_v2 }
 0x683   : > { %v7287_v56 = vadd.f32 %v7286_v33, %v7218_v12  ;;  %v8286_v33 = vld [vmem:[%s8524_s11 + $0xf8] sm:$0xff] }
 0x684   : > { %v12694_v28 = vadd.f32 %v7488_v37, %v7400_v5 }
 0x685   : > { %v7905_v25 = vadd.f32 %v8281_v55, %v7287_v56 }
 0x687   : > { %8001 = vst [vmem:[%s11399_s14 + $0x2b0] sm:$0xff] %v7905_v25 }
 0x689   : > { %v7522_v48 = vpop.f32.mrf.mxu0  ;;  %v7407_v6 = vpop.f32.mrf.mxu2 }
 0x68a   : > { %v7290_v23 = vpop.f32.mrf.mxu1  ;;  %v7492_v42 = vpop.f32.mrf.mxu3  ;;  %v7408_v31 = vadd.f32 %v7407_v6, %v13738_v14  ;;  %v7523_v38 = vadd.f32 %v7522_v48, %v12607_v62  ;;  %v8283_v14 = vld [vmem:[%s8524_s11 + $0x38] sm:$0xff] }
 0x68b   : > { %v7291_v53 = vadd.f32 %v7290_v23, %v7222_v59  ;;  %v8287_v48 = vld [vmem:[%s8524_s11 + $0x138] sm:$0xff] }
 0x68c   : > { %v12700_v45 = vadd.f32 %v7492_v42, %v7408_v31 }
 0x68d   : > { %v7913_v1 = vadd.f32 %v8282_v7, %v7291_v53 }
 0x68f   : > { %8009 = vst [vmem:[%s11399_s14 + $0x2f0] sm:$0xff] %v7913_v1 }
 0x691   : > { %v7527_v51 = vpop.f32.mrf.mxu0  ;;  %v7703_v2 = vpop.f32.mrf.mxu2 }
 0x692   : > { %v7604_v40 = vpop.f32.mrf.mxu1  ;;  %v7772_v44 = vpop.f32.mrf.mxu3  ;;  %v7528_v24 = vadd.f32 %v7527_v51, %v12617_v4 }
 0x693   : > { %v7605_v60 = vadd.f32 %v7604_v40, %v7523_v38  ;;  %v8288_v40 = vld [vmem:[%s8524_s11 + $0x178] sm:$0xff] }
 0x695   : > { %v7704_v36 = vadd.f32 %v7703_v2, %v7605_v60 }
 0x697   : > { %v7773_v61 = vadd.f32 %v7772_v44, %v7704_v36 }
 0x699   : > { %v7826_v39 = vadd.f32 %v8283_v14, %v7773_v61  ;;  %v7532_v41 = vpop.f32.mrf.mxu0  ;;  %v7707_v46 = vpop.f32.mrf.mxu2 }
 0x69a   : > { %v7610_v26 = vpop.f32.mrf.mxu1  ;;  %v7776_v62 = vpop.f32.mrf.mxu3  ;;  %v7533_v9 = vadd.f32 %v7532_v41, %v12627_v32  ;;  %v8289_v41 = vld [vmem:[%s8524_s11 + $0x1b8] sm:$0xff] }
 0x69b   : > { %7922 = vst [vmem:[%s11399_s14 + $0x38] sm:$0xff] %v7826_v39  ;;  %v7611_v57 = vadd.f32 %v7610_v26, %v7528_v24 }
 0x69d   : > { %v7708_v15 = vadd.f32 %v7707_v46, %v7611_v57 }
 0x69f   : > { %v7777_v20 = vadd.f32 %v7776_v62, %v7708_v15 }
 0x6a1   : > { %v7834_v0 = vadd.f32 %v8284_v47, %v7777_v20  ;;  %v7537_v21 = vpop.f32.mrf.mxu0  ;;  %v7711_v29 = vpop.f32.mrf.mxu2 }
 0x6a2   : > { %v7616_v58 = vpop.f32.mrf.mxu1  ;;  %v7780_v19 = vpop.f32.mrf.mxu3  ;;  %v7538_v18 = vadd.f32 %v7537_v21, %v12637_v8 }
 0x6a3   : > { %7930 = vst [vmem:[%s11399_s14 + $0x78] sm:$0xff] %v7834_v0  ;;  %v7617_v4 = vadd.f32 %v7616_v58, %v7533_v9  ;;  %v8290_v0 = vld [vmem:[%s8524_s11 + $0x1f8] sm:$0xff] }
 0x6a5   : > { %v7712_v17 = vadd.f32 %v7711_v29, %v7617_v4 }
 0x6a7   : > { %v7781_v16 = vadd.f32 %v7780_v19, %v7712_v17 }
 0x6a9   : > { %v7842_v50 = vadd.f32 %v8285_v13, %v7781_v16  ;;  %v7542_v52 = vpop.f32.mrf.mxu0  ;;  %v7715_v22 = vpop.f32.mrf.mxu2  ;;  %v8291_v13 = vld [vmem:[%s8524_s11 + $0x238] sm:$0xff] }
 0x6aa   : > { %v7622_v3 = vpop.f32.mrf.mxu1  ;;  %v7784_v30 = vpop.f32.mrf.mxu3  ;;  %v7543_v43 = vadd.f32 %v7542_v52, %v12647_v11 }
 0x6ab   : > { %7938 = vst [vmem:[%s11399_s14 + $0xb8] sm:$0xff] %v7842_v50  ;;  %v7623_v32 = vadd.f32 %v7622_v3, %v7538_v18 }
 0x6ad   : > { %v7716_v63 = vadd.f32 %v7715_v22, %v7623_v32 }
 0x6af   : > { %v7785_v12 = vadd.f32 %v7784_v30, %v7716_v63 }
 0x6b1   : > { %v7850_v56 = vadd.f32 %v8286_v33, %v7785_v12  ;;  %v7547_v34 = vpop.f32.mrf.mxu0  ;;  %v7719_v5 = vpop.f32.mrf.mxu2 }
 0x6b2   : > { %v7628_v37 = vpop.f32.mrf.mxu1  ;;  %v7788_v55 = vpop.f32.mrf.mxu3  ;;  %v7548_v23 = vadd.f32 %v7547_v34, %v12657_v54 }
 0x6b3   : > { %7946 = vst [vmem:[%s11399_s14 + $0xf8] sm:$0xff] %v7850_v56  ;;  %v7629_v8 = vadd.f32 %v7628_v37, %v7543_v43  ;;  %v8292_v43 = vld [vmem:[%s8524_s11 + $0x278] sm:$0xff] }
 0x6b5   : > { %v7720_v25 = vadd.f32 %v7719_v5, %v7629_v8 }
 0x6b7   : > { %v7789_v59 = vadd.f32 %v7788_v55, %v7720_v25 }
 0x6b9   : > { %v7858_v53 = vadd.f32 %v8287_v48, %v7789_v59  ;;  %v7552_v6 = vpop.f32.mrf.mxu0  ;;  %v7723_v31 = vpop.f32.mrf.mxu2  ;;  %v8293_v59 = vld [vmem:[%s8524_s11 + $0x2b8] sm:$0xff] }
 0x6ba   : > { %v7634_v42 = vpop.f32.mrf.mxu1  ;;  %v7792_v7 = vpop.f32.mrf.mxu3  ;;  %v7553_v51 = vadd.f32 %v7552_v6, %v12667_v49 }
 0x6bb   : > { %7954 = vst [vmem:[%s11399_s14 + $0x138] sm:$0xff] %v7858_v53  ;;  %v7635_v11 = vadd.f32 %v7634_v42, %v7548_v23 }
 0x6bd   : > { %v7724_v1 = vadd.f32 %v7723_v31, %v7635_v11 }
 0x6bf   : > { %v7793_v38 = vadd.f32 %v7792_v7, %v7724_v1 }
 0x6c1   : > { %v7866_v60 = vadd.f32 %v8288_v40, %v7793_v38  ;;  %v7557_v2 = vpop.f32.mrf.mxu0  ;;  %v7727_v36 = vpop.f32.mrf.mxu2 }
 0x6c2   : > { %v7640_v44 = vpop.f32.mrf.mxu1  ;;  %v7796_v61 = vpop.f32.mrf.mxu3  ;;  %v7558_v39 = vadd.f32 %v7557_v2, %v12676_v10 }
 0x6c3   : > { %7962 = vst [vmem:[%s11399_s14 + $0x178] sm:$0xff] %v7866_v60  ;;  %v7641_v54 = vadd.f32 %v7640_v44, %v7553_v51 }
 0x6c5   : > { %v7728_v24 = vadd.f32 %v7727_v36, %v7641_v54 }
 0x6c7   : > { %v7797_v14 = vadd.f32 %v7796_v61, %v7728_v24 }
 0x6c9   : > { %v7874_v26 = vadd.f32 %v8289_v41, %v7797_v14  ;;  %v7562_v57 = vpop.f32.mrf.mxu0  ;;  %v7731_v62 = vpop.f32.mrf.mxu2 }
 0x6ca   : > { %v7646_v46 = vpop.f32.mrf.mxu1  ;;  %v7800_v15 = vpop.f32.mrf.mxu3  ;;  %v7563_v47 = vadd.f32 %v7562_v57, %v12682_v35 }
 0x6cb   : > { %7970 = vst [vmem:[%s11399_s14 + $0x1b8] sm:$0xff] %v7874_v26  ;;  %v7647_v49 = vadd.f32 %v7646_v46, %v7558_v39 }
 0x6cd   : > { %v7732_v20 = vadd.f32 %v7731_v62, %v7647_v49 }
 0x6cf   : > { %v7801_v9 = vadd.f32 %v7800_v15, %v7732_v20 }
 0x6d1   : > { %v7882_v21 = vadd.f32 %v8290_v0, %v7801_v9  ;;  %v7567_v58 = vpop.f32.mrf.mxu0  ;;  %v7735_v29 = vpop.f32.mrf.mxu2 }
 0x6d2   : > { %v7652_v4 = vpop.f32.mrf.mxu1  ;;  %v7804_v19 = vpop.f32.mrf.mxu3  ;;  %v7568_v18 = vadd.f32 %v7567_v58, %v12688_v27 }
 0x6d3   : > { %7978 = vst [vmem:[%s11399_s14 + $0x1f8] sm:$0xff] %v7882_v21  ;;  %v7653_v10 = vadd.f32 %v7652_v4, %v7563_v47 }
 0x6d5   : > { %v7736_v17 = vadd.f32 %v7735_v29, %v7653_v10 }
 0x6d7   : > { %v7805_v16 = vadd.f32 %v7804_v19, %v7736_v17 }
 0x6d9   : > { %v7890_v50 = vadd.f32 %v8291_v13, %v7805_v16  ;;  %v7739_v35 = vpop.f32.mrf.mxu2  ;;  %v7572_v22 = vpop.f32.mrf.mxu0 }
 0x6da   : > { %v7658_v52 = vpop.f32.mrf.mxu1  ;;  %v7808_v32 = vpop.f32.mrf.mxu3  ;;  %v7573_v12 = vadd.f32 %v7572_v22, %v12694_v28 }
 0x6db   : > { %7986 = vst [vmem:[%s11399_s14 + $0x238] sm:$0xff] %v7890_v50  ;;  %v7659_v3 = vadd.f32 %v7658_v52, %v7568_v18 }
 0x6dd   : > { %v7740_v30 = vadd.f32 %v7739_v35, %v7659_v3 }
 0x6df   : > { %v7809_v63 = vadd.f32 %v7808_v32, %v7740_v30 }
 0x6e1   : > { %v7898_v33 = vadd.f32 %v8292_v43, %v7809_v63  ;;  %v7743_v34 = vpop.f32.mrf.mxu2  ;;  %v7577_v5 = vpop.f32.mrf.mxu0 }
 0x6e2   : > { %v7664_v56 = vpop.f32.mrf.mxu1  ;;  %v7812_v37 = vpop.f32.mrf.mxu3  ;;  %v7578_v25 = vadd.f32 %v7577_v5, %v12700_v45  ;;  %v8294_v45 = vld [vmem:[%s8524_s11 + $0x2f8] sm:$0xff] }
 0x6e3   : > { %7994 = vst [vmem:[%s11399_s14 + $0x278] sm:$0xff] %v7898_v33  ;;  %v7665_v27 = vadd.f32 %v7664_v56, %v7573_v12 }
 0x6e5   : > { %v7744_v8 = vadd.f32 %v7743_v34, %v7665_v27 }
 0x6e7   : > { %v7813_v55 = vadd.f32 %v7812_v37, %v7744_v8 }
 0x6e9   : > { %v7906_v23 = vadd.f32 %v8293_v59, %v7813_v55  ;;  %v7747_v53 = vpop.f32.mrf.mxu2 }
 0x6ea   : > { %v7670_v28 = vpop.f32.mrf.mxu1  ;;  %v7816_v6 = vpop.f32.mrf.mxu3 }
 0x6eb   : > { %8002 = vst [vmem:[%s11399_s14 + $0x2b8] sm:$0xff] %v7906_v23  ;;  %v7671_v48 = vadd.f32 %v7670_v28, %v7578_v25 }
 0x6ed   : > { %v7748_v42 = vadd.f32 %v7747_v53, %v7671_v48 }
 0x6ef   : > { %v7817_v11 = vadd.f32 %v7816_v6, %v7748_v42 }
 0x6f1   : > { %v7914_v31 = vadd.f32 %v8294_v45, %v7817_v11 }
 0x6f3   : > { %8010 = vst [vmem:[%s11399_s14 + $0x2f8] sm:$0xff] %v7914_v31 }
 0x6f4   : > { %8352 = shalt.err (!%p8349_p13)
}
 0x6f5   : > { %s8412_s28 = smov 1024   ;;  %s8413_s11 = smov 64  }
 0x6f6   : > { %8131 = dma.vmem_to_hbm [thread:$0]  (%p8495_p9), %s8027_s21, 12288, %s8029_s24, %s8012_s25, %s8412_s28, %s8412_s28, %s8413_s11  }
 0x6f7 PF: > { %s8043_s14 = sand.u32 1, %s8387_s18   ;;  %p8138_p0 = pnand %p8119_p12, %p8502_p11 }
 0x6f8   : > { %s8044_s15 = scalar_lea.sflag [#allocation4], %s8043_s14 }
 0x6f9   : > { %p8139_p1 = pneg %p8138_p0 }
 0x6fb   : > { %8382 = dma.done.wait (%p8139_p1), %s8044_s15, 12288  }
 0x6fc   : > { %8384 = vsyncadd (%p8139_p1), %s8044_s15, 4294955008  ;;  %s21_s23 = sadd.s32 1, %s8407_s23   ;;  %s13795_s18 = smov %s8391_s19 }
 0x6fd   : > { %p18_p2 = scmp.ge.s32.totalorder %s21_s23, 4   ;;  %s13796_s19 = smov %s8395_s20 }
 0x6fe   : > { %s13797_s20 = smov %s8500_s7  ;;  %s13798_s21 = smov %s8403_s22 }
 0x6ff   : > { %s13799_s22 = smov %s13801_s26  ;;  %20 = sbr.rel (!%p18_p2) target bundleno = 6 (0x6), region = 85 }
 0x704   :  { %8050 = vsyncpa [#allocation3], 1 }
 0x705   :  { %8052 = vsyncpa [#allocation3 + $0x1], 1 }
 0x706   :  { %8053 = vsyncpa [#allocation4], 1 }
 0x707   :  { %8055 = vsyncpa [#allocation4 + $0x1], 1 }

</bundles_post_ra>
